<compile_context>
chip_gen: v7x
topology: tpu7x:2x2x1
jax: 0.10.0
libtpu: 0.0.40
codegen_flags: <defaults>
</compile_context>

<pallas_src>
import functools

import jax
import jax.numpy as jnp
from jax import lax
from jax.experimental import pallas as pl
from jax.experimental.pallas import tpu as pltpu


# ------------------------------ fused kernel -------------------------------- #

def _make_kernel(h1, h2):
    """Build the kernel specialised (at trace time) to the conv1/conv2 grid sizes."""

    def kernel(x_ref, w1_ref, b1_ref, w2_ref, b2_ref, w3_ref, b3_ref,
               wl_ref, bl_ref, o_ref, y1_sc):
        f32 = jnp.float32
        cdt = x_ref.dtype
        tb = x_ref.shape[0]
        c16 = x_ref.shape[3]
        n1 = h1 * h1

        # conv1 (8x8 / stride 4) == 2x2 / stride 1 on the 4x4 space-to-depth grid.
        # 4 tap matmuls with M = tb*h1*h1, K = 16*cin, N = 32; f32 accumulation.
        acc1 = jnp.zeros((tb * n1, 32), f32)
        for t, (ro, co) in enumerate(((0, 0), (0, 1), (1, 0), (1, 1))):
            tap = x_ref[:, ro:ro + h1, co:co + h1, :]               # (tb, h1, h1, 16*cin)
            acc1 = acc1 + jnp.dot(tap.reshape(tb * n1, c16), w1_ref[t],
                                  preferred_element_type=f32)
        y1 = jnp.maximum(acc1 + b1_ref[...], 0.0).astype(cdt)       # (tb*n1, 32)
        y1_sc[...] = y1.reshape(tb, n1, 32)                         # (b, i*h1+j, c)

        # conv2 (4x4 / stride 2): one matmul per output position, the 4x4x32 window
        # lane-concatenated into K = 512; M = tb, N = 64.
        w2 = w2_ref[...]                                            # (512, 64), resident
        cols = []
        for oi in range(h2):
            for oj in range(h2):
                win = jnp.concatenate(
                    [y1_sc[:, (2 * oi + ki) * h1 + (2 * oj + kj), :]
                     for ki in range(4) for kj in range(4)], axis=-1)      # (tb, 512)
                cols.append(jnp.dot(win, w2, preferred_element_type=f32))  # (tb, 64)
        y2 = jnp.concatenate(cols, axis=-1) + b2_ref[...]           # (tb, h2*h2*64)
        y2 = jnp.maximum(y2, 0.0).astype(cdt)

        # conv3 (3x3 / stride 1 on the 3x3 map -> 1x1): ONE matmul with K = 576.
        y3 = jnp.dot(y2, w3_ref[...], preferred_element_type=f32) + b3_ref[...]
        y3 = jnp.maximum(y3, 0.0).astype(cdt)                       # (tb, 64)

        # linear + ReLU, lane-padded to 128 -> unmasked (tb, 128) store.
        out = jnp.dot(y3, wl_ref[...], preferred_element_type=f32) + bl_ref[...]
        o_ref[...] = jnp.maximum(out, 0.0).astype(o_ref.dtype)

    return kernel


# ------------------------------ JAX wrapper ---------------------------------- #

def _pick_tb(bsz):
    """Batch tile: large M for the MXU, but >=2 grid steps when the batch allows
    (v7x shards a 'parallel' grid axis over its two TensorCores)."""
    ceil8 = lambda v: -(-v // 8) * 8
    if bsz >= 256:
        return 128
    if bsz <= 8:
        return ceil8(bsz)
    return ceil8(-(-bsz // 2))


@functools.partial(jax.jit, static_argnames=("compute_dtype",))
def naturecnn_forward(obs_nchw, params, compute_dtype=jnp.bfloat16):
    """Equivalent of NatureCNN_Module.forward with use_cnn_feat=False."""
    bsz, cin, h, w = obs_nchw.shape
    assert h == w and h % 4 == 0, "obs_size must be square and divisible by 4"
    hs = h // 4                       # space-to-depth grid
    h1 = hs - 1                       # conv1 output (k=8, s=4)
    h2 = (h1 - 4) // 2 + 1            # conv2 output (k=4, s=2)
    h3 = h2 - 2                       # conv3 output (k=3, s=1)
    assert h1 >= 4 and (h1 - 4) % 2 == 0 and h2 == 3 and h3 == 1, \
        "kernel specialised to 1x1 post-conv spatial (obs_size=36)"

    cdt, f32 = compute_dtype, jnp.float32
    tb = _pick_tb(bsz)
    bsz_pad = -(-bsz // tb) * tb

    # --- observation relayout (pure permutation + cast, no data duplication) ---
    x = jnp.transpose(obs_nchw, (0, 2, 3, 1))                               # NHWC
    x = x.reshape(bsz, hs, 4, hs, 4, cin).transpose(0, 1, 3, 2, 4, 5)
    x = x.reshape(bsz, hs, hs, 16 * cin).astype(cdt)                        # space-to-depth
    if bsz_pad != bsz:
        x = jnp.pad(x, ((0, bsz_pad - bsz), (0, 0), (0, 0), (0, 0)))

    # --- weight relayouts (tiny, once per call) ---
    w1 = params["w1"].reshape(2, 4, 2, 4, cin, 32).transpose(0, 2, 1, 3, 4, 5)
    w1 = w1.reshape(4, 16 * cin, 32).astype(cdt)                            # per-tap (48, 32)
    w2 = params["w2"].reshape(16 * 32, 64).astype(cdt)                      # (512, 64)
    w3 = params["w3"].reshape(h2 * h2 * 64, 64).astype(cdt)                 # (576, 64)

    rep = params["wl"].shape[1]
    npad = -(-rep // 128) * 128
    wl = jnp.zeros((params["wl"].shape[0], npad), cdt).at[:, :rep].set(
        params["wl"].astype(cdt))
    bl = jnp.zeros((1, npad), f32).at[:, :rep].set(params["bl"].astype(f32))

    b1 = params["b1"].reshape(1, 32).astype(f32)
    b2 = jnp.tile(params["b2"].reshape(1, 64).astype(f32), (1, h2 * h2))    # lane order (pos, c)
    b3 = params["b3"].reshape(1, 64).astype(f32)

    full = lambda a: pl.BlockSpec(a.shape, lambda i, _n=a.ndim: (0,) * _n)

    out = pl.pallas_call(
        _make_kernel(h1, h2),
        out_shape=jax.ShapeDtypeStruct((bsz_pad, npad), jnp.float32),
        grid=(bsz_pad // tb,),
        in_specs=[
            pl.BlockSpec((tb, hs, hs, 16 * cin), lambda i: (i, 0, 0, 0)),
            full(w1), full(b1), full(w2), full(b2), full(w3), full(b3),
            full(wl), full(bl),
        ],
        out_specs=pl.BlockSpec((tb, npad), lambda i: (i, 0)),
        scratch_shapes=[pltpu.VMEM((tb, h1 * h1, 32), cdt)],
        compiler_params=pltpu.CompilerParams(
            dimension_semantics=("parallel",),
            vmem_limit_bytes=48 * 1024 * 1024,
        ),
    )(x, w1, b1, w2, b2, w3, b3, wl, bl)

    return out[:bsz, :rep]


# ------------------------------ params / reference --------------------------- #

def init_params(key, obs_channels, n_flatten, rep_dim):
    ks = jax.random.split(key, 8)

    def winit(k, shape, fan_in):
        return jax.random.normal(k, shape, jnp.float32) / jnp.sqrt(float(fan_in))

    return {
        "w1": winit(ks[0], (8, 8, obs_channels, 32), 8 * 8 * obs_channels),
        "b1": 0.01 * jax.random.normal(ks[1], (32,), jnp.float32),
        "w2": winit(ks[2], (4, 4, 32, 64), 4 * 4 * 32),
        "b2": 0.01 * jax.random.normal(ks[3], (64,), jnp.float32),
        "w3": winit(ks[4], (3, 3, 64, 64), 3 * 3 * 64),
        "b3": 0.01 * jax.random.normal(ks[5], (64,), jnp.float32),
        "wl": winit(ks[6], (n_flatten, rep_dim), n_flatten),
        "bl": 0.01 * jax.random.normal(ks[7], (rep_dim,), jnp.float32),
    }


def reference_forward(obs_nchw, params):
    x = jnp.transpose(obs_nchw, (0, 2, 3, 1))

    def conv(x, w, b, s):
        y = lax.conv_general_dilated(
            x, w, (s, s), "VALID", dimension_numbers=("NHWC", "HWIO", "NHWC"))
        return jax.nn.relu(y + b)

    x = conv(x, params["w1"], params["b1"], 4)
    x = conv(x, params["w2"], params["b2"], 2)
    x = conv(x, params["w3"], params["b3"], 1)
    x = jnp.transpose(x, (0, 3, 1, 2)).reshape(x.shape[0], -1)   # torch Flatten (NCHW)
    return jax.nn.relu(x @ params["wl"] + params["bl"])


# ------------------------------------ main ----------------------------------- #

if __name__ == "__main__":
    # obs_size=36 is the smallest square size the 8/4 -> 4/2 -> 3/1 conv stack reduces
    # to 1x1 spatial (36 -> 8 -> 3 -> 1); n_flatten = 64.  batch=16 -> TB=8, grid=(2,).
    batch, obs_channels, obs_size, rep_dim = 16, 3, 36, 32
    n_flatten = 64

    key = jax.random.PRNGKey(0)
    k_obs, k_par = jax.random.split(key)
    obs = jax.random.normal(k_obs, (batch, obs_channels, obs_size, obs_size), jnp.float32)
    params = init_params(k_par, obs_channels, n_flatten, rep_dim)

    ref = jax.block_until_ready(reference_forward(obs, params))

    # f32 MXU operands: tight check against the XLA reference.
    out_f32 = jax.block_until_ready(
        naturecnn_forward(obs, params, compute_dtype=jnp.float32))
    assert out_f32.shape == (batch, rep_dim), out_f32.shape
    assert jnp.allclose(out_f32, ref, atol=2e-4, rtol=2e-4), \
        float(jnp.abs(out_f32 - ref).max())

    # Default path: bf16 MXU operands + f32 accumulation (all TPU generations).
    out = jax.block_until_ready(naturecnn_forward(obs, params))
    assert out.shape == (batch, rep_dim), out.shape
    assert jnp.allclose(out, ref, atol=2e-1, rtol=1e-1), \
        float(jnp.abs(out - ref).max())

    print("KERNEL_OK")
</pallas_src>

<mosaic_0001>
module attributes {stable_mosaic.version = 11 : i64} {
  func.func @kernel(%arg0: i32, %arg1: memref<8x9x9x48xf32, #tpu.memory_space<vmem>>, %arg2: memref<4x48x32xf32, #tpu.memory_space<vmem>>, %arg3: memref<1x32xf32, #tpu.memory_space<vmem>>, %arg4: memref<512x64xf32, #tpu.memory_space<vmem>>, %arg5: memref<1x576xf32, #tpu.memory_space<vmem>>, %arg6: memref<576x64xf32, #tpu.memory_space<vmem>>, %arg7: memref<1x64xf32, #tpu.memory_space<vmem>>, %arg8: memref<64x128xf32, #tpu.memory_space<vmem>>, %arg9: memref<1x128xf32, #tpu.memory_space<vmem>>, %arg10: memref<8x128xf32, #tpu.memory_space<vmem>>, %arg11: memref<8x64x32xf32, #tpu.memory_space<vmem>>) attributes {dimension_semantics = [#tpu.dimension_semantics<parallel>], iteration_bounds = array<i64: 2>, scalar_prefetch = 0 : i64, scratch_operands = 1 : i64, tpu.core_type = #tpu.core_type<tc>, window_params = [{transform_indices = @transform_0, window_bounds = array<i64: 8, 9, 9, 48>}, {pipeline_mode = #tpu.pipeline_mode<synchronous>, transform_indices = @transform_1, window_bounds = array<i64: 4, 48, 32>}, {pipeline_mode = #tpu.pipeline_mode<synchronous>, transform_indices = @transform_2, window_bounds = array<i64: 1, 32>}, {pipeline_mode = #tpu.pipeline_mode<synchronous>, transform_indices = @transform_3, window_bounds = array<i64: 512, 64>}, {pipeline_mode = #tpu.pipeline_mode<synchronous>, transform_indices = @transform_4, window_bounds = array<i64: 1, 576>}, {pipeline_mode = #tpu.pipeline_mode<synchronous>, transform_indices = @transform_5, window_bounds = array<i64: 576, 64>}, {pipeline_mode = #tpu.pipeline_mode<synchronous>, transform_indices = @transform_6, window_bounds = array<i64: 1, 64>}, {pipeline_mode = #tpu.pipeline_mode<synchronous>, transform_indices = @transform_7, window_bounds = array<i64: 64, 128>}, {pipeline_mode = #tpu.pipeline_mode<synchronous>, transform_indices = @transform_8, window_bounds = array<i64: 1, 128>}, {transform_indices = @transform_9, window_bounds = array<i64: 8, 128>}]} {
    %cst = arith.constant 0.000000e+00 : f32
    %0 = vector.broadcast %cst : f32 to vector<512x32xf32>
    %c0 = arith.constant 0 : index
    %c0_0 = arith.constant 0 : index
    %c0_1 = arith.constant 0 : index
    %c0_2 = arith.constant 0 : index
    %1 = vector.load %arg1[%c0, %c0_0, %c0_1, %c0_2] : memref<8x9x9x48xf32, #tpu.memory_space<vmem>>, vector<8x8x8x48xf32>
    %2 = vector.shape_cast %1 : vector<8x8x8x48xf32> to vector<512x48xf32>
    %c0_3 = arith.constant 0 : index
    %c0_4 = arith.constant 0 : index
    %c0_5 = arith.constant 0 : index
    %3 = vector.load %arg2[%c0_3, %c0_4, %c0_5] : memref<4x48x32xf32, #tpu.memory_space<vmem>>, vector<1x48x32xf32>
    %4 = vector.shape_cast %3 : vector<1x48x32xf32> to vector<48x32xf32>
    %cst_6 = arith.constant dense<0.000000e+00> : vector<512x32xf32>
    %5 = tpu.matmul %2, %4, %cst_6 {dimension_numbers = #tpu.dot_dimension_numbers<[1], [0], [0], [1], [0, 0, 1, 1], [], []>} : vector<512x48xf32>, vector<48x32xf32>, vector<512x32xf32> -> vector<512x32xf32>
    %6 = arith.addf %0, %5 : vector<512x32xf32>
    %c0_7 = arith.constant 0 : index
    %c0_8 = arith.constant 0 : index
    %c1 = arith.constant 1 : index
    %c0_9 = arith.constant 0 : index
    %7 = vector.load %arg1[%c0_7, %c0_8, %c1, %c0_9] : memref<8x9x9x48xf32, #tpu.memory_space<vmem>>, vector<8x8x8x48xf32>
    %8 = vector.shape_cast %7 : vector<8x8x8x48xf32> to vector<512x48xf32>
    %c1_10 = arith.constant 1 : index
    %c0_11 = arith.constant 0 : index
    %c0_12 = arith.constant 0 : index
    %9 = vector.load %arg2[%c1_10, %c0_11, %c0_12] : memref<4x48x32xf32, #tpu.memory_space<vmem>>, vector<1x48x32xf32>
    %10 = vector.shape_cast %9 : vector<1x48x32xf32> to vector<48x32xf32>
    %cst_13 = arith.constant dense<0.000000e+00> : vector<512x32xf32>
    %11 = tpu.matmul %8, %10, %cst_13 {dimension_numbers = #tpu.dot_dimension_numbers<[1], [0], [0], [1], [0, 0, 1, 1], [], []>} : vector<512x48xf32>, vector<48x32xf32>, vector<512x32xf32> -> vector<512x32xf32>
    %12 = arith.addf %6, %11 : vector<512x32xf32>
    %c0_14 = arith.constant 0 : index
    %c1_15 = arith.constant 1 : index
    %c0_16 = arith.constant 0 : index
    %c0_17 = arith.constant 0 : index
    %13 = vector.load %arg1[%c0_14, %c1_15, %c0_16, %c0_17] : memref<8x9x9x48xf32, #tpu.memory_space<vmem>>, vector<8x8x8x48xf32>
    %14 = vector.shape_cast %13 : vector<8x8x8x48xf32> to vector<512x48xf32>
    %c2 = arith.constant 2 : index
    %c0_18 = arith.constant 0 : index
    %c0_19 = arith.constant 0 : index
    %15 = vector.load %arg2[%c2, %c0_18, %c0_19] : memref<4x48x32xf32, #tpu.memory_space<vmem>>, vector<1x48x32xf32>
    %16 = vector.shape_cast %15 : vector<1x48x32xf32> to vector<48x32xf32>
    %cst_20 = arith.constant dense<0.000000e+00> : vector<512x32xf32>
    %17 = tpu.matmul %14, %16, %cst_20 {dimension_numbers = #tpu.dot_dimension_numbers<[1], [0], [0], [1], [0, 0, 1, 1], [], []>} : vector<512x48xf32>, vector<48x32xf32>, vector<512x32xf32> -> vector<512x32xf32>
    %18 = arith.addf %12, %17 : vector<512x32xf32>
    %c0_21 = arith.constant 0 : index
    %c1_22 = arith.constant 1 : index
    %c1_23 = arith.constant 1 : index
    %c0_24 = arith.constant 0 : index
    %19 = vector.load %arg1[%c0_21, %c1_22, %c1_23, %c0_24] : memref<8x9x9x48xf32, #tpu.memory_space<vmem>>, vector<8x8x8x48xf32>
    %20 = vector.shape_cast %19 : vector<8x8x8x48xf32> to vector<512x48xf32>
    %c3 = arith.constant 3 : index
    %c0_25 = arith.constant 0 : index
    %c0_26 = arith.constant 0 : index
    %21 = vector.load %arg2[%c3, %c0_25, %c0_26] : memref<4x48x32xf32, #tpu.memory_space<vmem>>, vector<1x48x32xf32>
    %22 = vector.shape_cast %21 : vector<1x48x32xf32> to vector<48x32xf32>
    %cst_27 = arith.constant dense<0.000000e+00> : vector<512x32xf32>
    %23 = tpu.matmul %20, %22, %cst_27 {dimension_numbers = #tpu.dot_dimension_numbers<[1], [0], [0], [1], [0, 0, 1, 1], [], []>} : vector<512x48xf32>, vector<48x32xf32>, vector<512x32xf32> -> vector<512x32xf32>
    %24 = arith.addf %18, %23 : vector<512x32xf32>
    %c0_28 = arith.constant 0 : index
    %c0_29 = arith.constant 0 : index
    %25 = vector.load %arg3[%c0_28, %c0_29] : memref<1x32xf32, #tpu.memory_space<vmem>>, vector<1x32xf32>
    %26 = vector.broadcast %25 : vector<1x32xf32> to vector<512x32xf32>
    %27 = arith.addf %24, %26 : vector<512x32xf32>
    %cst_30 = arith.constant 0.000000e+00 : f32
    %28 = vector.broadcast %cst_30 : f32 to vector<512x32xf32>
    %29 = arith.maximumf %27, %28 : vector<512x32xf32>
    %30 = vector.shape_cast %29 : vector<512x32xf32> to vector<8x64x32xf32>
    %c0_31 = arith.constant 0 : index
    %c0_32 = arith.constant 0 : index
    %c0_33 = arith.constant 0 : index
    %31 = vector.load %arg11[%c0_31, %c0_32, %c0_33] : memref<8x64x32xf32, #tpu.memory_space<vmem>>, vector<8x64x32xf32>
    tpu.vector_store %arg11[%c0_31, %c0_32, %c0_33], %30 {strides = array<i32>} : memref<8x64x32xf32, #tpu.memory_space<vmem>>, vector<8x64x32xf32>,
    %c0_34 = arith.constant 0 : index
    %c0_35 = arith.constant 0 : index
    %32 = vector.load %arg4[%c0_34, %c0_35] : memref<512x64xf32, #tpu.memory_space<vmem>>, vector<512x64xf32>
    %c0_36 = arith.constant 0 : index
    %c0_37 = arith.constant 0 : index
    %c0_38 = arith.constant 0 : index
    %33 = vector.load %arg11[%c0_36, %c0_37, %c0_38] : memref<8x64x32xf32, #tpu.memory_space<vmem>>, vector<8x1x32xf32>
    %34 = vector.shape_cast %33 : vector<8x1x32xf32> to vector<8x32xf32>
    %c0_39 = arith.constant 0 : index
    %c1_40 = arith.constant 1 : index
    %c0_41 = arith.constant 0 : index
    %35 = vector.load %arg11[%c0_39, %c1_40, %c0_41] : memref<8x64x32xf32, #tpu.memory_space<vmem>>, vector<8x1x32xf32>
    %36 = vector.shape_cast %35 : vector<8x1x32xf32> to vector<8x32xf32>
    %c0_42 = arith.constant 0 : index
    %c2_43 = arith.constant 2 : index
    %c0_44 = arith.constant 0 : index
    %37 = vector.load %arg11[%c0_42, %c2_43, %c0_44] : memref<8x64x32xf32, #tpu.memory_space<vmem>>, vector<8x1x32xf32>
    %38 = vector.shape_cast %37 : vector<8x1x32xf32> to vector<8x32xf32>
    %c0_45 = arith.constant 0 : index
    %c3_46 = arith.constant 3 : index
    %c0_47 = arith.constant 0 : index
    %39 = vector.load %arg11[%c0_45, %c3_46, %c0_47] : memref<8x64x32xf32, #tpu.memory_space<vmem>>, vector<8x1x32xf32>
    %40 = vector.shape_cast %39 : vector<8x1x32xf32> to vector<8x32xf32>
    %c0_48 = arith.constant 0 : index
    %c8 = arith.constant 8 : index
    %c0_49 = arith.constant 0 : index
    %41 = vector.load %arg11[%c0_48, %c8, %c0_49] : memref<8x64x32xf32, #tpu.memory_space<vmem>>, vector<8x1x32xf32>
    %42 = vector.shape_cast %41 : vector<8x1x32xf32> to vector<8x32xf32>
    %c0_50 = arith.constant 0 : index
    %c9 = arith.constant 9 : index
    %c0_51 = arith.constant 0 : index
    %43 = vector.load %arg11[%c0_50, %c9, %c0_51] : memref<8x64x32xf32, #tpu.memory_space<vmem>>, vector<8x1x32xf32>
    %44 = vector.shape_cast %43 : vector<8x1x32xf32> to vector<8x32xf32>
    %c0_52 = arith.constant 0 : index
    %c10 = arith.constant 10 : index
    %c0_53 = arith.constant 0 : index
    %45 = vector.load %arg11[%c0_52, %c10, %c0_53] : memref<8x64x32xf32, #tpu.memory_space<vmem>>, vector<8x1x32xf32>
    %46 = vector.shape_cast %45 : vector<8x1x32xf32> to vector<8x32xf32>
    %c0_54 = arith.constant 0 : index
    %c11 = arith.constant 11 : index
    %c0_55 = arith.constant 0 : index
    %47 = vector.load %arg11[%c0_54, %c11, %c0_55] : memref<8x64x32xf32, #tpu.memory_space<vmem>>, vector<8x1x32xf32>
    %48 = vector.shape_cast %47 : vector<8x1x32xf32> to vector<8x32xf32>
    %c0_56 = arith.constant 0 : index
    %c16 = arith.constant 16 : index
    %c0_57 = arith.constant 0 : index
    %49 = vector.load %arg11[%c0_56, %c16, %c0_57] : memref<8x64x32xf32, #tpu.memory_space<vmem>>, vector<8x1x32xf32>
    %50 = vector.shape_cast %49 : vector<8x1x32xf32> to vector<8x32xf32>
    %c0_58 = arith.constant 0 : index
    %c17 = arith.constant 17 : index
    %c0_59 = arith.constant 0 : index
    %51 = vector.load %arg11[%c0_58, %c17, %c0_59] : memref<8x64x32xf32, #tpu.memory_space<vmem>>, vector<8x1x32xf32>
    %52 = vector.shape_cast %51 : vector<8x1x32xf32> to vector<8x32xf32>
    %c0_60 = arith.constant 0 : index
    %c18 = arith.constant 18 : index
    %c0_61 = arith.constant 0 : index
    %53 = vector.load %arg11[%c0_60, %c18, %c0_61] : memref<8x64x32xf32, #tpu.memory_space<vmem>>, vector<8x1x32xf32>
    %54 = vector.shape_cast %53 : vector<8x1x32xf32> to vector<8x32xf32>
    %c0_62 = arith.constant 0 : index
    %c19 = arith.constant 19 : index
    %c0_63 = arith.constant 0 : index
    %55 = vector.load %arg11[%c0_62, %c19, %c0_63] : memref<8x64x32xf32, #tpu.memory_space<vmem>>, vector<8x1x32xf32>
    %56 = vector.shape_cast %55 : vector<8x1x32xf32> to vector<8x32xf32>
    %c0_64 = arith.constant 0 : index
    %c24 = arith.constant 24 : index
    %c0_65 = arith.constant 0 : index
    %57 = vector.load %arg11[%c0_64, %c24, %c0_65] : memref<8x64x32xf32, #tpu.memory_space<vmem>>, vector<8x1x32xf32>
    %58 = vector.shape_cast %57 : vector<8x1x32xf32> to vector<8x32xf32>
    %c0_66 = arith.constant 0 : index
    %c25 = arith.constant 25 : index
    %c0_67 = arith.constant 0 : index
    %59 = vector.load %arg11[%c0_66, %c25, %c0_67] : memref<8x64x32xf32, #tpu.memory_space<vmem>>, vector<8x1x32xf32>
    %60 = vector.shape_cast %59 : vector<8x1x32xf32> to vector<8x32xf32>
    %c0_68 = arith.constant 0 : index
    %c26 = arith.constant 26 : index
    %c0_69 = arith.constant 0 : index
    %61 = vector.load %arg11[%c0_68, %c26, %c0_69] : memref<8x64x32xf32, #tpu.memory_space<vmem>>, vector<8x1x32xf32>
    %62 = vector.shape_cast %61 : vector<8x1x32xf32> to vector<8x32xf32>
    %c0_70 = arith.constant 0 : index
    %c27 = arith.constant 27 : index
    %c0_71 = arith.constant 0 : index
    %63 = vector.load %arg11[%c0_70, %c27, %c0_71] : memref<8x64x32xf32, #tpu.memory_space<vmem>>, vector<8x1x32xf32>
    %64 = vector.shape_cast %63 : vector<8x1x32xf32> to vector<8x32xf32>
    %65 = tpu.concatenate %34, %36, %38, %40, %42, %44, %46, %48, %50, %52, %54, %56, %58, %60, %62, %64 in 1 : vector<8x32xf32>, vector<8x32xf32>, vector<8x32xf32>, vector<8x32xf32>, vector<8x32xf32>, vector<8x32xf32>, vector<8x32xf32>, vector<8x32xf32>, vector<8x32xf32>, vector<8x32xf32>, vector<8x32xf32>, vector<8x32xf32>, vector<8x32xf32>, vector<8x32xf32>, vector<8x32xf32>, vector<8x32xf32> -> vector<8x512xf32>
    %cst_72 = arith.constant dense<0.000000e+00> : vector<8x64xf32>
    %66 = tpu.matmul %65, %32, %cst_72 {dimension_numbers = #tpu.dot_dimension_numbers<[1], [0], [0], [1], [0, 0, 1, 1], [], []>} : vector<8x512xf32>, vector<512x64xf32>, vector<8x64xf32> -> vector<8x64xf32>
    %c0_73 = arith.constant 0 : index
    %c2_74 = arith.constant 2 : index
    %c0_75 = arith.constant 0 : index
    %67 = vector.load %arg11[%c0_73, %c2_74, %c0_75] : memref<8x64x32xf32, #tpu.memory_space<vmem>>, vector<8x1x32xf32>
    %68 = vector.shape_cast %67 : vector<8x1x32xf32> to vector<8x32xf32>
    %c0_76 = arith.constant 0 : index
    %c3_77 = arith.constant 3 : index
    %c0_78 = arith.constant 0 : index
    %69 = vector.load %arg11[%c0_76, %c3_77, %c0_78] : memref<8x64x32xf32, #tpu.memory_space<vmem>>, vector<8x1x32xf32>
    %70 = vector.shape_cast %69 : vector<8x1x32xf32> to vector<8x32xf32>
    %c0_79 = arith.constant 0 : index
    %c4 = arith.constant 4 : index
    %c0_80 = arith.constant 0 : index
    %71 = vector.load %arg11[%c0_79, %c4, %c0_80] : memref<8x64x32xf32, #tpu.memory_space<vmem>>, vector<8x1x32xf32>
    %72 = vector.shape_cast %71 : vector<8x1x32xf32> to vector<8x32xf32>
    %c0_81 = arith.constant 0 : index
    %c5 = arith.constant 5 : index
    %c0_82 = arith.constant 0 : index
    %73 = vector.load %arg11[%c0_81, %c5, %c0_82] : memref<8x64x32xf32, #tpu.memory_space<vmem>>, vector<8x1x32xf32>
    %74 = vector.shape_cast %73 : vector<8x1x32xf32> to vector<8x32xf32>
    %c0_83 = arith.constant 0 : index
    %c10_84 = arith.constant 10 : index
    %c0_85 = arith.constant 0 : index
    %75 = vector.load %arg11[%c0_83, %c10_84, %c0_85] : memref<8x64x32xf32, #tpu.memory_space<vmem>>, vector<8x1x32xf32>
    %76 = vector.shape_cast %75 : vector<8x1x32xf32> to vector<8x32xf32>
    %c0_86 = arith.constant 0 : index
    %c11_87 = arith.constant 11 : index
    %c0_88 = arith.constant 0 : index
    %77 = vector.load %arg11[%c0_86, %c11_87, %c0_88] : memref<8x64x32xf32, #tpu.memory_space<vmem>>, vector<8x1x32xf32>
    %78 = vector.shape_cast %77 : vector<8x1x32xf32> to vector<8x32xf32>
    %c0_89 = arith.constant 0 : index
    %c12 = arith.constant 12 : index
    %c0_90 = arith.constant 0 : index
    %79 = vector.load %arg11[%c0_89, %c12, %c0_90] : memref<8x64x32xf32, #tpu.memory_space<vmem>>, vector<8x1x32xf32>
    %80 = vector.shape_cast %79 : vector<8x1x32xf32> to vector<8x32xf32>
    %c0_91 = arith.constant 0 : index
    %c13 = arith.constant 13 : index
    %c0_92 = arith.constant 0 : index
    %81 = vector.load %arg11[%c0_91, %c13, %c0_92] : memref<8x64x32xf32, #tpu.memory_space<vmem>>, vector<8x1x32xf32>
    %82 = vector.shape_cast %81 : vector<8x1x32xf32> to vector<8x32xf32>
    %c0_93 = arith.constant 0 : index
    %c18_94 = arith.constant 18 : index
    %c0_95 = arith.constant 0 : index
    %83 = vector.load %arg11[%c0_93, %c18_94, %c0_95] : memref<8x64x32xf32, #tpu.memory_space<vmem>>, vector<8x1x32xf32>
    %84 = vector.shape_cast %83 : vector<8x1x32xf32> to vector<8x32xf32>
    %c0_96 = arith.constant 0 : index
    %c19_97 = arith.constant 19 : index
    %c0_98 = arith.constant 0 : index
    %85 = vector.load %arg11[%c0_96, %c19_97, %c0_98] : memref<8x64x32xf32, #tpu.memory_space<vmem>>, vector<8x1x32xf32>
    %86 = vector.shape_cast %85 : vector<8x1x32xf32> to vector<8x32xf32>
    %c0_99 = arith.constant 0 : index
    %c20 = arith.constant 20 : index
    %c0_100 = arith.constant 0 : index
    %87 = vector.load %arg11[%c0_99, %c20, %c0_100] : memref<8x64x32xf32, #tpu.memory_space<vmem>>, vector<8x1x32xf32>
    %88 = vector.shape_cast %87 : vector<8x1x32xf32> to vector<8x32xf32>
    %c0_101 = arith.constant 0 : index
    %c21 = arith.constant 21 : index
    %c0_102 = arith.constant 0 : index
    %89 = vector.load %arg11[%c0_101, %c21, %c0_102] : memref<8x64x32xf32, #tpu.memory_space<vmem>>, vector<8x1x32xf32>
    %90 = vector.shape_cast %89 : vector<8x1x32xf32> to vector<8x32xf32>
    %c0_103 = arith.constant 0 : index
    %c26_104 = arith.constant 26 : index
    %c0_105 = arith.constant 0 : index
    %91 = vector.load %arg11[%c0_103, %c26_104, %c0_105] : memref<8x64x32xf32, #tpu.memory_space<vmem>>, vector<8x1x32xf32>
    %92 = vector.shape_cast %91 : vector<8x1x32xf32> to vector<8x32xf32>
    %c0_106 = arith.constant 0 : index
    %c27_107 = arith.constant 27 : index
    %c0_108 = arith.constant 0 : index
    %93 = vector.load %arg11[%c0_106, %c27_107, %c0_108] : memref<8x64x32xf32, #tpu.memory_space<vmem>>, vector<8x1x32xf32>
    %94 = vector.shape_cast %93 : vector<8x1x32xf32> to vector<8x32xf32>
    %c0_109 = arith.constant 0 : index
    %c28 = arith.constant 28 : index
    %c0_110 = arith.constant 0 : index
    %95 = vector.load %arg11[%c0_109, %c28, %c0_110] : memref<8x64x32xf32, #tpu.memory_space<vmem>>, vector<8x1x32xf32>
    %96 = vector.shape_cast %95 : vector<8x1x32xf32> to vector<8x32xf32>
    %c0_111 = arith.constant 0 : index
    %c29 = arith.constant 29 : index
    %c0_112 = arith.constant 0 : index
    %97 = vector.load %arg11[%c0_111, %c29, %c0_112] : memref<8x64x32xf32, #tpu.memory_space<vmem>>, vector<8x1x32xf32>
    %98 = vector.shape_cast %97 : vector<8x1x32xf32> to vector<8x32xf32>
    %99 = tpu.concatenate %68, %70, %72, %74, %76, %78, %80, %82, %84, %86, %88, %90, %92, %94, %96, %98 in 1 : vector<8x32xf32>, vector<8x32xf32>, vector<8x32xf32>, vector<8x32xf32>, vector<8x32xf32>, vector<8x32xf32>, vector<8x32xf32>, vector<8x32xf32>, vector<8x32xf32>, vector<8x32xf32>, vector<8x32xf32>, vector<8x32xf32>, vector<8x32xf32>, vector<8x32xf32>, vector<8x32xf32>, vector<8x32xf32> -> vector<8x512xf32>
    %cst_113 = arith.constant dense<0.000000e+00> : vector<8x64xf32>
    %100 = tpu.matmul %99, %32, %cst_113 {dimension_numbers = #tpu.dot_dimension_numbers<[1], [0], [0], [1], [0, 0, 1, 1], [], []>} : vector<8x512xf32>, vector<512x64xf32>, vector<8x64xf32> -> vector<8x64xf32>
    %c0_114 = arith.constant 0 : index
    %c4_115 = arith.constant 4 : index
    %c0_116 = arith.constant 0 : index
    %101 = vector.load %arg11[%c0_114, %c4_115, %c0_116] : memref<8x64x32xf32, #tpu.memory_space<vmem>>, vector<8x1x32xf32>
    %102 = vector.shape_cast %101 : vector<8x1x32xf32> to vector<8x32xf32>
    %c0_117 = arith.constant 0 : index
    %c5_118 = arith.constant 5 : index
    %c0_119 = arith.constant 0 : index
    %103 = vector.load %arg11[%c0_117, %c5_118, %c0_119] : memref<8x64x32xf32, #tpu.memory_space<vmem>>, vector<8x1x32xf32>
    %104 = vector.shape_cast %103 : vector<8x1x32xf32> to vector<8x32xf32>
    %c0_120 = arith.constant 0 : index
    %c6 = arith.constant 6 : index
    %c0_121 = arith.constant 0 : index
    %105 = vector.load %arg11[%c0_120, %c6, %c0_121] : memref<8x64x32xf32, #tpu.memory_space<vmem>>, vector<8x1x32xf32>
    %106 = vector.shape_cast %105 : vector<8x1x32xf32> to vector<8x32xf32>
    %c0_122 = arith.constant 0 : index
    %c7 = arith.constant 7 : index
    %c0_123 = arith.constant 0 : index
    %107 = vector.load %arg11[%c0_122, %c7, %c0_123] : memref<8x64x32xf32, #tpu.memory_space<vmem>>, vector<8x1x32xf32>
    %108 = vector.shape_cast %107 : vector<8x1x32xf32> to vector<8x32xf32>
    %c0_124 = arith.constant 0 : index
    %c12_125 = arith.constant 12 : index
    %c0_126 = arith.constant 0 : index
    %109 = vector.load %arg11[%c0_124, %c12_125, %c0_126] : memref<8x64x32xf32, #tpu.memory_space<vmem>>, vector<8x1x32xf32>
    %110 = vector.shape_cast %109 : vector<8x1x32xf32> to vector<8x32xf32>
    %c0_127 = arith.constant 0 : index
    %c13_128 = arith.constant 13 : index
    %c0_129 = arith.constant 0 : index
    %111 = vector.load %arg11[%c0_127, %c13_128, %c0_129] : memref<8x64x32xf32, #tpu.memory_space<vmem>>, vector<8x1x32xf32>
    %112 = vector.shape_cast %111 : vector<8x1x32xf32> to vector<8x32xf32>
    %c0_130 = arith.constant 0 : index
    %c14 = arith.constant 14 : index
    %c0_131 = arith.constant 0 : index
    %113 = vector.load %arg11[%c0_130, %c14, %c0_131] : memref<8x64x32xf32, #tpu.memory_space<vmem>>, vector<8x1x32xf32>
    %114 = vector.shape_cast %113 : vector<8x1x32xf32> to vector<8x32xf32>
    %c0_132 = arith.constant 0 : index
    %c15 = arith.constant 15 : index
    %c0_133 = arith.constant 0 : index
    %115 = vector.load %arg11[%c0_132, %c15, %c0_133] : memref<8x64x32xf32, #tpu.memory_space<vmem>>, vector<8x1x32xf32>
    %116 = vector.shape_cast %115 : vector<8x1x32xf32> to vector<8x32xf32>
    %c0_134 = arith.constant 0 : index
    %c20_135 = arith.constant 20 : index
    %c0_136 = arith.constant 0 : index
    %117 = vector.load %arg11[%c0_134, %c20_135, %c0_136] : memref<8x64x32xf32, #tpu.memory_space<vmem>>, vector<8x1x32xf32>
    %118 = vector.shape_cast %117 : vector<8x1x32xf32> to vector<8x32xf32>
    %c0_137 = arith.constant 0 : index
    %c21_138 = arith.constant 21 : index
    %c0_139 = arith.constant 0 : index
    %119 = vector.load %arg11[%c0_137, %c21_138, %c0_139] : memref<8x64x32xf32, #tpu.memory_space<vmem>>, vector<8x1x32xf32>
    %120 = vector.shape_cast %119 : vector<8x1x32xf32> to vector<8x32xf32>
    %c0_140 = arith.constant 0 : index
    %c22 = arith.constant 22 : index
    %c0_141 = arith.constant 0 : index
    %121 = vector.load %arg11[%c0_140, %c22, %c0_141] : memref<8x64x32xf32, #tpu.memory_space<vmem>>, vector<8x1x32xf32>
    %122 = vector.shape_cast %121 : vector<8x1x32xf32> to vector<8x32xf32>
    %c0_142 = arith.constant 0 : index
    %c23 = arith.constant 23 : index
    %c0_143 = arith.constant 0 : index
    %123 = vector.load %arg11[%c0_142, %c23, %c0_143] : memref<8x64x32xf32, #tpu.memory_space<vmem>>, vector<8x1x32xf32>
    %124 = vector.shape_cast %123 : vector<8x1x32xf32> to vector<8x32xf32>
    %c0_144 = arith.constant 0 : index
    %c28_145 = arith.constant 28 : index
    %c0_146 = arith.constant 0 : index
    %125 = vector.load %arg11[%c0_144, %c28_145, %c0_146] : memref<8x64x32xf32, #tpu.memory_space<vmem>>, vector<8x1x32xf32>
    %126 = vector.shape_cast %125 : vector<8x1x32xf32> to vector<8x32xf32>
    %c0_147 = arith.constant 0 : index
    %c29_148 = arith.constant 29 : index
    %c0_149 = arith.constant 0 : index
    %127 = vector.load %arg11[%c0_147, %c29_148, %c0_149] : memref<8x64x32xf32, #tpu.memory_space<vmem>>, vector<8x1x32xf32>
    %128 = vector.shape_cast %127 : vector<8x1x32xf32> to vector<8x32xf32>
    %c0_150 = arith.constant 0 : index
    %c30 = arith.constant 30 : index
    %c0_151 = arith.constant 0 : index
    %129 = vector.load %arg11[%c0_150, %c30, %c0_151] : memref<8x64x32xf32, #tpu.memory_space<vmem>>, vector<8x1x32xf32>
    %130 = vector.shape_cast %129 : vector<8x1x32xf32> to vector<8x32xf32>
    %c0_152 = arith.constant 0 : index
    %c31 = arith.constant 31 : index
    %c0_153 = arith.constant 0 : index
    %131 = vector.load %arg11[%c0_152, %c31, %c0_153] : memref<8x64x32xf32, #tpu.memory_space<vmem>>, vector<8x1x32xf32>
    %132 = vector.shape_cast %131 : vector<8x1x32xf32> to vector<8x32xf32>
    %133 = tpu.concatenate %102, %104, %106, %108, %110, %112, %114, %116, %118, %120, %122, %124, %126, %128, %130, %132 in 1 : vector<8x32xf32>, vector<8x32xf32>, vector<8x32xf32>, vector<8x32xf32>, vector<8x32xf32>, vector<8x32xf32>, vector<8x32xf32>, vector<8x32xf32>, vector<8x32xf32>, vector<8x32xf32>, vector<8x32xf32>, vector<8x32xf32>, vector<8x32xf32>, vector<8x32xf32>, vector<8x32xf32>, vector<8x32xf32> -> vector<8x512xf32>
    %cst_154 = arith.constant dense<0.000000e+00> : vector<8x64xf32>
    %134 = tpu.matmul %133, %32, %cst_154 {dimension_numbers = #tpu.dot_dimension_numbers<[1], [0], [0], [1], [0, 0, 1, 1], [], []>} : vector<8x512xf32>, vector<512x64xf32>, vector<8x64xf32> -> vector<8x64xf32>
    %c0_155 = arith.constant 0 : index
    %c16_156 = arith.constant 16 : index
    %c0_157 = arith.constant 0 : index
    %135 = vector.load %arg11[%c0_155, %c16_156, %c0_157] : memref<8x64x32xf32, #tpu.memory_space<vmem>>, vector<8x1x32xf32>
    %136 = vector.shape_cast %135 : vector<8x1x32xf32> to vector<8x32xf32>
    %c0_158 = arith.constant 0 : index
    %c17_159 = arith.constant 17 : index
    %c0_160 = arith.constant 0 : index
    %137 = vector.load %arg11[%c0_158, %c17_159, %c0_160] : memref<8x64x32xf32, #tpu.memory_space<vmem>>, vector<8x1x32xf32>
    %138 = vector.shape_cast %137 : vector<8x1x32xf32> to vector<8x32xf32>
    %c0_161 = arith.constant 0 : index
    %c18_162 = arith.constant 18 : index
    %c0_163 = arith.constant 0 : index
    %139 = vector.load %arg11[%c0_161, %c18_162, %c0_163] : memref<8x64x32xf32, #tpu.memory_space<vmem>>, vector<8x1x32xf32>
    %140 = vector.shape_cast %139 : vector<8x1x32xf32> to vector<8x32xf32>
    %c0_164 = arith.constant 0 : index
    %c19_165 = arith.constant 19 : index
    %c0_166 = arith.constant 0 : index
    %141 = vector.load %arg11[%c0_164, %c19_165, %c0_166] : memref<8x64x32xf32, #tpu.memory_space<vmem>>, vector<8x1x32xf32>
    %142 = vector.shape_cast %141 : vector<8x1x32xf32> to vector<8x32xf32>
    %c0_167 = arith.constant 0 : index
    %c24_168 = arith.constant 24 : index
    %c0_169 = arith.constant 0 : index
    %143 = vector.load %arg11[%c0_167, %c24_168, %c0_169] : memref<8x64x32xf32, #tpu.memory_space<vmem>>, vector<8x1x32xf32>
    %144 = vector.shape_cast %143 : vector<8x1x32xf32> to vector<8x32xf32>
    %c0_170 = arith.constant 0 : index
    %c25_171 = arith.constant 25 : index
    %c0_172 = arith.constant 0 : index
    %145 = vector.load %arg11[%c0_170, %c25_171, %c0_172] : memref<8x64x32xf32, #tpu.memory_space<vmem>>, vector<8x1x32xf32>
    %146 = vector.shape_cast %145 : vector<8x1x32xf32> to vector<8x32xf32>
    %c0_173 = arith.constant 0 : index
    %c26_174 = arith.constant 26 : index
    %c0_175 = arith.constant 0 : index
    %147 = vector.load %arg11[%c0_173, %c26_174, %c0_175] : memref<8x64x32xf32, #tpu.memory_space<vmem>>, vector<8x1x32xf32>
    %148 = vector.shape_cast %147 : vector<8x1x32xf32> to vector<8x32xf32>
    %c0_176 = arith.constant 0 : index
    %c27_177 = arith.constant 27 : index
    %c0_178 = arith.constant 0 : index
    %149 = vector.load %arg11[%c0_176, %c27_177, %c0_178] : memref<8x64x32xf32, #tpu.memory_space<vmem>>, vector<8x1x32xf32>
    %150 = vector.shape_cast %149 : vector<8x1x32xf32> to vector<8x32xf32>
    %c0_179 = arith.constant 0 : index
    %c32 = arith.constant 32 : index
    %c0_180 = arith.constant 0 : index
    %151 = vector.load %arg11[%c0_179, %c32, %c0_180] : memref<8x64x32xf32, #tpu.memory_space<vmem>>, vector<8x1x32xf32>
    %152 = vector.shape_cast %151 : vector<8x1x32xf32> to vector<8x32xf32>
    %c0_181 = arith.constant 0 : index
    %c33 = arith.constant 33 : index
    %c0_182 = arith.constant 0 : index
    %153 = vector.load %arg11[%c0_181, %c33, %c0_182] : memref<8x64x32xf32, #tpu.memory_space<vmem>>, vector<8x1x32xf32>
    %154 = vector.shape_cast %153 : vector<8x1x32xf32> to vector<8x32xf32>
    %c0_183 = arith.constant 0 : index
    %c34 = arith.constant 34 : index
    %c0_184 = arith.constant 0 : index
    %155 = vector.load %arg11[%c0_183, %c34, %c0_184] : memref<8x64x32xf32, #tpu.memory_space<vmem>>, vector<8x1x32xf32>
    %156 = vector.shape_cast %155 : vector<8x1x32xf32> to vector<8x32xf32>
    %c0_185 = arith.constant 0 : index
    %c35 = arith.constant 35 : index
    %c0_186 = arith.constant 0 : index
    %157 = vector.load %arg11[%c0_185, %c35, %c0_186] : memref<8x64x32xf32, #tpu.memory_space<vmem>>, vector<8x1x32xf32>
    %158 = vector.shape_cast %157 : vector<8x1x32xf32> to vector<8x32xf32>
    %c0_187 = arith.constant 0 : index
    %c40 = arith.constant 40 : index
    %c0_188 = arith.constant 0 : index
    %159 = vector.load %arg11[%c0_187, %c40, %c0_188] : memref<8x64x32xf32, #tpu.memory_space<vmem>>, vector<8x1x32xf32>
    %160 = vector.shape_cast %159 : vector<8x1x32xf32> to vector<8x32xf32>
    %c0_189 = arith.constant 0 : index
    %c41 = arith.constant 41 : index
    %c0_190 = arith.constant 0 : index
    %161 = vector.load %arg11[%c0_189, %c41, %c0_190] : memref<8x64x32xf32, #tpu.memory_space<vmem>>, vector<8x1x32xf32>
    %162 = vector.shape_cast %161 : vector<8x1x32xf32> to vector<8x32xf32>
    %c0_191 = arith.constant 0 : index
    %c42 = arith.constant 42 : index
    %c0_192 = arith.constant 0 : index
    %163 = vector.load %arg11[%c0_191, %c42, %c0_192] : memref<8x64x32xf32, #tpu.memory_space<vmem>>, vector<8x1x32xf32>
    %164 = vector.shape_cast %163 : vector<8x1x32xf32> to vector<8x32xf32>
    %c0_193 = arith.constant 0 : index
    %c43 = arith.constant 43 : index
    %c0_194 = arith.constant 0 : index
    %165 = vector.load %arg11[%c0_193, %c43, %c0_194] : memref<8x64x32xf32, #tpu.memory_space<vmem>>, vector<8x1x32xf32>
    %166 = vector.shape_cast %165 : vector<8x1x32xf32> to vector<8x32xf32>
    %167 = tpu.concatenate %136, %138, %140, %142, %144, %146, %148, %150, %152, %154, %156, %158, %160, %162, %164, %166 in 1 : vector<8x32xf32>, vector<8x32xf32>, vector<8x32xf32>, vector<8x32xf32>, vector<8x32xf32>, vector<8x32xf32>, vector<8x32xf32>, vector<8x32xf32>, vector<8x32xf32>, vector<8x32xf32>, vector<8x32xf32>, vector<8x32xf32>, vector<8x32xf32>, vector<8x32xf32>, vector<8x32xf32>, vector<8x32xf32> -> vector<8x512xf32>
    %cst_195 = arith.constant dense<0.000000e+00> : vector<8x64xf32>
    %168 = tpu.matmul %167, %32, %cst_195 {dimension_numbers = #tpu.dot_dimension_numbers<[1], [0], [0], [1], [0, 0, 1, 1], [], []>} : vector<8x512xf32>, vector<512x64xf32>, vector<8x64xf32> -> vector<8x64xf32>
    %c0_196 = arith.constant 0 : index
    %c18_197 = arith.constant 18 : index
    %c0_198 = arith.constant 0 : index
    %169 = vector.load %arg11[%c0_196, %c18_197, %c0_198] : memref<8x64x32xf32, #tpu.memory_space<vmem>>, vector<8x1x32xf32>
    %170 = vector.shape_cast %169 : vector<8x1x32xf32> to vector<8x32xf32>
    %c0_199 = arith.constant 0 : index
    %c19_200 = arith.constant 19 : index
    %c0_201 = arith.constant 0 : index
    %171 = vector.load %arg11[%c0_199, %c19_200, %c0_201] : memref<8x64x32xf32, #tpu.memory_space<vmem>>, vector<8x1x32xf32>
    %172 = vector.shape_cast %171 : vector<8x1x32xf32> to vector<8x32xf32>
    %c0_202 = arith.constant 0 : index
    %c20_203 = arith.constant 20 : index
    %c0_204 = arith.constant 0 : index
    %173 = vector.load %arg11[%c0_202, %c20_203, %c0_204] : memref<8x64x32xf32, #tpu.memory_space<vmem>>, vector<8x1x32xf32>
    %174 = vector.shape_cast %173 : vector<8x1x32xf32> to vector<8x32xf32>
    %c0_205 = arith.constant 0 : index
    %c21_206 = arith.constant 21 : index
    %c0_207 = arith.constant 0 : index
    %175 = vector.load %arg11[%c0_205, %c21_206, %c0_207] : memref<8x64x32xf32, #tpu.memory_space<vmem>>, vector<8x1x32xf32>
    %176 = vector.shape_cast %175 : vector<8x1x32xf32> to vector<8x32xf32>
    %c0_208 = arith.constant 0 : index
    %c26_209 = arith.constant 26 : index
    %c0_210 = arith.constant 0 : index
    %177 = vector.load %arg11[%c0_208, %c26_209, %c0_210] : memref<8x64x32xf32, #tpu.memory_space<vmem>>, vector<8x1x32xf32>
    %178 = vector.shape_cast %177 : vector<8x1x32xf32> to vector<8x32xf32>
    %c0_211 = arith.constant 0 : index
    %c27_212 = arith.constant 27 : index
    %c0_213 = arith.constant 0 : index
    %179 = vector.load %arg11[%c0_211, %c27_212, %c0_213] : memref<8x64x32xf32, #tpu.memory_space<vmem>>, vector<8x1x32xf32>
    %180 = vector.shape_cast %179 : vector<8x1x32xf32> to vector<8x32xf32>
    %c0_214 = arith.constant 0 : index
    %c28_215 = arith.constant 28 : index
    %c0_216 = arith.constant 0 : index
    %181 = vector.load %arg11[%c0_214, %c28_215, %c0_216] : memref<8x64x32xf32, #tpu.memory_space<vmem>>, vector<8x1x32xf32>
    %182 = vector.shape_cast %181 : vector<8x1x32xf32> to vector<8x32xf32>
    %c0_217 = arith.constant 0 : index
    %c29_218 = arith.constant 29 : index
    %c0_219 = arith.constant 0 : index
    %183 = vector.load %arg11[%c0_217, %c29_218, %c0_219] : memref<8x64x32xf32, #tpu.memory_space<vmem>>, vector<8x1x32xf32>
    %184 = vector.shape_cast %183 : vector<8x1x32xf32> to vector<8x32xf32>
    %c0_220 = arith.constant 0 : index
    %c34_221 = arith.constant 34 : index
    %c0_222 = arith.constant 0 : index
    %185 = vector.load %arg11[%c0_220, %c34_221, %c0_222] : memref<8x64x32xf32, #tpu.memory_space<vmem>>, vector<8x1x32xf32>
    %186 = vector.shape_cast %185 : vector<8x1x32xf32> to vector<8x32xf32>
    %c0_223 = arith.constant 0 : index
    %c35_224 = arith.constant 35 : index
    %c0_225 = arith.constant 0 : index
    %187 = vector.load %arg11[%c0_223, %c35_224, %c0_225] : memref<8x64x32xf32, #tpu.memory_space<vmem>>, vector<8x1x32xf32>
    %188 = vector.shape_cast %187 : vector<8x1x32xf32> to vector<8x32xf32>
    %c0_226 = arith.constant 0 : index
    %c36 = arith.constant 36 : index
    %c0_227 = arith.constant 0 : index
    %189 = vector.load %arg11[%c0_226, %c36, %c0_227] : memref<8x64x32xf32, #tpu.memory_space<vmem>>, vector<8x1x32xf32>
    %190 = vector.shape_cast %189 : vector<8x1x32xf32> to vector<8x32xf32>
    %c0_228 = arith.constant 0 : index
    %c37 = arith.constant 37 : index
    %c0_229 = arith.constant 0 : index
    %191 = vector.load %arg11[%c0_228, %c37, %c0_229] : memref<8x64x32xf32, #tpu.memory_space<vmem>>, vector<8x1x32xf32>
    %192 = vector.shape_cast %191 : vector<8x1x32xf32> to vector<8x32xf32>
    %c0_230 = arith.constant 0 : index
    %c42_231 = arith.constant 42 : index
    %c0_232 = arith.constant 0 : index
    %193 = vector.load %arg11[%c0_230, %c42_231, %c0_232] : memref<8x64x32xf32, #tpu.memory_space<vmem>>, vector<8x1x32xf32>
    %194 = vector.shape_cast %193 : vector<8x1x32xf32> to vector<8x32xf32>
    %c0_233 = arith.constant 0 : index
    %c43_234 = arith.constant 43 : index
    %c0_235 = arith.constant 0 : index
    %195 = vector.load %arg11[%c0_233, %c43_234, %c0_235] : memref<8x64x32xf32, #tpu.memory_space<vmem>>, vector<8x1x32xf32>
    %196 = vector.shape_cast %195 : vector<8x1x32xf32> to vector<8x32xf32>
    %c0_236 = arith.constant 0 : index
    %c44 = arith.constant 44 : index
    %c0_237 = arith.constant 0 : index
    %197 = vector.load %arg11[%c0_236, %c44, %c0_237] : memref<8x64x32xf32, #tpu.memory_space<vmem>>, vector<8x1x32xf32>
    %198 = vector.shape_cast %197 : vector<8x1x32xf32> to vector<8x32xf32>
    %c0_238 = arith.constant 0 : index
    %c45 = arith.constant 45 : index
    %c0_239 = arith.constant 0 : index
    %199 = vector.load %arg11[%c0_238, %c45, %c0_239] : memref<8x64x32xf32, #tpu.memory_space<vmem>>, vector<8x1x32xf32>
    %200 = vector.shape_cast %199 : vector<8x1x32xf32> to vector<8x32xf32>
    %201 = tpu.concatenate %170, %172, %174, %176, %178, %180, %182, %184, %186, %188, %190, %192, %194, %196, %198, %200 in 1 : vector<8x32xf32>, vector<8x32xf32>, vector<8x32xf32>, vector<8x32xf32>, vector<8x32xf32>, vector<8x32xf32>, vector<8x32xf32>, vector<8x32xf32>, vector<8x32xf32>, vector<8x32xf32>, vector<8x32xf32>, vector<8x32xf32>, vector<8x32xf32>, vector<8x32xf32>, vector<8x32xf32>, vector<8x32xf32> -> vector<8x512xf32>
    %cst_240 = arith.constant dense<0.000000e+00> : vector<8x64xf32>
    %202 = tpu.matmul %201, %32, %cst_240 {dimension_numbers = #tpu.dot_dimension_numbers<[1], [0], [0], [1], [0, 0, 1, 1], [], []>} : vector<8x512xf32>, vector<512x64xf32>, vector<8x64xf32> -> vector<8x64xf32>
    %c0_241 = arith.constant 0 : index
    %c20_242 = arith.constant 20 : index
    %c0_243 = arith.constant 0 : index
    %203 = vector.load %arg11[%c0_241, %c20_242, %c0_243] : memref<8x64x32xf32, #tpu.memory_space<vmem>>, vector<8x1x32xf32>
    %204 = vector.shape_cast %203 : vector<8x1x32xf32> to vector<8x32xf32>
    %c0_244 = arith.constant 0 : index
    %c21_245 = arith.constant 21 : index
    %c0_246 = arith.constant 0 : index
    %205 = vector.load %arg11[%c0_244, %c21_245, %c0_246] : memref<8x64x32xf32, #tpu.memory_space<vmem>>, vector<8x1x32xf32>
    %206 = vector.shape_cast %205 : vector<8x1x32xf32> to vector<8x32xf32>
    %c0_247 = arith.constant 0 : index
    %c22_248 = arith.constant 22 : index
    %c0_249 = arith.constant 0 : index
    %207 = vector.load %arg11[%c0_247, %c22_248, %c0_249] : memref<8x64x32xf32, #tpu.memory_space<vmem>>, vector<8x1x32xf32>
    %208 = vector.shape_cast %207 : vector<8x1x32xf32> to vector<8x32xf32>
    %c0_250 = arith.constant 0 : index
    %c23_251 = arith.constant 23 : index
    %c0_252 = arith.constant 0 : index
    %209 = vector.load %arg11[%c0_250, %c23_251, %c0_252] : memref<8x64x32xf32, #tpu.memory_space<vmem>>, vector<8x1x32xf32>
    %210 = vector.shape_cast %209 : vector<8x1x32xf32> to vector<8x32xf32>
    %c0_253 = arith.constant 0 : index
    %c28_254 = arith.constant 28 : index
    %c0_255 = arith.constant 0 : index
    %211 = vector.load %arg11[%c0_253, %c28_254, %c0_255] : memref<8x64x32xf32, #tpu.memory_space<vmem>>, vector<8x1x32xf32>
    %212 = vector.shape_cast %211 : vector<8x1x32xf32> to vector<8x32xf32>
    %c0_256 = arith.constant 0 : index
    %c29_257 = arith.constant 29 : index
    %c0_258 = arith.constant 0 : index
    %213 = vector.load %arg11[%c0_256, %c29_257, %c0_258] : memref<8x64x32xf32, #tpu.memory_space<vmem>>, vector<8x1x32xf32>
    %214 = vector.shape_cast %213 : vector<8x1x32xf32> to vector<8x32xf32>
    %c0_259 = arith.constant 0 : index
    %c30_260 = arith.constant 30 : index
    %c0_261 = arith.constant 0 : index
    %215 = vector.load %arg11[%c0_259, %c30_260, %c0_261] : memref<8x64x32xf32, #tpu.memory_space<vmem>>, vector<8x1x32xf32>
    %216 = vector.shape_cast %215 : vector<8x1x32xf32> to vector<8x32xf32>
    %c0_262 = arith.constant 0 : index
    %c31_263 = arith.constant 31 : index
    %c0_264 = arith.constant 0 : index
    %217 = vector.load %arg11[%c0_262, %c31_263, %c0_264] : memref<8x64x32xf32, #tpu.memory_space<vmem>>, vector<8x1x32xf32>
    %218 = vector.shape_cast %217 : vector<8x1x32xf32> to vector<8x32xf32>
    %c0_265 = arith.constant 0 : index
    %c36_266 = arith.constant 36 : index
    %c0_267 = arith.constant 0 : index
    %219 = vector.load %arg11[%c0_265, %c36_266, %c0_267] : memref<8x64x32xf32, #tpu.memory_space<vmem>>, vector<8x1x32xf32>
    %220 = vector.shape_cast %219 : vector<8x1x32xf32> to vector<8x32xf32>
    %c0_268 = arith.constant 0 : index
    %c37_269 = arith.constant 37 : index
    %c0_270 = arith.constant 0 : index
    %221 = vector.load %arg11[%c0_268, %c37_269, %c0_270] : memref<8x64x32xf32, #tpu.memory_space<vmem>>, vector<8x1x32xf32>
    %222 = vector.shape_cast %221 : vector<8x1x32xf32> to vector<8x32xf32>
    %c0_271 = arith.constant 0 : index
    %c38 = arith.constant 38 : index
    %c0_272 = arith.constant 0 : index
    %223 = vector.load %arg11[%c0_271, %c38, %c0_272] : memref<8x64x32xf32, #tpu.memory_space<vmem>>, vector<8x1x32xf32>
    %224 = vector.shape_cast %223 : vector<8x1x32xf32> to vector<8x32xf32>
    %c0_273 = arith.constant 0 : index
    %c39 = arith.constant 39 : index
    %c0_274 = arith.constant 0 : index
    %225 = vector.load %arg11[%c0_273, %c39, %c0_274] : memref<8x64x32xf32, #tpu.memory_space<vmem>>, vector<8x1x32xf32>
    %226 = vector.shape_cast %225 : vector<8x1x32xf32> to vector<8x32xf32>
    %c0_275 = arith.constant 0 : index
    %c44_276 = arith.constant 44 : index
    %c0_277 = arith.constant 0 : index
    %227 = vector.load %arg11[%c0_275, %c44_276, %c0_277] : memref<8x64x32xf32, #tpu.memory_space<vmem>>, vector<8x1x32xf32>
    %228 = vector.shape_cast %227 : vector<8x1x32xf32> to vector<8x32xf32>
    %c0_278 = arith.constant 0 : index
    %c45_279 = arith.constant 45 : index
    %c0_280 = arith.constant 0 : index
    %229 = vector.load %arg11[%c0_278, %c45_279, %c0_280] : memref<8x64x32xf32, #tpu.memory_space<vmem>>, vector<8x1x32xf32>
    %230 = vector.shape_cast %229 : vector<8x1x32xf32> to vector<8x32xf32>
    %c0_281 = arith.constant 0 : index
    %c46 = arith.constant 46 : index
    %c0_282 = arith.constant 0 : index
    %231 = vector.load %arg11[%c0_281, %c46, %c0_282] : memref<8x64x32xf32, #tpu.memory_space<vmem>>, vector<8x1x32xf32>
    %232 = vector.shape_cast %231 : vector<8x1x32xf32> to vector<8x32xf32>
    %c0_283 = arith.constant 0 : index
    %c47 = arith.constant 47 : index
    %c0_284 = arith.constant 0 : index
    %233 = vector.load %arg11[%c0_283, %c47, %c0_284] : memref<8x64x32xf32, #tpu.memory_space<vmem>>, vector<8x1x32xf32>
    %234 = vector.shape_cast %233 : vector<8x1x32xf32> to vector<8x32xf32>
    %235 = tpu.concatenate %204, %206, %208, %210, %212, %214, %216, %218, %220, %222, %224, %226, %228, %230, %232, %234 in 1 : vector<8x32xf32>, vector<8x32xf32>, vector<8x32xf32>, vector<8x32xf32>, vector<8x32xf32>, vector<8x32xf32>, vector<8x32xf32>, vector<8x32xf32>, vector<8x32xf32>, vector<8x32xf32>, vector<8x32xf32>, vector<8x32xf32>, vector<8x32xf32>, vector<8x32xf32>, vector<8x32xf32>, vector<8x32xf32> -> vector<8x512xf32>
    %cst_285 = arith.constant dense<0.000000e+00> : vector<8x64xf32>
    %236 = tpu.matmul %235, %32, %cst_285 {dimension_numbers = #tpu.dot_dimension_numbers<[1], [0], [0], [1], [0, 0, 1, 1], [], []>} : vector<8x512xf32>, vector<512x64xf32>, vector<8x64xf32> -> vector<8x64xf32>
    %c0_286 = arith.constant 0 : index
    %c32_287 = arith.constant 32 : index
    %c0_288 = arith.constant 0 : index
    %237 = vector.load %arg11[%c0_286, %c32_287, %c0_288] : memref<8x64x32xf32, #tpu.memory_space<vmem>>, vector<8x1x32xf32>
    %238 = vector.shape_cast %237 : vector<8x1x32xf32> to vector<8x32xf32>
    %c0_289 = arith.constant 0 : index
    %c33_290 = arith.constant 33 : index
    %c0_291 = arith.constant 0 : index
    %239 = vector.load %arg11[%c0_289, %c33_290, %c0_291] : memref<8x64x32xf32, #tpu.memory_space<vmem>>, vector<8x1x32xf32>
    %240 = vector.shape_cast %239 : vector<8x1x32xf32> to vector<8x32xf32>
    %c0_292 = arith.constant 0 : index
    %c34_293 = arith.constant 34 : index
    %c0_294 = arith.constant 0 : index
    %241 = vector.load %arg11[%c0_292, %c34_293, %c0_294] : memref<8x64x32xf32, #tpu.memory_space<vmem>>, vector<8x1x32xf32>
    %242 = vector.shape_cast %241 : vector<8x1x32xf32> to vector<8x32xf32>
    %c0_295 = arith.constant 0 : index
    %c35_296 = arith.constant 35 : index
    %c0_297 = arith.constant 0 : index
    %243 = vector.load %arg11[%c0_295, %c35_296, %c0_297] : memref<8x64x32xf32, #tpu.memory_space<vmem>>, vector<8x1x32xf32>
    %244 = vector.shape_cast %243 : vector<8x1x32xf32> to vector<8x32xf32>
    %c0_298 = arith.constant 0 : index
    %c40_299 = arith.constant 40 : index
    %c0_300 = arith.constant 0 : index
    %245 = vector.load %arg11[%c0_298, %c40_299, %c0_300] : memref<8x64x32xf32, #tpu.memory_space<vmem>>, vector<8x1x32xf32>
    %246 = vector.shape_cast %245 : vector<8x1x32xf32> to vector<8x32xf32>
    %c0_301 = arith.constant 0 : index
    %c41_302 = arith.constant 41 : index
    %c0_303 = arith.constant 0 : index
    %247 = vector.load %arg11[%c0_301, %c41_302, %c0_303] : memref<8x64x32xf32, #tpu.memory_space<vmem>>, vector<8x1x32xf32>
    %248 = vector.shape_cast %247 : vector<8x1x32xf32> to vector<8x32xf32>
    %c0_304 = arith.constant 0 : index
    %c42_305 = arith.constant 42 : index
    %c0_306 = arith.constant 0 : index
    %249 = vector.load %arg11[%c0_304, %c42_305, %c0_306] : memref<8x64x32xf32, #tpu.memory_space<vmem>>, vector<8x1x32xf32>
    %250 = vector.shape_cast %249 : vector<8x1x32xf32> to vector<8x32xf32>
    %c0_307 = arith.constant 0 : index
    %c43_308 = arith.constant 43 : index
    %c0_309 = arith.constant 0 : index
    %251 = vector.load %arg11[%c0_307, %c43_308, %c0_309] : memref<8x64x32xf32, #tpu.memory_space<vmem>>, vector<8x1x32xf32>
    %252 = vector.shape_cast %251 : vector<8x1x32xf32> to vector<8x32xf32>
    %c0_310 = arith.constant 0 : index
    %c48 = arith.constant 48 : index
    %c0_311 = arith.constant 0 : index
    %253 = vector.load %arg11[%c0_310, %c48, %c0_311] : memref<8x64x32xf32, #tpu.memory_space<vmem>>, vector<8x1x32xf32>
    %254 = vector.shape_cast %253 : vector<8x1x32xf32> to vector<8x32xf32>
    %c0_312 = arith.constant 0 : index
    %c49 = arith.constant 49 : index
    %c0_313 = arith.constant 0 : index
    %255 = vector.load %arg11[%c0_312, %c49, %c0_313] : memref<8x64x32xf32, #tpu.memory_space<vmem>>, vector<8x1x32xf32>
    %256 = vector.shape_cast %255 : vector<8x1x32xf32> to vector<8x32xf32>
    %c0_314 = arith.constant 0 : index
    %c50 = arith.constant 50 : index
    %c0_315 = arith.constant 0 : index
    %257 = vector.load %arg11[%c0_314, %c50, %c0_315] : memref<8x64x32xf32, #tpu.memory_space<vmem>>, vector<8x1x32xf32>
    %258 = vector.shape_cast %257 : vector<8x1x32xf32> to vector<8x32xf32>
    %c0_316 = arith.constant 0 : index
    %c51 = arith.constant 51 : index
    %c0_317 = arith.constant 0 : index
    %259 = vector.load %arg11[%c0_316, %c51, %c0_317] : memref<8x64x32xf32, #tpu.memory_space<vmem>>, vector<8x1x32xf32>
    %260 = vector.shape_cast %259 : vector<8x1x32xf32> to vector<8x32xf32>
    %c0_318 = arith.constant 0 : index
    %c56 = arith.constant 56 : index
    %c0_319 = arith.constant 0 : index
    %261 = vector.load %arg11[%c0_318, %c56, %c0_319] : memref<8x64x32xf32, #tpu.memory_space<vmem>>, vector<8x1x32xf32>
    %262 = vector.shape_cast %261 : vector<8x1x32xf32> to vector<8x32xf32>
    %c0_320 = arith.constant 0 : index
    %c57 = arith.constant 57 : index
    %c0_321 = arith.constant 0 : index
    %263 = vector.load %arg11[%c0_320, %c57, %c0_321] : memref<8x64x32xf32, #tpu.memory_space<vmem>>, vector<8x1x32xf32>
    %264 = vector.shape_cast %263 : vector<8x1x32xf32> to vector<8x32xf32>
    %c0_322 = arith.constant 0 : index
    %c58 = arith.constant 58 : index
    %c0_323 = arith.constant 0 : index
    %265 = vector.load %arg11[%c0_322, %c58, %c0_323] : memref<8x64x32xf32, #tpu.memory_space<vmem>>, vector<8x1x32xf32>
    %266 = vector.shape_cast %265 : vector<8x1x32xf32> to vector<8x32xf32>
    %c0_324 = arith.constant 0 : index
    %c59 = arith.constant 59 : index
    %c0_325 = arith.constant 0 : index
    %267 = vector.load %arg11[%c0_324, %c59, %c0_325] : memref<8x64x32xf32, #tpu.memory_space<vmem>>, vector<8x1x32xf32>
    %268 = vector.shape_cast %267 : vector<8x1x32xf32> to vector<8x32xf32>
    %269 = tpu.concatenate %238, %240, %242, %244, %246, %248, %250, %252, %254, %256, %258, %260, %262, %264, %266, %268 in 1 : vector<8x32xf32>, vector<8x32xf32>, vector<8x32xf32>, vector<8x32xf32>, vector<8x32xf32>, vector<8x32xf32>, vector<8x32xf32>, vector<8x32xf32>, vector<8x32xf32>, vector<8x32xf32>, vector<8x32xf32>, vector<8x32xf32>, vector<8x32xf32>, vector<8x32xf32>, vector<8x32xf32>, vector<8x32xf32> -> vector<8x512xf32>
    %cst_326 = arith.constant dense<0.000000e+00> : vector<8x64xf32>
    %270 = tpu.matmul %269, %32, %cst_326 {dimension_numbers = #tpu.dot_dimension_numbers<[1], [0], [0], [1], [0, 0, 1, 1], [], []>} : vector<8x512xf32>, vector<512x64xf32>, vector<8x64xf32> -> vector<8x64xf32>
    %c0_327 = arith.constant 0 : index
    %c34_328 = arith.constant 34 : index
    %c0_329 = arith.constant 0 : index
    %271 = vector.load %arg11[%c0_327, %c34_328, %c0_329] : memref<8x64x32xf32, #tpu.memory_space<vmem>>, vector<8x1x32xf32>
    %272 = vector.shape_cast %271 : vector<8x1x32xf32> to vector<8x32xf32>
    %c0_330 = arith.constant 0 : index
    %c35_331 = arith.constant 35 : index
    %c0_332 = arith.constant 0 : index
    %273 = vector.load %arg11[%c0_330, %c35_331, %c0_332] : memref<8x64x32xf32, #tpu.memory_space<vmem>>, vector<8x1x32xf32>
    %274 = vector.shape_cast %273 : vector<8x1x32xf32> to vector<8x32xf32>
    %c0_333 = arith.constant 0 : index
    %c36_334 = arith.constant 36 : index
    %c0_335 = arith.constant 0 : index
    %275 = vector.load %arg11[%c0_333, %c36_334, %c0_335] : memref<8x64x32xf32, #tpu.memory_space<vmem>>, vector<8x1x32xf32>
    %276 = vector.shape_cast %275 : vector<8x1x32xf32> to vector<8x32xf32>
    %c0_336 = arith.constant 0 : index
    %c37_337 = arith.constant 37 : index
    %c0_338 = arith.constant 0 : index
    %277 = vector.load %arg11[%c0_336, %c37_337, %c0_338] : memref<8x64x32xf32, #tpu.memory_space<vmem>>, vector<8x1x32xf32>
    %278 = vector.shape_cast %277 : vector<8x1x32xf32> to vector<8x32xf32>
    %c0_339 = arith.constant 0 : index
    %c42_340 = arith.constant 42 : index
    %c0_341 = arith.constant 0 : index
    %279 = vector.load %arg11[%c0_339, %c42_340, %c0_341] : memref<8x64x32xf32, #tpu.memory_space<vmem>>, vector<8x1x32xf32>
    %280 = vector.shape_cast %279 : vector<8x1x32xf32> to vector<8x32xf32>
    %c0_342 = arith.constant 0 : index
    %c43_343 = arith.constant 43 : index
    %c0_344 = arith.constant 0 : index
    %281 = vector.load %arg11[%c0_342, %c43_343, %c0_344] : memref<8x64x32xf32, #tpu.memory_space<vmem>>, vector<8x1x32xf32>
    %282 = vector.shape_cast %281 : vector<8x1x32xf32> to vector<8x32xf32>
    %c0_345 = arith.constant 0 : index
    %c44_346 = arith.constant 44 : index
    %c0_347 = arith.constant 0 : index
    %283 = vector.load %arg11[%c0_345, %c44_346, %c0_347] : memref<8x64x32xf32, #tpu.memory_space<vmem>>, vector<8x1x32xf32>
    %284 = vector.shape_cast %283 : vector<8x1x32xf32> to vector<8x32xf32>
    %c0_348 = arith.constant 0 : index
    %c45_349 = arith.constant 45 : index
    %c0_350 = arith.constant 0 : index
    %285 = vector.load %arg11[%c0_348, %c45_349, %c0_350] : memref<8x64x32xf32, #tpu.memory_space<vmem>>, vector<8x1x32xf32>
    %286 = vector.shape_cast %285 : vector<8x1x32xf32> to vector<8x32xf32>
    %c0_351 = arith.constant 0 : index
    %c50_352 = arith.constant 50 : index
    %c0_353 = arith.constant 0 : index
    %287 = vector.load %arg11[%c0_351, %c50_352, %c0_353] : memref<8x64x32xf32, #tpu.memory_space<vmem>>, vector<8x1x32xf32>
    %288 = vector.shape_cast %287 : vector<8x1x32xf32> to vector<8x32xf32>
    %c0_354 = arith.constant 0 : index
    %c51_355 = arith.constant 51 : index
    %c0_356 = arith.constant 0 : index
    %289 = vector.load %arg11[%c0_354, %c51_355, %c0_356] : memref<8x64x32xf32, #tpu.memory_space<vmem>>, vector<8x1x32xf32>
    %290 = vector.shape_cast %289 : vector<8x1x32xf32> to vector<8x32xf32>
    %c0_357 = arith.constant 0 : index
    %c52 = arith.constant 52 : index
    %c0_358 = arith.constant 0 : index
    %291 = vector.load %arg11[%c0_357, %c52, %c0_358] : memref<8x64x32xf32, #tpu.memory_space<vmem>>, vector<8x1x32xf32>
    %292 = vector.shape_cast %291 : vector<8x1x32xf32> to vector<8x32xf32>
    %c0_359 = arith.constant 0 : index
    %c53 = arith.constant 53 : index
    %c0_360 = arith.constant 0 : index
    %293 = vector.load %arg11[%c0_359, %c53, %c0_360] : memref<8x64x32xf32, #tpu.memory_space<vmem>>, vector<8x1x32xf32>
    %294 = vector.shape_cast %293 : vector<8x1x32xf32> to vector<8x32xf32>
    %c0_361 = arith.constant 0 : index
    %c58_362 = arith.constant 58 : index
    %c0_363 = arith.constant 0 : index
    %295 = vector.load %arg11[%c0_361, %c58_362, %c0_363] : memref<8x64x32xf32, #tpu.memory_space<vmem>>, vector<8x1x32xf32>
    %296 = vector.shape_cast %295 : vector<8x1x32xf32> to vector<8x32xf32>
    %c0_364 = arith.constant 0 : index
    %c59_365 = arith.constant 59 : index
    %c0_366 = arith.constant 0 : index
    %297 = vector.load %arg11[%c0_364, %c59_365, %c0_366] : memref<8x64x32xf32, #tpu.memory_space<vmem>>, vector<8x1x32xf32>
    %298 = vector.shape_cast %297 : vector<8x1x32xf32> to vector<8x32xf32>
    %c0_367 = arith.constant 0 : index
    %c60 = arith.constant 60 : index
    %c0_368 = arith.constant 0 : index
    %299 = vector.load %arg11[%c0_367, %c60, %c0_368] : memref<8x64x32xf32, #tpu.memory_space<vmem>>, vector<8x1x32xf32>
    %300 = vector.shape_cast %299 : vector<8x1x32xf32> to vector<8x32xf32>
    %c0_369 = arith.constant 0 : index
    %c61 = arith.constant 61 : index
    %c0_370 = arith.constant 0 : index
    %301 = vector.load %arg11[%c0_369, %c61, %c0_370] : memref<8x64x32xf32, #tpu.memory_space<vmem>>, vector<8x1x32xf32>
    %302 = vector.shape_cast %301 : vector<8x1x32xf32> to vector<8x32xf32>
    %303 = tpu.concatenate %272, %274, %276, %278, %280, %282, %284, %286, %288, %290, %292, %294, %296, %298, %300, %302 in 1 : vector<8x32xf32>, vector<8x32xf32>, vector<8x32xf32>, vector<8x32xf32>, vector<8x32xf32>, vector<8x32xf32>, vector<8x32xf32>, vector<8x32xf32>, vector<8x32xf32>, vector<8x32xf32>, vector<8x32xf32>, vector<8x32xf32>, vector<8x32xf32>, vector<8x32xf32>, vector<8x32xf32>, vector<8x32xf32> -> vector<8x512xf32>
    %cst_371 = arith.constant dense<0.000000e+00> : vector<8x64xf32>
    %304 = tpu.matmul %303, %32, %cst_371 {dimension_numbers = #tpu.dot_dimension_numbers<[1], [0], [0], [1], [0, 0, 1, 1], [], []>} : vector<8x512xf32>, vector<512x64xf32>, vector<8x64xf32> -> vector<8x64xf32>
    %c0_372 = arith.constant 0 : index
    %c36_373 = arith.constant 36 : index
    %c0_374 = arith.constant 0 : index
    %305 = vector.load %arg11[%c0_372, %c36_373, %c0_374] : memref<8x64x32xf32, #tpu.memory_space<vmem>>, vector<8x1x32xf32>
    %306 = vector.shape_cast %305 : vector<8x1x32xf32> to vector<8x32xf32>
    %c0_375 = arith.constant 0 : index
    %c37_376 = arith.constant 37 : index
    %c0_377 = arith.constant 0 : index
    %307 = vector.load %arg11[%c0_375, %c37_376, %c0_377] : memref<8x64x32xf32, #tpu.memory_space<vmem>>, vector<8x1x32xf32>
    %308 = vector.shape_cast %307 : vector<8x1x32xf32> to vector<8x32xf32>
    %c0_378 = arith.constant 0 : index
    %c38_379 = arith.constant 38 : index
    %c0_380 = arith.constant 0 : index
    %309 = vector.load %arg11[%c0_378, %c38_379, %c0_380] : memref<8x64x32xf32, #tpu.memory_space<vmem>>, vector<8x1x32xf32>
    %310 = vector.shape_cast %309 : vector<8x1x32xf32> to vector<8x32xf32>
    %c0_381 = arith.constant 0 : index
    %c39_382 = arith.constant 39 : index
    %c0_383 = arith.constant 0 : index
    %311 = vector.load %arg11[%c0_381, %c39_382, %c0_383] : memref<8x64x32xf32, #tpu.memory_space<vmem>>, vector<8x1x32xf32>
    %312 = vector.shape_cast %311 : vector<8x1x32xf32> to vector<8x32xf32>
    %c0_384 = arith.constant 0 : index
    %c44_385 = arith.constant 44 : index
    %c0_386 = arith.constant 0 : index
    %313 = vector.load %arg11[%c0_384, %c44_385, %c0_386] : memref<8x64x32xf32, #tpu.memory_space<vmem>>, vector<8x1x32xf32>
    %314 = vector.shape_cast %313 : vector<8x1x32xf32> to vector<8x32xf32>
    %c0_387 = arith.constant 0 : index
    %c45_388 = arith.constant 45 : index
    %c0_389 = arith.constant 0 : index
    %315 = vector.load %arg11[%c0_387, %c45_388, %c0_389] : memref<8x64x32xf32, #tpu.memory_space<vmem>>, vector<8x1x32xf32>
    %316 = vector.shape_cast %315 : vector<8x1x32xf32> to vector<8x32xf32>
    %c0_390 = arith.constant 0 : index
    %c46_391 = arith.constant 46 : index
    %c0_392 = arith.constant 0 : index
    %317 = vector.load %arg11[%c0_390, %c46_391, %c0_392] : memref<8x64x32xf32, #tpu.memory_space<vmem>>, vector<8x1x32xf32>
    %318 = vector.shape_cast %317 : vector<8x1x32xf32> to vector<8x32xf32>
    %c0_393 = arith.constant 0 : index
    %c47_394 = arith.constant 47 : index
    %c0_395 = arith.constant 0 : index
    %319 = vector.load %arg11[%c0_393, %c47_394, %c0_395] : memref<8x64x32xf32, #tpu.memory_space<vmem>>, vector<8x1x32xf32>
    %320 = vector.shape_cast %319 : vector<8x1x32xf32> to vector<8x32xf32>
    %c0_396 = arith.constant 0 : index
    %c52_397 = arith.constant 52 : index
    %c0_398 = arith.constant 0 : index
    %321 = vector.load %arg11[%c0_396, %c52_397, %c0_398] : memref<8x64x32xf32, #tpu.memory_space<vmem>>, vector<8x1x32xf32>
    %322 = vector.shape_cast %321 : vector<8x1x32xf32> to vector<8x32xf32>
    %c0_399 = arith.constant 0 : index
    %c53_400 = arith.constant 53 : index
    %c0_401 = arith.constant 0 : index
    %323 = vector.load %arg11[%c0_399, %c53_400, %c0_401] : memref<8x64x32xf32, #tpu.memory_space<vmem>>, vector<8x1x32xf32>
    %324 = vector.shape_cast %323 : vector<8x1x32xf32> to vector<8x32xf32>
    %c0_402 = arith.constant 0 : index
    %c54 = arith.constant 54 : index
    %c0_403 = arith.constant 0 : index
    %325 = vector.load %arg11[%c0_402, %c54, %c0_403] : memref<8x64x32xf32, #tpu.memory_space<vmem>>, vector<8x1x32xf32>
    %326 = vector.shape_cast %325 : vector<8x1x32xf32> to vector<8x32xf32>
    %c0_404 = arith.constant 0 : index
    %c55 = arith.constant 55 : index
    %c0_405 = arith.constant 0 : index
    %327 = vector.load %arg11[%c0_404, %c55, %c0_405] : memref<8x64x32xf32, #tpu.memory_space<vmem>>, vector<8x1x32xf32>
    %328 = vector.shape_cast %327 : vector<8x1x32xf32> to vector<8x32xf32>
    %c0_406 = arith.constant 0 : index
    %c60_407 = arith.constant 60 : index
    %c0_408 = arith.constant 0 : index
    %329 = vector.load %arg11[%c0_406, %c60_407, %c0_408] : memref<8x64x32xf32, #tpu.memory_space<vmem>>, vector<8x1x32xf32>
    %330 = vector.shape_cast %329 : vector<8x1x32xf32> to vector<8x32xf32>
    %c0_409 = arith.constant 0 : index
    %c61_410 = arith.constant 61 : index
    %c0_411 = arith.constant 0 : index
    %331 = vector.load %arg11[%c0_409, %c61_410, %c0_411] : memref<8x64x32xf32, #tpu.memory_space<vmem>>, vector<8x1x32xf32>
    %332 = vector.shape_cast %331 : vector<8x1x32xf32> to vector<8x32xf32>
    %c0_412 = arith.constant 0 : index
    %c62 = arith.constant 62 : index
    %c0_413 = arith.constant 0 : index
    %333 = vector.load %arg11[%c0_412, %c62, %c0_413] : memref<8x64x32xf32, #tpu.memory_space<vmem>>, vector<8x1x32xf32>
    %334 = vector.shape_cast %333 : vector<8x1x32xf32> to vector<8x32xf32>
    %c0_414 = arith.constant 0 : index
    %c63 = arith.constant 63 : index
    %c0_415 = arith.constant 0 : index
    %335 = vector.load %arg11[%c0_414, %c63, %c0_415] : memref<8x64x32xf32, #tpu.memory_space<vmem>>, vector<8x1x32xf32>
    %336 = vector.shape_cast %335 : vector<8x1x32xf32> to vector<8x32xf32>
    %337 = tpu.concatenate %306, %308, %310, %312, %314, %316, %318, %320, %322, %324, %326, %328, %330, %332, %334, %336 in 1 : vector<8x32xf32>, vector<8x32xf32>, vector<8x32xf32>, vector<8x32xf32>, vector<8x32xf32>, vector<8x32xf32>, vector<8x32xf32>, vector<8x32xf32>, vector<8x32xf32>, vector<8x32xf32>, vector<8x32xf32>, vector<8x32xf32>, vector<8x32xf32>, vector<8x32xf32>, vector<8x32xf32>, vector<8x32xf32> -> vector<8x512xf32>
    %cst_416 = arith.constant dense<0.000000e+00> : vector<8x64xf32>
    %338 = tpu.matmul %337, %32, %cst_416 {dimension_numbers = #tpu.dot_dimension_numbers<[1], [0], [0], [1], [0, 0, 1, 1], [], []>} : vector<8x512xf32>, vector<512x64xf32>, vector<8x64xf32> -> vector<8x64xf32>
    %339 = tpu.concatenate %66, %100, %134, %168, %202, %236, %270, %304, %338 in 1 : vector<8x64xf32>, vector<8x64xf32>, vector<8x64xf32>, vector<8x64xf32>, vector<8x64xf32>, vector<8x64xf32>, vector<8x64xf32>, vector<8x64xf32>, vector<8x64xf32> -> vector<8x576xf32>
    %c0_417 = arith.constant 0 : index
    %c0_418 = arith.constant 0 : index
    %340 = vector.load %arg5[%c0_417, %c0_418] : memref<1x576xf32, #tpu.memory_space<vmem>>, vector<1x576xf32>
    %341 = vector.broadcast %340 : vector<1x576xf32> to vector<8x576xf32>
    %342 = arith.addf %339, %341 : vector<8x576xf32>
    %cst_419 = arith.constant 0.000000e+00 : f32
    %343 = vector.broadcast %cst_419 : f32 to vector<8x576xf32>
    %344 = arith.maximumf %342, %343 : vector<8x576xf32>
    %c0_420 = arith.constant 0 : index
    %c0_421 = arith.constant 0 : index
    %345 = vector.load %arg6[%c0_420, %c0_421] : memref<576x64xf32, #tpu.memory_space<vmem>>, vector<576x64xf32>
    %cst_422 = arith.constant dense<0.000000e+00> : vector<8x64xf32>
    %346 = tpu.matmul %344, %345, %cst_422 {dimension_numbers = #tpu.dot_dimension_numbers<[1], [0], [0], [1], [0, 0, 1, 1], [], []>} : vector<8x576xf32>, vector<576x64xf32>, vector<8x64xf32> -> vector<8x64xf32>
    %c0_423 = arith.constant 0 : index
    %c0_424 = arith.constant 0 : index
    %347 = vector.load %arg7[%c0_423, %c0_424] : memref<1x64xf32, #tpu.memory_space<vmem>>, vector<1x64xf32>
    %348 = vector.broadcast %347 : vector<1x64xf32> to vector<8x64xf32>
    %349 = arith.addf %346, %348 : vector<8x64xf32>
    %cst_425 = arith.constant 0.000000e+00 : f32
    %350 = vector.broadcast %cst_425 : f32 to vector<8x64xf32>
    %351 = arith.maximumf %349, %350 : vector<8x64xf32>
    %c0_426 = arith.constant 0 : index
    %c0_427 = arith.constant 0 : index
    %352 = vector.load %arg8[%c0_426, %c0_427] : memref<64x128xf32, #tpu.memory_space<vmem>>, vector<64x128xf32>
    %cst_428 = arith.constant dense<0.000000e+00> : vector<8x128xf32>
    %353 = tpu.matmul %351, %352, %cst_428 {dimension_numbers = #tpu.dot_dimension_numbers<[1], [0], [0], [1], [0, 0, 1, 1], [], []>} : vector<8x64xf32>, vector<64x128xf32>, vector<8x128xf32> -> vector<8x128xf32>
    %c0_429 = arith.constant 0 : index
    %c0_430 = arith.constant 0 : index
    %354 = vector.load %arg9[%c0_429, %c0_430] : memref<1x128xf32, #tpu.memory_space<vmem>>, vector<1x128xf32>
    %355 = vector.broadcast %354 : vector<1x128xf32> to vector<8x128xf32>
    %356 = arith.addf %353, %355 : vector<8x128xf32>
    %cst_431 = arith.constant 0.000000e+00 : f32
    %357 = vector.broadcast %cst_431 : f32 to vector<8x128xf32>
    %358 = arith.maximumf %356, %357 : vector<8x128xf32>
    %c0_432 = arith.constant 0 : index
    %c0_433 = arith.constant 0 : index
    %359 = vector.load %arg10[%c0_432, %c0_433] : memref<8x128xf32, #tpu.memory_space<vmem>>, vector<8x128xf32>
    tpu.vector_store %arg10[%c0_432, %c0_433], %358 {strides = array<i32>} : memref<8x128xf32, #tpu.memory_space<vmem>>, vector<8x128xf32>,
    return
  }
  func.func @transform_0(%arg0: i32) -> (i32, i32, i32, i32) {
    %c0_i32 = arith.constant 0 : i32
    %c0_i32_0 = arith.constant 0 : i32
    %c0_i32_1 = arith.constant 0 : i32
    %c0_i32_2 = arith.constant 0 : i32
    return %arg0, %c0_i32, %c0_i32_0, %c0_i32_1 : i32, i32, i32, i32
  }
  func.func @transform_1(%arg0: i32) -> (i32, i32, i32) {
    %c0_i32 = arith.constant 0 : i32
    %c0_i32_0 = arith.constant 0 : i32
    %c0_i32_1 = arith.constant 0 : i32
    %c0_i32_2 = arith.constant 0 : i32
    return %c0_i32, %c0_i32_0, %c0_i32_1 : i32, i32, i32
  }
  func.func @transform_2(%arg0: i32) -> (i32, i32) {
    %c0_i32 = arith.constant 0 : i32
    %c0_i32_0 = arith.constant 0 : i32
    %c0_i32_1 = arith.constant 0 : i32
    return %c0_i32, %c0_i32_0 : i32, i32
  }
  func.func @transform_3(%arg0: i32) -> (i32, i32) {
    %c0_i32 = arith.constant 0 : i32
    %c0_i32_0 = arith.constant 0 : i32
    %c0_i32_1 = arith.constant 0 : i32
    return %c0_i32, %c0_i32_0 : i32, i32
  }
  func.func @transform_4(%arg0: i32) -> (i32, i32) {
    %c0_i32 = arith.constant 0 : i32
    %c0_i32_0 = arith.constant 0 : i32
    %c0_i32_1 = arith.constant 0 : i32
    return %c0_i32, %c0_i32_0 : i32, i32
  }
  func.func @transform_5(%arg0: i32) -> (i32, i32) {
    %c0_i32 = arith.constant 0 : i32
    %c0_i32_0 = arith.constant 0 : i32
    %c0_i32_1 = arith.constant 0 : i32
    return %c0_i32, %c0_i32_0 : i32, i32
  }
  func.func @transform_6(%arg0: i32) -> (i32, i32) {
    %c0_i32 = arith.constant 0 : i32
    %c0_i32_0 = arith.constant 0 : i32
    %c0_i32_1 = arith.constant 0 : i32
    return %c0_i32, %c0_i32_0 : i32, i32
  }
  func.func @transform_7(%arg0: i32) -> (i32, i32) {
    %c0_i32 = arith.constant 0 : i32
    %c0_i32_0 = arith.constant 0 : i32
    %c0_i32_1 = arith.constant 0 : i32
    return %c0_i32, %c0_i32_0 : i32, i32
  }
  func.func @transform_8(%arg0: i32) -> (i32, i32) {
    %c0_i32 = arith.constant 0 : i32
    %c0_i32_0 = arith.constant 0 : i32
    %c0_i32_1 = arith.constant 0 : i32
    return %c0_i32, %c0_i32_0 : i32, i32
  }
  func.func @transform_9(%arg0: i32) -> (i32, i32) {
    %c0_i32 = arith.constant 0 : i32
    %c0_i32_0 = arith.constant 0 : i32
    return %arg0, %c0_i32 : i32, i32
  }
}

</mosaic_0001>

<bundles_post_ra>
// kernel: naturecnn_forward.1
= control target key start
LH: loop header
LB: loop body
LE: loop exit
PB: predicated region body
PF: predicated region fallthrough
CT: control target
= control target key end

     0   :  { %14 = vsyncpa [#allocation4], 0  ;;  %s13753_s0 = inlined_call_operand.vmem [shape: f32[16,9,9,48], index: 0, kind: input, shape index: {}]   ;;  %s13754_s1 = inlined_call_operand.vmem [shape: f32[4,48,32], index: 1, kind: input, shape index: {}]   ;;  %s13755_s2 = inlined_call_operand.vmem [shape: f32[1,32], index: 2, kind: input, shape index: {}]   ;;  %s13756_s3 = inlined_call_operand.vmem [shape: f32[512,64], index: 3, kind: input, shape index: {}]   ;;  %s13757_s4 = inlined_call_operand.vmem [shape: f32[1,576], index: 4, kind: input, shape index: {}]   ;;  %s13758_s5 = inlined_call_operand.vmem [shape: f32[576,64], index: 5, kind: input, shape index: {}]   ;;  %s13759_s6 = inlined_call_operand.vmem [shape: f32[1,64], index: 6, kind: input, shape index: {}]   ;;  %s13760_s7 = inlined_call_operand.vmem [shape: f32[64,128], index: 7, kind: input, shape index: {}]   ;;  %s13761_s8 = inlined_call_operand.vmem [shape: f32[1,128], index: 8, kind: input, shape index: {}]   ;;  %s13762_s9 = inlined_call_operand.hbm [shape: f32[16,128], index: 9, kind: output, shape index: {}]  }
   0x1   :  { %16 = vsyncpa [#allocation4 + $0x1], 0  ;;  %s10473_s30 = smov 0   ;;  %s10475_s10 = smov 0  }
   0x2   :  { %s10477_s11 = smov 0   ;;  %s10479_s12 = smov 0  }
   0x3 LB: > { %s10494_s13 = sadd.s32 4294967295, %s10414_s12   ;;  %s7335_s14 = sadd.s32 4294967294, %s10414_s12   ;;  %s10414_s12 = sphi %s10479_s12, %s14024_s12   ;;  %s10410_s11 = sphi %s10477_s11, %s14023_s11   ;;  %s10406_s10 = sphi %s10475_s10, %s14022_s10   ;;  %s10402_s30 = sphi %s10473_s30, %s14021_s30  }
   0x4   : > { %s10498_s15 = sadd.s32 1, %s10414_s12   ;;  %s223_s16 = sadd.s32 1, %s10410_s11 }
   0x5   : > { %s220_s17 = ssub.s32 %s10414_s12, %s10498_s15  ;;  %p233_p0 = scmp.ne.s32.totalorder %s10410_s11, %s10406_s10 }
   0x6   : > { %p221_p1 = scmp.eq.s32.totalorder %s220_s17, 0  ;;  %p234_p2 = scmp.eq.s32.totalorder %s10494_s13, 1 }
   0x7   : > { %p239_p3 = scmp.ne.s32.totalorder %s10406_s10, %s10402_s30  ;;  %p240_p4 = scmp.eq.s32.totalorder %s7335_s14, 1 }
   0x8   : > { %s10509_s18 = scalar_select %p221_p1, %s10410_s11, %s223_s16  }
   0x9   : > { %p10511_p5 = por %p234_p2, %p233_p0  ;;  %p10515_p6 = por %p240_p4, %p239_p3 }
   0xa   : > { %p7338_p7 = scmp.ge.s32.totalorder %s10414_s12, 1  ;;  %p292_p8 = scmp.lt.s32.totalorder %s10414_s12, 3 }
   0xc   : > { %p293_p9 = pnand %p7338_p7, %p292_p8 }
   0xe   : > { %296 = sbr.rel (%p293_p9) target bundleno = 2201 (0x899), region = 56 }
  0x15   : > { %v7342_v0 = vld [vmem:[%s13754_s1 + $0x30] sm:$0xff]  ;;  %v7343_v1 = vld [vmem:[%s13754_s1 + $0x38] sm:$0xff]  ;;  %v7344_v2 = vld [vmem:[%s13754_s1 + $0x40] sm:$0xff]  ;;  %s7340_s27 = sshll.u32 %s10494_s13, 3  ;;  %vm477_vm0 = vcmask 392192   ;;  %vm3192_vm1 = vcmask 261120  }
  0x16   : > { %v9221_v3 = vpack.c.bf16 %v7343_v1, %v7342_v0  ;;  %v7345_v4 = vld [vmem:[%s13754_s1 + $0x48] sm:$0xff]  ;;  %p330_p10 = scmp.lt.s32.totalorder %s7340_s27, 15  ;;  %v7346_v6 = vld [vmem:[%s13754_s1 + $0x50] sm:$0xff]  ;;  %v7347_v7 = vld [vmem:[%s13754_s1 + $0x58] sm:$0xff]  ;;  %vm3458_vm2 = vcmask 1041409   ;;  %vm3461_vm3 = vcmask 1042434  }
  0x17   : > { %v9225_v5 = vpack.c.bf16 %v7345_v4, %v7344_v2  ;;  %v9229_v8 = vpack.c.bf16 %v7347_v7, %v7346_v6  ;;  %v400_v9 = vld [vmem:[%s13754_s1] sm:$0xff]  ;;  %v401_v10 = vld [vmem:[%s13754_s1 + $0x8] sm:$0xff]  ;;  %v402_v13 = vld [vmem:[%s13754_s1 + $0x10] sm:$0xff]  ;;  %vm3464_vm4 = vcmask 1043459   ;;  %vm3467_vm5 = vcmask 1044484   ;;  %s10416_s17 = smov 96  }
  0x18   : > { %9222 = vmatprep.subr.bf16.mxu0 %v9221_v3  ;;  %s14026_s27 = smov (!%p330_p10, %s7340_s27), 15  ;;  %v9233_v12 = vpack.c.bf16 %v401_v10, %v400_v9  ;;  %v403_v14 = vld [vmem:[%s13754_s1 + $0x18] sm:$0xff]  ;;  %v404_v18 = vld [vmem:[%s13754_s1 + $0x20] sm:$0xff]  ;;  %v405_v19 = vld [vmem:[%s13754_s1 + $0x28] sm:$0xff]  ;;  %vm3470_vm6 = vcmask 1045509   ;;  %vm3473_vm7 = vcmask 1046534  }
  0x19   : > { %9224 = vmatpush3.bf16.msra.mxu0 %v9221_v3  ;;  %s10125_s22 = smul.u32 144, %s14026_s27  ;;  %v9237_v17 = vpack.c.bf16 %v403_v14, %v402_v13  ;;  %v9241_v22 = vpack.c.bf16 %v405_v19, %v404_v18  ;;  %v7540_v29 = vld [vmem:[%s13754_s1 + $0x60] sm:$0xff]  ;;  %v7541_v30 = vld [vmem:[%s13754_s1 + $0x68] sm:$0xff]  ;;  %vm3476_vm8 = vcmask 1047559   ;;  %s10417_s21 = smov 32   ;;  %vm3849_vm9 = vcmask 523264  }
  0x1a   : > { %9226 = vmatprep.subr.bf16.mxu0 %v9225_v5  ;;  %v10616_v31 = vpack.c.bf16 %v7541_v30, %v7540_v29  ;;  %vm3851_vm10 = vcmask 785408   ;;  %vm10420_vm11 = vmmov 0   ;;  %s326_s16 = sand.u32 1, %s10406_s10   ;;  %s7750_s26 = sshll.u32 %s10494_s13, 7 }
  0x1b   : > { %s10549_s14 = scalar_lea.vmem %s13753_s0, %s10125_s22  ;;  %s10418_s22 = smov 64  }
  0x1c   : > { %v406_v11 = vld [vmem:[%s10549_s14 + $0x1] sm:$0xff]  ;;  %v10560_v15 = vld [vmem:[%s10549_s14 + $0x11] sm:$0xff]  ;;  %s7339_s23 = sshll.u32 %s326_s16, 3  ;;  %s10422_s13 = smov [#allocation3]  }
  0x1d   : > { %9228 = vmatpush3.bf16.msra.mxu0 %v9225_v5  ;;  %8763 = vmatprep.mubr.msk.f32.mxu0 %vm477_vm0, %v406_v11  ;;  %v10563_v16 = vld [vmem:[%s10549_s14 + $0x21] sm:$0xff]  ;;  %v10576_v20 = vld [vmem:[%s10549_s14 + $0x31] sm:$0xff]  ;;  %s328_s28 = scalar_lea.vmem [#allocation3], %s7339_s23  ;;  %s10356_s23 = sshll.u32 %s10422_s13, 4  ;;  %s10357_s23 = int_to_ptr.vmem [resolvable:$false] %s10356_s23 }
  0x1e   : > { %9230 = vmatprep.subr.bf16.mxu0 %v9229_v8  ;;  %13858 = vst [vmem:[#allocation6_spill] sm:$0xff] %v10563_v16  ;;  %13859 = vst [vmem:[#allocation7_spill] sm:$0xff] %v10576_v20  ;;  %v10579_v21 = vld [vmem:[%s10549_s14 + $0x41] sm:$0xff]  ;;  %v10586_v23 = vld [vmem:[%s10549_s14 + $0x51] sm:$0xff]  ;;  %s10358_s24 = scalar_lea.vmem %s10357_s23, 256 }
  0x1f   : > { %13860 = vst [vmem:[#allocation8_spill] sm:$0xff] %v10579_v21  ;;  %13861 = vst [vmem:[#allocation9_spill] sm:$0xff] %v10586_v23  ;;  %v10589_v24 = vld [vmem:[%s10549_s14 + $0x61] sm:$0xff]  ;;  %v10596_v25 = vld [vmem:[%s10549_s14 + $0x71] sm:$0xff] }
  0x20   : > { %13862 = vst [vmem:[#allocation10_spill] sm:$0xff] %v10589_v24  ;;  %13863 = vst [vmem:[#allocation11_spill] sm:$0xff] %v10596_v25  ;;  %v414_v26 = vld [vmem:[%s10549_s14 + $0x91] sm:$0xff]  ;;  %v10603_v27 = vld [vmem:[%s10549_s14 + $0xa1] sm:$0xff] }
  0x21   : > { %9232 = vmatpush3.bf16.msra.mxu0 %v9229_v8  ;;  %13864 = vst [vmem:[#allocation12_spill] sm:$0xff] %v10603_v27  ;;  %v10606_v28 = vld [vmem:[%s10549_s14 + $0xb1] sm:$0xff]  ;;  %v10621_v32 = vld [vmem:[%s10549_s14 + $0xc1] sm:$0xff] }
  0x22   : > { %9234 = vmatprep.subr.bf16.mxu0 %v9233_v12  ;;  %13865 = vst [vmem:[#allocation13_spill] sm:$0xff] %v10606_v28  ;;  %13866 = vst [vmem:[#allocation14_spill] sm:$0xff] %v10621_v32  ;;  %v10624_v33 = vld [vmem:[%s10549_s14 + $0xd1] sm:$0xff]  ;;  %v10632_v34 = vld [vmem:[%s10549_s14 + $0xe1] sm:$0xff] }
  0x23   : > { %13867 = vst [vmem:[#allocation15_spill] sm:$0xff] %v10624_v33  ;;  %13868 = vst [vmem:[#allocation16_spill] sm:$0xff] %v10632_v34  ;;  %v10635_v35 = vld [vmem:[%s10549_s14 + $0xf1] sm:$0xff]  ;;  %v10642_v36 = vld [vmem:[%s10549_s14 + $0x101] sm:$0xff] }
  0x24   : > { %8764 = vmatmul.mubr.msk.f32.vlgmr.msra.gmra.mrb[0].mxu0 %vm477_vm0, %v10560_v15  ;;  %13869 = vst [vmem:[#allocation17_spill] sm:$0xff] %v10635_v35  ;;  %13870 = vst [vmem:[#allocation18_spill] sm:$0xff] %v10642_v36  ;;  %v422_v37 = vld [vmem:[%s10549_s14 + $0x121] sm:$0xff]  ;;  %v10649_v38 = vld [vmem:[%s10549_s14 + $0x131] sm:$0xff] }
  0x25   : > { %9236 = vmatpush3.bf16.msra.mxu0 %v9233_v12  ;;  %8766 = vmatprep.mubr.msk.f32.mxu0 %vm477_vm0, %v10563_v16  ;;  %13871 = vst [vmem:[#allocation19_spill] sm:$0xff] %v10649_v38  ;;  %v10652_v39 = vld [vmem:[%s10549_s14 + $0x141] sm:$0xff]  ;;  %v10659_v40 = vld [vmem:[%s10549_s14 + $0x151] sm:$0xff] }
  0x26   : > { %9238 = vmatprep.subr.bf16.mxu0 %v9237_v17  ;;  %13872 = vst [vmem:[#allocation20_spill] sm:$0xff] %v10652_v39  ;;  %13873 = vst [vmem:[#allocation21_spill] sm:$0xff] %v10659_v40  ;;  %v10662_v41 = vld [vmem:[%s10549_s14 + $0x161] sm:$0xff]  ;;  %v10669_v42 = vld [vmem:[%s10549_s14 + $0x171] sm:$0xff] }
  0x27   : > { %13874 = vst [vmem:[#allocation22_spill] sm:$0xff] %v10662_v41  ;;  %13875 = vst [vmem:[#allocation23_spill] sm:$0xff] %v10669_v42  ;;  %v10672_v43 = vld [vmem:[%s10549_s14 + $0x181] sm:$0xff]  ;;  %v10679_v44 = vld [vmem:[%s10549_s14 + $0x191] sm:$0xff] }
  0x28   : > { %8767 = vmatmul.mubr.msk.f32.gmra.mrb[2].mxu0 %vm477_vm0, %v10576_v20  ;;  %13876 = vst [vmem:[#allocation24_spill] sm:$0xff] %v10672_v43  ;;  %13877 = vst [vmem:[#allocation25_spill] sm:$0xff] %v10679_v44  ;;  %v430_v45 = vld [vmem:[%s10549_s14 + $0x1b1] sm:$0xff]  ;;  %v10686_v46 = vld [vmem:[%s10549_s14 + $0x1c1] sm:$0xff] }
  0x29   : > { %8769 = vmatprep.mubr.msk.f32.mxu0 %vm477_vm0, %v10579_v21  ;;  %9240 = vmatpush3.bf16.msra.mxu0 %v9237_v17  ;;  %13878 = vst [vmem:[#allocation26_spill] sm:$0xff] %v10686_v46  ;;  %v10689_v47 = vld [vmem:[%s10549_s14 + $0x1d1] sm:$0xff]  ;;  %v10696_v48 = vld [vmem:[%s10549_s14 + $0x1e1] sm:$0xff] }
  0x2a   : > { %9242 = vmatprep.subr.bf16.mxu0 %v9241_v22  ;;  %13879 = vst [vmem:[#allocation27_spill] sm:$0xff] %v10689_v47  ;;  %13880 = vst [vmem:[#allocation28_spill] sm:$0xff] %v10696_v48  ;;  %v10699_v49 = vld [vmem:[%s10549_s14 + $0x1f1] sm:$0xff]  ;;  %v10706_v50 = vld [vmem:[%s10549_s14 + $0x201] sm:$0xff] }
  0x2b   : > { %13881 = vst [vmem:[#allocation29_spill] sm:$0xff] %v10699_v49  ;;  %13882 = vst [vmem:[#allocation30_spill] sm:$0xff] %v10706_v50  ;;  %v10709_v51 = vld [vmem:[%s10549_s14 + $0x211] sm:$0xff]  ;;  %v10716_v52 = vld [vmem:[%s10549_s14 + $0x221] sm:$0xff] }
  0x2c   : > { %8770 = vmatmul.mubr.msk.f32.gmra.mrb[4].mxu0 %vm477_vm0, %v10586_v23  ;;  %13883 = vst [vmem:[#allocation31_spill] sm:$0xff] %v10709_v51  ;;  %13884 = vst [vmem:[#allocation32_spill] sm:$0xff] %v10716_v52  ;;  %v438_v53 = vld [vmem:[%s10549_s14 + $0x241] sm:$0xff]  ;;  %v10723_v54 = vld [vmem:[%s10549_s14 + $0x251] sm:$0xff] }
  0x2d   : > { %8772 = vmatprep.mubr.msk.f32.mxu0 %vm477_vm0, %v10589_v24  ;;  %9244 = vmatpush3.bf16.msra.mxu0 %v9241_v22  ;;  %13885 = vst [vmem:[#allocation33_spill] sm:$0xff] %v10723_v54  ;;  %v10726_v55 = vld [vmem:[%s10549_s14 + $0x261] sm:$0xff]  ;;  %v10733_v56 = vld [vmem:[%s10549_s14 + $0x271] sm:$0xff] }
  0x2e   : > { %9246 = vmatprep.subr.bf16.mxu0 %v10616_v31  ;;  %13886 = vst [vmem:[#allocation34_spill] sm:$0xff] %v10726_v55  ;;  %13887 = vst [vmem:[#allocation35_spill] sm:$0xff] %v10733_v56  ;;  %v10736_v57 = vld [vmem:[%s10549_s14 + $0x281] sm:$0xff]  ;;  %v10743_v58 = vld [vmem:[%s10549_s14 + $0x291] sm:$0xff] }
  0x2f   : > { %13888 = vst [vmem:[#allocation36_spill] sm:$0xff] %v10736_v57  ;;  %13889 = vst [vmem:[#allocation37_spill] sm:$0xff] %v10743_v58  ;;  %v10746_v59 = vld [vmem:[%s10549_s14 + $0x2a1] sm:$0xff]  ;;  %v10753_v60 = vld [vmem:[%s10549_s14 + $0x2b1] sm:$0xff] }
  0x30   : > { %8773 = vmatmul.mubr.msk.f32.gmra.mrb[6].mxu0 %vm477_vm0, %v10596_v25  ;;  %13890 = vst [vmem:[#allocation38_spill] sm:$0xff] %v10746_v59  ;;  %13891 = vst [vmem:[#allocation39_spill] sm:$0xff] %v10753_v60  ;;  %v446_v61 = vld [vmem:[%s10549_s14 + $0x2d1] sm:$0xff]  ;;  %v10760_v62 = vld [vmem:[%s10549_s14 + $0x2e1] sm:$0xff] }
  0x31   : > { %8775 = vmatprep.mubr.msk.f32.mxu0 %vm477_vm0, %v414_v26  ;;  %13892 = vst [vmem:[#allocation40_spill] sm:$0xff] %v10760_v62  ;;  %v10763_v63 = vld [vmem:[%s10549_s14 + $0x2f1] sm:$0xff]  ;;  %v10770_v0 = vld [vmem:[%s10549_s14 + $0x301] sm:$0xff] }
  0x32   : > { %13893 = vst [vmem:[#allocation41_spill] sm:$0xff] %v10763_v63  ;;  %13894 = vst [vmem:[#allocation42_spill] sm:$0xff] %v10770_v0  ;;  %v10773_v1 = vld [vmem:[%s10549_s14 + $0x311] sm:$0xff]  ;;  %v10780_v2 = vld [vmem:[%s10549_s14 + $0x321] sm:$0xff] }
  0x33   : > { %13895 = vst [vmem:[#allocation43_spill] sm:$0xff] %v10773_v1  ;;  %13896 = vst [vmem:[#allocation44_spill] sm:$0xff] %v10780_v2  ;;  %v10783_v3 = vld [vmem:[%s10549_s14 + $0x331] sm:$0xff]  ;;  %v10790_v4 = vld [vmem:[%s10549_s14 + $0x341] sm:$0xff] }
  0x34   : > { %8776 = vmatmul.mubr.msk.f32.gmra.mrb[8].mxu0 %vm477_vm0, %v10603_v27  ;;  %13897 = vst [vmem:[#allocation45_spill] sm:$0xff] %v10783_v3  ;;  %13898 = vst [vmem:[#allocation46_spill] sm:$0xff] %v10790_v4  ;;  %v454_v5 = vld [vmem:[%s10549_s14 + $0x361] sm:$0xff]  ;;  %v10797_v6 = vld [vmem:[%s10549_s14 + $0x371] sm:$0xff] }
  0x35   : > { %8778 = vmatprep.mubr.msk.f32.mxu0 %vm477_vm0, %v10606_v28  ;;  %13899 = vst [vmem:[#allocation47_spill] sm:$0xff] %v10797_v6  ;;  %v10800_v7 = vld [vmem:[%s10549_s14 + $0x381] sm:$0xff]  ;;  %v10807_v8 = vld [vmem:[%s10549_s14 + $0x391] sm:$0xff] }
  0x36   : > { %13900 = vst [vmem:[#allocation48_spill] sm:$0xff] %v10800_v7  ;;  %13901 = vst [vmem:[#allocation49_spill] sm:$0xff] %v10807_v8  ;;  %v10810_v9 = vld [vmem:[%s10549_s14 + $0x3a1] sm:$0xff]  ;;  %v10817_v10 = vld [vmem:[%s10549_s14 + $0x3b1] sm:$0xff] }
  0x37   : > { %13902 = vst [vmem:[#allocation50_spill] sm:$0xff] %v10810_v9  ;;  %13903 = vst [vmem:[#allocation51_spill] sm:$0xff] %v10817_v10  ;;  %v10820_v11 = vld [vmem:[%s10549_s14 + $0x3c1] sm:$0xff]  ;;  %v10827_v12 = vld [vmem:[%s10549_s14 + $0x3d1] sm:$0xff] }
  0x38   : > { %8779 = vmatmul.mubr.msk.f32.gmra.mrb[10].mxu0 %vm477_vm0, %v10621_v32  ;;  %13904 = vst [vmem:[#allocation52_spill] sm:$0xff] %v10820_v11  ;;  %13905 = vst [vmem:[#allocation53_spill] sm:$0xff] %v10827_v12  ;;  %v462_v13 = vld [vmem:[%s10549_s14 + $0x3f1] sm:$0xff]  ;;  %v10834_v14 = vld [vmem:[%s10549_s14 + $0x401] sm:$0xff] }
  0x39   : > { %8781 = vmatprep.mubr.msk.f32.mxu0 %vm477_vm0, %v10624_v33  ;;  %13906 = vst [vmem:[#allocation54_spill] sm:$0xff] %v10834_v14  ;;  %v10837_v17 = vld [vmem:[%s10549_s14 + $0x411] sm:$0xff]  ;;  %v10844_v18 = vld [vmem:[%s10549_s14 + $0x421] sm:$0xff] }
  0x3a   : > { %13907 = vst [vmem:[#allocation55_spill] sm:$0xff] %v10837_v17  ;;  %13908 = vst [vmem:[#allocation56_spill] sm:$0xff] %v10844_v18  ;;  %v10847_v19 = vld [vmem:[%s10549_s14 + $0x431] sm:$0xff]  ;;  %v10854_v22 = vld [vmem:[%s10549_s14 + $0x441] sm:$0xff] }
  0x3b   : > { %13909 = vst [vmem:[#allocation57_spill] sm:$0xff] %v10847_v19  ;;  %13910 = vst [vmem:[#allocation58_spill] sm:$0xff] %v10854_v22  ;;  %v10857_v26 = vld [vmem:[%s10549_s14 + $0x451] sm:$0xff]  ;;  %v10864_v29 = vld [vmem:[%s10549_s14 + $0x461] sm:$0xff] }
  0x3c   : > { %8782 = vmatmul.mubr.msk.f32.gmra.mrb[12].mxu0 %vm477_vm0, %v10632_v34  ;;  %13911 = vst [vmem:[#allocation59_spill] sm:$0xff] %v10857_v26  ;;  %13912 = vst [vmem:[#allocation60_spill] sm:$0xff] %v10864_v29  ;;  %v336_v30 = vld [vmem:[%s10549_s14] sm:$0xff]  ;;  %v11155_v34 = vld [vmem:[%s10549_s14 + $0x410] sm:$0xff] }
  0x3d   : > { %8784 = vmatprep.mubr.msk.f32.mxu0 %vm477_vm0, %v10635_v35  ;;  %v11152_v35 = vld [vmem:[%s10549_s14 + $0x400] sm:$0xff]  ;;  %v11165_v32 = vld [vmem:[%s10549_s14 + $0x430] sm:$0xff]  ;;  %v7677_v24 = vld [vmem:[%s13754_s1 + $0xa8] sm:$0xff] }
  0x3e   : > { %v11162_v33 = vld [vmem:[%s10549_s14 + $0x420] sm:$0xff]  ;;  %v11175_v28 = vld [vmem:[%s10549_s14 + $0x450] sm:$0xff]  ;;  %v7679_v20 = vld [vmem:[%s13754_s1 + $0xb8] sm:$0xff] }
  0x3f   : > { %v11182_v27 = vld [vmem:[%s10549_s14 + $0x460] sm:$0xff]  ;;  %v7678_v21 = vld [vmem:[%s13754_s1 + $0xb0] sm:$0xff] }
  0x40   : > { %8785 = vmatmul.mubr.msk.f32.gmra.mrb[14].mxu0 %vm477_vm0, %v10642_v36  ;;  %v392_v36 = vld [vmem:[%s10549_s14 + $0x3f0] sm:$0xff]  ;;  %v7676_v25 = vld [vmem:[%s13754_s1 + $0xa0] sm:$0xff]  ;;  %v9265_v16 = vpack.c.bf16 %v7679_v20, %v7678_v21 }
  0x41   : > { %8787 = vmatprep.mubr.msk.f32.mxu0 %vm477_vm0, %v422_v37  ;;  %v7542_v37 = vld [vmem:[%s13754_s1 + $0x70] sm:$0xff]  ;;  %v9261_v23 = vpack.c.bf16 %v7677_v24, %v7676_v25  ;;  %v7483_v24 = vld [vmem:[%s10549_s14 + $0x80] sm:$0xff] }
  0x42   : > { %v7499_v20 = vld [vmem:[%s10549_s14 + $0x1a0] sm:$0xff]  ;;  %v7507_v21 = vld [vmem:[%s10549_s14 + $0x230] sm:$0xff] }
  0x43   : > { %v7523_v25 = vld [vmem:[%s10549_s14 + $0x350] sm:$0xff] }
  0x44   : > { %8788 = vmatmul.mubr.msk.f32.gmra.mrb[16].mxu0 %vm477_vm0, %v10649_v38  ;;  %v11145_v38 = vld [vmem:[%s10549_s14 + $0x3d0] sm:$0xff] }
  0x45   : > { %8790 = vmatprep.mubr.msk.f32.mxu0 %vm477_vm0, %v10652_v39  ;;  %v11138_v39 = vld [vmem:[%s10549_s14 + $0x3c0] sm:$0xff] }
  0x48   : > { %8791 = vmatmul.mubr.msk.f32.gmra.mrb[18].mxu0 %vm477_vm0, %v10659_v40  ;;  %v11128_v40 = vld [vmem:[%s10549_s14 + $0x3a0] sm:$0xff] }
  0x49   : > { %8793 = vmatprep.mubr.msk.f32.mxu0 %vm477_vm0, %v10662_v41  ;;  %v11125_v41 = vld [vmem:[%s10549_s14 + $0x390] sm:$0xff] }
  0x4c   : > { %8794 = vmatmul.mubr.msk.f32.gmra.mrb[20].mxu0 %vm477_vm0, %v10669_v42  ;;  %v11118_v42 = vld [vmem:[%s10549_s14 + $0x380] sm:$0xff] }
  0x4d   : > { %8796 = vmatprep.mubr.msk.f32.mxu0 %vm477_vm0, %v10672_v43  ;;  %v11115_v43 = vld [vmem:[%s10549_s14 + $0x370] sm:$0xff] }
  0x50   : > { %8797 = vmatmul.mubr.msk.f32.gmra.mrb[22].mxu0 %vm477_vm0, %v10679_v44  ;;  %v384_v44 = vld [vmem:[%s10549_s14 + $0x360] sm:$0xff] }
  0x51   : > { %8799 = vmatprep.mubr.msk.f32.mxu0 %vm477_vm0, %v430_v45  ;;  %v7543_v45 = vld [vmem:[%s13754_s1 + $0x78] sm:$0xff] }
  0x54   : > { %8800 = vmatmul.mubr.msk.f32.gmra.mrb[24].mxu0 %vm477_vm0, %v10686_v46  ;;  %v11108_v46 = vld [vmem:[%s10549_s14 + $0x340] sm:$0xff] }
  0x55   : > { %8802 = vmatprep.mubr.msk.f32.mxu0 %vm477_vm0, %v10689_v47  ;;  %v11101_v47 = vld [vmem:[%s10549_s14 + $0x330] sm:$0xff] }
  0x58   : > { %8803 = vmatmul.mubr.msk.f32.gmra.mrb[26].mxu0 %vm477_vm0, %v10696_v48  ;;  %v11091_v48 = vld [vmem:[%s10549_s14 + $0x310] sm:$0xff] }
  0x59   : > { %8805 = vmatprep.mubr.msk.f32.mxu0 %vm477_vm0, %v10699_v49  ;;  %v11088_v49 = vld [vmem:[%s10549_s14 + $0x300] sm:$0xff] }
  0x5c   : > { %8806 = vmatmul.mubr.msk.f32.gmra.mrb[28].mxu0 %vm477_vm0, %v10706_v50  ;;  %v11081_v50 = vld [vmem:[%s10549_s14 + $0x2f0] sm:$0xff] }
  0x5d   : > { %8808 = vmatprep.mubr.msk.f32.mxu0 %vm477_vm0, %v10709_v51  ;;  %v11078_v51 = vld [vmem:[%s10549_s14 + $0x2e0] sm:$0xff] }
  0x60   : > { %8809 = vmatmul.mubr.msk.f32.gmra.mrb[30].mxu0 %vm477_vm0, %v10716_v52  ;;  %v376_v52 = vld [vmem:[%s10549_s14 + $0x2d0] sm:$0xff] }
  0x61   : > { %8811 = vmatprep.mubr.msk.f32.mxu0 %vm477_vm0, %v438_v53  ;;  %v10877_v53 = vld [vmem:[%s10549_s14 + $0x10] sm:$0xff] }
  0x64   : > { %8812 = vmatmul.mubr.msk.f32.gmra.mrb[32].mxu0 %vm477_vm0, %v10723_v54  ;;  %v11071_v54 = vld [vmem:[%s10549_s14 + $0x2b0] sm:$0xff] }
  0x65   : > { %8814 = vmatprep.mubr.msk.f32.mxu0 %vm477_vm0, %v10726_v55  ;;  %v11064_v55 = vld [vmem:[%s10549_s14 + $0x2a0] sm:$0xff] }
  0x68   : > { %8815 = vmatmul.mubr.msk.f32.gmra.mrb[34].mxu0 %vm477_vm0, %v10733_v56  ;;  %v11054_v56 = vld [vmem:[%s10549_s14 + $0x280] sm:$0xff] }
  0x69   : > { %8817 = vmatprep.mubr.msk.f32.mxu0 %vm477_vm0, %v10736_v57  ;;  %v11051_v57 = vld [vmem:[%s10549_s14 + $0x270] sm:$0xff] }
  0x6c   : > { %8818 = vmatmul.mubr.msk.f32.gmra.mrb[36].mxu0 %vm477_vm0, %v10743_v58  ;;  %v11044_v58 = vld [vmem:[%s10549_s14 + $0x260] sm:$0xff] }
  0x6d   : > { %8820 = vmatprep.mubr.msk.f32.mxu0 %vm477_vm0, %v10746_v59  ;;  %v11041_v59 = vld [vmem:[%s10549_s14 + $0x250] sm:$0xff] }
  0x70   : > { %8821 = vmatmul.mubr.msk.f32.gmra.mrb[38].mxu0 %vm477_vm0, %v10753_v60  ;;  %v368_v60 = vld [vmem:[%s10549_s14 + $0x240] sm:$0xff] }
  0x71   : > { %8823 = vmatprep.mubr.msk.f32.mxu0 %vm477_vm0, %v446_v61  ;;  %v10880_v61 = vld [vmem:[%s10549_s14 + $0x20] sm:$0xff] }
  0x74   : > { %8824 = vmatmul.mubr.msk.f32.gmra.mrb[40].mxu0 %vm477_vm0, %v10760_v62  ;;  %v11034_v62 = vld [vmem:[%s10549_s14 + $0x220] sm:$0xff] }
  0x75   : > { %8826 = vmatprep.mubr.msk.f32.mxu0 %vm477_vm0, %v10763_v63  ;;  %v11027_v63 = vld [vmem:[%s10549_s14 + $0x210] sm:$0xff] }
  0x78   : > { %8827 = vmatmul.mubr.msk.f32.gmra.mrb[42].mxu0 %vm477_vm0, %v10770_v0  ;;  %v11017_v0 = vld [vmem:[%s10549_s14 + $0x1f0] sm:$0xff] }
  0x79   : > { %8829 = vmatprep.mubr.msk.f32.mxu0 %vm477_vm0, %v10773_v1  ;;  %v11014_v1 = vld [vmem:[%s10549_s14 + $0x1e0] sm:$0xff] }
  0x7c   : > { %8830 = vmatmul.mubr.msk.f32.gmra.mrb[44].mxu0 %vm477_vm0, %v10780_v2  ;;  %v11007_v2 = vld [vmem:[%s10549_s14 + $0x1d0] sm:$0xff] }
  0x7d   : > { %8832 = vmatprep.mubr.msk.f32.mxu0 %vm477_vm0, %v10783_v3  ;;  %v11004_v3 = vld [vmem:[%s10549_s14 + $0x1c0] sm:$0xff] }
  0x80   : > { %8833 = vmatmul.mubr.msk.f32.gmra.mrb[46].mxu0 %vm477_vm0, %v10790_v4  ;;  %v360_v4 = vld [vmem:[%s10549_s14 + $0x1b0] sm:$0xff] }
  0x81   : > { %8835 = vmatprep.mubr.msk.f32.mxu0 %vm477_vm0, %v454_v5  ;;  %v9249_v5 = vpack.c.bf16 %v7543_v45, %v7542_v37  ;;  %v10897_v37 = vld [vmem:[%s10549_s14 + $0x40] sm:$0xff] }
  0x84   : > { %8836 = vmatmul.mubr.msk.f32.gmra.mrb[48].mxu0 %vm477_vm0, %v10797_v6  ;;  %v10997_v6 = vld [vmem:[%s10549_s14 + $0x190] sm:$0xff] }
  0x85   : > { %8838 = vmatprep.mubr.msk.f32.mxu0 %vm477_vm0, %v10800_v7  ;;  %v10990_v7 = vld [vmem:[%s10549_s14 + $0x180] sm:$0xff] }
  0x88   : > { %8839 = vmatmul.mubr.msk.f32.gmra.mrb[50].mxu0 %vm477_vm0, %v10807_v8  ;;  %v10980_v8 = vld [vmem:[%s10549_s14 + $0x160] sm:$0xff] }
  0x89   : > { %8841 = vmatprep.mubr.msk.f32.mxu0 %vm477_vm0, %v10810_v9  ;;  %v10977_v9 = vld [vmem:[%s10549_s14 + $0x150] sm:$0xff] }
  0x8c   : > { %8842 = vmatmul.mubr.msk.f32.gmra.mrb[52].mxu0 %vm477_vm0, %v10817_v10  ;;  %v10970_v10 = vld [vmem:[%s10549_s14 + $0x140] sm:$0xff] }
  0x8d   : > { %8844 = vmatprep.mubr.msk.f32.mxu0 %vm477_vm0, %v10820_v11  ;;  %v10967_v11 = vld [vmem:[%s10549_s14 + $0x130] sm:$0xff] }
  0x90   : > { %8845 = vmatmul.mubr.msk.f32.gmra.mrb[54].mxu0 %vm477_vm0, %v10827_v12  ;;  %v352_v12 = vld [vmem:[%s10549_s14 + $0x120] sm:$0xff] }
  0x91   : > { %8847 = vmatprep.mubr.msk.f32.mxu0 %vm477_vm0, %v462_v13  ;;  %v7544_v13 = vld [vmem:[%s13754_s1 + $0x80] sm:$0xff] }
  0x94   : > { %8848 = vmatmul.mubr.msk.f32.gmra.mrb[56].mxu0 %vm477_vm0, %v10834_v14  ;;  %v10960_v14 = vld [vmem:[%s10549_s14 + $0x100] sm:$0xff] }
  0x95   : > { %8850 = vmatprep.mubr.msk.f32.mxu0 %vm477_vm0, %v10837_v17  ;;  %v10953_v17 = vld [vmem:[%s10549_s14 + $0xf0] sm:$0xff] }
  0x98   : > { %8851 = vmatmul.mubr.msk.f32.gmra.mrb[58].mxu0 %vm477_vm0, %v10844_v18  ;;  %v344_v18 = vld [vmem:[%s10549_s14 + $0x90] sm:$0xff] }
  0x99   : > { %8853 = vmatprep.mubr.msk.f32.mxu0 %vm477_vm0, %v10847_v19  ;;  %v10922_v19 = vld [vmem:[%s10549_s14 + $0x70] sm:$0xff] }
  0x9c   : > { %8854 = vmatmul.mubr.msk.f32.gmra.mrb[60].mxu0 %vm477_vm0, %v10854_v22  ;;  %v7675_v22 = vld [vmem:[%s13754_s1 + $0x98] sm:$0xff] }
  0x9d   : > { %8856 = vmatprep.mubr.msk.f32.mxu0 %vm477_vm0, %v10857_v26  ;;  %v7545_v26 = vld [vmem:[%s13754_s1 + $0x88] sm:$0xff] }
  0x9e   : > { %v9253_v45 = vpack.c.bf16 %v7545_v26, %v7544_v13  ;;  %v10913_v26 = vld [vmem:[%s10549_s14 + $0x60] sm:$0xff] }
  0xa0   : > { %8857 = vmatmul.mubr.msk.f32.gmra.mrb[62].mxu0 %vm477_vm0, %v10864_v29  ;;  %v7674_v29 = vld [vmem:[%s13754_s1 + $0x90] sm:$0xff] }
  0xa1   : > { %8871 = vmatprep.mubr.msk.f32.mxu0 %vm477_vm0, %v336_v30  ;;  %v10894_v30 = vld [vmem:[%s10549_s14 + $0x30] sm:$0xff]  ;;  %v10915_v13 = vpack.c.bf16 %v7675_v22, %v7674_v29  ;;  %v10930_v22 = vld [vmem:[%s10549_s14 + $0xa0] sm:$0xff] }
  0xa2   : > { %v10933_v29 = vld [vmem:[%s10549_s14 + $0xb0] sm:$0xff] }
  0xa4   : > { %8872 = vmatmul.mubr.msk.f32.vlgmr.msra.gmra.mrb[0].mxu0 %vm477_vm0, %v10877_v53 }
  0xa5   : > { %9248 = vmatpush3.bf16.msra.mxu0 %v10616_v31  ;;  %8874 = vmatprep.mubr.msk.f32.mxu0 %vm477_vm0, %v10880_v61  ;;  %v10910_v31 = vld [vmem:[%s10549_s14 + $0x50] sm:$0xff] }
  0xa6   : > { %9250 = vmatprep.subr.bf16.mxu0 %v9249_v5 }
  0xa8   : > { %8875 = vmatmul.mubr.msk.f32.gmra.mrb[2].mxu0 %vm477_vm0, %v10894_v30 }
  0xa9   : > { %8877 = vmatprep.mubr.msk.f32.mxu0 %vm477_vm0, %v10897_v37  ;;  %9252 = vmatpush3.bf16.msra.mxu0 %v9249_v5  ;;  %v10940_v5 = vld [vmem:[%s10549_s14 + $0xc0] sm:$0xff] }
  0xaa   : > { %9254 = vmatprep.subr.bf16.mxu0 %v9253_v45 }
  0xac   : > { %8878 = vmatmul.mubr.msk.f32.gmra.mrb[4].mxu0 %vm477_vm0, %v10910_v31 }
  0xad   : > { %8880 = vmatprep.mubr.msk.f32.mxu0 %vm477_vm0, %v10913_v26  ;;  %9256 = vmatpush3.bf16.msra.mxu0 %v9253_v45  ;;  %v10943_v45 = vld [vmem:[%s10549_s14 + $0xd0] sm:$0xff] }
  0xae   : > { %9258 = vmatprep.subr.bf16.mxu0 %v10915_v13 }
  0xb0   : > { %8881 = vmatmul.mubr.msk.f32.gmra.mrb[6].mxu0 %vm477_vm0, %v10922_v19 }
  0xb1   : > { %8883 = vmatprep.mubr.msk.f32.mxu0 %vm477_vm0, %v344_v18  ;;  %v10950_v18 = vld [vmem:[%s10549_s14 + $0xe0] sm:$0xff] }
  0xb4   : > { %8884 = vmatmul.mubr.msk.f32.gmra.mrb[8].mxu0 %vm477_vm0, %v10930_v22 }
  0xb5   : > { %8886 = vmatprep.mubr.msk.f32.mxu0 %vm477_vm0, %v10933_v29 }
  0xb8   : > { %8887 = vmatmul.mubr.msk.f32.gmra.mrb[10].mxu0 %vm477_vm0, %v10940_v5 }
  0xb9   : > { %8889 = vmatprep.mubr.msk.f32.mxu0 %vm477_vm0, %v10943_v45 }
  0xbc   : > { %8890 = vmatmul.mubr.msk.f32.gmra.mrb[12].mxu0 %vm477_vm0, %v10950_v18 }
  0xbd   : > { %8892 = vmatprep.mubr.msk.f32.mxu0 %vm477_vm0, %v10953_v17 }
  0xc0   : > { %8893 = vmatmul.mubr.msk.f32.gmra.mrb[14].mxu0 %vm477_vm0, %v10960_v14 }
  0xc1   : > { %8895 = vmatprep.mubr.msk.f32.mxu0 %vm477_vm0, %v352_v12  ;;  %v10987_v12 = vld [vmem:[%s10549_s14 + $0x170] sm:$0xff] }
  0xc4   : > { %8896 = vmatmul.mubr.msk.f32.gmra.mrb[16].mxu0 %vm477_vm0, %v10967_v11 }
  0xc5   : > { %8898 = vmatprep.mubr.msk.f32.mxu0 %vm477_vm0, %v10970_v10 }
  0xc8   : > { %8899 = vmatmul.mubr.msk.f32.gmra.mrb[18].mxu0 %vm477_vm0, %v10977_v9 }
  0xc9   : > { %8901 = vmatprep.mubr.msk.f32.mxu0 %vm477_vm0, %v10980_v8 }
  0xcc   : > { %8902 = vmatmul.mubr.msk.f32.gmra.mrb[20].mxu0 %vm477_vm0, %v10987_v12 }
  0xcd   : > { %8904 = vmatprep.mubr.msk.f32.mxu0 %vm477_vm0, %v10990_v7 }
  0xd0   : > { %8905 = vmatmul.mubr.msk.f32.gmra.mrb[22].mxu0 %vm477_vm0, %v10997_v6 }
  0xd1   : > { %8907 = vmatprep.mubr.msk.f32.mxu0 %vm477_vm0, %v360_v4  ;;  %v11024_v4 = vld [vmem:[%s10549_s14 + $0x200] sm:$0xff] }
  0xd4   : > { %8908 = vmatmul.mubr.msk.f32.gmra.mrb[24].mxu0 %vm477_vm0, %v11004_v3 }
  0xd5   : > { %8910 = vmatprep.mubr.msk.f32.mxu0 %vm477_vm0, %v11007_v2 }
  0xd8   : > { %8911 = vmatmul.mubr.msk.f32.gmra.mrb[26].mxu0 %vm477_vm0, %v11014_v1 }
  0xd9   : > { %8913 = vmatprep.mubr.msk.f32.mxu0 %vm477_vm0, %v11017_v0 }
  0xdc   : > { %8914 = vmatmul.mubr.msk.f32.gmra.mrb[28].mxu0 %vm477_vm0, %v11024_v4 }
  0xdd   : > { %8916 = vmatprep.mubr.msk.f32.mxu0 %vm477_vm0, %v11027_v63 }
  0xe0   : > { %8917 = vmatmul.mubr.msk.f32.gmra.mrb[30].mxu0 %vm477_vm0, %v11034_v62 }
  0xe1   : > { %8919 = vmatprep.mubr.msk.f32.mxu0 %vm477_vm0, %v368_v60  ;;  %v11061_v60 = vld [vmem:[%s10549_s14 + $0x290] sm:$0xff] }
  0xe4   : > { %8920 = vmatmul.mubr.msk.f32.gmra.mrb[32].mxu0 %vm477_vm0, %v11041_v59 }
  0xe5   : > { %8922 = vmatprep.mubr.msk.f32.mxu0 %vm477_vm0, %v11044_v58 }
  0xe8   : > { %8923 = vmatmul.mubr.msk.f32.gmra.mrb[34].mxu0 %vm477_vm0, %v11051_v57 }
  0xe9   : > { %8925 = vmatprep.mubr.msk.f32.mxu0 %vm477_vm0, %v11054_v56 }
  0xec   : > { %8926 = vmatmul.mubr.msk.f32.gmra.mrb[36].mxu0 %vm477_vm0, %v11061_v60 }
  0xed   : > { %8928 = vmatprep.mubr.msk.f32.mxu0 %vm477_vm0, %v11064_v55 }
  0xf0   : > { %8929 = vmatmul.mubr.msk.f32.gmra.mrb[38].mxu0 %vm477_vm0, %v11071_v54 }
  0xf1   : > { %8931 = vmatprep.mubr.msk.f32.mxu0 %vm477_vm0, %v376_v52  ;;  %v11098_v52 = vld [vmem:[%s10549_s14 + $0x320] sm:$0xff] }
  0xf4   : > { %8932 = vmatmul.mubr.msk.f32.gmra.mrb[40].mxu0 %vm477_vm0, %v11078_v51 }
  0xf5   : > { %8934 = vmatprep.mubr.msk.f32.mxu0 %vm477_vm0, %v11081_v50 }
  0xf8   : > { %8935 = vmatmul.mubr.msk.f32.gmra.mrb[42].mxu0 %vm477_vm0, %v11088_v49 }
  0xf9   : > { %8937 = vmatprep.mubr.msk.f32.mxu0 %vm477_vm0, %v11091_v48 }
  0xfc   : > { %8938 = vmatmul.mubr.msk.f32.gmra.mrb[44].mxu0 %vm477_vm0, %v11098_v52 }
  0xfd   : > { %8940 = vmatprep.mubr.msk.f32.mxu0 %vm477_vm0, %v11101_v47 }
 0x100   : > { %8941 = vmatmul.mubr.msk.f32.gmra.mrb[46].mxu0 %vm477_vm0, %v11108_v46 }
 0x101   : > { %8943 = vmatprep.mubr.msk.f32.mxu0 %vm477_vm0, %v384_v44  ;;  %v11135_v44 = vld [vmem:[%s10549_s14 + $0x3b0] sm:$0xff] }
 0x104   : > { %8944 = vmatmul.mubr.msk.f32.gmra.mrb[48].mxu0 %vm477_vm0, %v11115_v43 }
 0x105   : > { %8946 = vmatprep.mubr.msk.f32.mxu0 %vm477_vm0, %v11118_v42 }
 0x108   : > { %8947 = vmatmul.mubr.msk.f32.gmra.mrb[50].mxu0 %vm477_vm0, %v11125_v41 }
 0x109   : > { %8949 = vmatprep.mubr.msk.f32.mxu0 %vm477_vm0, %v11128_v40 }
 0x10c   : > { %8950 = vmatmul.mubr.msk.f32.gmra.mrb[52].mxu0 %vm477_vm0, %v11135_v44 }
 0x10d   : > { %8952 = vmatprep.mubr.msk.f32.mxu0 %vm477_vm0, %v11138_v39 }
 0x110   : > { %8953 = vmatmul.mubr.msk.f32.gmra.mrb[54].mxu0 %vm477_vm0, %v11145_v38 }
 0x111   : > { %8955 = vmatprep.mubr.msk.f32.mxu0 %vm477_vm0, %v392_v36  ;;  %v11172_v36 = vld [vmem:[%s10549_s14 + $0x440] sm:$0xff] }
 0x114   : > { %8956 = vmatmul.mubr.msk.f32.gmra.mrb[56].mxu0 %vm477_vm0, %v11152_v35 }
 0x115   : > { %8958 = vmatprep.mubr.msk.f32.mxu0 %vm477_vm0, %v11155_v34 }
 0x118   : > { %8959 = vmatmul.mubr.msk.f32.gmra.mrb[58].mxu0 %vm477_vm0, %v11162_v33 }
 0x119   : > { %8961 = vmatprep.mubr.msk.f32.mxu0 %vm477_vm0, %v11165_v32 }
 0x11c   : > { %8962 = vmatmul.mubr.msk.f32.gmra.mrb[60].mxu0 %vm477_vm0, %v11172_v36 }
 0x11d   : > { %8964 = vmatprep.mubr.msk.f32.mxu0 %vm477_vm0, %v11175_v28 }
 0x120   : > { %8965 = vmatmul.mubr.msk.f32.gmra.mrb[62].mxu0 %vm477_vm0, %v11182_v27 }
 0x121   : > { %8979 = vmatprep.mubr.msk.f32.mxu0 %vm477_vm0, %v10877_v53  ;;  %v7649_v53 = vld [vmem:[%s10549_s14 + $0x2c1] sm:$0xff] }
 0x124   : > { %8980 = vmatmul.mubr.msk.f32.vlgmr.msra.gmra.mrb[0].mxu0 %vm477_vm0, %v10880_v61  ;;  %v13947_v61 = vld [vmem:[#allocation40_spill] sm:$0xff] }
 0x125   : > { %9260 = vmatpush3.bf16.msra.mxu0 %v10915_v13  ;;  %8982 = vmatprep.mubr.msk.f32.mxu0 %vm477_vm0, %v10894_v30  ;;  %v13948_v30 = vld [vmem:[#allocation41_spill] sm:$0xff] }
 0x126   : > { %9262 = vmatprep.subr.bf16.mxu0 %v9261_v23  ;;  %v13952_v13 = vld [vmem:[#allocation45_spill] sm:$0xff] }
 0x128   : > { %8983 = vmatmul.mubr.msk.f32.gmra.mrb[2].mxu0 %vm477_vm0, %v10897_v37  ;;  %v13949_v37 = vld [vmem:[#allocation42_spill] sm:$0xff] }
 0x129   : > { %8985 = vmatprep.mubr.msk.f32.mxu0 %vm477_vm0, %v10910_v31  ;;  %9264 = vmatpush3.bf16.msra.mxu0 %v9261_v23  ;;  %v7515_v23 = vld [vmem:[%s10549_s14 + $0x2c0] sm:$0xff]  ;;  %v13950_v31 = vld [vmem:[#allocation43_spill] sm:$0xff] }
 0x12a   : > { %9266 = vmatprep.subr.bf16.mxu0 %v9265_v16 }
 0x12c   : > { %8986 = vmatmul.mubr.msk.f32.gmra.mrb[4].mxu0 %vm477_vm0, %v10913_v26  ;;  %v13951_v26 = vld [vmem:[#allocation44_spill] sm:$0xff] }
 0x12d   : > { %8988 = vmatprep.mubr.msk.f32.mxu0 %vm477_vm0, %v10922_v19  ;;  %9268 = vmatpush3.bf16.msra.mxu0 %v9265_v16  ;;  %v7491_v16 = vld [vmem:[%s10549_s14 + $0x110] sm:$0xff]  ;;  %v13946_v19 = vld [vmem:[#allocation39_spill] sm:$0xff] }
 0x130   : > { %8989 = vmatmul.mubr.msk.f32.gmra.mrb[6].mxu0 %vm477_vm0, %v7483_v24  ;;  %v13962_v24 = vld [vmem:[#allocation55_spill] sm:$0xff] }
 0x131   : > { %8991 = vmatprep.mubr.msk.f32.mxu0 %vm477_vm0, %v10930_v22  ;;  %v13953_v22 = vld [vmem:[#allocation46_spill] sm:$0xff] }
 0x134   : > { %8992 = vmatmul.mubr.msk.f32.gmra.mrb[8].mxu0 %vm477_vm0, %v10933_v29  ;;  %v7657_v29 = vld [vmem:[%s10549_s14 + $0x351] sm:$0xff] }
 0x135   : > { %8994 = vmatprep.mubr.msk.f32.mxu0 %vm477_vm0, %v10940_v5  ;;  %v13954_v5 = vld [vmem:[#allocation47_spill] sm:$0xff] }
 0x138   : > { %8995 = vmatmul.mubr.msk.f32.gmra.mrb[10].mxu0 %vm477_vm0, %v10943_v45  ;;  %v13955_v45 = vld [vmem:[#allocation48_spill] sm:$0xff] }
 0x139   : > { %8997 = vmatprep.mubr.msk.f32.mxu0 %vm477_vm0, %v10950_v18  ;;  %v13956_v18 = vld [vmem:[#allocation49_spill] sm:$0xff] }
 0x13c   : > { %8998 = vmatmul.mubr.msk.f32.gmra.mrb[12].mxu0 %vm477_vm0, %v10953_v17  ;;  %v13945_v17 = vld [vmem:[#allocation38_spill] sm:$0xff] }
 0x13d   : > { %9000 = vmatprep.mubr.msk.f32.mxu0 %vm477_vm0, %v10960_v14  ;;  %v13944_v14 = vld [vmem:[#allocation37_spill] sm:$0xff] }
 0x140   : > { %9001 = vmatmul.mubr.msk.f32.gmra.mrb[14].mxu0 %vm477_vm0, %v7491_v16  ;;  %v13963_v16 = vld [vmem:[#allocation56_spill] sm:$0xff] }
 0x141   : > { %9003 = vmatprep.mubr.msk.f32.mxu0 %vm477_vm0, %v10967_v11  ;;  %v13943_v11 = vld [vmem:[#allocation36_spill] sm:$0xff] }
 0x144   : > { %9004 = vmatmul.mubr.msk.f32.gmra.mrb[16].mxu0 %vm477_vm0, %v10970_v10  ;;  %v13942_v10 = vld [vmem:[#allocation35_spill] sm:$0xff] }
 0x145   : > { %9006 = vmatprep.mubr.msk.f32.mxu0 %vm477_vm0, %v10977_v9  ;;  %v13941_v9 = vld [vmem:[#allocation34_spill] sm:$0xff] }
 0x148   : > { %9007 = vmatmul.mubr.msk.f32.gmra.mrb[18].mxu0 %vm477_vm0, %v10980_v8  ;;  %v13940_v8 = vld [vmem:[#allocation33_spill] sm:$0xff] }
 0x149   : > { %9009 = vmatprep.mubr.msk.f32.mxu0 %vm477_vm0, %v10987_v12  ;;  %v13957_v12 = vld [vmem:[#allocation50_spill] sm:$0xff] }
 0x14c   : > { %9010 = vmatmul.mubr.msk.f32.gmra.mrb[20].mxu0 %vm477_vm0, %v10990_v7  ;;  %v7641_v7 = vld [vmem:[%s10549_s14 + $0x231] sm:$0xff] }
 0x14d   : > { %9012 = vmatprep.mubr.msk.f32.mxu0 %vm477_vm0, %v10997_v6  ;;  %v13939_v6 = vld [vmem:[#allocation32_spill] sm:$0xff] }
 0x150   : > { %9013 = vmatmul.mubr.msk.f32.gmra.mrb[22].mxu0 %vm477_vm0, %v7499_v20  ;;  %v13964_v20 = vld [vmem:[#allocation57_spill] sm:$0xff] }
 0x151   : > { %9015 = vmatprep.mubr.msk.f32.mxu0 %vm477_vm0, %v11004_v3  ;;  %v13938_v3 = vld [vmem:[#allocation31_spill] sm:$0xff] }
 0x154   : > { %9016 = vmatmul.mubr.msk.f32.gmra.mrb[24].mxu0 %vm477_vm0, %v11007_v2  ;;  %v13937_v2 = vld [vmem:[#allocation30_spill] sm:$0xff] }
 0x155   : > { %9018 = vmatprep.mubr.msk.f32.mxu0 %vm477_vm0, %v11014_v1  ;;  %v13936_v1 = vld [vmem:[#allocation29_spill] sm:$0xff] }
 0x158   : > { %9019 = vmatmul.mubr.msk.f32.gmra.mrb[26].mxu0 %vm477_vm0, %v11017_v0  ;;  %v13935_v0 = vld [vmem:[#allocation28_spill] sm:$0xff] }
 0x159   : > { %9021 = vmatprep.mubr.msk.f32.mxu0 %vm477_vm0, %v11024_v4  ;;  %v13958_v4 = vld [vmem:[#allocation51_spill] sm:$0xff] }
 0x15c   : > { %9022 = vmatmul.mubr.msk.f32.gmra.mrb[28].mxu0 %vm477_vm0, %v11027_v63  ;;  %v13934_v63 = vld [vmem:[#allocation27_spill] sm:$0xff] }
 0x15d   : > { %9024 = vmatprep.mubr.msk.f32.mxu0 %vm477_vm0, %v11034_v62  ;;  %v13933_v62 = vld [vmem:[#allocation26_spill] sm:$0xff] }
 0x160   : > { %9025 = vmatmul.mubr.msk.f32.gmra.mrb[30].mxu0 %vm477_vm0, %v7507_v21  ;;  %v13965_v21 = vld [vmem:[#allocation58_spill] sm:$0xff] }
 0x161   : > { %9027 = vmatprep.mubr.msk.f32.mxu0 %vm477_vm0, %v11041_v59  ;;  %v7633_v59 = vld [vmem:[%s10549_s14 + $0x1a1] sm:$0xff] }
 0x164   : > { %9028 = vmatmul.mubr.msk.f32.gmra.mrb[32].mxu0 %vm477_vm0, %v11044_v58  ;;  %v13932_v58 = vld [vmem:[#allocation25_spill] sm:$0xff] }
 0x165   : > { %9030 = vmatprep.mubr.msk.f32.mxu0 %vm477_vm0, %v11051_v57  ;;  %v13931_v57 = vld [vmem:[#allocation24_spill] sm:$0xff] }
 0x168   : > { %9031 = vmatmul.mubr.msk.f32.gmra.mrb[34].mxu0 %vm477_vm0, %v11054_v56  ;;  %v13930_v56 = vld [vmem:[#allocation23_spill] sm:$0xff] }
 0x169   : > { %9033 = vmatprep.mubr.msk.f32.mxu0 %vm477_vm0, %v11061_v60  ;;  %v13959_v60 = vld [vmem:[#allocation52_spill] sm:$0xff] }
 0x16c   : > { %9034 = vmatmul.mubr.msk.f32.gmra.mrb[36].mxu0 %vm477_vm0, %v11064_v55  ;;  %v13929_v55 = vld [vmem:[#allocation22_spill] sm:$0xff] }
 0x16d   : > { %9036 = vmatprep.mubr.msk.f32.mxu0 %vm477_vm0, %v11071_v54  ;;  %v13928_v54 = vld [vmem:[#allocation21_spill] sm:$0xff] }
 0x170   : > { %9037 = vmatmul.mubr.msk.f32.gmra.mrb[38].mxu0 %vm477_vm0, %v7515_v23  ;;  %v13966_v23 = vld [vmem:[#allocation59_spill] sm:$0xff] }
 0x171   : > { %9039 = vmatprep.mubr.msk.f32.mxu0 %vm477_vm0, %v11078_v51  ;;  %v13927_v51 = vld [vmem:[#allocation20_spill] sm:$0xff] }
 0x174   : > { %9040 = vmatmul.mubr.msk.f32.gmra.mrb[40].mxu0 %vm477_vm0, %v11081_v50  ;;  %v13926_v50 = vld [vmem:[#allocation19_spill] sm:$0xff] }
 0x175   : > { %9042 = vmatprep.mubr.msk.f32.mxu0 %vm477_vm0, %v11088_v49  ;;  %v7625_v49 = vld [vmem:[%s10549_s14 + $0x111] sm:$0xff] }
 0x178   : > { %9043 = vmatmul.mubr.msk.f32.gmra.mrb[42].mxu0 %vm477_vm0, %v11091_v48  ;;  %v13925_v48 = vld [vmem:[#allocation18_spill] sm:$0xff] }
 0x179   : > { %9045 = vmatprep.mubr.msk.f32.mxu0 %vm477_vm0, %v11098_v52  ;;  %v13960_v52 = vld [vmem:[#allocation53_spill] sm:$0xff] }
 0x17c   : > { %9046 = vmatmul.mubr.msk.f32.gmra.mrb[44].mxu0 %vm477_vm0, %v11101_v47  ;;  %v13924_v47 = vld [vmem:[#allocation17_spill] sm:$0xff] }
 0x17d   : > { %9048 = vmatprep.mubr.msk.f32.mxu0 %vm477_vm0, %v11108_v46  ;;  %v13923_v46 = vld [vmem:[#allocation16_spill] sm:$0xff] }
 0x180   : > { %9049 = vmatmul.mubr.msk.f32.gmra.mrb[46].mxu0 %vm477_vm0, %v7523_v25  ;;  %v13967_v25 = vld [vmem:[#allocation60_spill] sm:$0xff] }
 0x181   : > { %9051 = vmatprep.mubr.msk.f32.mxu0 %vm477_vm0, %v11115_v43  ;;  %v7531_v43 = vld [vmem:[%s10549_s14 + $0x3e0] sm:$0xff] }
 0x184   : > { %9052 = vmatmul.mubr.msk.f32.gmra.mrb[48].mxu0 %vm477_vm0, %v11118_v42  ;;  %v13922_v42 = vld [vmem:[#allocation15_spill] sm:$0xff] }
 0x185   : > { %9054 = vmatprep.mubr.msk.f32.mxu0 %vm477_vm0, %v11125_v41  ;;  %v13921_v41 = vld [vmem:[#allocation14_spill] sm:$0xff] }
 0x188   : > { %9055 = vmatmul.mubr.msk.f32.gmra.mrb[50].mxu0 %vm477_vm0, %v11128_v40  ;;  %v13920_v40 = vld [vmem:[#allocation13_spill] sm:$0xff] }
 0x189   : > { %9057 = vmatprep.mubr.msk.f32.mxu0 %vm477_vm0, %v11135_v44  ;;  %v7665_v44 = vld [vmem:[%s10549_s14 + $0x3e1] sm:$0xff] }
 0x18c   : > { %9058 = vmatmul.mubr.msk.f32.gmra.mrb[52].mxu0 %vm477_vm0, %v11138_v39  ;;  %v13919_v39 = vld [vmem:[#allocation12_spill] sm:$0xff] }
 0x18d   : > { %9060 = vmatprep.mubr.msk.f32.mxu0 %vm477_vm0, %v11145_v38  ;;  %v13918_v38 = vld [vmem:[#allocation11_spill] sm:$0xff] }
 0x190   : > { %9061 = vmatmul.mubr.msk.f32.gmra.mrb[54].mxu0 %vm477_vm0, %v7531_v43  ;;  %v7673_v43 = vld [vmem:[%s10549_s14 + $0x471] sm:$0xff] }
 0x191   : > { %9063 = vmatprep.mubr.msk.f32.mxu0 %vm477_vm0, %v11152_v35  ;;  %v7539_v35 = vld [vmem:[%s10549_s14 + $0x470] sm:$0xff] }
 0x194   : > { %9064 = vmatmul.mubr.msk.f32.gmra.mrb[56].mxu0 %vm477_vm0, %v11155_v34  ;;  %v13913_v34 = vld [vmem:[#allocation6_spill] sm:$0xff] }
 0x195   : > { %9066 = vmatprep.mubr.msk.f32.mxu0 %vm477_vm0, %v11162_v33  ;;  %v13915_v33 = vld [vmem:[#allocation8_spill] sm:$0xff] }
 0x198   : > { %9067 = vmatmul.mubr.msk.f32.gmra.mrb[58].mxu0 %vm477_vm0, %v11165_v32  ;;  %v13914_v32 = vld [vmem:[#allocation7_spill] sm:$0xff] }
 0x199   : > { %9069 = vmatprep.mubr.msk.f32.mxu0 %vm477_vm0, %v11172_v36  ;;  %v13961_v36 = vld [vmem:[#allocation54_spill] sm:$0xff] }
 0x19c   : > { %9070 = vmatmul.mubr.msk.f32.gmra.mrb[60].mxu0 %vm477_vm0, %v11175_v28  ;;  %v13916_v28 = vld [vmem:[#allocation9_spill] sm:$0xff] }
 0x19d   : > { %9072 = vmatprep.mubr.msk.f32.mxu0 %vm477_vm0, %v11182_v27  ;;  %v13917_v27 = vld [vmem:[#allocation10_spill] sm:$0xff] }
 0x1a0   : > { %9073 = vmatmul.mubr.msk.f32.gmra.mrb[62].mxu0 %vm477_vm0, %v7539_v35  ;;  %v11458_v35 = vld [vmem:[%s13755_s2] ss:$0 sm:$0xff] }
 0x1a1   : > { %9087 = vmatprep.mubr.msk.f32.mxu0 %vm477_vm0, %v10560_v15  ;;  %v7617_v15 = vld [vmem:[%s10549_s14 + $0x81] sm:$0xff] }
 0x1a4   : > { %9088 = vmatmul.mubr.msk.f32.vlgmr.msra.gmra.mrb[0].mxu0 %vm477_vm0, %v13913_v34 }
 0x1a5   : > { %9090 = vmatprep.mubr.msk.f32.mxu0 %vm477_vm0, %v13914_v32 }
 0x1a8   : > { %9091 = vmatmul.mubr.msk.f32.gmra.mrb[2].mxu0 %vm477_vm0, %v13915_v33 }
 0x1a9   : > { %9093 = vmatprep.mubr.msk.f32.mxu0 %vm477_vm0, %v13916_v28 }
 0x1ac   : > { %9094 = vmatmul.mubr.msk.f32.gmra.mrb[4].mxu0 %vm477_vm0, %v13917_v27 }
 0x1ad   : > { %9096 = vmatprep.mubr.msk.f32.mxu0 %vm477_vm0, %v13918_v38 }
 0x1b0   : > { %9097 = vmatmul.mubr.msk.f32.gmra.mrb[6].mxu0 %vm477_vm0, %v7617_v15 }
 0x1b1   : > { %9099 = vmatprep.mubr.msk.f32.mxu0 %vm477_vm0, %v13919_v39 }
 0x1b4   : > { %9100 = vmatmul.mubr.msk.f32.gmra.mrb[8].mxu0 %vm477_vm0, %v13920_v40 }
 0x1b5   : > { %9102 = vmatprep.mubr.msk.f32.mxu0 %vm477_vm0, %v13921_v41 }
 0x1b8   : > { %9103 = vmatmul.mubr.msk.f32.gmra.mrb[10].mxu0 %vm477_vm0, %v13922_v42 }
 0x1b9   : > { %9105 = vmatprep.mubr.msk.f32.mxu0 %vm477_vm0, %v13923_v46 }
 0x1bc   : > { %9106 = vmatmul.mubr.msk.f32.gmra.mrb[12].mxu0 %vm477_vm0, %v13924_v47 }
 0x1bd   : > { %9108 = vmatprep.mubr.msk.f32.mxu0 %vm477_vm0, %v13925_v48 }
 0x1c0   : > { %9109 = vmatmul.mubr.msk.f32.gmra.mrb[14].mxu0 %vm477_vm0, %v7625_v49 }
 0x1c1   : > { %9111 = vmatprep.mubr.msk.f32.mxu0 %vm477_vm0, %v13926_v50 }
 0x1c4   : > { %9112 = vmatmul.mubr.msk.f32.gmra.mrb[16].mxu0 %vm477_vm0, %v13927_v51 }
 0x1c5   : > { %9114 = vmatprep.mubr.msk.f32.mxu0 %vm477_vm0, %v13928_v54 }
 0x1c8   : > { %9115 = vmatmul.mubr.msk.f32.gmra.mrb[18].mxu0 %vm477_vm0, %v13929_v55 }
 0x1c9   : > { %9117 = vmatprep.mubr.msk.f32.mxu0 %vm477_vm0, %v13930_v56 }
 0x1cc   : > { %9118 = vmatmul.mubr.msk.f32.gmra.mrb[20].mxu0 %vm477_vm0, %v13931_v57 }
 0x1cd   : > { %9120 = vmatprep.mubr.msk.f32.mxu0 %vm477_vm0, %v13932_v58 }
 0x1d0   : > { %9121 = vmatmul.mubr.msk.f32.gmra.mrb[22].mxu0 %vm477_vm0, %v7633_v59 }
 0x1d1   : > { %9123 = vmatprep.mubr.msk.f32.mxu0 %vm477_vm0, %v13933_v62 }
 0x1d4   : > { %9124 = vmatmul.mubr.msk.f32.gmra.mrb[24].mxu0 %vm477_vm0, %v13934_v63 }
 0x1d5   : > { %9126 = vmatprep.mubr.msk.f32.mxu0 %vm477_vm0, %v13935_v0 }
 0x1d8   : > { %9127 = vmatmul.mubr.msk.f32.gmra.mrb[26].mxu0 %vm477_vm0, %v13936_v1 }
 0x1d9   : > { %9129 = vmatprep.mubr.msk.f32.mxu0 %vm477_vm0, %v13937_v2 }
 0x1dc   : > { %9130 = vmatmul.mubr.msk.f32.gmra.mrb[28].mxu0 %vm477_vm0, %v13938_v3 }
 0x1dd   : > { %9132 = vmatprep.mubr.msk.f32.mxu0 %vm477_vm0, %v13939_v6 }
 0x1e0   : > { %9133 = vmatmul.mubr.msk.f32.gmra.mrb[30].mxu0 %vm477_vm0, %v7641_v7 }
 0x1e1   : > { %9135 = vmatprep.mubr.msk.f32.mxu0 %vm477_vm0, %v13940_v8 }
 0x1e4   : > { %9136 = vmatmul.mubr.msk.f32.gmra.mrb[32].mxu0 %vm477_vm0, %v13941_v9 }
 0x1e5   : > { %9138 = vmatprep.mubr.msk.f32.mxu0 %vm477_vm0, %v13942_v10 }
 0x1e8   : > { %9139 = vmatmul.mubr.msk.f32.gmra.mrb[34].mxu0 %vm477_vm0, %v13943_v11 }
 0x1e9   : > { %9141 = vmatprep.mubr.msk.f32.mxu0 %vm477_vm0, %v13944_v14 }
 0x1ec   : > { %9142 = vmatmul.mubr.msk.f32.gmra.mrb[36].mxu0 %vm477_vm0, %v13945_v17 }
 0x1ed   : > { %9144 = vmatprep.mubr.msk.f32.mxu0 %vm477_vm0, %v13946_v19 }
 0x1f0   : > { %9145 = vmatmul.mubr.msk.f32.gmra.mrb[38].mxu0 %vm477_vm0, %v7649_v53 }
 0x1f1   : > { %9147 = vmatprep.mubr.msk.f32.mxu0 %vm477_vm0, %v13947_v61 }
 0x1f4   : > { %9148 = vmatmul.mubr.msk.f32.gmra.mrb[40].mxu0 %vm477_vm0, %v13948_v30 }
 0x1f5   : > { %9150 = vmatprep.mubr.msk.f32.mxu0 %vm477_vm0, %v13949_v37 }
 0x1f8   : > { %9151 = vmatmul.mubr.msk.f32.gmra.mrb[42].mxu0 %vm477_vm0, %v13950_v31 }
 0x1f9   : > { %9153 = vmatprep.mubr.msk.f32.mxu0 %vm477_vm0, %v13951_v26 }
 0x1fc   : > { %9154 = vmatmul.mubr.msk.f32.gmra.mrb[44].mxu0 %vm477_vm0, %v13952_v13 }
 0x1fd   : > { %9156 = vmatprep.mubr.msk.f32.mxu0 %vm477_vm0, %v13953_v22 }
 0x200   : > { %9157 = vmatmul.mubr.msk.f32.gmra.mrb[46].mxu0 %vm477_vm0, %v7657_v29 }
 0x201   : > { %9159 = vmatprep.mubr.msk.f32.mxu0 %vm477_vm0, %v13954_v5 }
 0x204   : > { %9160 = vmatmul.mubr.msk.f32.gmra.mrb[48].mxu0 %vm477_vm0, %v13955_v45 }
 0x205   : > { %9162 = vmatprep.mubr.msk.f32.mxu0 %vm477_vm0, %v13956_v18 }
 0x208   : > { %9163 = vmatmul.mubr.msk.f32.gmra.mrb[50].mxu0 %vm477_vm0, %v13957_v12 }
 0x209   : > { %9165 = vmatprep.mubr.msk.f32.mxu0 %vm477_vm0, %v13958_v4 }
 0x20c   : > { %9166 = vmatmul.mubr.msk.f32.gmra.mrb[52].mxu0 %vm477_vm0, %v13959_v60 }
 0x20d   : > { %9168 = vmatprep.mubr.msk.f32.mxu0 %vm477_vm0, %v13960_v52 }
 0x210   : > { %9169 = vmatmul.mubr.msk.f32.gmra.mrb[54].mxu0 %vm477_vm0, %v7665_v44 }
 0x211   : > { %9171 = vmatprep.mubr.msk.f32.mxu0 %vm477_vm0, %v13961_v36 }
 0x214   : > { %9172 = vmatmul.mubr.msk.f32.gmra.mrb[56].mxu0 %vm477_vm0, %v13962_v24 }
 0x215   : > { %9174 = vmatprep.mubr.msk.f32.mxu0 %vm477_vm0, %v13963_v16 }
 0x218   : > { %9175 = vmatmul.mubr.msk.f32.gmra.mrb[58].mxu0 %vm477_vm0, %v13964_v20 }
 0x219   : > { %9177 = vmatprep.mubr.msk.f32.mxu0 %vm477_vm0, %v13965_v21 }
 0x21c   : > { %9178 = vmatmul.mubr.msk.f32.gmra.mrb[60].mxu0 %vm477_vm0, %v13966_v23 }
 0x21d   : > { %9180 = vmatprep.mubr.msk.f32.mxu0 %vm477_vm0, %v13967_v25 }
 0x220   : > { %9181 = vmatmul.mubr.msk.f32.gmra.mrb[62].mxu0 %vm477_vm0, %v7673_v43 }
 0x277   : > { %v9089_v34 = vpop.f32.mrb[0].mxu0 }
 0x278   : > { %v3065_v32 = vadd.f32 %v9089_v34, %v11458_v35  ;;  %v2674_v33 = vpop.f32.mrb[1].mxu0 }
 0x279   : > { %v3064_v28 = vadd.f32 %v11458_v35, %v2674_v33 }
 0x27a   : > { %v3129_v27 = vmax.f32 %v3065_v32, 0.0 }
 0x27b   : > { %v3128_v38 = vmax.f32 %v3064_v28, 0.0  ;;  %v9092_v15 = vpop.f32.mrb[2].mxu0 }
 0x27c   : > { %3194 = vst.msk [vmem:[#allocation2 + $0x8] sm:$0xff] %vm3192_vm1, %v3129_v27  ;;  %v3067_v39 = vadd.f32 %v9092_v15, %v11458_v35  ;;  %v2684_v40 = vpop.f32.mrb[3].mxu0 }
 0x27d   : > { %3193 = vst.msk [vmem:[#allocation2] sm:$0xff] %vm3192_vm1, %v3128_v38  ;;  %v3066_v41 = vadd.f32 %v11458_v35, %v2684_v40 }
 0x27e   : > { %v3131_v42 = vmax.f32 %v3067_v39, 0.0 }
 0x27f   : > { %v3130_v46 = vmax.f32 %v3066_v41, 0.0  ;;  %v9095_v47 = vpop.f32.mrb[4].mxu0 }
 0x280   : > { %3196 = vst.msk [vmem:[#allocation2 + $0x18] sm:$0xff] %vm3192_vm1, %v3131_v42  ;;  %v3069_v48 = vadd.f32 %v9095_v47, %v11458_v35  ;;  %v2694_v49 = vpop.f32.mrb[5].mxu0 }
 0x281   : > { %3195 = vst.msk [vmem:[#allocation2 + $0x10] sm:$0xff] %vm3192_vm1, %v3130_v46  ;;  %v3068_v50 = vadd.f32 %v11458_v35, %v2694_v49 }
 0x282   : > { %v3133_v51 = vmax.f32 %v3069_v48, 0.0 }
 0x283   : > { %v3132_v54 = vmax.f32 %v3068_v50, 0.0  ;;  %v9098_v55 = vpop.f32.mrb[6].mxu0  ;;  %v3377_v28 = vld [vmem:[#allocation2 + $0xb] sm:$0x1]  ;;  %v3361_v48 = vld [vmem:[#allocation2 + $0x9] sm:$0x1] }
 0x284   : > { %3198 = vst.msk [vmem:[#allocation2 + $0x28] sm:$0xff] %vm3192_vm1, %v3133_v51  ;;  %v3071_v56 = vadd.f32 %v9098_v55, %v11458_v35  ;;  %v2704_v57 = vpop.f32.mrb[7].mxu0  ;;  %v3345_v33 = vld [vmem:[#allocation2 + $0x3] sm:$0x1]  ;;  %v3329_v39 = vld [vmem:[#allocation2 + $0x1] sm:$0x1] }
 0x285   : > { %3197 = vst.msk [vmem:[#allocation2 + $0x20] sm:$0xff] %vm3192_vm1, %v3132_v54  ;;  %v3070_v58 = vadd.f32 %v11458_v35, %v2704_v57 }
 0x286   : > { %v3135_v59 = vmax.f32 %v3071_v56, 0.0 }
 0x287   : > { %v3134_v62 = vmax.f32 %v3070_v58, 0.0  ;;  %v9101_v63 = vpop.f32.mrb[8].mxu0 }
 0x288   : > { %3200 = vst.msk [vmem:[#allocation2 + $0x38] sm:$0xff] %vm3192_vm1, %v3135_v59  ;;  %v3073_v0 = vadd.f32 %v9101_v63, %v11458_v35  ;;  %v2714_v1 = vpop.f32.mrb[9].mxu0  ;;  %v3337_v59 = vld [vmem:[#allocation2 + $0x2] sm:$0x1] }
 0x289   : > { %3199 = vst.msk [vmem:[#allocation2 + $0x30] sm:$0xff] %vm3192_vm1, %v3134_v62  ;;  %v3072_v2 = vadd.f32 %v11458_v35, %v2714_v1  ;;  %v3369_v62 = vld [vmem:[#allocation2 + $0xa] sm:$0x1] }
 0x28a   : > { %v3137_v3 = vmax.f32 %v3073_v0, 0.0 }
 0x28b   : > { %v3136_v6 = vmax.f32 %v3072_v2, 0.0  ;;  %v9104_v7 = vpop.f32.mrb[10].mxu0 }
 0x28c   : > { %3202 = vst.msk [vmem:[#allocation2 + $0x48] sm:$0xff] %vm3192_vm1, %v3137_v3  ;;  %v3075_v8 = vadd.f32 %v9104_v7, %v11458_v35  ;;  %v2724_v9 = vpop.f32.mrb[11].mxu0 }
 0x28d   : > { %3201 = vst.msk [vmem:[#allocation2 + $0x40] sm:$0xff] %vm3192_vm1, %v3136_v6  ;;  %v3074_v10 = vadd.f32 %v11458_v35, %v2724_v9  ;;  %v3425_v6 = vld [vmem:[#allocation2 + $0x19] sm:$0x1] }
 0x28e   : > { %v3139_v11 = vmax.f32 %v3075_v8, 0.0 }
 0x28f   : > { %v3138_v14 = vmax.f32 %v3074_v10, 0.0  ;;  %v9107_v17 = vpop.f32.mrb[12].mxu0 }
 0x290   : > { %3204 = vst.msk [vmem:[#allocation2 + $0x58] sm:$0xff] %vm3192_vm1, %v3139_v11  ;;  %v3077_v19 = vadd.f32 %v9107_v17, %v11458_v35  ;;  %v2734_v53 = vpop.f32.mrb[13].mxu0 }
 0x291   : > { %3203 = vst.msk [vmem:[#allocation2 + $0x50] sm:$0xff] %vm3192_vm1, %v3138_v14  ;;  %v3076_v61 = vadd.f32 %v11458_v35, %v2734_v53  ;;  %v3393_v14 = vld [vmem:[#allocation2 + $0x11] sm:$0x1] }
 0x292   : > { %v3141_v30 = vmax.f32 %v3077_v19, 0.0 }
 0x293   : > { %v3140_v37 = vmax.f32 %v3076_v61, 0.0  ;;  %v9110_v31 = vpop.f32.mrb[14].mxu0  ;;  %v3378_v60 = vld [vmem:[#allocation2 + $0x4b] sm:$0x1]  ;;  %v3362_v24 = vld [vmem:[#allocation2 + $0x49] sm:$0x1] }
 0x294   : > { %3206 = vst.msk [vmem:[#allocation2 + $0x68] sm:$0xff] %vm3192_vm1, %v3141_v30  ;;  %v3079_v26 = vadd.f32 %v9110_v31, %v11458_v35  ;;  %v2744_v13 = vpop.f32.mrb[15].mxu0  ;;  %v3346_v4 = vld [vmem:[#allocation2 + $0x43] sm:$0x1]  ;;  %v3330_v44 = vld [vmem:[#allocation2 + $0x41] sm:$0x1] }
 0x295   : > { %3205 = vst.msk [vmem:[#allocation2 + $0x60] sm:$0xff] %vm3192_vm1, %v3140_v37  ;;  %v3078_v22 = vadd.f32 %v11458_v35, %v2744_v13  ;;  %v3338_v16 = vld [vmem:[#allocation2 + $0x42] sm:$0x1]  ;;  %v3537_v23 = vrot.slane %v3346_v4, 7  ;;  %v3635_v25 = vrot.slane %v3378_v60, 7  ;;  %v3487_v27 = vrot.slane %v3330_v44, 7 }
 0x296   : > { %v3143_v29 = vmax.f32 %v3079_v26, 0.0  ;;  %v3370_v43 = vld [vmem:[#allocation2 + $0x4a] sm:$0x1]  ;;  %v3585_v40 = vrot.slane %v3362_v24, 7  ;;  %v3512_v41 = vrot.slane %v3338_v16, 7 }
 0x297   : > { %v3142_v5 = vmax.f32 %v3078_v22, 0.0  ;;  %v9113_v45 = vpop.f32.mrb[16].mxu0  ;;  %v3426_v38 = vld [vmem:[#allocation2 + $0x59] sm:$0x1]  ;;  %v3434_v46 = vld [vmem:[#allocation2 + $0x5a] sm:$0x1]  ;;  %v11505_v57 = vsel %vm3458_vm2, %v3537_v23, %v3345_v33  ;;  %v11508_v58 = vsel %vm3458_vm2, %v3635_v25, %v3377_v28  ;;  %v11515_v3 = vsel %vm3458_vm2, %v3487_v27, %v3329_v39 }
 0x298   : > { %3208 = vst.msk [vmem:[#allocation2 + $0x78] sm:$0xff] %vm3192_vm1, %v3143_v29  ;;  %v3081_v18 = vadd.f32 %v9113_v45, %v11458_v35  ;;  %v2754_v12 = vpop.f32.mrb[17].mxu0  ;;  %v3394_v42 = vld [vmem:[#allocation2 + $0x51] sm:$0x1]  ;;  %v3610_v49 = vrot.slane %v3370_v43, 7  ;;  %v3781_v63 = vrot.slane %v3426_v38, 7  ;;  %v11520_v11 = vsel %vm3458_vm2, %v3585_v40, %v3361_v48 }
 0x299   : > { %3207 = vst.msk [vmem:[#allocation2 + $0x70] sm:$0xff] %vm3192_vm1, %v3142_v5  ;;  %v3080_v52 = vadd.f32 %v11458_v35, %v2754_v12  ;;  %v11498_v50 = vld [vmem:[#allocation2 + $0x52] sm:$0x1]  ;;  %v11500_v51 = vld [vmem:[#allocation2 + $0x53] sm:$0x1]  ;;  %v3683_v7 = vrot.slane %v3394_v42, 7  ;;  %v11527_v37 = vsel %vm3458_vm2, %v3512_v41, %v3337_v59 }
 0x29a   : > { %v3145_v36 = vmax.f32 %v3081_v18, 0.0  ;;  %v11502_v54 = vld [vmem:[#allocation2 + $0x44] sm:$0x1]  ;;  %v11510_v0 = vld [vmem:[#allocation2 + $0x5b] sm:$0x1]  ;;  %v3806_v8 = vrot.slane %v3434_v46, 7  ;;  %v11530_v31 = vsel %vm3458_vm2, %v3610_v49, %v3369_v62  ;;  %v11538_v18 = vsel %vm3458_vm2, %v3781_v63, %v3425_v6 }
 0x29b   : > { %v3144_v20 = vmax.f32 %v3080_v52, 0.0  ;;  %v9116_v21 = vpop.f32.mrb[18].mxu0  ;;  %v4019_v9 = vld [vmem:[#allocation2 + $0x4c] sm:$0x1]  ;;  %v3708_v17 = vrot.slane %v11498_v50, 7  ;;  %v3733_v19 = vrot.slane %v11500_v51, 7  ;;  %v11546_v16 = vsel %vm3458_vm2, %v3683_v7, %v3393_v14 }
 0x29c   : > { %3210 = vst.msk [vmem:[#allocation2 + $0x88] sm:$0xff] %vm3192_vm1, %v3145_v36  ;;  %v3083_v34 = vadd.f32 %v9116_v21, %v11458_v35  ;;  %v2764_v32 = vpop.f32.mrb[19].mxu0  ;;  %v4011_v53 = vld [vmem:[#allocation2 + $0x45] sm:$0x1]  ;;  %v11524_v61 = vld [vmem:[#allocation2 + $0x4d] sm:$0x1] }
 0x29d   : > { %3209 = vst.msk [vmem:[#allocation2 + $0x80] sm:$0xff] %vm3192_vm1, %v3144_v20  ;;  %v3082_v15 = vadd.f32 %v11458_v35, %v2764_v32  ;;  %v3433_v26 = vld [vmem:[#allocation2 + $0x1a] sm:$0x1]  ;;  %v3831_v13 = vrot.slane %v11510_v0, 7  ;;  %v11533_v22 = vld [vmem:[#allocation2 + $0x54] sm:$0x1] }
 0x29e   : > { %v3147_v47 = vmax.f32 %v3083_v34, 0.0  ;;  %v11535_v29 = vld [vmem:[#allocation2 + $0x5c] sm:$0x1]  ;;  %v3401_v12 = vld [vmem:[#allocation2 + $0x12] sm:$0x1]  ;;  %v4078_v60 = vrot.slane %v11502_v54, 7  ;;  %v11552_v33 = vsel %vm3458_vm2, %v3806_v8, %v3433_v26 }
 0x29f   : > { %v3146_v55 = vmax.f32 %v3082_v15, 0.0  ;;  %v9119_v56 = vpop.f32.mrb[20].mxu0  ;;  %v3409_v4 = vld [vmem:[#allocation2 + $0x13] sm:$0x1]  ;;  %v4132_v52 = vrot.slane %v4019_v9, 7  ;;  %v4103_v25 = vrot.slane %v4011_v53, 7  ;;  %v11559_v46 = vsel %vm3458_vm2, %v3708_v17, %v3401_v12 }
 0x2a0   : > { %3212 = vst.msk [vmem:[#allocation2 + $0x98] sm:$0xff] %vm3192_vm1, %v3147_v47  ;;  %v3085_v1 = vadd.f32 %v9119_v56, %v11458_v35  ;;  %v2774_v2 = vpop.f32.mrb[21].mxu0  ;;  %v11541_v44 = vld [vmem:[#allocation2 + $0x55] sm:$0x1]  ;;  %v3441_v20 = vld [vmem:[#allocation2 + $0x1b] sm:$0x1]  ;;  %v11562_v47 = vsel %vm3458_vm2, %v3733_v19, %v3409_v4 }
 0x2a1   : > { %3211 = vst.msk [vmem:[#allocation2 + $0x90] sm:$0xff] %vm3192_vm1, %v3146_v55  ;;  %v3084_v10 = vadd.f32 %v11458_v35, %v2774_v2  ;;  %v4002_v21 = vld [vmem:[#allocation2 + $0x4] sm:$0x1]  ;;  %v4018_v23 = vld [vmem:[#allocation2 + $0xc] sm:$0x1]  ;;  %v4157_v43 = vrot.slane %v11524_v61, 7  ;;  %v11566_v56 = vsel %vm3458_vm2, %v3831_v13, %v3441_v20 }
 0x2a2   : > { %v3149_v30 = vmax.f32 %v3085_v1, 0.0  ;;  %v4059_v34 = vld [vmem:[#allocation2 + $0x5d] sm:$0x1]  ;;  %v4010_v28 = vld [vmem:[#allocation2 + $0x5] sm:$0x1]  ;;  %v4186_v27 = vrot.slane %v11533_v22, 7  ;;  %v11569_v59 = vsel %vm3458_vm2, %v4078_v60, %v4002_v21  ;;  %v11572_v62 = vsel %vm3458_vm2, %v4132_v52, %v4018_v23 }
 0x2a3   : > { %v3148_v5 = vmax.f32 %v3084_v10, 0.0  ;;  %v9122_v45 = vpop.f32.mrb[22].mxu0  ;;  %v4240_v38 = vrot.slane %v11535_v29, 7  ;;  %v4435_v15 = vld [vmem:[#allocation2 + $0x46] sm:$0x1]  ;;  %v4211_v49 = vrot.slane %v11541_v44, 7  ;;  %v11577_v1 = vsel %vm3458_vm2, %v4103_v25, %v4010_v28 }
 0x2a4   : > { %3214 = vst.msk [vmem:[#allocation2 + $0xa8] sm:$0xff] %vm3192_vm1, %v3149_v30  ;;  %v3087_v36 = vadd.f32 %v9122_v45, %v11458_v35  ;;  %v2784_v24 = vpop.f32.mrb[23].mxu0  ;;  %v4451_v39 = vld [vmem:[#allocation2 + $0x4e] sm:$0x1]  ;;  %v3379_v41 = vld [vmem:[#allocation2 + $0x8b] sm:$0x1] }
 0x2a5   : > { %3213 = vst.msk [vmem:[#allocation2 + $0xa0] sm:$0xff] %vm3192_vm1, %v3148_v5  ;;  %v3086_v32 = vadd.f32 %v11458_v35, %v2784_v24  ;;  %v11556_v42 = vld [vmem:[#allocation2 + $0x89] sm:$0x1]  ;;  %v4026_v48 = vld [vmem:[#allocation2 + $0xd] sm:$0x1]  ;;  %v4265_v8 = vrot.slane %v4059_v34, 7 }
 0x2a6   : > { %v3151_v40 = vmax.f32 %v3087_v36, 0.0  ;;  %v3347_v54 = vld [vmem:[#allocation2 + $0x83] sm:$0x1]  ;;  %v3331_v55 = vld [vmem:[#allocation2 + $0x81] sm:$0x1]  ;;  %v4510_v9 = vrot.slane %v4435_v15, 7  ;;  %v11582_v19 = vsel %vm3458_vm2, %v4157_v43, %v4026_v48 }
 0x2a7   : > { %v3150_v50 = vmax.f32 %v3086_v32, 0.0  ;;  %v9125_v51 = vpop.f32.mrb[24].mxu0  ;;  %v4034_v2 = vld [vmem:[#allocation2 + $0x14] sm:$0x1]  ;;  %v4050_v6 = vld [vmem:[#allocation2 + $0x1c] sm:$0x1] }
 0x2a8   : > { %3216 = vst.msk [vmem:[#allocation2 + $0xb8] sm:$0xff] %vm3192_vm1, %v3151_v40  ;;  %v3089_v63 = vadd.f32 %v9125_v51, %v11458_v35  ;;  %v2794_v0 = vpop.f32.mrb[25].mxu0  ;;  %v4042_v7 = vld [vmem:[#allocation2 + $0x15] sm:$0x1]  ;;  %v3637_v14 = vrot.slane %v3379_v41, 6  ;;  %v4564_v30 = vrot.slane %v4451_v39, 7  ;;  %v11586_v44 = vsel %vm3458_vm2, %v4186_v27, %v4034_v2 }
 0x2a9   : > { %3215 = vst.msk [vmem:[#allocation2 + $0xb0] sm:$0xff] %vm3192_vm1, %v3150_v50  ;;  %v3088_v10 = vadd.f32 %v11458_v35, %v2794_v0  ;;  %v3339_v17 = vld [vmem:[#allocation2 + $0x82] sm:$0x1]  ;;  %v4058_v53 = vld [vmem:[#allocation2 + $0x1d] sm:$0x1]  ;;  %v3539_v13 = vrot.slane %v3347_v54, 6  ;;  %v11589_v36 = vsel %vm3458_vm2, %v4240_v38, %v4050_v6  ;;  %v11592_v24 = vsel %vm3458_vm2, %v4211_v49, %v4042_v7 }
 0x2aa   : > { %v4434_v61 = vld [vmem:[#allocation2 + $0x6] sm:$0x1]  ;;  %v3153_v26 = vmax.f32 %v3089_v63, 0.0  ;;  %v3489_v22 = vrot.slane %v3331_v55, 6  ;;  %v3587_v29 = vrot.slane %v11556_v42, 6  ;;  %v3514_v23 = vrot.slane %v3339_v17, 6 }
 0x2ab   : > { %v3371_v5 = vld [vmem:[#allocation2 + $0x8a] sm:$0x1]  ;;  %v4450_v45 = vld [vmem:[#allocation2 + $0xe] sm:$0x1]  ;;  %v3152_v12 = vmax.f32 %v3088_v10, 0.0  ;;  %v9128_v4 = vpop.f32.mrb[26].mxu0  ;;  %v11597_v34 = vsel %vm3458_vm2, %v4265_v8, %v4058_v53  ;;  %v11600_v32 = vsel %vm3458_vm2, %v4510_v9, %v4434_v61  ;;  %v11606_v27 = vsel %vm3461_vm3, %v3637_v14, %v11508_v58 }
 0x2ac   : > { %v3395_v60 = vld [vmem:[#allocation2 + $0x91] sm:$0x1]  ;;  %v3427_v52 = vld [vmem:[#allocation2 + $0x99] sm:$0x1]  ;;  %3218 = vst.msk [vmem:[#allocation2 + $0xc8] sm:$0xff] %vm3192_vm1, %v3153_v26  ;;  %v3091_v20 = vadd.f32 %v9128_v4, %v11458_v35  ;;  %v2804_v21 = vpop.f32.mrb[27].mxu0  ;;  %v11609_v40 = vsel %vm3458_vm2, %v4564_v30, %v4450_v45  ;;  %v11613_v42 = vsel %vm3461_vm3, %v3539_v13, %v11505_v57  ;;  %v11617_v58 = vsel %vm3461_vm3, %v3489_v22, %v11515_v3 }
 0x2ad   : > { %v3403_v25 = vld [vmem:[#allocation2 + $0x92] sm:$0x1]  ;;  %v3435_v43 = vld [vmem:[#allocation2 + $0x9a] sm:$0x1]  ;;  %3217 = vst.msk [vmem:[#allocation2 + $0xc0] sm:$0xff] %vm3192_vm1, %v3152_v12  ;;  %v3090_v28 = vadd.f32 %v11458_v35, %v2804_v21  ;;  %v3612_v38 = vrot.slane %v3371_v5, 6  ;;  %v11623_v57 = vsel %vm3461_vm3, %v3587_v29, %v11520_v11  ;;  %v11627_v7 = vsel %vm3461_vm3, %v3514_v23, %v11527_v37 }
 0x2ae   : > { %v3411_v15 = vld [vmem:[#allocation2 + $0x93] sm:$0x1]  ;;  %v4004_v39 = vld [vmem:[#allocation2 + $0x84] sm:$0x1]  ;;  %v3155_v41 = vmax.f32 %v3091_v20, 0.0  ;;  %v3685_v48 = vrot.slane %v3395_v60, 6 }
 0x2af   : > { %v3783_v49 = vrot.slane %v3427_v52, 6  ;;  %v3443_v50 = vld [vmem:[#allocation2 + $0x9b] sm:$0x1]  ;;  %v3154_v51 = vmax.f32 %v3090_v28, 0.0  ;;  %v9131_v54 = vpop.f32.mrb[28].mxu0  ;;  %v3710_v55 = vrot.slane %v3403_v25, 6  ;;  %v11633_v14 = vsel %vm3461_vm3, %v3612_v38, %v11530_v31 }
 0x2b0   : > { %v3808_v63 = vrot.slane %v3435_v43, 6  ;;  %v4020_v0 = vld [vmem:[#allocation2 + $0x8c] sm:$0x1]  ;;  %3220 = vst.msk [vmem:[#allocation2 + $0xd8] sm:$0xff] %vm3192_vm1, %v3155_v41  ;;  %v3093_v2 = vadd.f32 %v9131_v54, %v11458_v35  ;;  %v2814_v6 = vpop.f32.mrb[29].mxu0  ;;  %v3735_v8 = vrot.slane %v3411_v15, 6  ;;  %v11637_v37 = vsel %vm3461_vm3, %v3685_v48, %v11546_v16 }
 0x2b1   : > { %v4012_v9 = vld [vmem:[#allocation2 + $0x85] sm:$0x1]  ;;  %v4028_v3 = vld [vmem:[#allocation2 + $0x8d] sm:$0x1]  ;;  %3219 = vst.msk [vmem:[#allocation2 + $0xd0] sm:$0xff] %vm3192_vm1, %v3154_v51  ;;  %v3092_v10 = vadd.f32 %v11458_v35, %v2814_v6  ;;  %v3833_v17 = vrot.slane %v3443_v50, 6  ;;  %v11641_v30 = vsel %vm3461_vm3, %v3783_v49, %v11538_v18  ;;  %v11651_v18 = vsel %vm3461_vm3, %v3710_v55, %v11559_v46 }
 0x2b2   : > { %v4080_v53 = vrot.slane %v4004_v39, 6  ;;  %v4036_v11 = vld [vmem:[#allocation2 + $0x94] sm:$0x1]  ;;  %v3157_v61 = vmax.f32 %v3093_v2, 0.0  ;;  %v4134_v26 = vrot.slane %v4020_v0, 6  ;;  %v11645_v31 = vsel %vm3461_vm3, %v3808_v63, %v11552_v33 }
 0x2b3   : > { %v4052_v13 = vld [vmem:[#allocation2 + $0x9c] sm:$0x1]  ;;  %v4044_v22 = vld [vmem:[#allocation2 + $0x95] sm:$0x1]  ;;  %v3156_v29 = vmax.f32 %v3092_v10, 0.0  ;;  %v9134_v5 = vpop.f32.mrb[30].mxu0  ;;  %v11655_v52 = vsel %vm3461_vm3, %v3735_v8, %v11562_v47  ;;  %v11661_v43 = vsel %vm3461_vm3, %v3833_v17, %v11566_v56 }
 0x2b4   : > { %v4105_v45 = vrot.slane %v4012_v9, 6  ;;  %v4159_v12 = vrot.slane %v4028_v3, 6  ;;  %v4060_v4 = vld [vmem:[#allocation2 + $0x9d] sm:$0x1]  ;;  %3222 = vst.msk [vmem:[#allocation2 + $0xe8] sm:$0xff] %vm3192_vm1, %v3157_v61  ;;  %v3095_v16 = vadd.f32 %v9134_v5, %v11458_v35  ;;  %v2824_v60 = vpop.f32.mrb[31].mxu0  ;;  %v11665_v47 = vsel %vm3461_vm3, %v4080_v53, %v11569_v59 }
 0x2b5   : > { %v4188_v20 = vrot.slane %v4036_v11, 6  ;;  %v4436_v21 = vld [vmem:[#allocation2 + $0x86] sm:$0x1]  ;;  %v4452_v33 = vld [vmem:[#allocation2 + $0x8e] sm:$0x1]  ;;  %3221 = vst.msk [vmem:[#allocation2 + $0xe0] sm:$0xff] %vm3192_vm1, %v3156_v29  ;;  %v3094_v23 = vadd.f32 %v11458_v35, %v2824_v60  ;;  %v11669_v41 = vsel %vm3461_vm3, %v4134_v26, %v11572_v62 }
 0x2b6   : > { %v3380_v25 = vld [vmem:[#allocation2 + $0xcb] sm:$0x1]  ;;  %v4242_v28 = vrot.slane %v4052_v13, 6  ;;  %v4213_v38 = vrot.slane %v4044_v22, 6  ;;  %v3159_v46 = vmax.f32 %v3095_v16, 0.0  ;;  %v4267_v48 = vrot.slane %v4060_v4, 6 }
 0x2b7   : > { %v3348_v15 = vld [vmem:[#allocation2 + $0xc3] sm:$0x1]  ;;  %v3332_v39 = vld [vmem:[#allocation2 + $0xc1] sm:$0x1]  ;;  %v3158_v49 = vmax.f32 %v3094_v23, 0.0  ;;  %v9137_v50 = vpop.f32.mrb[32].mxu0  ;;  %v11673_v56 = vsel %vm3461_vm3, %v4105_v45, %v11577_v1  ;;  %v11679_v62 = vsel %vm3461_vm3, %v4159_v12, %v11582_v19  ;;  %v11683_v8 = vsel %vm3461_vm3, %v4188_v20, %v11586_v44 }
 0x2b8   : > { %v3364_v51 = vld [vmem:[#allocation2 + $0xc9] sm:$0x1]  ;;  %v4512_v54 = vrot.slane %v4436_v21, 6  ;;  %v4566_v55 = vrot.slane %v4452_v33, 6  ;;  %3224 = vst.msk [vmem:[#allocation2 + $0xf8] sm:$0xff] %vm3192_vm1, %v3159_v46  ;;  %v3097_v63 = vadd.f32 %v9137_v50, %v11458_v35  ;;  %v2834_v59 = vpop.f32.mrb[33].mxu0  ;;  %v11689_v17 = vsel %vm3461_vm3, %v4242_v28, %v11589_v36 }
 0x2b9   : > { %v3639_v0 = vrot.slane %v3380_v25, 5  ;;  %v3340_v2 = vld [vmem:[#allocation2 + $0xc2] sm:$0x1]  ;;  %v3372_v6 = vld [vmem:[#allocation2 + $0xca] sm:$0x1]  ;;  %3223 = vst.msk [vmem:[#allocation2 + $0xf0] sm:$0xff] %vm3192_vm1, %v3158_v49  ;;  %v3096_v1 = vadd.f32 %v11458_v35, %v2834_v59  ;;  %v11693_v26 = vsel %vm3461_vm3, %v4213_v38, %v11592_v24  ;;  %v11697_v44 = vsel %vm3461_vm3, %v4267_v48, %v11597_v34 }
 0x2ba   : > { %v3541_v9 = vrot.slane %v3348_v15, 5  ;;  %v3491_v3 = vrot.slane %v3332_v39, 5  ;;  %v3428_v10 = vld [vmem:[#allocation2 + $0xd9] sm:$0x1]  ;;  %v3161_v53 = vmax.f32 %v3097_v63, 0.0  ;;  %v3589_v11 = vrot.slane %v3364_v51, 5 }
 0x2bb   : > { %v3396_v61 = vld [vmem:[#allocation2 + $0xd1] sm:$0x1]  ;;  %v3436_v19 = vld [vmem:[#allocation2 + $0xda] sm:$0x1]  ;;  %v3160_v13 = vmax.f32 %v3096_v1, 0.0  ;;  %v9140_v22 = vpop.f32.mrb[34].mxu0  ;;  %v11701_v36 = vsel %vm3461_vm3, %v4512_v54, %v11600_v32  ;;  %v11707_v24 = vsel %vm3464_vm4, %v3639_v0, %v11606_v27  ;;  %v11711_v20 = vsel %vm3461_vm3, %v4566_v55, %v11609_v40 }
 0x2bc   : > { %v3516_v29 = vrot.slane %v3340_v2, 5  ;;  %v3614_v5 = vrot.slane %v3372_v6, 5  ;;  %v3404_v45 = vld [vmem:[#allocation2 + $0xd2] sm:$0x1]  ;;  %3226 = vst.msk [vmem:[#allocation2 + $0x108] sm:$0xff] %vm3192_vm1, %v3161_v53  ;;  %v3099_v12 = vadd.f32 %v9140_v22, %v11458_v35  ;;  %v2844_v4 = vpop.f32.mrb[35].mxu0  ;;  %v11717_v21 = vsel %vm3464_vm4, %v3541_v9, %v11613_v42 }
 0x2bd   : > { %v3785_v34 = vrot.slane %v3428_v10, 5  ;;  %v3412_v16 = vld [vmem:[#allocation2 + $0xd3] sm:$0x1]  ;;  %v3444_v60 = vld [vmem:[#allocation2 + $0xdb] sm:$0x1]  ;;  %3225 = vst.msk [vmem:[#allocation2 + $0x100] sm:$0xff] %vm3192_vm1, %v3160_v13  ;;  %v3098_v32 = vadd.f32 %v11458_v35, %v2844_v4  ;;  %v11721_v28 = vsel %vm3464_vm4, %v3491_v3, %v11617_v58  ;;  %v11725_v40 = vsel %vm3464_vm4, %v3589_v11, %v11623_v57 }
 0x2be   : > { %v3687_v33 = vrot.slane %v3396_v61, 5  ;;  %v3810_v23 = vrot.slane %v3436_v19, 5  ;;  %v4005_v25 = vld [vmem:[#allocation2 + $0xc4] sm:$0x1]  ;;  %v3163_v27 = vmax.f32 %v3099_v12, 0.0  ;;  %v3712_v38 = vrot.slane %v3404_v45, 5 }
 0x2bf   : > { %v4021_v46 = vld [vmem:[#allocation2 + $0xcc] sm:$0x1]  ;;  %v4013_v15 = vld [vmem:[#allocation2 + $0xc5] sm:$0x1]  ;;  %v3162_v39 = vmax.f32 %v3098_v32, 0.0  ;;  %v9143_v48 = vpop.f32.mrb[36].mxu0  ;;  %v11729_v42 = vsel %vm3464_vm4, %v3516_v29, %v11627_v7  ;;  %v11735_v57 = vsel %vm3464_vm4, %v3614_v5, %v11633_v14  ;;  %v11739_v55 = vsel %vm3464_vm4, %v3785_v34, %v11641_v30 }
 0x2c0   : > { %v3737_v49 = vrot.slane %v3412_v16, 5  ;;  %v3835_v50 = vrot.slane %v3444_v60, 5  ;;  %v4029_v51 = vld [vmem:[#allocation2 + $0xcd] sm:$0x1]  ;;  %3228 = vst.msk [vmem:[#allocation2 + $0x118] sm:$0xff] %vm3192_vm1, %v3163_v27  ;;  %v3101_v58 = vadd.f32 %v9143_v48, %v11458_v35  ;;  %v2854_v54 = vpop.f32.mrb[37].mxu0  ;;  %v11745_v2 = vsel %vm3464_vm4, %v3687_v33, %v11637_v37 }
 0x2c1   : > { %v4082_v63 = vrot.slane %v4005_v25, 5  ;;  %v4037_v59 = vld [vmem:[#allocation2 + $0xd4] sm:$0x1]  ;;  %v4053_v7 = vld [vmem:[#allocation2 + $0xdc] sm:$0x1]  ;;  %3227 = vst.msk [vmem:[#allocation2 + $0x110] sm:$0xff] %vm3192_vm1, %v3162_v39  ;;  %v3100_v0 = vadd.f32 %v11458_v35, %v2854_v54  ;;  %v11749_v30 = vsel %vm3464_vm4, %v3712_v38, %v11651_v18  ;;  %v11753_v10 = vsel %vm3464_vm4, %v3810_v23, %v11645_v31 }
 0x2c2   : > { %v4136_v6 = vrot.slane %v4021_v46, 5  ;;  %v4107_v1 = vrot.slane %v4013_v15, 5  ;;  %v4045_v9 = vld [vmem:[#allocation2 + $0xd5] sm:$0x1]  ;;  %v4061_v14 = vld [vmem:[#allocation2 + $0xdd] sm:$0x1]  ;;  %v11757_v22 = vsel %vm3464_vm4, %v3737_v49, %v11655_v52  ;;  %v11763_v4 = vsel %vm3464_vm4, %v3835_v50, %v11661_v43 }
 0x2c3   : > { %v3165_v3 = vmax.f32 %v3101_v58, 0.0  ;;  %v4161_v53 = vrot.slane %v4029_v51, 5  ;;  %v4437_v11 = vld [vmem:[#allocation2 + $0xc6] sm:$0x1]  ;;  %v4453_v61 = vld [vmem:[#allocation2 + $0xce] sm:$0x1]  ;;  %v11767_v34 = vsel %vm3464_vm4, %v4082_v63, %v11665_v47 }
 0x2c4   : > { %v3164_v19 = vmax.f32 %v3100_v0, 0.0  ;;  %v9146_v13 = vpop.f32.mrb[38].mxu0  ;;  %v3381_v37 = vld [vmem:[#allocation2 + $0x10b] sm:$0x1]  ;;  %v4190_v29 = vrot.slane %v4037_v59, 5  ;;  %v4244_v5 = vrot.slane %v4053_v7, 5  ;;  %v11773_v47 = vsel %vm3464_vm4, %v4136_v6, %v11669_v41 }
 0x2c5   : > { %3230 = vst.msk [vmem:[#allocation2 + $0x128] sm:$0xff] %vm3192_vm1, %v3165_v3  ;;  %v3103_v18 = vadd.f32 %v9146_v13, %v11458_v35  ;;  %v2864_v45 = vpop.f32.mrb[39].mxu0  ;;  %v3349_v12 = vld [vmem:[#allocation2 + $0x103] sm:$0x1]  ;;  %v3333_v31 = vld [vmem:[#allocation2 + $0x101] sm:$0x1]  ;;  %v11777_v49 = vsel %vm3464_vm4, %v4107_v1, %v11673_v56  ;;  %v11781_v50 = vsel %vm3464_vm4, %v4161_v53, %v11679_v62 }
 0x2c6   : > { %v4215_v16 = vrot.slane %v4045_v9, 5  ;;  %3229 = vst.msk [vmem:[#allocation2 + $0x120] sm:$0xff] %vm3192_vm1, %v3164_v19  ;;  %v3102_v52 = vadd.f32 %v11458_v35, %v2864_v45  ;;  %v3365_v60 = vld [vmem:[#allocation2 + $0x109] sm:$0x1]  ;;  %v4269_v32 = vrot.slane %v4061_v14, 5  ;;  %v4514_v33 = vrot.slane %v4437_v11, 5 }
 0x2c7   : > { %v4568_v23 = vrot.slane %v4453_v61, 5  ;;  %v3167_v25 = vmax.f32 %v3103_v18, 0.0  ;;  %v3543_v27 = vrot.slane %v3349_v12, 4  ;;  %v3641_v38 = vrot.slane %v3381_v37, 4  ;;  %v9149_v43 = vpop.f32.mrb[40].mxu0 }
 0x2c8   : > { %v3493_v46 = vrot.slane %v3333_v31, 4  ;;  %v3166_v15 = vmax.f32 %v3102_v52, 0.0  ;;  %v3341_v39 = vld [vmem:[#allocation2 + $0x102] sm:$0x1]  ;;  %v3373_v48 = vld [vmem:[#allocation2 + $0x10a] sm:$0x1]  ;;  %v3105_v51 = vadd.f32 %v9149_v43, %v11458_v35  ;;  %v11787_v41 = vsel %vm3464_vm4, %v4190_v29, %v11683_v8 }
 0x2c9   : > { %3232 = vst.msk [vmem:[#allocation2 + $0x138] sm:$0xff] %vm3192_vm1, %v3167_v25  ;;  %v2874_v58 = vpop.f32.mrb[41].mxu0  ;;  %v3591_v54 = vrot.slane %v3365_v60, 4  ;;  %v3397_v63 = vld [vmem:[#allocation2 + $0x111] sm:$0x1]  ;;  %v11791_v56 = vsel %vm3464_vm4, %v4244_v5, %v11689_v17  ;;  %v11799_v1 = vsel %vm3464_vm4, %v4215_v16, %v11693_v26  ;;  %v11803_v8 = vsel %vm3464_vm4, %v4269_v32, %v11697_v44 }
 0x2ca   : > { %v3429_v59 = vld [vmem:[#allocation2 + $0x119] sm:$0x1]  ;;  %3231 = vst.msk [vmem:[#allocation2 + $0x130] sm:$0xff] %vm3192_vm1, %v3166_v15  ;;  %v3104_v62 = vadd.f32 %v11458_v35, %v2874_v58  ;;  %v3405_v7 = vld [vmem:[#allocation2 + $0x112] sm:$0x1]  ;;  %v11807_v17 = vsel %vm3464_vm4, %v4514_v33, %v11701_v36  ;;  %v3169_v9 = vmax.f32 %v3105_v51, 0.0  ;;  %v11811_v14 = vsel %vm3467_vm5, %v3641_v38, %v11707_v24 }
 0x2cb   : > { %v3437_v0 = vld [vmem:[#allocation2 + $0x11a] sm:$0x1]  ;;  %v11795_v6 = vld [vmem:[#allocation2 + $0x104] sm:$0x1]  ;;  %v3518_v3 = vrot.slane %v3341_v39, 4  ;;  %v11815_v26 = vsel %vm3464_vm4, %v4568_v23, %v11711_v20  ;;  %v9152_v19 = vpop.f32.mrb[42].mxu0  ;;  %v11821_v24 = vsel %vm3467_vm5, %v3543_v27, %v11717_v21  ;;  %v11827_v12 = vsel %vm3467_vm5, %v3493_v46, %v11721_v28 }
 0x2cc   : > { %v3413_v53 = vld [vmem:[#allocation2 + $0x113] sm:$0x1]  ;;  %v3445_v11 = vld [vmem:[#allocation2 + $0x11b] sm:$0x1]  ;;  %v3168_v61 = vmax.f32 %v3104_v62, 0.0  ;;  %v3616_v44 = vrot.slane %v3373_v48, 4  ;;  %v3107_v36 = vadd.f32 %v9152_v19, %v11458_v35  ;;  %v11831_v21 = vsel %vm3467_vm5, %v3591_v54, %v11725_v40 }
 0x2cd   : > { %v3689_v13 = vrot.slane %v3397_v63, 4  ;;  %v3787_v37 = vrot.slane %v3429_v59, 4  ;;  %3234 = vst.msk [vmem:[#allocation2 + $0x148] sm:$0xff] %vm3192_vm1, %v3169_v9  ;;  %v2884_v29 = vpop.f32.mrb[43].mxu0  ;;  %v3714_v5 = vrot.slane %v3405_v7, 4  ;;  %v3812_v18 = vrot.slane %v3437_v0, 4 }
 0x2ce   : > { %v4022_v45 = vld [vmem:[#allocation2 + $0x10c] sm:$0x1]  ;;  %3233 = vst.msk [vmem:[#allocation2 + $0x140] sm:$0xff] %vm3192_vm1, %v3168_v61  ;;  %v3106_v20 = vadd.f32 %v11458_v35, %v2884_v29  ;;  %v3739_v31 = vrot.slane %v3413_v53, 4  ;;  %v3837_v16 = vrot.slane %v3445_v11, 4  ;;  %v3171_v32 = vmax.f32 %v3107_v36, 0.0 }
 0x2cf   : > { %v4014_v52 = vld [vmem:[#allocation2 + $0x105] sm:$0x1]  ;;  %v4030_v60 = vld [vmem:[#allocation2 + $0x10d] sm:$0x1]  ;;  %v11835_v33 = vsel %vm3467_vm5, %v3518_v3, %v11729_v42  ;;  %v4084_v23 = vrot.slane %v11795_v6, 4  ;;  %v9155_v28 = vpop.f32.mrb[44].mxu0  ;;  %v11840_v46 = vsel %vm3467_vm5, %v3616_v44, %v11735_v57  ;;  %v11844_v15 = vsel %vm3467_vm5, %v3689_v13, %v11745_v2 }
 0x2d0   : > { %v4038_v25 = vld [vmem:[#allocation2 + $0x114] sm:$0x1]  ;;  %v4054_v27 = vld [vmem:[#allocation2 + $0x11c] sm:$0x1]  ;;  %v3170_v38 = vmax.f32 %v3106_v20, 0.0  ;;  %v11848_v40 = vsel %vm3467_vm5, %v3787_v37, %v11739_v55  ;;  %3236 = vst.msk [vmem:[#allocation2 + $0x158] sm:$0xff] %vm3192_vm1, %v3171_v32  ;;  %v3109_v39 = vadd.f32 %v9155_v28, %v11458_v35  ;;  %v11854_v51 = vsel %vm3467_vm5, %v3812_v18, %v11753_v10 }
 0x2d1   : > { %v4046_v42 = vld [vmem:[#allocation2 + $0x115] sm:$0x1]  ;;  %v4062_v43 = vld [vmem:[#allocation2 + $0x11d] sm:$0x1]  ;;  %v2894_v48 = vpop.f32.mrb[45].mxu0  ;;  %v4138_v57 = vrot.slane %v4022_v45, 4  ;;  %v11860_v55 = vsel %vm3467_vm5, %v3714_v5, %v11749_v30  ;;  %v11866_v61 = vsel %vm3467_vm5, %v3739_v31, %v11757_v22  ;;  %v11870_v30 = vsel %vm3467_vm5, %v3837_v16, %v11763_v4 }
 0x2d2   : > { %v4109_v58 = vrot.slane %v4014_v52, 4  ;;  %3235 = vst.msk [vmem:[#allocation2 + $0x150] sm:$0xff] %vm3192_vm1, %v3170_v38  ;;  %v3108_v2 = vadd.f32 %v11458_v35, %v2894_v48  ;;  %v4163_v54 = vrot.slane %v4030_v60, 4  ;;  %v4192_v63 = vrot.slane %v4038_v25, 4  ;;  %v4438_v59 = vld [vmem:[#allocation2 + $0x106] sm:$0x1] }
 0x2d3   : > { %v3173_v62 = vmax.f32 %v3109_v39, 0.0  ;;  %v4246_v7 = vrot.slane %v4054_v27, 4  ;;  %v4217_v0 = vrot.slane %v4046_v42, 4  ;;  %v4271_v6 = vrot.slane %v4062_v43, 4  ;;  %v4454_v9 = vld [vmem:[#allocation2 + $0x10e] sm:$0x1] }
 0x2d4   : > { %v3172_v10 = vmax.f32 %v3108_v2, 0.0  ;;  %v9158_v3 = vpop.f32.mrb[46].mxu0  ;;  %v3382_v53 = vld [vmem:[#allocation2 + $0x14b] sm:$0x1]  ;;  %v11862_v11 = vld [vmem:[#allocation2 + $0x149] sm:$0x1]  ;;  %v11874_v19 = vsel %vm3467_vm5, %v4084_v23, %v11767_v34  ;;  %v11880_v29 = vsel %vm3467_vm5, %v4138_v57, %v11773_v47  ;;  %v11884_v22 = vsel %vm3467_vm5, %v4109_v58, %v11777_v49 }
 0x2d5   : > { %3238 = vst.msk [vmem:[#allocation2 + $0x168] sm:$0xff] %vm3192_vm1, %v3173_v62  ;;  %v3111_v44 = vadd.f32 %v9158_v3, %v11458_v35  ;;  %v2904_v13 = vpop.f32.mrb[47].mxu0  ;;  %v3350_v37 = vld [vmem:[#allocation2 + $0x143] sm:$0x1]  ;;  %v3334_v36 = vld [vmem:[#allocation2 + $0x141] sm:$0x1]  ;;  %v11890_v18 = vsel %vm3467_vm5, %v4163_v54, %v11781_v50  ;;  %v11894_v45 = vsel %vm3467_vm5, %v4192_v63, %v11787_v41  ;;  %v11898_v52 = vsel %vm3467_vm5, %v4246_v7, %v11791_v56 }
 0x2d6   : > { %v4516_v4 = vrot.slane %v4438_v59, 4  ;;  %3237 = vst.msk [vmem:[#allocation2 + $0x160] sm:$0xff] %vm3192_vm1, %v3172_v10  ;;  %v3110_v34 = vadd.f32 %v11458_v35, %v2904_v13  ;;  %v3342_v5 = vld [vmem:[#allocation2 + $0x142] sm:$0x1]  ;;  %v4570_v47 = vrot.slane %v4454_v9, 4  ;;  %v3545_v31 = vrot.slane %v3350_v37, 3 }
 0x2d7   : > { %v3175_v20 = vmax.f32 %v3111_v44, 0.0  ;;  %v3643_v16 = vrot.slane %v3382_v53, 3  ;;  %v3374_v49 = vld [vmem:[#allocation2 + $0x14a] sm:$0x1]  ;;  %v9161_v32 = vpop.f32.mrb[48].mxu0  ;;  %v3495_v23 = vrot.slane %v3334_v36, 3  ;;  %v11903_v27 = vsel %vm3467_vm5, %v4217_v0, %v11799_v1 }
 0x2d8   : > { %v3174_v60 = vmax.f32 %v3110_v34, 0.0  ;;  %v3593_v25 = vrot.slane %v11862_v11, 3  ;;  %v3430_v50 = vld [vmem:[#allocation2 + $0x159] sm:$0x1]  ;;  %v3113_v41 = vadd.f32 %v9161_v32, %v11458_v35  ;;  %v2914_v38 = vpop.f32.mrb[49].mxu0  ;;  %v3520_v28 = vrot.slane %v3342_v5, 3 }
 0x2d9   : > { %3240 = vst.msk [vmem:[#allocation2 + $0x178] sm:$0xff] %vm3192_vm1, %v3175_v20  ;;  %v3398_v42 = vld [vmem:[#allocation2 + $0x151] sm:$0x1]  ;;  %v3438_v43 = vld [vmem:[#allocation2 + $0x15a] sm:$0x1]  ;;  %v11911_v39 = vsel %vm3467_vm5, %v4271_v6, %v11803_v8  ;;  %v11915_v48 = vsel %vm3467_vm5, %v4516_v4, %v11807_v17  ;;  %v3112_v1 = vadd.f32 %v11458_v35, %v2914_v38  ;;  %v3618_v57 = vrot.slane %v3374_v49, 3 }
 0x2da   : > { %v11907_v56 = vld [vmem:[#allocation2 + $0x144] sm:$0x1]  ;;  %3239 = vst.msk [vmem:[#allocation2 + $0x170] sm:$0xff] %vm3192_vm1, %v3174_v60  ;;  %v3789_v58 = vrot.slane %v3430_v50, 3  ;;  %v3406_v2 = vld [vmem:[#allocation2 + $0x152] sm:$0x1]  ;;  %v11921_v63 = vsel %vm3467_vm5, %v4570_v47, %v11815_v26  ;;  %v11925_v8 = vsel %vm3470_vm6, %v3545_v31, %v11821_v24  ;;  %v11929_v17 = vsel %vm3470_vm6, %v3643_v16, %v11811_v14 }
 0x2db   : > { %v3414_v54 = vld [vmem:[#allocation2 + $0x153] sm:$0x1]  ;;  %v3177_v59 = vmax.f32 %v3113_v41, 0.0  ;;  %v3691_v62 = vrot.slane %v3398_v42, 3  ;;  %v3446_v7 = vld [vmem:[#allocation2 + $0x15b] sm:$0x1]  ;;  %v11933_v9 = vsel %vm3470_vm6, %v3495_v23, %v11827_v12  ;;  %v11944_v11 = vsel %vm3470_vm6, %v3593_v25, %v11831_v21 }
 0x2dc   : > { %v4023_v35 = vld [vmem:[#allocation2 + $0x14c] sm:$0x1]  ;;  %v3176_v0 = vmax.f32 %v3112_v1, 0.0  ;;  %v9164_v6 = vpop.f32.mrb[50].mxu0  ;;  %v3716_v26 = vrot.slane %v3406_v2, 3  ;;  %v3814_v10 = vrot.slane %v3438_v43, 3  ;;  %v11950_v37 = vsel %vm3470_vm6, %v3520_v28, %v11835_v33 }
 0x2dd   : > { %v4015_v3 = vld [vmem:[#allocation2 + $0x145] sm:$0x1]  ;;  %3242 = vst.msk [vmem:[#allocation2 + $0x188] sm:$0xff] %vm3192_vm1, %v3177_v59  ;;  %v11939_v24 = vld [vmem:[%s13755_s2] ss:$0 sm:$0xff]  ;;  %v2924_v53 = vpop.f32.mrb[51].mxu0  ;;  %v11955_v21 = vsel %vm3470_vm6, %v3618_v57, %v11840_v46  ;;  %v11959_v20 = vsel %vm3470_vm6, %v3789_v58, %v11848_v40  ;;  %v11963_v32 = vsel %vm3470_vm6, %v3691_v62, %v11844_v15 }
 0x2de   : > { %v3115_v14 = vadd.f32 %v11939_v24, %v9164_v6  ;;  %v3741_v44 = vrot.slane %v3414_v54, 3  ;;  %v3839_v12 = vrot.slane %v3446_v7, 3  ;;  %3241 = vst.msk [vmem:[#allocation2 + $0x180] sm:$0xff] %vm3192_vm1, %v3176_v0  ;;  %v3114_v13 = vadd.f32 %v11939_v24, %v2924_v53  ;;  %v4031_v34 = vld [vmem:[#allocation2 + $0x14d] sm:$0x1] }
 0x2df   : > { %v4086_v36 = vrot.slane %v11907_v56, 3  ;;  %v4140_v4 = vrot.slane %v4023_v35, 3  ;;  %v4039_v5 = vld [vmem:[#allocation2 + $0x154] sm:$0x1]  ;;  %v4111_v31 = vrot.slane %v4015_v3, 3  ;;  %v9167_v33 = vpop.f32.mrb[52].mxu0  ;;  %v11967_v23 = vsel %vm3470_vm6, %v3716_v26, %v11860_v55 }
 0x2e0   : > { %v3179_v47 = vmax.f32 %v3115_v14, 0.0  ;;  %v4055_v16 = vld [vmem:[#allocation2 + $0x15c] sm:$0x1]  ;;  %v4047_v49 = vld [vmem:[#allocation2 + $0x155] sm:$0x1]  ;;  %v3178_v60 = vmax.f32 %v3114_v13, 0.0  ;;  %v11971_v46 = vsel %vm3470_vm6, %v3814_v10, %v11854_v51  ;;  %v3117_v50 = vadd.f32 %v11939_v24, %v9167_v33 }
 0x2e1   : > { %v4063_v25 = vld [vmem:[#allocation2 + $0x15d] sm:$0x1]  ;;  %v4439_v40 = vld [vmem:[#allocation2 + $0x146] sm:$0x1]  ;;  %v2934_v41 = vpop.f32.mrb[53].mxu0  ;;  %v11977_v38 = vsel %vm3470_vm6, %v3741_v44, %v11866_v61  ;;  %v4165_v15 = vrot.slane %v4031_v34, 3  ;;  %v11983_v51 = vsel %vm3470_vm6, %v3839_v12, %v11870_v30  ;;  %v11987_v7 = vsel %vm3470_vm6, %v4086_v36, %v11874_v19 }
 0x2e2   : > { %3244 = vst.msk [vmem:[#allocation2 + $0x198] sm:$0xff] %vm3192_vm1, %v3179_v47  ;;  %v4194_v28 = vrot.slane %v4039_v5, 3  ;;  %v4455_v42 = vld [vmem:[#allocation2 + $0x14e] sm:$0x1]  ;;  %3243 = vst.msk [vmem:[#allocation2 + $0x190] sm:$0xff] %vm3192_vm1, %v3178_v60  ;;  %v3116_v55 = vadd.f32 %v11939_v24, %v2934_v41  ;;  %v4248_v43 = vrot.slane %v4055_v16, 3  ;;  %v11991_v35 = vsel %vm3470_vm6, %v4140_v4, %v11880_v29 }
 0x2e3   : > { %v4219_v56 = vrot.slane %v4047_v49, 3  ;;  %v3181_v1 = vmax.f32 %v3117_v50, 0.0  ;;  %v4273_v57 = vrot.slane %v4063_v25, 3  ;;  %v4518_v58 = vrot.slane %v4439_v40, 3  ;;  %v9170_v61 = vpop.f32.mrb[54].mxu0 }
 0x2e4   : > { %v4572_v2 = vrot.slane %v4455_v42, 3  ;;  %v3180_v54 = vmax.f32 %v3116_v55, 0.0  ;;  %v3383_v59 = vld [vmem:[#allocation2 + $0x18b] sm:$0x1]  ;;  %v3367_v62 = vld [vmem:[#allocation2 + $0x189] sm:$0x1]  ;;  %v11995_v30 = vsel %vm3470_vm6, %v4111_v31, %v11884_v22  ;;  %v3119_v0 = vadd.f32 %v11939_v24, %v9170_v61 }
 0x2e5   : > { %3246 = vst.msk [vmem:[#allocation2 + $0x1a8] sm:$0xff] %vm3192_vm1, %v3181_v1  ;;  %v2944_v6 = vpop.f32.mrb[55].mxu0  ;;  %v3351_v26 = vld [vmem:[#allocation2 + $0x183] sm:$0x1]  ;;  %v3645_v10 = vrot.slane %v3383_v59, 2  ;;  %v12001_v19 = vsel %vm3470_vm6, %v4165_v15, %v11890_v18  ;;  %v12005_v29 = vsel %vm3470_vm6, %v4194_v28, %v11894_v45  ;;  %v12011_v44 = vsel %vm3470_vm6, %v4248_v43, %v11898_v52 }
 0x2e6   : > { %v3335_v3 = vld [vmem:[#allocation2 + $0x181] sm:$0x1]  ;;  %3245 = vst.msk [vmem:[#allocation2 + $0x1a0] sm:$0xff] %vm3192_vm1, %v3180_v54  ;;  %v3118_v22 = vadd.f32 %v11939_v24, %v2944_v6  ;;  %v3547_v14 = vrot.slane %v3351_v26, 2  ;;  %v3343_v53 = vld [vmem:[#allocation2 + $0x182] sm:$0x1]  ;;  %v12015_v12 = vsel %vm3470_vm6, %v4219_v56, %v11903_v27  ;;  %v12019_v49 = vsel %vm3470_vm6, %v4273_v57, %v11911_v39 }
 0x2e7   : > { %v3183_v18 = vmax.f32 %v3119_v0, 0.0  ;;  %v3497_v13 = vrot.slane %v3335_v3, 2  ;;  %v3595_v36 = vrot.slane %v3367_v62, 2  ;;  %v3375_v4 = vld [vmem:[#allocation2 + $0x18a] sm:$0x1]  ;;  %v3522_v45 = vrot.slane %v3343_v53, 2 }
 0x2e8   : > { %v3182_v34 = vmax.f32 %v3118_v22, 0.0  ;;  %v9173_v5 = vpop.f32.mrb[56].mxu0  ;;  %v4008_v16 = vld [vmem:[#allocation2 + $0x184] sm:$0x1]  ;;  %v12023_v52 = vsel %vm3470_vm6, %v4518_v58, %v11915_v48  ;;  %v12027_v27 = vsel %vm3470_vm6, %v4572_v2, %v11921_v63  ;;  %v12033_v25 = vsel %vm3473_vm7, %v3645_v10, %v11929_v17  ;;  %v4024_v57 = vld [vmem:[#allocation2 + $0x18c] sm:$0x1] }
 0x2e9   : > { %v3431_v47 = vld [vmem:[#allocation2 + $0x199] sm:$0x1]  ;;  %v3439_v31 = vld [vmem:[#allocation2 + $0x19a] sm:$0x1]  ;;  %3248 = vst.msk [vmem:[#allocation2 + $0x1b8] sm:$0xff] %vm3192_vm1, %v3183_v18  ;;  %v3121_v60 = vadd.f32 %v11939_v24, %v9173_v5  ;;  %v2954_v33 = vpop.f32.mrb[57].mxu0  ;;  %v12039_v63 = vsel %vm3473_vm7, %v3547_v14, %v11925_v8  ;;  %v12043_v17 = vsel %vm3473_vm7, %v3497_v13, %v11933_v9  ;;  %v12047_v43 = vsel %vm3473_vm7, %v3595_v36, %v11944_v11 }
 0x2ea   : > { %v3620_v40 = vrot.slane %v3375_v4, 2  ;;  %v3399_v39 = vld [vmem:[#allocation2 + $0x191] sm:$0x1]  ;;  %v3791_v50 = vrot.slane %v3431_v47, 2  ;;  %3247 = vst.msk [vmem:[#allocation2 + $0x1b0] sm:$0xff] %vm3192_vm1, %v3182_v34  ;;  %v3120_v48 = vadd.f32 %v11939_v24, %v2954_v33  ;;  %v3816_v28 = vrot.slane %v3439_v31, 2 }
 0x2eb   : > { %v3693_v41 = vrot.slane %v3399_v39, 2  ;;  %v3407_v15 = vld [vmem:[#allocation2 + $0x192] sm:$0x1]  ;;  %v3415_v42 = vld [vmem:[#allocation2 + $0x193] sm:$0x1]  ;;  %v3185_v55 = vmax.f32 %v3121_v60, 0.0  ;;  %v12051_v8 = vsel %vm3473_vm7, %v3522_v45, %v11950_v37 }
 0x2ec   : > { %v3718_v56 = vrot.slane %v3407_v15, 2  ;;  %v3447_v1 = vld [vmem:[#allocation2 + $0x19b] sm:$0x1]  ;;  %v3184_v58 = vmax.f32 %v3120_v48, 0.0  ;;  %v9176_v2 = vpop.f32.mrb[58].mxu0  ;;  %v12055_v54 = vsel %vm3473_vm7, %v3620_v40, %v11955_v21  ;;  %v3743_v9 = vrot.slane %v3415_v42, 2 }
 0x2ed   : > { %v4016_v61 = vld [vmem:[#allocation2 + $0x185] sm:$0x1]  ;;  %3250 = vst.msk [vmem:[#allocation2 + $0x1c8] sm:$0xff] %vm3192_vm1, %v3185_v55  ;;  %v3123_v11 = vadd.f32 %v11939_v24, %v9176_v2  ;;  %v2964_v59 = vpop.f32.mrb[59].mxu0  ;;  %v12061_v62 = vsel %vm3473_vm7, %v3791_v50, %v11959_v20  ;;  %v3841_v0 = vrot.slane %v3447_v1, 2  ;;  %v4088_v6 = vrot.slane %v4008_v16, 2 }
 0x2ee   : > { %v4032_v26 = vld [vmem:[#allocation2 + $0x18d] sm:$0x1]  ;;  %3249 = vst.msk [vmem:[#allocation2 + $0x1c0] sm:$0xff] %vm3192_vm1, %v3184_v58  ;;  %v3122_v37 = vadd.f32 %v11939_v24, %v2964_v59  ;;  %v12067_v21 = vsel %vm3473_vm7, %v3693_v41, %v11963_v32  ;;  %v4142_v10 = vrot.slane %v4024_v57, 2  ;;  %v4113_v3 = vrot.slane %v4016_v61, 2 }
 0x2ef   : > { %v4040_v22 = vld [vmem:[#allocation2 + $0x194] sm:$0x1]  ;;  %v4056_v14 = vld [vmem:[#allocation2 + $0x19c] sm:$0x1]  ;;  %v3187_v53 = vmax.f32 %v3123_v11, 0.0  ;;  %v12071_v20 = vsel %vm3473_vm7, %v3718_v56, %v11967_v23  ;;  %v12075_v18 = vsel %vm3473_vm7, %v3816_v28, %v11971_v46  ;;  %v4167_v13 = vrot.slane %v4032_v26, 2 }
 0x2f0   : > { %v4048_v36 = vld [vmem:[#allocation2 + $0x195] sm:$0x1]  ;;  %v4064_v4 = vld [vmem:[#allocation2 + $0x19d] sm:$0x1]  ;;  %v3186_v45 = vmax.f32 %v3122_v37, 0.0  ;;  %v9179_v34 = vpop.f32.mrb[60].mxu0  ;;  %v12079_v32 = vsel %vm3473_vm7, %v3743_v9, %v11977_v38  ;;  %v12083_v5 = vsel %vm3473_vm7, %v3841_v0, %v11983_v51  ;;  %v12089_v16 = vsel %vm3473_vm7, %v4088_v6, %v11987_v7 }
 0x2f1   : > { %v4196_v47 = vrot.slane %v4040_v22, 2  ;;  %v4440_v23 = vld [vmem:[#allocation2 + $0x186] sm:$0x1]  ;;  %3252 = vst.msk [vmem:[#allocation2 + $0x1d8] sm:$0xff] %vm3192_vm1, %v3187_v53  ;;  %v3125_v46 = vadd.f32 %v11939_v24, %v9179_v34  ;;  %v2974_v31 = vpop.f32.mrb[61].mxu0  ;;  %v4250_v60 = vrot.slane %v4056_v14, 2  ;;  %v12095_v51 = vsel %vm3473_vm7, %v4142_v10, %v11991_v35 }
 0x2f2   : > { %v4221_v33 = vrot.slane %v4048_v36, 2  ;;  %v4456_v40 = vld [vmem:[#allocation2 + $0x18e] sm:$0x1]  ;;  %3251 = vst.msk [vmem:[#allocation2 + $0x1d0] sm:$0xff] %vm3192_vm1, %v3186_v45  ;;  %v3124_v38 = vadd.f32 %v11939_v24, %v2974_v31  ;;  %v4275_v39 = vrot.slane %v4064_v4, 2  ;;  %v4520_v50 = vrot.slane %v4440_v23, 2 }
 0x2f3   : > { %v3189_v48 = vmax.f32 %v3125_v46, 0.0  ;;  %v12099_v41 = vsel %vm3473_vm7, %v4113_v3, %v11995_v30  ;;  %v12103_v7 = vsel %vm3473_vm7, %v4167_v13, %v12001_v19  ;;  %v4574_v15 = vrot.slane %v4456_v40, 2  ;;  %v9182_v42 = vpop.f32.mrb[62].mxu0 }
 0x2f4   : > { %v3188_v28 = vmax.f32 %v3124_v38, 0.0  ;;  %v3384_v55 = vld [vmem:[#allocation2 + $0x1cb] sm:$0x1]  ;;  %v3368_v56 = vld [vmem:[#allocation2 + $0x1c9] sm:$0x1]  ;;  %v12107_v35 = vsel %vm3473_vm7, %v4196_v47, %v12005_v29  ;;  %v12111_v1 = vsel %vm3473_vm7, %v4250_v60, %v12011_v44  ;;  %v12115_v30 = vsel %vm3473_vm7, %v4221_v33, %v12015_v12  ;;  %v2984_v57 = vpop.f32.mrb[63].mxu0 }
 0x2f5   : > { %3254 = vst.msk [vmem:[#allocation2 + $0x1e8] sm:$0xff] %vm3192_vm1, %v3189_v48  ;;  %v3127_v19 = vadd.f32 %v11939_v24, %v9182_v42  ;;  %v3352_v58 = vld [vmem:[#allocation2 + $0x1c3] sm:$0x1]  ;;  %v3647_v2 = vrot.slane %v3384_v55, 1  ;;  %v3336_v9 = vld [vmem:[#allocation2 + $0x1c1] sm:$0x1]  ;;  %v12121_v29 = vsel %vm3473_vm7, %v4275_v39, %v12019_v49  ;;  %v12125_v44 = vsel %vm3473_vm7, %v4520_v50, %v12023_v52 }
 0x2f6   : > { %3253 = vst.msk [vmem:[#allocation2 + $0x1e0] sm:$0xff] %vm3192_vm1, %v3188_v28  ;;  %v3126_v12 = vadd.f32 %v11939_v24, %v2984_v57  ;;  %v3549_v61 = vrot.slane %v3352_v58, 1  ;;  %v3499_v11 = vrot.slane %v3336_v9, 1  ;;  %v3597_v59 = vrot.slane %v3368_v56, 1  ;;  %v3344_v0 = vld [vmem:[#allocation2 + $0x1c2] sm:$0x1] }
 0x2f7   : > { %v3191_v6 = vmax.f32 %v3127_v19, 0.0  ;;  %v3648_v26 = vsel %vm3476_vm8, %v3647_v2, %v12033_v25  ;;  %v3376_v37 = vld [vmem:[#allocation2 + $0x1ca] sm:$0x1]  ;;  %v3524_v10 = vrot.slane %v3344_v0, 1  ;;  %v4009_v49 = vld [vmem:[#allocation2 + $0x1c4] sm:$0x1]  ;;  %v12133_v3 = vsel %vm3473_vm7, %v4574_v15, %v12027_v27 }
 0x2f8   : > { %v3190_v52 = vmax.f32 %v3126_v12, 0.0  ;;  %v3550_v22 = vsel %vm3476_vm8, %v3549_v61, %v12039_v63  ;;  %v3500_v24 = vsel %vm3476_vm8, %v3499_v11, %v12043_v17  ;;  %v3598_v14 = vsel %vm3476_vm8, %v3597_v59, %v12047_v43  ;;  %v3432_v53 = vld [vmem:[#allocation2 + $0x1d9] sm:$0x1]  ;;  %v3440_v13 = vld [vmem:[#allocation2 + $0x1da] sm:$0x1] }
 0x2f9   : > { %3256 = vst.msk [vmem:[#allocation2 + $0x1f8] sm:$0xff] %vm3192_vm1, %v3191_v6  ;;  %v12142_v25 = vpack.i.bf16 %v3550_v22, %v3648_v26  ;;  %v10171_v36 = vpack.i.bf16 %v3500_v24, %v3598_v14  ;;  %v12146_v27 = vsel %vm3476_vm8, %v3524_v10, %v12051_v8  ;;  %v3400_v4 = vld [vmem:[#allocation2 + $0x1d1] sm:$0x1]  ;;  %v3408_v45 = vld [vmem:[#allocation2 + $0x1d2] sm:$0x1]  ;;  %v3622_v17 = vrot.slane %v3376_v37, 1 }
 0x2fa   : > { %13968 = vst [vmem:[#allocation6_spill] sm:$0xff] %v12146_v27  ;;  %v3416_v63 = vld [vmem:[#allocation2 + $0x1d3] sm:$0x1]  ;;  %3255 = vst.msk [vmem:[#allocation2 + $0x1f0] sm:$0xff] %vm3192_vm1, %v3190_v52  ;;  %v3695_v34 = vrot.slane %v3400_v4, 1  ;;  %v3793_v47 = vrot.slane %v3432_v53, 1 }
 0x2fb   : > { %v3720_v43 = vrot.slane %v3408_v45, 1  ;;  %v3448_v23 = vld [vmem:[#allocation2 + $0x1db] sm:$0x1]  ;;  %10182 = vrot.lane.b32.xlu1 %v12142_v25, %s10416_s17  ;;  %10172 = vrot.lane.b32.xlu0 %v10171_v36, %s10417_s21  ;;  %v3818_v46 = vrot.slane %v3440_v13, 1  ;;  %v3745_v8 = vrot.slane %v3416_v63, 1  ;;  %v4090_v33 = vrot.slane %v4009_v49, 1 }
 0x2fc   : > { %v3843_v31 = vrot.slane %v3448_v23, 1  ;;  %v4025_v60 = vld [vmem:[#allocation2 + $0x1cc] sm:$0x1]  ;;  %v12154_v40 = vsel %vm3476_vm8, %v3622_v17, %v12055_v54  ;;  %v3696_v38 = vsel %vm3476_vm8, %v3695_v34, %v12067_v21  ;;  %v3794_v39 = vsel %vm3476_vm8, %v3793_v47, %v12061_v62  ;;  %v4017_v48 = vld [vmem:[#allocation2 + $0x1c5] sm:$0x1] }
 0x2fd   : > { %v12162_v50 = vsel %vm3476_vm8, %v3720_v43, %v12071_v20  ;;  %v4033_v15 = vld [vmem:[#allocation2 + $0x1cd] sm:$0x1]  ;;  %v10176_v28 = vpack.i.bf16 %v12146_v27, %v12154_v40  ;;  %v10186_v42 = vpack.i.bf16 %v3696_v38, %v3794_v39  ;;  %v12168_v54 = vsel %vm3476_vm8, %v3818_v46, %v12075_v18  ;;  %v4041_v55 = vld [vmem:[#allocation2 + $0x1d4] sm:$0x1]  ;;  %v4057_v56 = vld [vmem:[#allocation2 + $0x1dc] sm:$0x1] }
 0x2fe   : > { %13969 = vst [vmem:[#allocation7_spill] sm:$0xff] %v12168_v54  ;;  %v3746_v21 = vsel %vm3476_vm8, %v3745_v8, %v12079_v32  ;;  %v4049_v62 = vld [vmem:[#allocation2 + $0x1d5] sm:$0x1]  ;;  %v10191_v20 = vpack.i.bf16 %v12162_v50, %v12168_v54  ;;  %v3844_v19 = vsel %vm3476_vm8, %v3843_v31, %v12083_v5  ;;  %v12178_v57 = vsel %vm3476_vm8, %v4090_v33, %v12089_v16  ;;  %v4065_v2 = vld [vmem:[#allocation2 + $0x1dd] sm:$0x1] }
 0x2ff   : > { %v4144_v58 = vrot.slane %v4025_v60, 1  ;;  %10177 = vrot.lane.b32.xlu0 %v10176_v28, %s10418_s22  ;;  %10187 = vrot.lane.b32.xlu1 %v10186_v42, %s10417_s21  ;;  %v12182_v18 = vpack.i.bf16 %v3746_v21, %v3844_v19  ;;  %v4115_v32 = vrot.slane %v4017_v48, 1  ;;  %v4169_v9 = vrot.slane %v4033_v15, 1  ;;  %v4443_v12 = vld [vmem:[#allocation2 + $0x47] sm:$0x1] }
 0x300   : > { %v4198_v5 = vrot.slane %v4041_v55, 1  ;;  %v4252_v11 = vrot.slane %v4057_v56, 1  ;;  %v4223_v16 = vrot.slane %v4049_v62, 1  ;;  %v4441_v59 = vld [vmem:[#allocation2 + $0x1c6] sm:$0x1]  ;;  %v4277_v37 = vrot.slane %v4065_v2, 1 }
 0x301   : > { %v12186_v61 = vsel %vm3476_vm8, %v4144_v58, %v12095_v51  ;;  %v4116_v6 = vsel %vm3476_vm8, %v4115_v32, %v12099_v41  ;;  %v4170_v26 = vsel %vm3476_vm8, %v4169_v9, %v12103_v7  ;;  %v4457_v10 = vld [vmem:[#allocation2 + $0x1ce] sm:$0x1]  ;;  %v4444_v49 = vld [vmem:[#allocation2 + $0x87] sm:$0x1]  ;;  %v4459_v7 = vld [vmem:[#allocation2 + $0x4f] sm:$0x1] }
 0x302   : > { %v10206_v0 = vpack.i.bf16 %v12178_v57, %v12186_v61  ;;  %v12194_v52 = vpack.i.bf16 %v4116_v6, %v4170_v26  ;;  %v12198_v51 = vsel %vm3476_vm8, %v4198_v5, %v12107_v35  ;;  %v12202_v22 = vsel %vm3476_vm8, %v4252_v11, %v12111_v1  ;;  %v4445_v41 = vld [vmem:[#allocation2 + $0xc7] sm:$0x1]  ;;  %v4460_v13 = vld [vmem:[#allocation2 + $0x8f] sm:$0x1]  ;;  %v4467_v56 = vld [vmem:[#allocation2 + $0x56] sm:$0x1] }
 0x303   : > { %v4224_v24 = vsel %vm3476_vm8, %v4223_v16, %v12115_v30  ;;  %v4446_v14 = vld [vmem:[#allocation2 + $0x107] sm:$0x1]  ;;  %10192 = vrot.lane.b32.xlu0 %v10191_v20, %s10418_s22  ;;  %10197 = vrot.lane.b32.xlu1 %v12182_v18, %s10416_s17  ;;  %v10221_v35 = vpack.i.bf16 %v12198_v51, %v12202_v22  ;;  %v4278_v1 = vsel %vm3476_vm8, %v4277_v37, %v12121_v29  ;;  %v4522_v36 = vrot.slane %v4441_v59, 1  ;;  %v4461_v63 = vld [vmem:[#allocation2 + $0xcf] sm:$0x1] }
 0x304   : > { %v4447_v53 = vld [vmem:[#allocation2 + $0x147] sm:$0x1]  ;;  %v12213_v17 = vpack.i.bf16 %v4224_v24, %v4278_v1  ;;  %v4576_v34 = vrot.slane %v4457_v10, 1  ;;  %v4462_v47 = vld [vmem:[#allocation2 + $0x10f] sm:$0x1]  ;;  %v4535_v43 = vrot.slane %v4443_v12, 7 }
 0x305   : > { %v4442_v4 = vld [vmem:[#allocation2 + $0x7] sm:$0x1]  ;;  %v4537_v23 = vrot.slane %v4444_v49, 6  ;;  %v12217_v46 = vsel %vm3476_vm8, %v4522_v36, %v12125_v44  ;;  %v4463_v8 = vld [vmem:[#allocation2 + $0x14f] sm:$0x1]  ;;  %v4539_v31 = vrot.slane %v4445_v41, 5 }
 0x306   : > { %v4448_v45 = vld [vmem:[#allocation2 + $0x187] sm:$0x1]  ;;  %v4541_v60 = vrot.slane %v4446_v14, 4  ;;  %v4543_v33 = vrot.slane %v4447_v53, 3  ;;  %v12221_v29 = vsel %vm3476_vm8, %v4576_v34, %v12133_v3  ;;  %v4458_v38 = vld [vmem:[#allocation2 + $0xf] sm:$0x1]  ;;  %v4536_v15 = vsel %vm3458_vm2, %v4535_v43, %v4442_v4 }
 0x307   : > { %v4449_v30 = vld [vmem:[#allocation2 + $0x1c7] sm:$0x1]  ;;  %v4464_v39 = vld [vmem:[#allocation2 + $0x18f] sm:$0x1]  ;;  %v4545_v28 = vrot.slane %v4448_v45, 2  ;;  %10202 = vrot.lane.b32.xlu0 %v12142_v25, %s10417_s21  ;;  %10207 = vrot.lane.b32.xlu1 %v10206_v0, %s10418_s22  ;;  %v10236_v44 = vpack.i.bf16 %v12217_v46, %v12221_v29  ;;  %v4538_v21 = vsel %vm3461_vm3, %v4537_v23, %v4536_v15  ;;  %v4589_v55 = vrot.slane %v4459_v7, 7 }
 0x308   : > { %v4465_v48 = vld [vmem:[#allocation2 + $0x1cf] sm:$0x1]  ;;  %v4547_v42 = vrot.slane %v4449_v30, 1  ;;  %v4591_v3 = vrot.slane %v4460_v13, 6  ;;  %v4468_v62 = vld [vmem:[#allocation2 + $0x96] sm:$0x1]  ;;  %v4540_v20 = vsel %vm3464_vm4, %v4539_v31, %v4538_v21 }
 0x309   : > { %v4593_v19 = vrot.slane %v4461_v63, 5  ;;  %v4595_v58 = vrot.slane %v4462_v47, 4  ;;  %v4597_v2 = vrot.slane %v4463_v8, 3  ;;  %v4469_v32 = vld [vmem:[#allocation2 + $0xd6] sm:$0x1]  ;;  %v4542_v9 = vsel %vm3467_vm5, %v4541_v60, %v4540_v20 }
 0x30a   : > { %v4590_v25 = vsel %vm3458_vm2, %v4589_v55, %v4458_v38  ;;  %v4599_v12 = vrot.slane %v4464_v39, 2  ;;  %v4601_v5 = vrot.slane %v4465_v48, 1  ;;  %v4466_v11 = vld [vmem:[#allocation2 + $0x16] sm:$0x1]  ;;  %v4483_v59 = vld [vmem:[#allocation2 + $0x5e] sm:$0x1]  ;;  %v4544_v0 = vsel %vm3470_vm6, %v4543_v33, %v4542_v9 }
 0x30b   : > { %v4470_v16 = vld [vmem:[#allocation2 + $0x116] sm:$0x1]  ;;  %v4592_v6 = vsel %vm3461_vm3, %v4591_v3, %v4590_v25  ;;  %v4618_v10 = vrot.slane %v4467_v56, 7  ;;  %10212 = vrot.lane.b32.xlu0 %v12194_v52, %s10416_s17  ;;  %10217 = vrot.lane.b32.xlu1 %v12182_v18, %s10417_s21  ;;  %v4546_v49 = vsel %vm3473_vm7, %v4545_v28, %v4544_v0  ;;  %v4484_v14 = vld [vmem:[#allocation2 + $0x9e] sm:$0x1]  ;;  %v4620_v53 = vrot.slane %v4468_v62, 6 }
 0x30c   : > { %v4471_v26 = vld [vmem:[#allocation2 + $0x156] sm:$0x1]  ;;  %v4594_v24 = vsel %vm3464_vm4, %v4593_v19, %v4592_v6  ;;  %v4622_v7 = vrot.slane %v4469_v32, 5  ;;  %v12242_v13 = vsel %vm3476_vm8, %v4547_v42, %v4546_v49  ;;  %v4485_v36 = vld [vmem:[#allocation2 + $0xde] sm:$0x1]  ;;  %v4624_v30 = vrot.slane %v4470_v16, 4 }
 0x30d   : > { %v4472_v37 = vld [vmem:[#allocation2 + $0x196] sm:$0x1]  ;;  %v4596_v1 = vsel %vm3467_vm5, %v4595_v58, %v4594_v24  ;;  %v4486_v4 = vld [vmem:[#allocation2 + $0x11e] sm:$0x1]  ;;  %v4619_v45 = vsel %vm3458_vm2, %v4618_v10, %v4466_v11  ;;  %v4626_v23 = vrot.slane %v4471_v26, 3  ;;  %v4672_v39 = vrot.slane %v4483_v59, 7 }
 0x30e   : > { %v4473_v41 = vld [vmem:[#allocation2 + $0x1d6] sm:$0x1]  ;;  %v4598_v18 = vsel %vm3470_vm6, %v4597_v2, %v4596_v1  ;;  %v4482_v63 = vld [vmem:[#allocation2 + $0x1e] sm:$0x1]  ;;  %v4621_v43 = vsel %vm3461_vm3, %v4620_v53, %v4619_v45  ;;  %v4628_v8 = vrot.slane %v4472_v37, 2  ;;  %v4674_v42 = vrot.slane %v4484_v14, 6 }
 0x30f   : > { %v4487_v34 = vld [vmem:[#allocation2 + $0x15e] sm:$0x1]  ;;  %v4600_v31 = vsel %vm3473_vm7, %v4599_v12, %v4598_v18  ;;  %v4623_v33 = vsel %vm3464_vm4, %v4622_v7, %v4621_v43  ;;  %v4630_v38 = vrot.slane %v4473_v41, 1  ;;  %v4475_v48 = vld [vmem:[#allocation2 + $0x57] sm:$0x1]  ;;  %10222 = vrot.lane.b32.xlu0 %v10221_v35, %s10418_s22  ;;  %10227 = vrot.lane.b32.xlu1 %v12213_v17, %s10416_s17  ;;  %v4676_v21 = vrot.slane %v4485_v36, 5 }
 0x310   : > { %v4488_v47 = vld [vmem:[#allocation2 + $0x19e] sm:$0x1]  ;;  %v4602_v15 = vsel %vm3476_vm8, %v4601_v5, %v4600_v31  ;;  %v4625_v28 = vsel %vm3467_vm5, %v4624_v30, %v4623_v33  ;;  %v4476_v55 = vld [vmem:[#allocation2 + $0x97] sm:$0x1]  ;;  %v4673_v20 = vsel %vm3458_vm2, %v4672_v39, %v4482_v63  ;;  %v4678_v19 = vrot.slane %v4486_v4, 4 }
 0x311   : > { %v4489_v60 = vld [vmem:[#allocation2 + $0x1de] sm:$0x1]  ;;  %v4477_v3 = vld [vmem:[#allocation2 + $0xd7] sm:$0x1]  ;;  %v10241_v56 = vpack.i.bf16 %v12242_v13, %v4602_v15  ;;  %v4627_v62 = vsel %vm3470_vm6, %v4626_v23, %v4625_v28  ;;  %v4675_v32 = vsel %vm3461_vm3, %v4674_v42, %v4673_v20  ;;  %v4680_v9 = vrot.slane %v4487_v34, 3 }
 0x312   : > { %v4478_v58 = vld [vmem:[#allocation2 + $0x117] sm:$0x1]  ;;  %v4629_v2 = vsel %vm3473_vm7, %v4628_v8, %v4627_v62  ;;  %v4682_v25 = vrot.slane %v4488_v47, 2  ;;  %v4677_v59 = vsel %vm3464_vm4, %v4676_v21, %v4675_v32  ;;  %v4684_v0 = vrot.slane %v4489_v60, 1  ;;  %v4491_v6 = vld [vmem:[#allocation2 + $0x5f] sm:$0x1] }
 0x313   : > { %v4479_v35 = vld [vmem:[#allocation2 + $0x157] sm:$0x1]  ;;  %v4631_v16 = vsel %vm3476_vm8, %v4630_v38, %v4629_v2  ;;  %v4492_v26 = vld [vmem:[#allocation2 + $0x9f] sm:$0x1]  ;;  %v4643_v37 = vrot.slane %v4475_v48, 7  ;;  %10232 = vrot.lane.b32.xlu0 %v12194_v52, %s10417_s21  ;;  %10237 = vrot.lane.b32.xlu1 %v10236_v44, %s10418_s22  ;;  %v4679_v10 = vsel %vm3467_vm5, %v4678_v19, %v4677_v59  ;;  %v4645_v24 = vrot.slane %v4476_v55, 6 }
 0x314   : > { %v4474_v12 = vld [vmem:[#allocation2 + $0x17] sm:$0x1]  ;;  %v4493_v49 = vld [vmem:[#allocation2 + $0xdf] sm:$0x1]  ;;  %v4647_v41 = vrot.slane %v4477_v3, 5  ;;  %v4649_v14 = vrot.slane %v4478_v58, 4  ;;  %v4681_v53 = vsel %vm3470_vm6, %v4680_v9, %v4679_v10 }
 0x315   : > { %v4480_v5 = vld [vmem:[#allocation2 + $0x197] sm:$0x1]  ;;  %v4490_v7 = vld [vmem:[#allocation2 + $0x1f] sm:$0x1]  ;;  %v4644_v36 = vsel %vm3458_vm2, %v4643_v37, %v4474_v12  ;;  %v4651_v4 = vrot.slane %v4479_v35, 3  ;;  %v4683_v45 = vsel %vm3473_vm7, %v4682_v25, %v4681_v53  ;;  %v4697_v18 = vrot.slane %v4491_v6, 7 }
 0x316   : > { %v4481_v11 = vld [vmem:[#allocation2 + $0x1d7] sm:$0x1]  ;;  %v4494_v13 = vld [vmem:[#allocation2 + $0x11f] sm:$0x1]  ;;  %v4653_v52 = vrot.slane %v4480_v5, 2  ;;  %v4646_v29 = vsel %vm3461_vm3, %v4645_v24, %v4644_v36  ;;  %v4685_v63 = vsel %vm3476_vm8, %v4684_v0, %v4683_v45  ;;  %v4699_v47 = vrot.slane %v4492_v26, 6 }
 0x317   : > { %v4495_v1 = vld [vmem:[#allocation2 + $0x15f] sm:$0x1]  ;;  %v4655_v44 = vrot.slane %v4481_v11, 1  ;;  %v4648_v34 = vsel %vm3464_vm4, %v4647_v41, %v4646_v29  ;;  %v4701_v43 = vrot.slane %v4493_v49, 5  ;;  %v4883_v23 = vld [vmem:[#allocation2 + $0x62] sm:$0x1]  ;;  %10242 = vrot.lane.b32.xlu0 %v10241_v56, %s10416_s17  ;;  %10247 = vrot.lane.b32.xlu1 %v12213_v17, %s10417_s21  ;;  %v10251_v31 = vpack.i.bf16 %v4631_v16, %v4685_v63 }
 0x318   : > { %v4496_v30 = vld [vmem:[#allocation2 + $0x19f] sm:$0x1]  ;;  %v4884_v8 = vld [vmem:[#allocation2 + $0xa2] sm:$0x1]  ;;  %v4650_v60 = vsel %vm3467_vm5, %v4649_v14, %v4648_v34  ;;  %v4698_v33 = vsel %vm3458_vm2, %v4697_v18, %v4490_v7  ;;  %v4703_v38 = vrot.slane %v4494_v13, 4  ;;  %v4705_v42 = vrot.slane %v4495_v1, 3 }
 0x319   : > { %v4497_v46 = vld [vmem:[#allocation2 + $0x1df] sm:$0x1]  ;;  %v4885_v39 = vld [vmem:[#allocation2 + $0xe2] sm:$0x1]  ;;  %v4652_v15 = vsel %vm3470_vm6, %v4651_v4, %v4650_v60  ;;  %v4700_v28 = vsel %vm3461_vm3, %v4699_v47, %v4698_v33  ;;  %v4707_v21 = vrot.slane %v4496_v30, 2  ;;  %v4986_v35 = vrot.slane %v4883_v23, 7 }
 0x31a   : > { %v4886_v48 = vld [vmem:[#allocation2 + $0x122] sm:$0x1]  ;;  %v4654_v62 = vsel %vm3473_vm7, %v4653_v52, %v4652_v15  ;;  %v4702_v17 = vsel %vm3464_vm4, %v4701_v43, %v4700_v28  ;;  %v4709_v20 = vrot.slane %v4497_v46, 1  ;;  %v4915_v58 = vld [vmem:[#allocation2 + $0x6a] sm:$0x1]  ;;  %v4988_v12 = vrot.slane %v4884_v8, 6 }
 0x31b   : > { %v4882_v55 = vld [vmem:[#allocation2 + $0x22] sm:$0x1]  ;;  %v4656_v2 = vsel %vm3476_vm8, %v4655_v44, %v4654_v62  ;;  %v4704_v32 = vsel %vm3467_vm5, %v4703_v38, %v4702_v17  ;;  %v4916_v9 = vld [vmem:[#allocation2 + $0xaa] sm:$0x1]  ;;  %v4990_v5 = vrot.slane %v4885_v39, 5  ;;  %10252 = vrot.lane.b32.xlu0 %v10251_v31, %s10418_s22  ;;  %v4992_v6 = vrot.slane %v4886_v48, 4 }
 0x31c   : > { %v4887_v3 = vld [vmem:[#allocation2 + $0x162] sm:$0x1]  ;;  %v4917_v25 = vld [vmem:[#allocation2 + $0xea] sm:$0x1]  ;;  %v4706_v11 = vsel %vm3470_vm6, %v4705_v42, %v4704_v32  ;;  %v4987_v0 = vsel %vm3458_vm2, %v4986_v35, %v4882_v55  ;;  %v5084_v1 = vrot.slane %v4915_v58, 7  ;;  %v5086_v36 = vrot.slane %v4916_v9, 6 }
 0x31d   : > { %v4888_v56 = vld [vmem:[#allocation2 + $0x1a2] sm:$0x1]  ;;  %v4918_v16 = vld [vmem:[#allocation2 + $0x12a] sm:$0x1]  ;;  %v4994_v26 = vrot.slane %v4887_v3, 3  ;;  %v4708_v37 = vsel %vm3473_vm7, %v4707_v21, %v4706_v11  ;;  %v4989_v41 = vsel %vm3461_vm3, %v4988_v12, %v4987_v0  ;;  %v5088_v46 = vrot.slane %v4917_v25, 5 }
 0x31e   : > { %v4889_v19 = vld [vmem:[#allocation2 + $0x1e2] sm:$0x1]  ;;  %v4919_v59 = vld [vmem:[#allocation2 + $0x16a] sm:$0x1]  ;;  %v4996_v14 = vrot.slane %v4888_v56, 2  ;;  %v4710_v7 = vsel %vm3476_vm8, %v4709_v20, %v4708_v37  ;;  %v4991_v13 = vsel %vm3464_vm4, %v4990_v5, %v4989_v41  ;;  %v5090_v29 = vrot.slane %v4918_v16, 4 }
 0x31f   : > { %v4914_v10 = vld [vmem:[#allocation2 + $0x2a] sm:$0x1]  ;;  %v4998_v53 = vrot.slane %v4889_v19, 1  ;;  %v4875_v4 = vld [vmem:[#allocation2 + $0x61] sm:$0x1]  ;;  %v10256_v45 = vpack.i.bf16 %v4656_v2, %v4710_v7  ;;  %v4993_v30 = vsel %vm3467_vm5, %v4992_v6, %v4991_v13  ;;  %v5092_v47 = vrot.slane %v4919_v59, 3 }
 0x320   : > { %v4920_v49 = vld [vmem:[#allocation2 + $0x1aa] sm:$0x1]  ;;  %v4876_v52 = vld [vmem:[#allocation2 + $0xa1] sm:$0x1]  ;;  %v4995_v63 = vsel %vm3470_vm6, %v4994_v26, %v4993_v30  ;;  %v5085_v34 = vsel %vm3458_vm2, %v5084_v1, %v4914_v10  ;;  %v4907_v48 = vld [vmem:[#allocation2 + $0x69] sm:$0x1] }
 0x321   : > { %v4921_v24 = vld [vmem:[#allocation2 + $0x1ea] sm:$0x1]  ;;  %v4877_v44 = vld [vmem:[#allocation2 + $0xe1] sm:$0x1]  ;;  %v5094_v43 = vrot.slane %v4920_v49, 2  ;;  %10257 = vrot.lane.b32.xlu1 %v10256_v45, %s10416_s17  ;;  %v4997_v60 = vsel %vm3473_vm7, %v4996_v14, %v4995_v63  ;;  %v5087_v33 = vsel %vm3461_vm3, %v5086_v36, %v5085_v34  ;;  %v4961_v15 = vrot.slane %v4875_v4, 7 }
 0x322   : > { %v4878_v18 = vld [vmem:[#allocation2 + $0x121] sm:$0x1]  ;;  %v5096_v38 = vrot.slane %v4921_v24, 1  ;;  %v12303_v28 = vsel %vm3476_vm8, %v4998_v53, %v4997_v60  ;;  %v5089_v42 = vsel %vm3464_vm4, %v5088_v46, %v5087_v33  ;;  %v4908_v21 = vld [vmem:[#allocation2 + $0xa9] sm:$0x1]  ;;  %v4963_v3 = vrot.slane %v4876_v52, 6 }
 0x323   : > { %v4874_v23 = vld [vmem:[#allocation2 + $0x21] sm:$0x1]  ;;  %13970 = vst [vmem:[#allocation8_spill] sm:$0xff] %v12303_v28  ;;  %v4909_v55 = vld [vmem:[#allocation2 + $0xe9] sm:$0x1]  ;;  %v4965_v56 = vrot.slane %v4877_v44, 5  ;;  %v5091_v62 = vsel %vm3467_vm5, %v5090_v29, %v5089_v42 }
 0x324   : > { %v4879_v8 = vld [vmem:[#allocation2 + $0x161] sm:$0x1]  ;;  %v4910_v17 = vld [vmem:[#allocation2 + $0x129] sm:$0x1]  ;;  %v4962_v19 = vsel %vm3458_vm2, %v4961_v15, %v4874_v23  ;;  %v4967_v58 = vrot.slane %v4878_v18, 4  ;;  %v5093_v2 = vsel %vm3470_vm6, %v5092_v47, %v5091_v62  ;;  %v5059_v0 = vrot.slane %v4907_v48, 7 }
 0x325   : > { %v4880_v31 = vld [vmem:[#allocation2 + $0x1a1] sm:$0x1]  ;;  %v4911_v20 = vld [vmem:[#allocation2 + $0x169] sm:$0x1]  ;;  %v4969_v35 = vrot.slane %v4879_v8, 3  ;;  %v4964_v12 = vsel %vm3461_vm3, %v4963_v3, %v4962_v19  ;;  %v5095_v16 = vsel %vm3473_vm7, %v5094_v43, %v5093_v2  ;;  %v5061_v6 = vrot.slane %v4908_v21, 6 }
 0x326   : > { %v4881_v39 = vld [vmem:[#allocation2 + $0x1e1] sm:$0x1]  ;;  %v4906_v32 = vld [vmem:[#allocation2 + $0x29] sm:$0x1]  ;;  %v4971_v5 = vrot.slane %v4880_v31, 2  ;;  %v4966_v59 = vsel %vm3464_vm4, %v4965_v56, %v4964_v12  ;;  %v12313_v10 = vsel %vm3476_vm8, %v5096_v38, %v5095_v16  ;;  %v5063_v24 = vrot.slane %v4909_v55, 5 }
 0x327   : > { %v4912_v9 = vld [vmem:[#allocation2 + $0x1a9] sm:$0x1]  ;;  %v4973_v11 = vrot.slane %v4881_v39, 1  ;;  %v4891_v26 = vld [vmem:[#allocation2 + $0x63] sm:$0x1]  ;;  %13971 = vst [vmem:[#allocation9_spill] sm:$0xff] %v12313_v10  ;;  %v4968_v49 = vsel %vm3467_vm5, %v4967_v58, %v4966_v59  ;;  %v10266_v7 = vpack.i.bf16 %v12303_v28, %v12313_v10  ;;  %v5060_v1 = vsel %vm3458_vm2, %v5059_v0, %v4906_v32 }
 0x328   : > { %v4913_v25 = vld [vmem:[#allocation2 + $0x1e9] sm:$0x1]  ;;  %v4892_v37 = vld [vmem:[#allocation2 + $0xa3] sm:$0x1]  ;;  %v5065_v41 = vrot.slane %v4910_v17, 4  ;;  %v4970_v13 = vsel %vm3470_vm6, %v4969_v35, %v4968_v49  ;;  %v5067_v36 = vrot.slane %v4911_v20, 3  ;;  %v5062_v30 = vsel %vm3461_vm3, %v5061_v6, %v5060_v1 }
 0x329   : > { %v4893_v14 = vld [vmem:[#allocation2 + $0xe3] sm:$0x1]  ;;  %v4972_v45 = vsel %vm3473_vm7, %v4971_v5, %v4970_v13  ;;  %v5069_v46 = vrot.slane %v4912_v9, 2  ;;  %v5071_v29 = vrot.slane %v4913_v25, 1  ;;  %v4923_v63 = vld [vmem:[#allocation2 + $0x6b] sm:$0x1]  ;;  %10267 = vrot.lane.b32.xlu1 %v10266_v7, %s10418_s22  ;;  %v5064_v47 = vsel %vm3464_vm4, %v5063_v24, %v5062_v30 }
 0x32a   : > { %v4894_v53 = vld [vmem:[#allocation2 + $0x123] sm:$0x1]  ;;  %v4974_v34 = vsel %vm3476_vm8, %v4973_v11, %v4972_v45  ;;  %v4924_v43 = vld [vmem:[#allocation2 + $0xab] sm:$0x1]  ;;  %v5011_v8 = vrot.slane %v4891_v26, 7  ;;  %v5013_v31 = vrot.slane %v4892_v37, 6  ;;  %v5066_v60 = vsel %vm3467_vm5, %v5065_v41, %v5064_v47 }
 0x32b   : > { %v4895_v4 = vld [vmem:[#allocation2 + $0x163] sm:$0x1]  ;;  %v4925_v23 = vld [vmem:[#allocation2 + $0xeb] sm:$0x1]  ;;  %v5015_v38 = vrot.slane %v4893_v14, 5  ;;  %v5017_v39 = vrot.slane %v4894_v53, 4  ;;  %v5068_v15 = vsel %vm3470_vm6, %v5067_v36, %v5066_v60 }
 0x32c   : > { %v4896_v52 = vld [vmem:[#allocation2 + $0x1a3] sm:$0x1]  ;;  %v4926_v33 = vld [vmem:[#allocation2 + $0x12b] sm:$0x1]  ;;  %v5019_v48 = vrot.slane %v4895_v4, 3  ;;  %v5070_v62 = vsel %vm3473_vm7, %v5069_v46, %v5068_v15  ;;  %v5109_v58 = vrot.slane %v4923_v63, 7 }
 0x32d   : > { %v4890_v44 = vld [vmem:[#allocation2 + $0x23] sm:$0x1]  ;;  %v4922_v42 = vld [vmem:[#allocation2 + $0x2b] sm:$0x1]  ;;  %v5021_v3 = vrot.slane %v4896_v52, 2  ;;  %v5111_v35 = vrot.slane %v4924_v43, 6  ;;  %v5072_v2 = vsel %vm3476_vm8, %v5071_v29, %v5070_v62 }
 0x32e   : > { %v4897_v18 = vld [vmem:[#allocation2 + $0x1e3] sm:$0x1]  ;;  %v4927_v21 = vld [vmem:[#allocation2 + $0x16b] sm:$0x1]  ;;  %v5012_v55 = vsel %vm3458_vm2, %v5011_v8, %v4890_v44  ;;  %v5113_v9 = vrot.slane %v4925_v23, 5  ;;  %v5115_v25 = vrot.slane %v4926_v33, 4  ;;  %v10261_v11 = vpack.i.bf16 %v4974_v34, %v5072_v2 }
 0x32f   : > { %v5023_v56 = vrot.slane %v4897_v18, 1  ;;  %v4928_v17 = vld [vmem:[#allocation2 + $0x1ab] sm:$0x1]  ;;  %v5014_v19 = vsel %vm3461_vm3, %v5013_v31, %v5012_v55  ;;  %v5281_v12 = vld [vmem:[#allocation2 + $0x65] sm:$0x1]  ;;  %v5110_v59 = vsel %vm3458_vm2, %v5109_v58, %v4922_v42  ;;  %v5117_v0 = vrot.slane %v4927_v21, 3 }
 0x330   : > { %v4929_v20 = vld [vmem:[#allocation2 + $0x1eb] sm:$0x1]  ;;  %v5016_v32 = vsel %vm3464_vm4, %v5015_v38, %v5014_v19  ;;  %v5282_v5 = vld [vmem:[#allocation2 + $0xa5] sm:$0x1]  ;;  %v5112_v49 = vsel %vm3461_vm3, %v5111_v35, %v5110_v59  ;;  %v5119_v24 = vrot.slane %v4928_v17, 2  ;;  %10262 = vrot.lane.b32.xlu0 %v10261_v11, %s10417_s21  ;;  %v5341_v52 = vrot.slane %v5281_v12, 7 }
 0x331   : > { %v5018_v16 = vsel %vm3467_vm5, %v5017_v39, %v5016_v32  ;;  %v5283_v6 = vld [vmem:[#allocation2 + $0xe5] sm:$0x1]  ;;  %v5121_v41 = vrot.slane %v4929_v20, 1  ;;  %v5114_v1 = vsel %vm3464_vm4, %v5113_v9, %v5112_v49  ;;  %v5297_v4 = vld [vmem:[#allocation2 + $0x6d] sm:$0x1]  ;;  %v5343_v45 = vrot.slane %v5282_v5, 6 }
 0x332   : > { %v5284_v26 = vld [vmem:[#allocation2 + $0x125] sm:$0x1]  ;;  %v5020_v37 = vsel %vm3470_vm6, %v5019_v48, %v5018_v16  ;;  %v5116_v46 = vsel %vm3467_vm5, %v5115_v25, %v5114_v1  ;;  %v5298_v29 = vld [vmem:[#allocation2 + $0xad] sm:$0x1]  ;;  %v5345_v18 = vrot.slane %v5283_v6, 5  ;;  %v5395_v42 = vrot.slane %v5297_v4, 7 }
 0x333   : > { %v5280_v14 = vld [vmem:[#allocation2 + $0x25] sm:$0x1]  ;;  %v5022_v13 = vsel %vm3473_vm7, %v5021_v3, %v5020_v37  ;;  %v5299_v44 = vld [vmem:[#allocation2 + $0xed] sm:$0x1]  ;;  %v5347_v63 = vrot.slane %v5284_v26, 4  ;;  %v5118_v34 = vsel %vm3470_vm6, %v5117_v0, %v5116_v46  ;;  %v5397_v3 = vrot.slane %v5298_v29, 6 }
 0x334   : > { %v5285_v53 = vld [vmem:[#allocation2 + $0x165] sm:$0x1]  ;;  %v5024_v30 = vsel %vm3476_vm8, %v5023_v56, %v5022_v13  ;;  %v5296_v47 = vld [vmem:[#allocation2 + $0x2d] sm:$0x1]  ;;  %v5342_v8 = vsel %vm3458_vm2, %v5341_v52, %v5280_v14  ;;  %v5120_v33 = vsel %vm3473_vm7, %v5119_v24, %v5118_v34  ;;  %v5399_v56 = vrot.slane %v5299_v44, 5 }
 0x335   : > { %v5286_v7 = vld [vmem:[#allocation2 + $0x1a5] sm:$0x1]  ;;  %v5300_v43 = vld [vmem:[#allocation2 + $0x12d] sm:$0x1]  ;;  %v5349_v31 = vrot.slane %v5285_v53, 3  ;;  %v5344_v48 = vsel %vm3461_vm3, %v5343_v45, %v5342_v8  ;;  %v5122_v21 = vsel %vm3476_vm8, %v5121_v41, %v5120_v33  ;;  %v5396_v58 = vsel %vm3458_vm2, %v5395_v42, %v5296_v47 }
 0x336   : > { %v5287_v36 = vld [vmem:[#allocation2 + $0x1e5] sm:$0x1]  ;;  %v5301_v23 = vld [vmem:[#allocation2 + $0x16d] sm:$0x1]  ;;  %v5351_v60 = vrot.slane %v5286_v7, 2  ;;  %v5346_v55 = vsel %vm3464_vm4, %v5345_v18, %v5344_v48  ;;  %v10276_v20 = vpack.i.bf16 %v5024_v30, %v5122_v21  ;;  %v5398_v25 = vsel %vm3461_vm3, %v5397_v3, %v5396_v58 }
 0x337   : > { %v5302_v38 = vld [vmem:[#allocation2 + $0x1ad] sm:$0x1]  ;;  %v5353_v15 = vrot.slane %v5287_v36, 1  ;;  %v5273_v62 = vld [vmem:[#allocation2 + $0x64] sm:$0x1]  ;;  %v5348_v19 = vsel %vm3467_vm5, %v5347_v63, %v5346_v55  ;;  %v5401_v12 = vrot.slane %v5300_v43, 4  ;;  %v5400_v0 = vsel %vm3464_vm4, %v5399_v56, %v5398_v25 }
 0x338   : > { %v5303_v39 = vld [vmem:[#allocation2 + $0x1ed] sm:$0x1]  ;;  %v5274_v17 = vld [vmem:[#allocation2 + $0xa4] sm:$0x1]  ;;  %v5350_v9 = vsel %vm3470_vm6, %v5349_v31, %v5348_v19  ;;  %v5403_v5 = vrot.slane %v5301_v23, 3  ;;  %10277 = vrot.lane.b32.xlu1 %v10276_v20, %s10417_s21  ;;  %10272 = vrot.lane.b32.xlu0 %v10276_v20, %s10416_s17  ;;  %v5405_v6 = vrot.slane %v5302_v38, 2 }
 0x339   : > { %v5275_v35 = vld [vmem:[#allocation2 + $0xe4] sm:$0x1]  ;;  %v5352_v59 = vsel %vm3473_vm7, %v5351_v60, %v5350_v9  ;;  %v5407_v26 = vrot.slane %v5303_v39, 1  ;;  %v5289_v49 = vld [vmem:[#allocation2 + $0x6c] sm:$0x1]  ;;  %v5402_v14 = vsel %vm3467_vm5, %v5401_v12, %v5400_v0  ;;  %v5316_v13 = vrot.slane %v5273_v62, 7 }
 0x33a   : > { %v5276_v2 = vld [vmem:[#allocation2 + $0x124] sm:$0x1]  ;;  %v5290_v24 = vld [vmem:[#allocation2 + $0xac] sm:$0x1]  ;;  %v5354_v41 = vsel %vm3476_vm8, %v5353_v15, %v5352_v59  ;;  %v5318_v1 = vrot.slane %v5274_v17, 6  ;;  %v5404_v36 = vsel %vm3470_vm6, %v5403_v5, %v5402_v14  ;;  %v5320_v52 = vrot.slane %v5275_v35, 5 }
 0x33b   : > { %v5277_v32 = vld [vmem:[#allocation2 + $0x164] sm:$0x1]  ;;  %v5291_v53 = vld [vmem:[#allocation2 + $0xec] sm:$0x1]  ;;  %v5322_v45 = vrot.slane %v5276_v2, 4  ;;  %v5406_v46 = vsel %vm3473_vm7, %v5405_v6, %v5404_v36  ;;  %v5370_v8 = vrot.slane %v5289_v49, 7 }
 0x33c   : > { %v5278_v11 = vld [vmem:[#allocation2 + $0x1a4] sm:$0x1]  ;;  %v5292_v7 = vld [vmem:[#allocation2 + $0x12c] sm:$0x1]  ;;  %v5324_v30 = vrot.slane %v5277_v32, 3  ;;  %v5408_v43 = vsel %vm3476_vm8, %v5407_v26, %v5406_v46  ;;  %v5372_v31 = vrot.slane %v5290_v24, 6 }
 0x33d   : > { %v5279_v16 = vld [vmem:[#allocation2 + $0x1e4] sm:$0x1]  ;;  %v5293_v4 = vld [vmem:[#allocation2 + $0x16c] sm:$0x1]  ;;  %v5326_v34 = vrot.slane %v5278_v11, 2  ;;  %v12362_v38 = vpack.i.bf16 %v5354_v41, %v5408_v43  ;;  %v5374_v48 = vrot.slane %v5291_v53, 5 }
 0x33e   : > { %v5272_v37 = vld [vmem:[#allocation2 + $0x24] sm:$0x1]  ;;  %v5288_v29 = vld [vmem:[#allocation2 + $0x2c] sm:$0x1]  ;;  %v5328_v47 = vrot.slane %v5279_v16, 1  ;;  %v5376_v15 = vrot.slane %v5292_v7, 4 }
 0x33f   : > { %v5294_v44 = vld [vmem:[#allocation2 + $0x1ac] sm:$0x1]  ;;  %v5317_v63 = vsel %vm3458_vm2, %v5316_v13, %v5272_v37  ;;  %v5559_v60 = vld [vmem:[#allocation2 + $0x66] sm:$0x1]  ;;  %v5371_v3 = vsel %vm3458_vm2, %v5370_v8, %v5288_v29  ;;  %v5378_v56 = vrot.slane %v5293_v4, 3  ;;  %10287 = vrot.lane.b32.xlu1 %v12362_v38, %s10416_s17 }
 0x340   : > { %v5295_v18 = vld [vmem:[#allocation2 + $0x1ec] sm:$0x1]  ;;  %v5319_v23 = vsel %vm3461_vm3, %v5318_v1, %v5317_v63  ;;  %v5560_v33 = vld [vmem:[#allocation2 + $0xa6] sm:$0x1]  ;;  %v5380_v62 = vrot.slane %v5294_v44, 2  ;;  %v5373_v35 = vsel %vm3461_vm3, %v5372_v31, %v5371_v3  ;;  %v5602_v25 = vrot.slane %v5559_v60, 7 }
 0x341   : > { %v5321_v39 = vsel %vm3464_vm4, %v5320_v52, %v5319_v23  ;;  %v5561_v42 = vld [vmem:[#allocation2 + $0xe6] sm:$0x1]  ;;  %v5382_v2 = vrot.slane %v5295_v18, 1  ;;  %v5575_v9 = vld [vmem:[#allocation2 + $0x6e] sm:$0x1]  ;;  %v5375_v5 = vsel %vm3464_vm4, %v5374_v48, %v5373_v35  ;;  %v5604_v59 = vrot.slane %v5560_v33, 6 }
 0x342   : > { %v5562_v21 = vld [vmem:[#allocation2 + $0x126] sm:$0x1]  ;;  %v5323_v55 = vsel %vm3467_vm5, %v5322_v45, %v5321_v39  ;;  %v5576_v11 = vld [vmem:[#allocation2 + $0xae] sm:$0x1]  ;;  %v5606_v0 = vrot.slane %v5561_v42, 5  ;;  %v5377_v26 = vsel %vm3467_vm5, %v5376_v15, %v5375_v5  ;;  %v5656_v46 = vrot.slane %v5575_v9, 7 }
 0x343   : > { %v5558_v17 = vld [vmem:[#allocation2 + $0x26] sm:$0x1]  ;;  %v5325_v58 = vsel %vm3470_vm6, %v5324_v30, %v5323_v55  ;;  %v5577_v16 = vld [vmem:[#allocation2 + $0xee] sm:$0x1]  ;;  %v5608_v41 = vrot.slane %v5562_v21, 4  ;;  %v5379_v14 = vsel %vm3470_vm6, %v5378_v56, %v5377_v26 }
 0x344   : > { %v5563_v20 = vld [vmem:[#allocation2 + $0x166] sm:$0x1]  ;;  %v5327_v12 = vsel %vm3473_vm7, %v5326_v34, %v5325_v58  ;;  %v5578_v37 = vld [vmem:[#allocation2 + $0x12e] sm:$0x1]  ;;  %v5603_v24 = vsel %vm3458_vm2, %v5602_v25, %v5558_v17  ;;  %v5381_v52 = vsel %vm3473_vm7, %v5380_v62, %v5379_v14  ;;  %v5567_v29 = vld [vmem:[#allocation2 + $0x67] sm:$0x1] }
 0x345   : > { %v5564_v19 = vld [vmem:[#allocation2 + $0x1a6] sm:$0x1]  ;;  %v12374_v6 = vsel %vm3476_vm8, %v5328_v47, %v5327_v12  ;;  %v5579_v49 = vld [vmem:[#allocation2 + $0x16e] sm:$0x1]  ;;  %v5605_v1 = vsel %vm3461_vm3, %v5604_v59, %v5603_v24  ;;  %v5610_v36 = vrot.slane %v5563_v20, 3  ;;  %v12383_v18 = vsel %vm3476_vm8, %v5382_v2, %v5381_v52 }
 0x346   : > { %v5565_v32 = vld [vmem:[#allocation2 + $0x1e6] sm:$0x1]  ;;  %v5574_v53 = vld [vmem:[#allocation2 + $0x2e] sm:$0x1]  ;;  %v5612_v4 = vrot.slane %v5564_v19, 2  ;;  %v5607_v45 = vsel %vm3464_vm4, %v5606_v0, %v5605_v1  ;;  %v5658_v34 = vrot.slane %v5576_v11, 6  ;;  %v10281_v8 = vpack.i.bf16 %v12374_v6, %v12383_v18 }
 0x347   : > { %v5580_v7 = vld [vmem:[#allocation2 + $0x1ae] sm:$0x1]  ;;  %v5614_v30 = vrot.slane %v5565_v32, 1  ;;  %v5568_v44 = vld [vmem:[#allocation2 + $0xa7] sm:$0x1]  ;;  %v5609_v63 = vsel %vm3467_vm5, %v5608_v41, %v5607_v45  ;;  %v5660_v47 = vrot.slane %v5577_v16, 5  ;;  %v5657_v60 = vsel %vm3458_vm2, %v5656_v46, %v5574_v53 }
 0x348   : > { %v5581_v13 = vld [vmem:[#allocation2 + $0x1ee] sm:$0x1]  ;;  %v5569_v43 = vld [vmem:[#allocation2 + $0xe7] sm:$0x1]  ;;  %v5611_v31 = vsel %vm3470_vm6, %v5610_v36, %v5609_v63  ;;  %v5662_v33 = vrot.slane %v5578_v37, 4  ;;  %v5659_v42 = vsel %vm3461_vm3, %v5658_v34, %v5657_v60  ;;  %v5664_v21 = vrot.slane %v5579_v49, 3  ;;  %10282 = vrot.lane.b32.xlu0 %v10281_v8, %s10418_s22 }
 0x349   : > { %v5570_v23 = vld [vmem:[#allocation2 + $0x127] sm:$0x1]  ;;  %v5613_v15 = vsel %vm3473_vm7, %v5612_v4, %v5611_v31  ;;  %v5666_v55 = vrot.slane %v5580_v7, 2  ;;  %v5583_v56 = vld [vmem:[#allocation2 + $0x6f] sm:$0x1]  ;;  %v5661_v17 = vsel %vm3464_vm4, %v5660_v47, %v5659_v42  ;;  %v5668_v20 = vrot.slane %v5581_v13, 1 }
 0x34a   : > { %v5571_v39 = vld [vmem:[#allocation2 + $0x167] sm:$0x1]  ;;  %v5615_v62 = vsel %vm3476_vm8, %v5614_v30, %v5613_v15  ;;  %v5584_v58 = vld [vmem:[#allocation2 + $0xaf] sm:$0x1]  ;;  %v5663_v2 = vsel %vm3467_vm5, %v5662_v33, %v5661_v17  ;;  %v5627_v9 = vrot.slane %v5567_v29, 7  ;;  %v5629_v25 = vrot.slane %v5568_v44, 6 }
 0x34b   : > { %v5572_v48 = vld [vmem:[#allocation2 + $0x1a7] sm:$0x1]  ;;  %v5585_v35 = vld [vmem:[#allocation2 + $0xef] sm:$0x1]  ;;  %v5631_v12 = vrot.slane %v5569_v43, 5  ;;  %v5665_v5 = vsel %vm3470_vm6, %v5664_v21, %v5663_v2  ;;  %v5633_v59 = vrot.slane %v5570_v23, 4 }
 0x34c   : > { %v5573_v3 = vld [vmem:[#allocation2 + $0x1e7] sm:$0x1]  ;;  %v5586_v32 = vld [vmem:[#allocation2 + $0x12f] sm:$0x1]  ;;  %v5635_v0 = vrot.slane %v5571_v39, 3  ;;  %v5637_v26 = vrot.slane %v5572_v48, 2  ;;  %v5667_v37 = vsel %vm3473_vm7, %v5666_v55, %v5665_v5  ;;  %10292 = vrot.lane.b32.xlu0 %v12362_v38, %s10417_s21 }
 0x34d   : > { %v5566_v19 = vld [vmem:[#allocation2 + $0x27] sm:$0x1]  ;;  %v5582_v11 = vld [vmem:[#allocation2 + $0x2f] sm:$0x1]  ;;  %v5639_v14 = vrot.slane %v5573_v3, 1  ;;  %v5681_v53 = vrot.slane %v5583_v56, 7  ;;  %v5669_v7 = vsel %vm3476_vm8, %v5668_v20, %v5667_v37 }
 0x34e   : > { %v5587_v16 = vld [vmem:[#allocation2 + $0x16f] sm:$0x1]  ;;  %v5628_v41 = vsel %vm3458_vm2, %v5627_v9, %v5566_v19  ;;  %v5683_v1 = vrot.slane %v5584_v58, 6  ;;  %v5685_v36 = vrot.slane %v5585_v35, 5  ;;  %v5853_v4 = vld [vmem:[#allocation2 + $0x71] sm:$0x1]  ;;  %v10296_v45 = vpack.i.bf16 %v5615_v62, %v5669_v7 }
 0x34f   : > { %v5588_v49 = vld [vmem:[#allocation2 + $0x1af] sm:$0x1]  ;;  %v5630_v13 = vsel %vm3461_vm3, %v5629_v25, %v5628_v41  ;;  %v5854_v52 = vld [vmem:[#allocation2 + $0xb1] sm:$0x1]  ;;  %v5682_v46 = vsel %vm3458_vm2, %v5681_v53, %v5582_v11  ;;  %v5687_v29 = vrot.slane %v5586_v32, 4  ;;  %v5689_v43 = vrot.slane %v5587_v16, 3 }
 0x350   : > { %v5589_v24 = vld [vmem:[#allocation2 + $0x1ef] sm:$0x1]  ;;  %v5632_v30 = vsel %vm3464_vm4, %v5631_v12, %v5630_v13  ;;  %v5855_v44 = vld [vmem:[#allocation2 + $0xf1] sm:$0x1]  ;;  %v5684_v47 = vsel %vm3461_vm3, %v5683_v1, %v5682_v46  ;;  %v5691_v38 = vrot.slane %v5588_v49, 2  ;;  %10297 = vrot.lane.b32.xlu1 %v10296_v45, %s10418_s22  ;;  %v5939_v42 = vrot.slane %v5853_v4, 7 }
 0x351   : > { %v5856_v63 = vld [vmem:[#allocation2 + $0x131] sm:$0x1]  ;;  %v5634_v34 = vsel %vm3467_vm5, %v5633_v59, %v5632_v30  ;;  %v5686_v33 = vsel %vm3464_vm4, %v5685_v36, %v5684_v47  ;;  %v5693_v39 = vrot.slane %v5589_v24, 1  ;;  %v5885_v15 = vld [vmem:[#allocation2 + $0x79] sm:$0x1]  ;;  %v5941_v62 = vrot.slane %v5854_v52, 6 }
 0x352   : > { %v5852_v23 = vld [vmem:[#allocation2 + $0x31] sm:$0x1]  ;;  %v5636_v60 = vsel %vm3470_vm6, %v5635_v0, %v5634_v34  ;;  %v5688_v55 = vsel %vm3467_vm5, %v5687_v29, %v5686_v33  ;;  %v5886_v3 = vld [vmem:[#allocation2 + $0xb9] sm:$0x1]  ;;  %v5943_v17 = vrot.slane %v5855_v44, 5  ;;  %v5945_v32 = vrot.slane %v5856_v63, 4 }
 0x353   : > { %v5857_v8 = vld [vmem:[#allocation2 + $0x171] sm:$0x1]  ;;  %v5638_v21 = vsel %vm3473_vm7, %v5637_v26, %v5636_v60  ;;  %v5887_v56 = vld [vmem:[#allocation2 + $0xf9] sm:$0x1]  ;;  %v5690_v19 = vsel %vm3470_vm6, %v5689_v43, %v5688_v55  ;;  %v5940_v2 = vsel %vm3458_vm2, %v5939_v42, %v5852_v23  ;;  %v6037_v49 = vrot.slane %v5885_v15, 7 }
 0x354   : > { %v5858_v31 = vld [vmem:[#allocation2 + $0x1b1] sm:$0x1]  ;;  %v5640_v20 = vsel %vm3476_vm8, %v5639_v14, %v5638_v21  ;;  %v5888_v58 = vld [vmem:[#allocation2 + $0x139] sm:$0x1]  ;;  %v5692_v9 = vsel %vm3473_vm7, %v5691_v38, %v5690_v19  ;;  %v5942_v11 = vsel %vm3461_vm3, %v5941_v62, %v5940_v2  ;;  %v5947_v16 = vrot.slane %v5857_v8, 3 }
 0x355   : > { %v5859_v48 = vld [vmem:[#allocation2 + $0x1f1] sm:$0x1]  ;;  %v5889_v35 = vld [vmem:[#allocation2 + $0x179] sm:$0x1]  ;;  %v5949_v59 = vrot.slane %v5858_v31, 2  ;;  %v5694_v0 = vsel %vm3476_vm8, %v5693_v39, %v5692_v9  ;;  %v5944_v26 = vsel %vm3464_vm4, %v5943_v17, %v5942_v11  ;;  %v6039_v7 = vrot.slane %v5886_v3, 6 }
 0x356   : > { %v5884_v25 = vld [vmem:[#allocation2 + $0x39] sm:$0x1]  ;;  %v5951_v37 = vrot.slane %v5859_v48, 1  ;;  %v5861_v24 = vld [vmem:[#allocation2 + $0x72] sm:$0x1]  ;;  %v10301_v14 = vpack.i.bf16 %v5640_v20, %v5694_v0  ;;  %v5946_v53 = vsel %vm3467_vm5, %v5945_v32, %v5944_v26  ;;  %v6041_v13 = vrot.slane %v5887_v56, 5 }
 0x357   : > { %v5890_v12 = vld [vmem:[#allocation2 + $0x1b9] sm:$0x1]  ;;  %v5862_v41 = vld [vmem:[#allocation2 + $0xb2] sm:$0x1]  ;;  %v5948_v4 = vsel %vm3470_vm6, %v5947_v16, %v5946_v53  ;;  %v6038_v52 = vsel %vm3458_vm2, %v6037_v49, %v5884_v25  ;;  %v6043_v45 = vrot.slane %v5888_v58, 4  ;;  %v6045_v30 = vrot.slane %v5889_v35, 3 }
 0x358   : > { %v5891_v5 = vld [vmem:[#allocation2 + $0x1f9] sm:$0x1]  ;;  %v5863_v1 = vld [vmem:[#allocation2 + $0xf2] sm:$0x1]  ;;  %10302 = vrot.lane.b32.xlu0 %v10301_v14, %s10416_s17  ;;  %v5950_v44 = vsel %vm3473_vm7, %v5949_v59, %v5948_v4  ;;  %v6040_v63 = vsel %vm3461_vm3, %v6039_v7, %v6038_v52  ;;  %v6047_v34 = vrot.slane %v5890_v12, 2  ;;  %v5964_v39 = vrot.slane %v5861_v24, 7 }
 0x359   : > { %v5864_v36 = vld [vmem:[#allocation2 + $0x132] sm:$0x1]  ;;  %v6049_v47 = vrot.slane %v5891_v5, 1  ;;  %v5893_v23 = vld [vmem:[#allocation2 + $0x7a] sm:$0x1]  ;;  %v5952_v8 = vsel %vm3476_vm8, %v5951_v37, %v5950_v44  ;;  %v6042_v31 = vsel %vm3464_vm4, %v6041_v13, %v6040_v63  ;;  %v5966_v48 = vrot.slane %v5862_v41, 6 }
 0x35a   : > { %v5865_v46 = vld [vmem:[#allocation2 + $0x172] sm:$0x1]  ;;  %v5894_v60 = vld [vmem:[#allocation2 + $0xba] sm:$0x1]  ;;  %v6044_v15 = vsel %vm3467_vm5, %v6043_v45, %v6042_v31  ;;  %v5968_v21 = vrot.slane %v5863_v1, 5  ;;  %v5970_v55 = vrot.slane %v5864_v36, 4 }
 0x35b   : > { %v5866_v29 = vld [vmem:[#allocation2 + $0x1b2] sm:$0x1]  ;;  %v5895_v33 = vld [vmem:[#allocation2 + $0xfa] sm:$0x1]  ;;  %v5972_v3 = vrot.slane %v5865_v46, 3  ;;  %v6046_v56 = vsel %vm3470_vm6, %v6045_v30, %v6044_v15  ;;  %v6062_v25 = vrot.slane %v5893_v23, 7 }
 0x35c   : > { %v5860_v43 = vld [vmem:[#allocation2 + $0x32] sm:$0x1]  ;;  %v5896_v42 = vld [vmem:[#allocation2 + $0x13a] sm:$0x1]  ;;  %v5974_v19 = vrot.slane %v5866_v29, 2  ;;  %v6048_v35 = vsel %vm3473_vm7, %v6047_v34, %v6046_v56  ;;  %v6064_v12 = vrot.slane %v5894_v60, 6 }
 0x35d   : > { %v5867_v38 = vld [vmem:[#allocation2 + $0x1f2] sm:$0x1]  ;;  %v5892_v62 = vld [vmem:[#allocation2 + $0x3a] sm:$0x1]  ;;  %v5965_v20 = vsel %vm3458_vm2, %v5964_v39, %v5860_v43  ;;  %v6050_v5 = vsel %vm3476_vm8, %v6049_v47, %v6048_v35  ;;  %v6066_v16 = vrot.slane %v5895_v33, 5  ;;  %v6068_v59 = vrot.slane %v5896_v42, 4 }
 0x35e   : > { %v5897_v17 = vld [vmem:[#allocation2 + $0x17a] sm:$0x1]  ;;  %v5976_v58 = vrot.slane %v5867_v38, 1  ;;  %v5967_v9 = vsel %vm3461_vm3, %v5966_v48, %v5965_v20  ;;  %v5869_v0 = vld [vmem:[#allocation2 + $0x73] sm:$0x1]  ;;  %v10306_v37 = vpack.i.bf16 %v5952_v8, %v6050_v5  ;;  %v6063_v24 = vsel %vm3458_vm2, %v6062_v25, %v5892_v62 }
 0x35f   : > { %v5898_v2 = vld [vmem:[#allocation2 + $0x1ba] sm:$0x1]  ;;  %v5969_v11 = vsel %vm3464_vm4, %v5968_v21, %v5967_v9  ;;  %v5870_v26 = vld [vmem:[#allocation2 + $0xb3] sm:$0x1]  ;;  %v6070_v41 = vrot.slane %v5897_v17, 3  ;;  %v6065_v13 = vsel %vm3461_vm3, %v6064_v12, %v6063_v24  ;;  %v5989_v63 = vrot.slane %v5869_v0, 7 }
 0x360   : > { %v5899_v32 = vld [vmem:[#allocation2 + $0x1fa] sm:$0x1]  ;;  %v5971_v49 = vsel %vm3467_vm5, %v5970_v55, %v5969_v11  ;;  %v5871_v14 = vld [vmem:[#allocation2 + $0xf3] sm:$0x1]  ;;  %v6072_v1 = vrot.slane %v5898_v2, 2  ;;  %10307 = vrot.lane.b32.xlu1 %v10306_v37, %s10417_s21  ;;  %v6067_v46 = vsel %vm3464_vm4, %v6066_v16, %v6065_v13  ;;  %v5991_v34 = vrot.slane %v5870_v26, 6 }
 0x361   : > { %v5872_v53 = vld [vmem:[#allocation2 + $0x133] sm:$0x1]  ;;  %v5973_v7 = vsel %vm3470_vm6, %v5972_v3, %v5971_v49  ;;  %v6074_v36 = vrot.slane %v5899_v32, 1  ;;  %v5901_v44 = vld [vmem:[#allocation2 + $0x7b] sm:$0x1]  ;;  %v6069_v43 = vsel %vm3467_vm5, %v6068_v59, %v6067_v46  ;;  %v5993_v8 = vrot.slane %v5871_v14, 5 }
 0x362   : > { %v5868_v4 = vld [vmem:[#allocation2 + $0x33] sm:$0x1]  ;;  %v5975_v30 = vsel %vm3473_vm7, %v5974_v19, %v5973_v7  ;;  %v5902_v38 = vld [vmem:[#allocation2 + $0xbb] sm:$0x1]  ;;  %v5995_v31 = vrot.slane %v5872_v53, 4  ;;  %v6071_v60 = vsel %vm3470_vm6, %v6070_v41, %v6069_v43  ;;  %v6087_v20 = vrot.slane %v5901_v44, 7 }
 0x363   : > { %v5873_v52 = vld [vmem:[#allocation2 + $0x173] sm:$0x1]  ;;  %v12442_v47 = vsel %vm3476_vm8, %v5976_v58, %v5975_v30  ;;  %v5903_v23 = vld [vmem:[#allocation2 + $0xfb] sm:$0x1]  ;;  %v5990_v15 = vsel %vm3458_vm2, %v5989_v63, %v5868_v4  ;;  %v6073_v55 = vsel %vm3473_vm7, %v6072_v1, %v6071_v60  ;;  %v6089_v35 = vrot.slane %v5902_v38, 6 }
 0x364   : > { %v5874_v45 = vld [vmem:[#allocation2 + $0x1b3] sm:$0x1]  ;;  %13972 = vst [vmem:[#allocation10_spill] sm:$0xff] %v12442_v47  ;;  %v5900_v33 = vld [vmem:[#allocation2 + $0x3b] sm:$0x1]  ;;  %v5997_v42 = vrot.slane %v5873_v52, 3  ;;  %v5992_v62 = vsel %vm3461_vm3, %v5991_v34, %v5990_v15  ;;  %v12450_v19 = vsel %vm3476_vm8, %v6074_v36, %v6073_v55 }
 0x365   : > { %v5875_v29 = vld [vmem:[#allocation2 + $0x1f3] sm:$0x1]  ;;  %v5904_v39 = vld [vmem:[#allocation2 + $0x13b] sm:$0x1]  ;;  %v5999_v21 = vrot.slane %v5874_v45, 2  ;;  %13973 = vst [vmem:[#allocation11_spill] sm:$0xff] %v12450_v19  ;;  %v5994_v58 = vsel %vm3464_vm4, %v5993_v8, %v5992_v62  ;;  %v10311_v25 = vpack.i.bf16 %v12442_v47, %v12450_v19  ;;  %v6088_v5 = vsel %vm3458_vm2, %v6087_v20, %v5900_v33 }
 0x366   : > { %v5905_v48 = vld [vmem:[#allocation2 + $0x17b] sm:$0x1]  ;;  %v6001_v17 = vrot.slane %v5875_v29, 1  ;;  %v6091_v2 = vrot.slane %v5903_v23, 5  ;;  %v6251_v32 = vld [vmem:[#allocation2 + $0x74] sm:$0x1]  ;;  %v5996_v12 = vsel %vm3467_vm5, %v5995_v31, %v5994_v58  ;;  %v6090_v26 = vsel %vm3461_vm3, %v6089_v35, %v6088_v5 }
 0x367   : > { %v5906_v3 = vld [vmem:[#allocation2 + $0x1bb] sm:$0x1]  ;;  %v6252_v9 = vld [vmem:[#allocation2 + $0xb4] sm:$0x1]  ;;  %v6093_v11 = vrot.slane %v5904_v39, 4  ;;  %v5998_v0 = vsel %vm3470_vm6, %v5997_v42, %v5996_v12  ;;  %v6095_v37 = vrot.slane %v5905_v48, 3  ;;  %10312 = vrot.lane.b32.xlu0 %v10311_v25, %s10418_s22 }
 0x368   : > { %v5907_v56 = vld [vmem:[#allocation2 + $0x1fb] sm:$0x1]  ;;  %v6253_v16 = vld [vmem:[#allocation2 + $0xf4] sm:$0x1]  ;;  %v6097_v49 = vrot.slane %v5906_v3, 2  ;;  %v6000_v53 = vsel %vm3473_vm7, %v5999_v21, %v5998_v0  ;;  %v6092_v7 = vsel %vm3464_vm4, %v6091_v2, %v6090_v26  ;;  %v6294_v4 = vrot.slane %v6251_v32, 7 }
 0x369   : > { %v6254_v59 = vld [vmem:[#allocation2 + $0x134] sm:$0x1]  ;;  %v6099_v13 = vrot.slane %v5907_v56, 1  ;;  %v6267_v36 = vld [vmem:[#allocation2 + $0x7c] sm:$0x1]  ;;  %v6002_v52 = vsel %vm3476_vm8, %v6001_v17, %v6000_v53  ;;  %v6094_v45 = vsel %vm3467_vm5, %v6093_v11, %v6092_v7  ;;  %v6296_v29 = vrot.slane %v6252_v9, 6 }
 0x36a   : > { %v6250_v24 = vld [vmem:[#allocation2 + $0x34] sm:$0x1]  ;;  %v6268_v30 = vld [vmem:[#allocation2 + $0xbc] sm:$0x1]  ;;  %v6298_v44 = vrot.slane %v6253_v16, 5  ;;  %v6096_v63 = vsel %vm3470_vm6, %v6095_v37, %v6094_v45  ;;  %v6300_v23 = vrot.slane %v6254_v59, 4 }
 0x36b   : > { %v6255_v41 = vld [vmem:[#allocation2 + $0x174] sm:$0x1]  ;;  %v6269_v46 = vld [vmem:[#allocation2 + $0xfc] sm:$0x1]  ;;  %v6295_v38 = vsel %vm3458_vm2, %v6294_v4, %v6250_v24  ;;  %v6098_v31 = vsel %vm3473_vm7, %v6097_v49, %v6096_v63  ;;  %v6348_v3 = vrot.slane %v6267_v36, 7  ;;  %v6350_v56 = vrot.slane %v6268_v30, 6 }
 0x36c   : > { %v6256_v14 = vld [vmem:[#allocation2 + $0x1b4] sm:$0x1]  ;;  %v6270_v34 = vld [vmem:[#allocation2 + $0x13c] sm:$0x1]  ;;  %v6302_v8 = vrot.slane %v6255_v41, 3  ;;  %v6297_v48 = vsel %vm3461_vm3, %v6296_v29, %v6295_v38  ;;  %v6100_v21 = vsel %vm3476_vm8, %v6099_v13, %v6098_v31  ;;  %v6352_v35 = vrot.slane %v6269_v46, 5 }
 0x36d   : > { %v6257_v1 = vld [vmem:[#allocation2 + $0x1f4] sm:$0x1]  ;;  %v6271_v43 = vld [vmem:[#allocation2 + $0x17c] sm:$0x1]  ;;  %v6304_v15 = vrot.slane %v6256_v14, 2  ;;  %v6299_v55 = vsel %vm3464_vm4, %v6298_v44, %v6297_v48  ;;  %v10316_v20 = vpack.i.bf16 %v6002_v52, %v6100_v21  ;;  %v6354_v12 = vrot.slane %v6270_v34, 4 }
 0x36e   : > { %v6266_v60 = vld [vmem:[#allocation2 + $0x3c] sm:$0x1]  ;;  %v6306_v42 = vrot.slane %v6257_v1, 1  ;;  %v6259_v62 = vld [vmem:[#allocation2 + $0x75] sm:$0x1]  ;;  %v6301_v58 = vsel %vm3467_vm5, %v6300_v23, %v6299_v55  ;;  %v6356_v5 = vrot.slane %v6271_v43, 3 }
 0x36f   : > { %v6272_v33 = vld [vmem:[#allocation2 + $0x1bc] sm:$0x1]  ;;  %v6260_v17 = vld [vmem:[#allocation2 + $0xb5] sm:$0x1]  ;;  %v6303_v9 = vsel %vm3470_vm6, %v6302_v8, %v6301_v58  ;;  %v6349_v25 = vsel %vm3458_vm2, %v6348_v3, %v6266_v60  ;;  %10317 = vrot.lane.b32.xlu1 %v10316_v20, %s10416_s17  ;;  %10322 = vrot.lane.b32.xlu0 %v10316_v20, %s10417_s21  ;;  %v6275_v41 = vld [vmem:[#allocation2 + $0x7d] sm:$0x1] }
 0x370   : > { %v6273_v39 = vld [vmem:[#allocation2 + $0x1fc] sm:$0x1]  ;;  %v6261_v2 = vld [vmem:[#allocation2 + $0xf5] sm:$0x1]  ;;  %v6305_v59 = vsel %vm3473_vm7, %v6304_v15, %v6303_v9  ;;  %v6351_v0 = vsel %vm3461_vm3, %v6350_v56, %v6349_v25  ;;  %v6358_v26 = vrot.slane %v6272_v33, 2  ;;  %v6319_v1 = vrot.slane %v6259_v62, 7 }
 0x371   : > { %v6262_v32 = vld [vmem:[#allocation2 + $0x135] sm:$0x1]  ;;  %v6360_v37 = vrot.slane %v6273_v39, 1  ;;  %v12478_v14 = vsel %vm3476_vm8, %v6306_v42, %v6305_v59  ;;  %v6353_v53 = vsel %vm3464_vm4, %v6352_v35, %v6351_v0  ;;  %v6276_v7 = vld [vmem:[#allocation2 + $0xbd] sm:$0x1]  ;;  %v6321_v36 = vrot.slane %v6260_v17, 6 }
 0x372   : > { %v6263_v11 = vld [vmem:[#allocation2 + $0x175] sm:$0x1]  ;;  %13974 = vst [vmem:[#allocation12_spill] sm:$0xff] %v12478_v14  ;;  %v6277_v13 = vld [vmem:[#allocation2 + $0xfd] sm:$0x1]  ;;  %v6355_v4 = vsel %vm3467_vm5, %v6354_v12, %v6353_v53  ;;  %v6323_v45 = vrot.slane %v6261_v2, 5 }
 0x373   : > { %v6264_v16 = vld [vmem:[#allocation2 + $0x1b5] sm:$0x1]  ;;  %v6278_v52 = vld [vmem:[#allocation2 + $0x13d] sm:$0x1]  ;;  %v6325_v30 = vrot.slane %v6262_v32, 4  ;;  %v6327_v46 = vrot.slane %v6263_v11, 3  ;;  %v6357_v29 = vsel %vm3470_vm6, %v6356_v5, %v6355_v4 }
 0x374   : > { %v6258_v49 = vld [vmem:[#allocation2 + $0x35] sm:$0x1]  ;;  %v6279_v44 = vld [vmem:[#allocation2 + $0x17d] sm:$0x1]  ;;  %v6329_v34 = vrot.slane %v6264_v16, 2  ;;  %v3273_v38 = vld [vmem:[%s13756_s3 + $0x80] sm:$0xff]  ;;  %v6359_v60 = vsel %vm3473_vm7, %v6358_v26, %v6357_v29 }
 0x375   : > { %v6265_v24 = vld [vmem:[#allocation2 + $0x1f5] sm:$0x1]  ;;  %v6320_v63 = vsel %vm3458_vm2, %v6319_v1, %v6258_v49  ;;  %v3274_v23 = vld [vmem:[%s13756_s3 + $0x88] sm:$0xff]  ;;  %v3257_v8 = vld [vmem:[%s13756_s3] sm:$0xff]  ;;  %v6373_v15 = vrot.slane %v6275_v41, 7  ;;  %v6375_v42 = vrot.slane %v6276_v7, 6  ;;  %v12499_v21 = vsel %vm3476_vm8, %v6360_v37, %v6359_v60 }
 0x376   : > { %v6331_v43 = vrot.slane %v6265_v24, 1  ;;  %v3258_v31 = vld [vmem:[%s13756_s3 + $0x8] sm:$0xff]  ;;  %v6280_v33 = vld [vmem:[#allocation2 + $0x1bd] sm:$0x1]  ;;  %v6322_v48 = vsel %vm3461_vm3, %v6321_v36, %v6320_v63  ;;  %13975 = vst [vmem:[#allocation13_spill] sm:$0xff] %v12499_v21  ;;  %v6377_v56 = vrot.slane %v6277_v13, 5  ;;  %v10326_v20 = vpack.i.bf16 %v12478_v14, %v12499_v21 }
 0x377   : > { %v6281_v39 = vld [vmem:[#allocation2 + $0x1fd] sm:$0x1]  ;;  %v6324_v3 = vsel %vm3464_vm4, %v6323_v45, %v6322_v48  ;;  %v6379_v62 = vrot.slane %v6278_v52, 4  ;;  %v6537_v17 = vld [vmem:[#allocation2 + $0x76] sm:$0x1]  ;;  %v6381_v2 = vrot.slane %v6279_v44, 3  ;;  %v12515_v41 = vpack.c.bf16 %v3274_v23, %v3273_v38 }
 0x378   : > { %v6274_v55 = vld [vmem:[#allocation2 + $0x3d] sm:$0x1]  ;;  %v6326_v58 = vsel %vm3467_vm5, %v6325_v30, %v6324_v3  ;;  %v6538_v32 = vld [vmem:[#allocation2 + $0xb6] sm:$0x1]  ;;  %v6383_v5 = vrot.slane %v6280_v33, 2  ;;  %v6385_v11 = vrot.slane %v6281_v39, 1  ;;  %10327 = vrot.lane.b32.xlu1 %v10326_v20, %s10418_s22  ;;  %v12517_v53 = vpack.c.bf16 %v3258_v31, %v3257_v8  ;;  %v12541_v3 = vpop.permute.xlu0 %10172 }
 0x379   : > { %v6374_v35 = vsel %vm3458_vm2, %v6373_v15, %v6274_v55  ;;  %v6539_v9 = vld [vmem:[#allocation2 + $0xf6] sm:$0x1]  ;;  %v6328_v25 = vsel %vm3470_vm6, %v6327_v46, %v6326_v58  ;;  %v6553_v1 = vld [vmem:[#allocation2 + $0x7e] sm:$0x1]  ;;  %v6580_v4 = vrot.slane %v6537_v17, 7  ;;  %v6582_v52 = vrot.slane %v6538_v32, 6  ;;  %9270 = vmatprep.subr.bf16.mxu1 %v12515_v41  ;;  %9782 = vmatprep.subr.bf16.mxu0 %v12515_v41 }
 0x37a   : > { %v6376_v12 = vsel %vm3461_vm3, %v6375_v42, %v6374_v35  ;;  %v6540_v16 = vld [vmem:[#allocation2 + $0x136] sm:$0x1]  ;;  %v6330_v0 = vsel %vm3473_vm7, %v6329_v34, %v6328_v25  ;;  %v6554_v36 = vld [vmem:[#allocation2 + $0xbe] sm:$0x1]  ;;  %v6584_v46 = vrot.slane %v6539_v9, 5  ;;  %9272 = vmatpush3.bf16.msra.mxu1 %v12517_v53  ;;  %9784 = vmatpush3.bf16.msra.mxu0 %v12517_v53  ;;  %v6634_v48 = vrot.slane %v6553_v1, 7 }
 0x37b   : > { %v6541_v59 = vld [vmem:[#allocation2 + $0x176] sm:$0x1]  ;;  %v6378_v26 = vsel %vm3464_vm4, %v6377_v56, %v6376_v12  ;;  %v6332_v7 = vsel %vm3476_vm8, %v6331_v43, %v6330_v0  ;;  %v6555_v30 = vld [vmem:[#allocation2 + $0xfe] sm:$0x1]  ;;  %v6586_v29 = vrot.slane %v6540_v16, 4  ;;  %v6636_v15 = vrot.slane %v6554_v36, 6 }
 0x37c   : > { %v6536_v37 = vld [vmem:[#allocation2 + $0x36] sm:$0x1]  ;;  %v6380_v13 = vsel %vm3467_vm5, %v6379_v62, %v6378_v26  ;;  %v6588_v44 = vrot.slane %v6541_v59, 3  ;;  %v6556_v34 = vld [vmem:[#allocation2 + $0x13e] sm:$0x1]  ;;  %v6638_v58 = vrot.slane %v6555_v30, 5 }
 0x37d   : > { %v12511_v49 = vld [vmem:[#allocation2 + $0x1b6] sm:$0x1]  ;;  %v6382_v45 = vsel %vm3470_vm6, %v6381_v2, %v6380_v13  ;;  %v6557_v43 = vld [vmem:[#allocation2 + $0x17e] sm:$0x1]  ;;  %v6581_v38 = vsel %vm3458_vm2, %v6580_v4, %v6536_v37  ;;  %v6640_v9 = vrot.slane %v6556_v34, 4  ;;  %v12553_v37 = vpop.permute.xlu1 %10182 }
 0x37e   : > { %v12513_v24 = vld [vmem:[#allocation2 + $0x1f6] sm:$0x1]  ;;  %v6384_v63 = vsel %vm3473_vm7, %v6383_v5, %v6382_v45  ;;  %v6590_v23 = vrot.slane %v12511_v49, 2  ;;  %v6558_v33 = vld [vmem:[#allocation2 + $0x1be] sm:$0x1]  ;;  %v6583_v39 = vsel %vm3461_vm3, %v6582_v52, %v6581_v38  ;;  %v6642_v25 = vrot.slane %v6557_v43, 3 }
 0x37f   : > { %v6592_v8 = vrot.slane %v12513_v24, 1  ;;  %v3275_v31 = vld [vmem:[%s13756_s3 + $0x90] sm:$0xff]  ;;  %v6386_v60 = vsel %vm3476_vm8, %v6385_v11, %v6384_v63  ;;  %v3276_v42 = vld [vmem:[%s13756_s3 + $0x98] sm:$0xff]  ;;  %v6585_v20 = vsel %vm3464_vm4, %v6584_v46, %v6583_v39  ;;  %v6644_v59 = vrot.slane %v6558_v33, 2  ;;  %v12573_v39 = vpop.permute.xlu0 %10177  ;;  %v3328_v47 = vld [vmem:[#allocation2 + $0x1c0] sm:$0x1] }
 0x380   : > { %v3259_v55 = vld [vmem:[%s13756_s3 + $0x10] sm:$0xff]  ;;  %v10331_v56 = vpack.i.bf16 %v6332_v7, %v6386_v60  ;;  %v6552_v62 = vld [vmem:[#allocation2 + $0x3e] sm:$0x1]  ;;  %v6587_v2 = vsel %vm3467_vm5, %v6586_v29, %v6585_v20  ;;  %v12558_v36 = vpack.c.bf16 %v3276_v42, %v3275_v31  ;;  %v6561_v30 = vld [vmem:[#allocation2 + $0x7f] sm:$0x1] }
 0x381   : > { %v6559_v17 = vld [vmem:[#allocation2 + $0x1fe] sm:$0x1]  ;;  %v6635_v32 = vsel %vm3458_vm2, %v6634_v48, %v6552_v62  ;;  %v6545_v12 = vld [vmem:[#allocation2 + $0x77] sm:$0x1]  ;;  %v6589_v11 = vsel %vm3470_vm6, %v6588_v44, %v6587_v2  ;;  %v6562_v46 = vld [vmem:[#allocation2 + $0xbf] sm:$0x1] }
 0x382   : > { %v3260_v35 = vld [vmem:[%s13756_s3 + $0x18] sm:$0xff]  ;;  %v6546_v5 = vld [vmem:[#allocation2 + $0xb7] sm:$0x1]  ;;  %10332 = vrot.lane.b32.xlu0 %v10331_v56, %s10416_s17  ;;  %10337 = vrot.lane.b32.xlu1 %v10331_v56, %s10417_s21  ;;  %v6637_v16 = vsel %vm3461_vm3, %v6636_v15, %v6635_v32  ;;  %v6646_v24 = vrot.slane %v6559_v17, 1  ;;  %v6591_v52 = vsel %vm3473_vm7, %v6590_v23, %v6589_v11  ;;  %v6605_v29 = vrot.slane %v6545_v12, 7  ;;  %v3277_v23 = vld [vmem:[%s13756_s3 + $0xa0] sm:$0xff] }
 0x383   : > { %v6547_v0 = vld [vmem:[#allocation2 + $0xf7] sm:$0x1]  ;;  %v6639_v49 = vsel %vm3464_vm4, %v6638_v58, %v6637_v16  ;;  %v12560_v4 = vpack.c.bf16 %v3260_v35, %v3259_v55  ;;  %v6607_v44 = vrot.slane %v6546_v5, 6  ;;  %v6593_v63 = vsel %vm3476_vm8, %v6592_v8, %v6591_v52  ;;  %v6563_v43 = vld [vmem:[#allocation2 + $0xff] sm:$0x1]  ;;  %9274 = vmatprep.subr.bf16.mxu1 %v12558_v36  ;;  %v3278_v31 = vld [vmem:[%s13756_s3 + $0xa8] sm:$0xff]  ;;  %9786 = vmatprep.subr.bf16.mxu0 %v12558_v36 }
 0x384   : > { %v6548_v26 = vld [vmem:[#allocation2 + $0x137] sm:$0x1]  ;;  %v6641_v45 = vsel %vm3467_vm5, %v6640_v9, %v6639_v49  ;;  %v6564_v38 = vld [vmem:[#allocation2 + $0x13f] sm:$0x1]  ;;  %v6609_v60 = vrot.slane %v6547_v0, 5  ;;  %v3261_v62 = vld [vmem:[%s13756_s3 + $0x20] sm:$0xff] }
 0x385   : > { %v6544_v7 = vld [vmem:[#allocation2 + $0x37] sm:$0x1]  ;;  %v6643_v34 = vsel %vm3470_vm6, %v6642_v25, %v6641_v45  ;;  %v6611_v33 = vrot.slane %v6548_v26, 4  ;;  %v6565_v15 = vld [vmem:[#allocation2 + $0x17f] sm:$0x1]  ;;  %9276 = vmatpush3.bf16.msra.mxu1 %v12560_v4  ;;  %v3262_v17 = vld [vmem:[%s13756_s3 + $0x28] sm:$0xff]  ;;  %9788 = vmatpush3.bf16.msra.mxu0 %v12560_v4  ;;  %v12596_v26 = vpop.permute.xlu1 %10187 }
 0x386   : > { %v6549_v13 = vld [vmem:[#allocation2 + $0x177] sm:$0x1]  ;;  %v6645_v8 = vsel %vm3473_vm7, %v6644_v59, %v6643_v34  ;;  %v6606_v42 = vsel %vm3458_vm2, %v6605_v29, %v6544_v7  ;;  %v6566_v58 = vld [vmem:[#allocation2 + $0x1bf] sm:$0x1]  ;;  %v6659_v2 = vrot.slane %v6561_v30, 7  ;;  %v6661_v32 = vrot.slane %v6562_v46, 6 }
 0x387   : > { %v12556_v1 = vld [vmem:[#allocation2 + $0x1b7] sm:$0x1]  ;;  %v6613_v55 = vrot.slane %v6549_v13, 3  ;;  %v6647_v20 = vsel %vm3476_vm8, %v6646_v24, %v6645_v8  ;;  %v6608_v35 = vsel %vm3461_vm3, %v6607_v44, %v6606_v42  ;;  %v3280_v25 = vld [vmem:[%s13756_s3 + $0xb8] sm:$0xff]  ;;  %v6663_v59 = vrot.slane %v6563_v43, 5  ;;  %s7263_s21 = scalar_lea.sflag [#allocation4], %s326_s16 }
 0x388   : > { %v6551_v48 = vld [vmem:[#allocation2 + $0x1f7] sm:$0x1]  ;;  %v6615_v56 = vrot.slane %v12556_v1, 2  ;;  %v10341_v12 = vpack.i.bf16 %v6593_v63, %v6647_v20  ;;  %v6560_v5 = vld [vmem:[#allocation2 + $0x3f] sm:$0x1]  ;;  %v6610_v16 = vsel %vm3464_vm4, %v6609_v60, %v6608_v35  ;;  %v6665_v0 = vrot.slane %v6564_v38, 4 }
 0x389   : > { %v3279_v9 = vld [vmem:[%s13756_s3 + $0xb0] sm:$0xff]  ;;  %v6567_v11 = vld [vmem:[#allocation2 + $0x1ff] sm:$0x1]  ;;  %v6612_v49 = vsel %vm3467_vm5, %v6611_v33, %v6610_v16  ;;  %v6617_v24 = vrot.slane %v6551_v48, 1  ;;  %v6660_v7 = vsel %vm3458_vm2, %v6659_v2, %v6560_v5  ;;  %v6667_v13 = vrot.slane %v6565_v15, 3  ;;  %v3281_v38 = vld [vmem:[%s13756_s3 + $0xc0] sm:$0xff]  ;;  %v12622_v33 = vpop.permute.xlu0 %10192 }
 0x38a   : > { %10342 = vrot.lane.b32.xlu0 %v10341_v12, %s10418_s22  ;;  %v6614_v1 = vsel %vm3470_vm6, %v6613_v55, %v6612_v49  ;;  %v6662_v52 = vsel %vm3461_vm3, %v6661_v32, %v6660_v7  ;;  %v6669_v45 = vrot.slane %v6566_v58, 2  ;;  %v12603_v30 = vpack.c.bf16 %v3278_v31, %v3277_v23  ;;  %v3263_v46 = vld [vmem:[%s13756_s3 + $0x30] sm:$0xff]  ;;  %v3264_v29 = vld [vmem:[%s13756_s3 + $0x38] sm:$0xff]  ;;  %v3282_v60 = vld [vmem:[%s13756_s3 + $0xc8] sm:$0xff] }
 0x38b   : > { %v6664_v44 = vsel %vm3464_vm4, %v6663_v59, %v6662_v52  ;;  %v6671_v63 = vrot.slane %v6567_v11, 1  ;;  %v12612_v34 = vpack.c.bf16 %v3262_v17, %v3261_v62  ;;  %v12614_v43 = vpack.c.bf16 %v3280_v25, %v3279_v9  ;;  %v3266_v62 = vld [vmem:[%s13756_s3 + $0x48] sm:$0xff]  ;;  %v12642_v17 = vpop.permute.xlu1 %10197  ;;  %v3283_v58 = vld [vmem:[%s13756_s3 + $0xd0] sm:$0xff]  ;;  %v3284_v35 = vld [vmem:[%s13756_s3 + $0xd8] sm:$0xff] }
 0x38c   : > { %v6616_v23 = vsel %vm3473_vm7, %v6615_v56, %v6614_v1  ;;  %v6666_v31 = vsel %vm3467_vm5, %v6665_v0, %v6664_v44  ;;  %9278 = vmatprep.subr.bf16.mxu1 %v12603_v30  ;;  %v12630_v15 = vpack.c.bf16 %v3264_v29, %v3263_v46  ;;  %v12634_v55 = vpack.c.bf16 %v3282_v60, %v3281_v38  ;;  %v3265_v56 = vld [vmem:[%s13756_s3 + $0x40] sm:$0xff]  ;;  %v3267_v9 = vld [vmem:[%s13756_s3 + $0x50] sm:$0xff]  ;;  %v3268_v25 = vld [vmem:[%s13756_s3 + $0x58] sm:$0xff] }
 0x38d   : > { %v6618_v8 = vsel %vm3476_vm8, %v6617_v24, %v6616_v23  ;;  %v6668_v48 = vsel %vm3470_vm6, %v6667_v13, %v6666_v31  ;;  %9280 = vmatpush3.bf16.msra.mxu1 %v12612_v34  ;;  %9790 = vmatprep.subr.bf16.mxu0 %v12603_v30  ;;  %v12655_v32 = vpack.c.bf16 %v3266_v62, %v3265_v56  ;;  %v3285_v12 = vld [vmem:[%s13756_s3 + $0xe0] sm:$0xff]  ;;  %v12666_v5 = vpop.permute.xlu0 %10202  ;;  %v3286_v16 = vld [vmem:[%s13756_s3 + $0xe8] sm:$0xff]  ;;  %v3287_v1 = vld [vmem:[%s13756_s3 + $0xf0] sm:$0xff] }
 0x38e   : > { %v6670_v42 = vsel %vm3473_vm7, %v6669_v45, %v6668_v48  ;;  %9282 = vmatprep.subr.bf16.mxu1 %v12614_v43  ;;  %9792 = vmatpush3.bf16.msra.mxu0 %v12612_v34  ;;  %v12670_v11 = vpack.c.bf16 %v3284_v35, %v3283_v58  ;;  %v3354_v59 = vld [vmem:[#allocation2 + $0x48] sm:$0x1]  ;;  %v3269_v49 = vld [vmem:[%s13756_s3 + $0x60] sm:$0xff]  ;;  %v3288_v52 = vld [vmem:[%s13756_s3 + $0xf8] sm:$0xff]  ;;  %v12692_v44 = vpack.c.bf16 %v3268_v25, %v3267_v9 }
 0x38f   : > { %v6672_v20 = vsel %vm3476_vm8, %v6671_v63, %v6670_v42  ;;  %9794 = vmatprep.subr.bf16.mxu0 %v12614_v43  ;;  %v3355_v0 = vld [vmem:[#allocation2 + $0x88] sm:$0x1]  ;;  %v12688_v29 = vpop.permute.xlu1 %10207  ;;  %v3562_v60 = vrot.slane %v3354_v59, 7  ;;  %v12695_v31 = vpack.c.bf16 %v3286_v16, %v3285_v12  ;;  %v3322_v42 = vld [vmem:[#allocation2 + $0x40] sm:$0x1]  ;;  %v10179_v12 = vunpack.i.l.bf16 %v12573_v39  ;;  %v3271_v16 = vld [vmem:[%s13756_s3 + $0x70] sm:$0xff] }
 0x390   : > { %v10346_v2 = vpack.i.bf16 %v6618_v8, %v6672_v20  ;;  %v3270_v24 = vld [vmem:[%s13756_s3 + $0x68] sm:$0xff]  ;;  %v3564_v23 = vrot.slane %v3355_v0, 6  ;;  %v3323_v56 = vld [vmem:[#allocation2 + $0x80] sm:$0x1]  ;;  %v10174_v20 = vunpack.i.l.bf16 %v12541_v3  ;;  %v3272_v0 = vld [vmem:[%s13756_s3 + $0x78] sm:$0xff]  ;;  %v3457_v14 = vrot.slane %v3322_v42, 7 }
 0x391   : > { %9284 = vmatpush3.bf16.msra.mxu1 %v12630_v15  ;;  %v3356_v7 = vld [vmem:[#allocation2 + $0xc8] sm:$0x1]  ;;  %v3325_v9 = vld [vmem:[#allocation2 + $0x100] sm:$0x1]  ;;  %v12700_v25 = vpop.permute.xlu0 %10212  ;;  %v12703_v59 = vpack.c.bf16 %v3270_v24, %v3269_v49  ;;  %v12715_v49 = vpack.c.bf16 %v3288_v52, %v3287_v1  ;;  %v12722_v28 = vpack.c.bf16 %v3272_v0, %v3271_v16  ;;  %v3419_v16 = vld [vmem:[#allocation2 + $0x98] sm:$0x1] }
 0x392   : > { %10347 = vrot.lane.b32.xlu1 %v10346_v2, %s10416_s17  ;;  %9286 = vmatprep.subr.bf16.mxu1 %v12634_v55  ;;  %v3357_v13 = vld [vmem:[#allocation2 + $0x108] sm:$0x1]  ;;  %v3566_v8 = vrot.slane %v3356_v7, 5  ;;  %v3324_v2 = vld [vmem:[#allocation2 + $0xc0] sm:$0x1]  ;;  %s13711_s17 = scalar_lea.hbm %s13762_s9, %s7750_s26 }
 0x393   : > { %9796 = vmatpush3.bf16.msra.mxu0 %v12630_v15  ;;  %v3353_v45 = vld [vmem:[#allocation2 + $0x8] sm:$0x1]  ;;  %v3568_v48 = vrot.slane %v3357_v13, 4  ;;  %v3327_v62 = vld [vmem:[#allocation2 + $0x180] sm:$0x1]  ;;  %v12720_v19 = vpop.permute.xlu1 %10217  ;;  %13976 = vst [vmem:[#allocation14_spill] sm:$0xff] %v12722_v28 }
 0x394   : > { %v3358_v46 = vld [vmem:[#allocation2 + $0x148] sm:$0x1]  ;;  %9798 = vmatprep.subr.bf16.mxu0 %v12634_v55  ;;  %v3563_v58 = vsel %vm3458_vm2, %v3562_v60, %v3353_v45  ;;  %v3326_v45 = vld [vmem:[#allocation2 + $0x140] sm:$0x1] }
 0x395   : > { %9288 = vmatpush3.bf16.msra.mxu1 %v12655_v32  ;;  %v3359_v63 = vld [vmem:[#allocation2 + $0x188] sm:$0x1]  ;;  %v3570_v35 = vrot.slane %v3358_v46, 3  ;;  %v3565_v7 = vsel %vm3461_vm3, %v3564_v23, %v3563_v58  ;;  %v3321_v60 = vld [vmem:[#allocation2] sm:$0x1]  ;;  %v3460_v23 = vrot.slane %v3323_v56, 6  ;;  %v12739_v0 = vpop.permute.xlu0 %10222 }
 0x396   : > { %v3360_v38 = vld [vmem:[#allocation2 + $0x1c8] sm:$0x1]  ;;  %9290 = vmatprep.subr.bf16.mxu1 %v12670_v11  ;;  %v3572_v13 = vrot.slane %v3359_v63, 2  ;;  %v3567_v24 = vsel %vm3464_vm4, %v3566_v8, %v3565_v7  ;;  %v3463_v63 = vrot.slane %v3324_v2, 5  ;;  %v3466_v58 = vrot.slane %v3325_v9, 4  ;;  %v3305_v52 = vld [vmem:[%s13756_s3 + $0x180] sm:$0xff] }
 0x397   : > { %9800 = vmatpush3.bf16.msra.mxu0 %v12655_v32  ;;  %v3574_v46 = vrot.slane %v3360_v38, 1  ;;  %v3569_v21 = vsel %vm3467_vm5, %v3568_v48, %v3567_v24  ;;  %v3306_v38 = vld [vmem:[%s13756_s3 + $0x188] sm:$0xff]  ;;  %v3459_v8 = vsel %vm3458_vm2, %v3457_v14, %v3321_v60  ;;  %v3469_v48 = vrot.slane %v3326_v45, 3  ;;  %v3418_v14 = vld [vmem:[#allocation2 + $0x58] sm:$0x1] }
 0x398   : > { %9802 = vmatprep.subr.bf16.mxu0 %v12670_v11  ;;  %v3571_v1 = vsel %vm3470_vm6, %v3570_v35, %v3569_v21  ;;  %v3462_v56 = vsel %vm3461_vm3, %v3460_v23, %v3459_v8  ;;  %v3472_v2 = vrot.slane %v3327_v62, 2  ;;  %v3475_v9 = vrot.slane %v3328_v47, 1  ;;  %v3420_v24 = vld [vmem:[#allocation2 + $0xd8] sm:$0x1] }
 0x399   : > { %9292 = vmatpush3.bf16.msra.mxu1 %v12692_v44  ;;  %v3573_v42 = vsel %vm3473_vm7, %v3572_v13, %v3571_v1  ;;  %v3465_v35 = vsel %vm3464_vm4, %v3463_v63, %v3462_v56  ;;  %v10175_v7 = vunpack.i.h.bf16 %v12541_v3  ;;  %v12744_v13 = vpack.c.bf16 %v3306_v38, %v3305_v52  ;;  %v3289_v3 = vld [vmem:[%s13756_s3 + $0x100] sm:$0xff]  ;;  %v3422_v63 = vld [vmem:[#allocation2 + $0x158] sm:$0x1] }
 0x39a   : > { %9294 = vmatprep.subr.bf16.mxu1 %v12695_v31  ;;  %v3575_v21 = vsel %vm3476_vm8, %v3574_v46, %v3573_v42  ;;  %v3468_v45 = vsel %vm3467_vm5, %v3466_v58, %v3465_v35  ;;  %v3421_v46 = vld [vmem:[#allocation2 + $0x118] sm:$0x1]  ;;  %v10180_v60 = vunpack.i.h.bf16 %v12573_v39  ;;  %v13978_v58 = vunpack.i.l.bf16 %v12553_v37  ;;  %v12767_v42 = vpop.permute.xlu1 %10227 }
 0x39b   : > { %9804 = vmatpush3.bf16.msra.mxu0 %v12692_v44  ;;  %v3853_v62 = vsel %vm3192_vm1, %v3575_v21, %v10174_v20  ;;  %13977 = vst [vmem:[#allocation15_spill] sm:$0xff] %v12744_v13  ;;  %v3471_v23 = vsel %vm3470_vm6, %v3469_v48, %v3468_v45  ;;  %v3290_v20 = vld [vmem:[%s13756_s3 + $0x108] sm:$0xff]  ;;  %v3308_v52 = vld [vmem:[%s13756_s3 + $0x198] sm:$0xff]  ;;  %v3758_v8 = vrot.slane %v3418_v14, 7  ;;  %v3760_v48 = vrot.slane %v3419_v16, 6  ;;  %13979 = vst [vmem:[#allocation16_spill] sm:$0xff] %v12767_v42 }
 0x39c   : > { %9806 = vmatprep.subr.bf16.mxu0 %v12695_v31  ;;  %v3854_v47 = vsel %vm3849_vm9, %v3853_v62, %v10179_v12  ;;  %v3474_v39 = vsel %vm3473_vm7, %v3472_v2, %v3471_v23  ;;  %v3307_v12 = vld [vmem:[%s13756_s3 + $0x190] sm:$0xff]  ;;  %v3423_v38 = vld [vmem:[#allocation2 + $0x198] sm:$0x1]  ;;  %v10185_v56 = vunpack.i.h.bf16 %v12553_v37  ;;  %v3762_v62 = vrot.slane %v3420_v24, 5 }
 0x39d   : > { %9296 = vmatpush3.bf16.msra.mxu1 %v12703_v59  ;;  %v3855_v1 = vsel %vm3851_vm10, %v3854_v47, %v13978_v58  ;;  %v3477_v2 = vsel %vm3476_vm8, %v3475_v9, %v3474_v39  ;;  %v3417_v21 = vld [vmem:[#allocation2 + $0x18] sm:$0x1]  ;;  %v3764_v45 = vrot.slane %v3421_v46, 4  ;;  %v12775_v16 = vpack.c.bf16 %v3290_v20, %v3289_v3  ;;  %v3291_v24 = vld [vmem:[%s13756_s3 + $0x110] sm:$0xff]  ;;  %v12788_v46 = vpop.permute.xlu0 %10232  ;;  %v3310_v39 = vld [vmem:[%s13756_s3 + $0x1a8] sm:$0xff] }
 0x39e   : > { %9298 = vmatprep.subr.bf16.mxu1 %v12715_v49  ;;  %3926 = vmatprep.mubr.f32.mxu1 %v3855_v1  ;;  %v3424_v35 = vld [vmem:[#allocation2 + $0x1d8] sm:$0x1]  ;;  %v3848_v14 = vsel %vm3192_vm1, %v3477_v2, %v10175_v7  ;;  %v3759_v47 = vsel %vm3458_vm2, %v3758_v8, %v3417_v21  ;;  %v3766_v23 = vrot.slane %v3422_v63, 3  ;;  %v12779_v58 = vpack.c.bf16 %v3308_v52, %v3307_v12  ;;  %v3309_v63 = vld [vmem:[%s13756_s3 + $0x1a0] sm:$0xff] }
 0x39f   : > { %9808 = vmatpush3.bf16.msra.mxu0 %v12703_v59  ;;  %13980 = vst [vmem:[#allocation17_spill] sm:$0xff] %v12775_v16  ;;  %v3850_v37 = vsel %vm3849_vm9, %v3848_v14, %v10180_v60  ;;  %v3761_v1 = vsel %vm3461_vm3, %v3760_v48, %v3759_v47  ;;  %v3768_v9 = vrot.slane %v3423_v38, 2  ;;  %v3292_v7 = vld [vmem:[%s13756_s3 + $0x118] sm:$0xff]  ;;  %v3770_v20 = vrot.slane %v3424_v35, 1  ;;  %v3311_v47 = vld [vmem:[%s13756_s3 + $0x1b0] sm:$0xff] }
 0x3a0   : > { %9810 = vmatprep.subr.bf16.mxu0 %v12715_v49  ;;  %13981 = vst [vmem:[#allocation18_spill] sm:$0xff] %v12779_v58  ;;  %v3852_v3 = vsel %vm3851_vm10, %v3850_v37, %v10185_v56  ;;  %v3763_v60 = vsel %vm3464_vm4, %v3762_v62, %v3761_v1  ;;  %v10189_v12 = vunpack.i.l.bf16 %v12596_v26  ;;  %v10194_v38 = vunpack.i.l.bf16 %v12622_v33  ;;  %v12806_v56 = vpop.permute.xlu1 %10237  ;;  %v3293_v62 = vld [vmem:[%s13756_s3 + $0x120] sm:$0xff] }
 0x3a1   : > { %9300 = vmatpush3.bf16.msra.mxu1 %v12722_v28  ;;  %v3765_v52 = vsel %vm3467_vm5, %v3764_v45, %v3763_v60  ;;  %v12804_v48 = vpack.c.bf16 %v3292_v7, %v3291_v24  ;;  %v10199_v2 = vunpack.i.l.bf16 %v12642_v17  ;;  %v12811_v35 = vpack.c.bf16 %v3310_v39, %v3309_v63  ;;  %v3294_v45 = vld [vmem:[%s13756_s3 + $0x128] sm:$0xff]  ;;  %v12827_v1 = vpop.permute.xlu0 %10242  ;;  %v3295_v60 = vld [vmem:[%s13756_s3 + $0x130] sm:$0xff]  ;;  %v3313_v63 = vld [vmem:[%s13756_s3 + $0x1c0] sm:$0xff] }
 0x3a2   : > { %9302 = vmatprep.subr.bf16.mxu1 %v12744_v13  ;;  %v3767_v8 = vsel %vm3470_vm6, %v3766_v23, %v3765_v52  ;;  %v3312_v23 = vld [vmem:[%s13756_s3 + $0x1b8] sm:$0xff]  ;;  %v12831_v24 = vpack.c.bf16 %v3294_v45, %v3293_v62  ;;  %v3314_v39 = vld [vmem:[%s13756_s3 + $0x1c8] sm:$0xff]  ;;  %v3386_v52 = vld [vmem:[#allocation2 + $0x50] sm:$0x1] }
 0x3a3   : > { %9812 = vmatpush3.bf16.msra.mxu0 %v12722_v28  ;;  %13982 = vst [vmem:[#allocation19_spill] sm:$0xff] %v12804_v48  ;;  %v3769_v21 = vsel %vm3473_vm7, %v3768_v9, %v3767_v8  ;;  %13983 = vst [vmem:[#allocation20_spill] sm:$0xff] %v12811_v35  ;;  %v3387_v8 = vld [vmem:[#allocation2 + $0x90] sm:$0x1]  ;;  %v3298_v62 = vld [vmem:[%s13756_s3 + $0x148] sm:$0xff]  ;;  %v10234_v28 = vunpack.i.l.bf16 %v12788_v46 }
 0x3a4   : > { %3927 = vmatmul.mubr.f32.vlgmr.msra.gmra.mrb[0].mxu1 %v3852_v3  ;;  %v3771_v14 = vsel %vm3476_vm8, %v3770_v20, %v3769_v21  ;;  %13984 = vst [vmem:[#allocation21_spill] sm:$0xff] %v12831_v24  ;;  %v12837_v3 = vpack.c.bf16 %v3312_v23, %v3311_v47  ;;  %v3296_v20 = vld [vmem:[%s13756_s3 + $0x138] sm:$0xff]  ;;  %v3297_v21 = vld [vmem:[%s13756_s3 + $0x140] sm:$0xff]  ;;  %v3315_v47 = vld [vmem:[%s13756_s3 + $0x1d0] sm:$0xff] }
 0x3a5   : > { %9304 = vmatpush3.bf16.msra.mxu1 %v12775_v16  ;;  %v3859_v37 = vsel %vm3192_vm1, %v3771_v14, %v10189_v12  ;;  %v12852_v12 = vpop.permute.xlu1 %10247  ;;  %v12866_v45 = vpop.permute.xlu0 %10252  ;;  %v3388_v14 = vld [vmem:[#allocation2 + $0xd0] sm:$0x1]  ;;  %v3316_v23 = vld [vmem:[%s13756_s3 + $0x1d8] sm:$0xff] }
 0x3a6   : > { %9306 = vmatprep.subr.bf16.mxu1 %v12779_v58  ;;  %v3860_v9 = vsel %vm3849_vm9, %v3859_v37, %v10194_v38  ;;  %13986 = vst [vmem:[#allocation23_spill] sm:$0xff] %v12837_v3  ;;  %v12855_v38 = vpack.c.bf16 %v3296_v20, %v3295_v60  ;;  %v3389_v37 = vld [vmem:[#allocation2 + $0x110] sm:$0x1]  ;;  %v3660_v60 = vrot.slane %v3386_v52, 7 }
 0x3a7   : > { %v12834_v7 = vsel %vm3851_vm10, %v3860_v9, %v10199_v2  ;;  %v12858_v2 = vpack.c.bf16 %v3314_v39, %v3313_v63  ;;  %v12874_v9 = vld [vmem:[#allocation2 + $0x150] sm:$0x1]  ;;  %v3662_v63 = vrot.slane %v3387_v8, 6  ;;  %v10220_v39 = vunpack.i.h.bf16 %v12720_v19  ;;  %v3300_v8 = vld [vmem:[%s13756_s3 + $0x158] sm:$0xff] }
 0x3a8   : > { %13985 = vst [vmem:[#allocation22_spill] sm:$0xff] %v12834_v7  ;;  %3996 = vmatprep.mubr.f32.mxu1 %v12834_v7  ;;  %13987 = vst [vmem:[#allocation24_spill] sm:$0xff] %v12855_v38  ;;  %v12876_v20 = vld [vmem:[#allocation2 + $0x190] sm:$0x1]  ;;  %v12880_v7 = vpack.c.bf16 %v3298_v62, %v3297_v21  ;;  %v3668_v21 = vrot.slane %v12874_v9, 3  ;;  %v10225_v62 = vunpack.i.h.bf16 %v12739_v0  ;;  %v10230_v9 = vunpack.i.h.bf16 %v12767_v42 }
 0x3a9   : > { %9308 = vmatpush3.bf16.msra.mxu1 %v12804_v48  ;;  %13988 = vst [vmem:[#allocation25_spill] sm:$0xff] %v12858_v2  ;;  %v12882_v10 = vpop.permute.xlu1 %10257  ;;  %v3299_v52 = vld [vmem:[%s13756_s3 + $0x150] sm:$0xff]  ;;  %v3666_v48 = vrot.slane %v3389_v37, 4  ;;  %v10190_v37 = vunpack.i.h.bf16 %v12596_v26  ;;  %v12906_v58 = vpop.permute.xlu0 %10262  ;;  %v4288_v13 = vsel %vm3192_vm1, %v12162_v50, %v10220_v39  ;;  %v10239_v26 = vunpack.i.l.bf16 %v12806_v56  ;;  %v3301_v50 = vld [vmem:[%s13756_s3 + $0x160] sm:$0xff] }
 0x3aa   : > { %9310 = vmatprep.subr.bf16.mxu1 %v12811_v35  ;;  %13989 = vst [vmem:[#allocation26_spill] sm:$0xff] %v12880_v7  ;;  %v3385_v35 = vld [vmem:[#allocation2 + $0x10] sm:$0x1]  ;;  %13991 = vst [vmem:[#allocation28_spill] sm:$0xff] %v12906_v58  ;;  %v12913_v54 = vpack.c.bf16 %v3300_v8, %v3299_v52  ;;  %v3320_v8 = vld [vmem:[%s13756_s3 + $0x1f8] sm:$0xff]  ;;  %v10195_v42 = vunpack.i.h.bf16 %v12622_v33  ;;  %v4717_v33 = vsel %vm3192_vm1, %v12186_v61, %v10234_v28 }
 0x3ab   : > { %v3319_v52 = vld [vmem:[%s13756_s3 + $0x1f0] sm:$0xff] }
 0x3ad   : > { %9312 = vmatpush3.bf16.msra.mxu1 %v12831_v24  ;;  %v12885_v24 = vpack.c.bf16 %v3316_v23, %v3315_v47  ;;  %v3317_v47 = vld [vmem:[%s13756_s3 + $0x1e0] sm:$0xff]  ;;  %v3318_v23 = vld [vmem:[%s13756_s3 + $0x1e8] sm:$0xff]  ;;  %v12931_v39 = vpop.permute.xlu1 %10267 }
 0x3ae   : > { %9314 = vmatprep.subr.bf16.mxu1 %v12837_v3  ;;  %v3664_v3 = vrot.slane %v3388_v14, 5  ;;  %v10235_v14 = vunpack.i.h.bf16 %v12788_v46  ;;  %v12919_v58 = vpack.c.bf16 %v3318_v23, %v3317_v47  ;;  %v3302_v46 = vld [vmem:[%s13756_s3 + $0x168] sm:$0xff]  ;;  %13992 = vst [vmem:[#allocation29_spill] sm:$0xff] %v12931_v39  ;;  %v4289_v47 = vsel %vm3849_vm9, %v4288_v13, %v10225_v62 }
 0x3af   : > { %13990 = vst [vmem:[#allocation27_spill] sm:$0xff] %v12885_v24  ;;  %v12949_v27 = vpack.c.bf16 %v3302_v46, %v3301_v50  ;;  %v12952_v13 = vpack.c.bf16 %v3320_v8, %v3319_v52  ;;  %v10204_v52 = vunpack.i.l.bf16 %v12666_v5  ;;  %v10250_v8 = vunpack.i.h.bf16 %v12852_v12 }
 0x3b1   : > { %9316 = vmatpush3.bf16.msra.mxu1 %v12855_v38  ;;  %v3670_v38 = vrot.slane %v12876_v20, 2  ;;  %v10249_v20 = vunpack.i.l.bf16 %v12852_v12  ;;  %v10260_v12 = vunpack.i.h.bf16 %v12882_v10 }
 0x3b2   : > { %9318 = vmatprep.subr.bf16.mxu1 %v12858_v2  ;;  %v3661_v2 = vsel %vm3458_vm2, %v3660_v60, %v3385_v35  ;;  %v3392_v35 = vld [vmem:[#allocation2 + $0x1d0] sm:$0x1]  ;;  %v10240_v60 = vunpack.i.h.bf16 %v12806_v56  ;;  %v10254_v56 = vunpack.i.l.bf16 %v12866_v45 }
 0x3b3   : > { %v3663_v16 = vsel %vm3461_vm3, %v3662_v63, %v3661_v2  ;;  %v4714_v2 = vsel %vm3192_vm1, %v12178_v57, %v10235_v14  ;;  %v10245_v63 = vunpack.i.h.bf16 %v12827_v1  ;;  %v10244_v57 = vunpack.i.l.bf16 %v12827_v1  ;;  %v3304_v1 = vld [vmem:[%s13756_s3 + $0x178] sm:$0xff] }
 0x3b4   : > { %v3665_v23 = vsel %vm3464_vm4, %v3664_v3, %v3663_v16  ;;  %v10259_v14 = vunpack.i.l.bf16 %v12882_v10  ;;  %v3672_v39 = vrot.slane %v3392_v35, 1  ;;  %v3303_v16 = vld [vmem:[%s13756_s3 + $0x170] sm:$0xff]  ;;  %v4715_v3 = vsel %vm3849_vm9, %v4714_v2, %v10240_v60  ;;  %v12986_v60 = vpop.permute.xlu1 %10277 }
 0x3b5   : > { %9320 = vmatpush3.bf16.msra.mxu1 %v12880_v7  ;;  %v3667_v7 = vsel %vm3467_vm5, %v3666_v48, %v3665_v23  ;;  %v12960_v48 = vpop.permute.xlu0 %10272  ;;  %v4723_v62 = vsel %vm3192_vm1, %v12202_v22, %v10249_v20  ;;  %v4718_v35 = vsel %vm3849_vm9, %v4717_v33, %v10239_v26  ;;  %v12970_v50 = vsel %vm3851_vm10, %v4715_v3, %v10245_v63 }
 0x3b6   : > { %9322 = vmatprep.subr.bf16.mxu1 %v12885_v24  ;;  %v12944_v24 = vsel %vm3851_vm10, %v4289_v47, %v10230_v9  ;;  %v3669_v9 = vsel %vm3470_vm6, %v3668_v21, %v3667_v7  ;;  %v4724_v46 = vsel %vm3849_vm9, %v4723_v62, %v10254_v56  ;;  %v12976_v61 = vsel %vm3851_vm10, %v4718_v35, %v10244_v57 }
 0x3b7   : > { %v12979_v28 = vsel %vm3851_vm10, %v4724_v46, %v10259_v14  ;;  %v3671_v22 = vsel %vm3473_vm7, %v3670_v38, %v3669_v9  ;;  %v10255_v7 = vunpack.i.h.bf16 %v12866_v45  ;;  %v12984_v21 = vpack.c.bf16 %v3304_v1, %v3303_v16 }
 0x3b8   : > { %v3673_v26 = vsel %vm3476_vm8, %v3672_v39, %v3671_v22  ;;  %v10200_v2 = vunpack.i.h.bf16 %v12642_v17  ;;  %v10209_v38 = vunpack.i.l.bf16 %v12688_v29  ;;  %v10214_v45 = vunpack.i.l.bf16 %v12700_v25 }
 0x3b9   : > { %9324 = vmatpush3.bf16.msra.mxu1 %v12913_v54  ;;  %v3856_v20 = vsel %vm3192_vm1, %v3673_v26, %v10190_v37  ;;  %v4720_v63 = vsel %vm3192_vm1, %v12198_v51, %v10250_v8  ;;  %v4285_v39 = vsel %vm3192_vm1, %v12154_v40, %v10204_v52  ;;  %v4901_v26 = vld [vmem:[#allocation2 + $0xe8] sm:$0x1] }
 0x3ba   : > { %9326 = vmatprep.subr.bf16.mxu1 %v12919_v58  ;;  %v3857_v56 = vsel %vm3849_vm9, %v3856_v20, %v10195_v42  ;;  %v13000_v47 = vpop.permute.xlu0 %10282  ;;  %v4721_v10 = vsel %vm3849_vm9, %v4720_v63, %v10255_v7  ;;  %v4286_v51 = vsel %vm3849_vm9, %v4285_v39, %v10209_v38  ;;  %v13012_v42 = vpop.permute.xlu1 %10287  ;;  %v4900_v7 = vld [vmem:[#allocation2 + $0xa8] sm:$0x1]  ;;  %v10219_v38 = vunpack.i.l.bf16 %v12720_v19 }
 0x3bb   : > { %v13006_v17 = vsel %vm3851_vm10, %v4721_v10, %v10260_v12  ;;  %v13009_v37 = vsel %vm3851_vm10, %v3857_v56, %v10200_v2  ;;  %v4287_v40 = vsel %vm3851_vm10, %v4286_v51, %v10214_v45  ;;  %v10205_v12 = vunpack.i.h.bf16 %v12666_v5  ;;  %v4902_v20 = vld [vmem:[#allocation2 + $0x128] sm:$0x1]  ;;  %v13995_v5 = vld [vmem:[#allocation6_spill] sm:$0xff] }
 0x3bc   : > { %v4903_v45 = vld [vmem:[#allocation2 + $0x168] sm:$0x1]  ;;  %v5038_v63 = vrot.slane %v4900_v7, 6  ;;  %v10224_v56 = vunpack.i.l.bf16 %v12739_v0  ;;  %v5040_v10 = vrot.slane %v4901_v26, 5  ;;  %v10210_v51 = vunpack.i.h.bf16 %v12688_v29  ;;  %v13996_v0 = vld [vmem:[#allocation16_spill] sm:$0xff]  ;;  %v14000_v26 = vld [vmem:[#allocation15_spill] sm:$0xff] }
 0x3bd   : > { %9328 = vmatpush3.bf16.msra.mxu1 %v12949_v27  ;;  %v4904_v39 = vld [vmem:[#allocation2 + $0x1a8] sm:$0x1]  ;;  %v10215_v19 = vunpack.i.h.bf16 %v12700_v25 }
 0x3be   : > { %9330 = vmatprep.subr.bf16.mxu1 %v12952_v13  ;;  %v10293_v23 = vpop.permute.xlu0 %10292 }
 0x3bf   : > { %v10295_v14 = vunpack.i.h.bf16 %v10293_v23  ;;  %v10294_v16 = vunpack.i.l.bf16 %v10293_v23  ;;  %v4905_v23 = vld [vmem:[#allocation2 + $0x1e8] sm:$0x1] }
 0x3c1   : > { %9332 = vmatpush3.bf16.msra.mxu1 %v12984_v21  ;;  %v5698_v3 = vsel %vm3192_vm1, %v12374_v6, %v10295_v14  ;;  %v5701_v62 = vsel %vm3192_vm1, %v12383_v18, %v10294_v16  ;;  %v4899_v18 = vld [vmem:[#allocation2 + $0x68] sm:$0x1]  ;;  %v4282_v14 = vsel %vm3192_vm1, %v13995_v5, %v10205_v12 }
 0x3c2   : > { %9334 = vmatprep.subr.bf16.mxu1 %v12515_v41  ;;  %v10298_v57 = vpop.permute.xlu1 %10297  ;;  %v5036_v2 = vrot.slane %v4899_v18, 7  ;;  %v13999_v18 = vld [vmem:[#allocation28_spill] sm:$0xff]  ;;  %v4283_v7 = vsel %vm3849_vm9, %v4282_v14, %v10210_v51  ;;  %v14004_v14 = vld [vmem:[#allocation19_spill] sm:$0xff] }
 0x3c3   : > { %v10300_v1 = vunpack.i.h.bf16 %v10298_v57  ;;  %v10299_v33 = vunpack.i.l.bf16 %v10298_v57  ;;  %v5042_v57 = vrot.slane %v4902_v20, 4  ;;  %v10264_v25 = vunpack.i.l.bf16 %v13999_v18  ;;  %v14001_v20 = vld [vmem:[#allocation29_spill] sm:$0xff] }
 0x3c4   : > { %3997 = vmatmul.mubr.f32.vlgmr.msra.gmra.mrb[2].mxu1 %v13009_v37 }
 0x3c5   : > { %9336 = vmatpush3.bf16.msra.mxu1 %v12517_v53  ;;  %4358 = vmatprep.mubr.f32.mxu1 %v4287_v40  ;;  %v5702_v52 = vsel %vm3849_vm9, %v5701_v62, %v10299_v33  ;;  %v5699_v8 = vsel %vm3849_vm9, %v5698_v3, %v10300_v1  ;;  %v4898_v40 = vld [vmem:[#allocation2 + $0x28] sm:$0x1]  ;;  %v5044_v1 = vrot.slane %v4903_v45, 3  ;;  %v10229_v33 = vunpack.i.l.bf16 %v13996_v0  ;;  %v13997_v3 = vld [vmem:[#allocation7_spill] sm:$0xff]  ;;  %v4867_v0 = vld [vmem:[#allocation2 + $0x60] sm:$0x1] }
 0x3c6   : > { %9338 = vmatprep.subr.bf16.mxu1 %v12558_v36  ;;  %v5037_v16 = vsel %vm3458_vm2, %v5036_v2, %v4898_v40  ;;  %v4291_v62 = vsel %vm3192_vm1, %v13997_v3, %v10219_v38  ;;  %v10269_v2 = vunpack.i.l.bf16 %v14001_v20  ;;  %v4284_v38 = vsel %vm3851_vm10, %v4283_v7, %v10215_v19  ;;  %v14003_v40 = vld [vmem:[#allocation18_spill] sm:$0xff]  ;;  %v14005_v19 = vld [vmem:[#allocation20_spill] sm:$0xff] }
 0x3c7   : > { %v5039_v29 = vsel %vm3461_vm3, %v5038_v63, %v5037_v16  ;;  %v10274_v63 = vunpack.i.l.bf16 %v12960_v48  ;;  %v14006_v16 = vld [vmem:[#allocation21_spill] sm:$0xff]  ;;  %v14008_v3 = vld [vmem:[#allocation24_spill] sm:$0xff] }
 0x3c9   : > { %9340 = vmatpush3.bf16.msra.mxu1 %v12560_v4 }
 0x3ca   : > { %9342 = vmatprep.subr.bf16.mxu1 %v12603_v30  ;;  %v10303_v9 = vpop.permute.xlu0 %10302 }
 0x3cb   : > { %v10305_v35 = vunpack.i.h.bf16 %v10303_v9  ;;  %v10304_v46 = vunpack.i.l.bf16 %v10303_v9  ;;  %v5046_v9 = vrot.slane %v4904_v39, 2 }
 0x3cd   : > { %9344 = vmatpush3.bf16.msra.mxu1 %v12612_v34  ;;  %v13030_v22 = vsel %vm3851_vm10, %v5702_v52, %v10304_v46  ;;  %v13033_v6 = vsel %vm3851_vm10, %v5699_v8, %v10305_v35  ;;  %v13998_v35 = vld [vmem:[#allocation14_spill] sm:$0xff]  ;;  %v4292_v46 = vsel %vm3849_vm9, %v4291_v62, %v10224_v56  ;;  %v5041_v52 = vsel %vm3464_vm4, %v5040_v10, %v5039_v29  ;;  %v14002_v10 = vld [vmem:[#allocation17_spill] sm:$0xff]  ;;  %v4869_v62 = vld [vmem:[#allocation2 + $0xe0] sm:$0x1] }
 0x3ce   : > { %9346 = vmatprep.subr.bf16.mxu1 %v12614_v43  ;;  %13993 = vst [vmem:[#allocation30_spill] sm:$0xff] %v13030_v22  ;;  %13994 = vst [vmem:[#allocation31_spill] sm:$0xff] %v13033_v6  ;;  %6746 = vmatprep.mubr.f32.mxu0 %v13030_v22  ;;  %v5048_v8 = vrot.slane %v4905_v23, 1  ;;  %v5043_v12 = vsel %vm3467_vm5, %v5042_v57, %v5041_v52  ;;  %v13068_v56 = vsel %vm3851_vm10, %v4292_v46, %v10229_v33  ;;  %v4868_v33 = vld [vmem:[#allocation2 + $0xa0] sm:$0x1]  ;;  %v14009_v29 = vld [vmem:[#allocation25_spill] sm:$0xff] }
 0x3cf   : > { %6747 = vmatmul.mubr.f32.vlgmr.msra.gmra.mrb[64].mxu0 %v13033_v6  ;;  %v5045_v45 = vsel %vm3470_vm6, %v5044_v1, %v5043_v12  ;;  %v14007_v1 = vld [vmem:[#allocation23_spill] sm:$0xff]  ;;  %v4938_v46 = vrot.slane %v4867_v0, 7  ;;  %v4871_v52 = vld [vmem:[#allocation2 + $0x160] sm:$0x1]  ;;  %v4942_v7 = vrot.slane %v4869_v62, 5  ;;  %v14010_v12 = vld [vmem:[#allocation26_spill] sm:$0xff]  ;;  %v10265_v62 = vunpack.i.h.bf16 %v13999_v18 }
 0x3d0   : > { %v5047_v39 = vsel %vm3473_vm7, %v5046_v9, %v5045_v45  ;;  %v4870_v9 = vld [vmem:[#allocation2 + $0x120] sm:$0x1] }
 0x3d1   : > { %9348 = vmatpush3.bf16.msra.mxu1 %v12630_v15  ;;  %v5049_v51 = vsel %vm3476_vm8, %v5048_v8, %v5047_v39  ;;  %v4940_v8 = vrot.slane %v4868_v33, 6  ;;  %v4873_v45 = vld [vmem:[#allocation2 + $0x1e0] sm:$0x1] }
 0x3d2   : > { %9350 = vmatprep.subr.bf16.mxu1 %v12634_v55  ;;  %v5129_v23 = vsel %vm3192_vm1, %v5049_v51, %v10264_v25  ;;  %v4872_v25 = vld [vmem:[#allocation2 + $0x1a0] sm:$0x1]  ;;  %v4946_v51 = vrot.slane %v4871_v52, 3  ;;  %v4950_v0 = vrot.slane %v4873_v45, 1  ;;  %v10285_v45 = vunpack.i.h.bf16 %v13000_v47 }
 0x3d3   : > { %v5130_v57 = vsel %vm3849_vm9, %v5129_v23, %v10269_v2  ;;  %v4866_v2 = vld [vmem:[#allocation2 + $0x20] sm:$0x1] }
 0x3d4   : > { %v13078_v5 = vsel %vm3851_vm10, %v5130_v57, %v10274_v63  ;;  %v14011_v63 = vld [vmem:[#allocation27_spill] sm:$0xff]  ;;  %v4939_v39 = vsel %vm3458_vm2, %v4938_v46, %v4866_v2  ;;  %v4948_v57 = vrot.slane %v4872_v25, 2  ;;  %v10270_v46 = vunpack.i.h.bf16 %v14001_v20  ;;  %v14012_v20 = vld [vmem:[#allocation9_spill] sm:$0xff] }
 0x3d5   : > { %9352 = vmatpush3.bf16.msra.mxu1 %v12655_v32  ;;  %v4941_v23 = vsel %vm3461_vm3, %v4940_v8, %v4939_v39  ;;  %v10275_v25 = vunpack.i.h.bf16 %v12960_v48  ;;  %v10279_v48 = vunpack.i.l.bf16 %v12986_v60  ;;  %v10290_v39 = vunpack.i.h.bf16 %v13012_v42 }
 0x3d6   : > { %9354 = vmatprep.subr.bf16.mxu1 %v12670_v11  ;;  %v4943_v6 = vsel %vm3464_vm4, %v4942_v7, %v4941_v23 }
 0x3d7   : > { %v5415_v7 = vsel %vm3192_vm1, %v14012_v20, %v10279_v48  ;;  %v14015_v20 = vld [vmem:[#allocation30_spill] sm:$0xff] }
 0x3d9   : > { %9356 = vmatpush3.bf16.msra.mxu1 %v12692_v44 }
 0x3da   : > { %9358 = vmatprep.subr.bf16.mxu1 %v12695_v31 }
 0x3dd   : > { %9360 = vmatpush3.bf16.msra.mxu1 %v12703_v59 }
 0x3de   : > { %9362 = vmatprep.subr.bf16.mxu1 %v12715_v49 }
 0x3e1   : > { %9364 = vmatpush3.bf16.msra.mxu1 %v13998_v35 }
 0x3e2   : > { %9366 = vmatprep.subr.bf16.mxu1 %v14000_v26 }
 0x3e4   : > { %4359 = vmatmul.mubr.f32.vlgmr.msra.gmra.mrb[4].mxu1 %v4284_v38  ;;  %v4944_v38 = vrot.slane %v4870_v9, 4 }
 0x3e5   : > { %9368 = vmatpush3.bf16.msra.mxu1 %v14002_v10  ;;  %4428 = vmatprep.mubr.f32.mxu1 %v13068_v56 }
 0x3e6   : > { %9370 = vmatprep.subr.bf16.mxu1 %v14003_v40  ;;  %v4945_v33 = vsel %vm3467_vm5, %v4944_v38, %v4943_v6 }
 0x3e7   : > { %v4947_v9 = vsel %vm3470_vm6, %v4946_v51, %v4945_v33  ;;  %v14013_v51 = vld [vmem:[#allocation8_spill] sm:$0xff] }
 0x3e8   : > { %v4949_v22 = vsel %vm3473_vm7, %v4948_v57, %v4947_v9 }
 0x3e9   : > { %9372 = vmatpush3.bf16.msra.mxu1 %v14004_v14  ;;  %v4951_v52 = vsel %vm3476_vm8, %v4950_v0, %v4949_v22  ;;  %v10289_v22 = vunpack.i.l.bf16 %v13012_v42 }
 0x3ea   : > { %9374 = vmatprep.subr.bf16.mxu1 %v14005_v19  ;;  %v5126_v8 = vsel %vm3192_vm1, %v4951_v52, %v10265_v62 }
 0x3eb   : > { %v5127_v6 = vsel %vm3849_vm9, %v5126_v8, %v10270_v46 }
 0x3ec   : > { %v13107_v18 = vsel %vm3851_vm10, %v5127_v6, %v10275_v25 }
 0x3ed   : > { %9376 = vmatpush3.bf16.msra.mxu1 %v14006_v16 }
 0x3ee   : > { %9378 = vmatprep.subr.bf16.mxu1 %v14007_v1 }
 0x3f1   : > { %9380 = vmatpush3.bf16.msra.mxu1 %v14008_v3 }
 0x3f2   : > { %9382 = vmatprep.subr.bf16.mxu1 %v14009_v29 }
 0x3f5   : > { %9384 = vmatpush3.bf16.msra.mxu1 %v14010_v12 }
 0x3f6   : > { %9386 = vmatprep.subr.bf16.mxu1 %v14011_v63 }
 0x3f9   : > { %9388 = vmatpush3.bf16.msra.mxu1 %v12913_v54 }
 0x3fa   : > { %9390 = vmatprep.subr.bf16.mxu1 %v12919_v58 }
 0x3fd   : > { %9392 = vmatpush3.bf16.msra.mxu1 %v12949_v27 }
 0x3fe   : > { %9394 = vmatprep.subr.bf16.mxu1 %v12952_v13 }
 0x401   : > { %9396 = vmatpush3.bf16.msra.mxu1 %v12984_v21 }
 0x402   : > { %9398 = vmatprep.subr.bf16.mxu1 %v12515_v41 }
 0x404   : > { %4429 = vmatmul.mubr.f32.vlgmr.msra.gmra.mrb[6].mxu1 %v12944_v24 }
 0x405   : > { %9400 = vmatpush3.bf16.msra.mxu1 %v12517_v53  ;;  %4790 = vmatprep.mubr.f32.mxu1 %v12976_v61  ;;  %v10284_v61 = vunpack.i.l.bf16 %v13000_v47 }
 0x406   : > { %9402 = vmatprep.subr.bf16.mxu1 %v12558_v36 }
 0x407   : > { %v5416_v2 = vsel %vm3849_vm9, %v5415_v7, %v10284_v61 }
 0x408   : > { %v13138_v38 = vsel %vm3851_vm10, %v5416_v2, %v10289_v22 }
 0x409   : > { %9404 = vmatpush3.bf16.msra.mxu1 %v12560_v4 }
 0x40a   : > { %9406 = vmatprep.subr.bf16.mxu1 %v12603_v30 }
 0x40d   : > { %9408 = vmatpush3.bf16.msra.mxu1 %v12612_v34 }
 0x40e   : > { %9410 = vmatprep.subr.bf16.mxu1 %v12614_v43 }
 0x411   : > { %9412 = vmatpush3.bf16.msra.mxu1 %v12630_v15 }
 0x412   : > { %9414 = vmatprep.subr.bf16.mxu1 %v12634_v55 }
 0x415   : > { %9416 = vmatpush3.bf16.msra.mxu1 %v12655_v32 }
 0x416   : > { %9418 = vmatprep.subr.bf16.mxu1 %v12670_v11 }
 0x419   : > { %9420 = vmatpush3.bf16.msra.mxu1 %v12692_v44 }
 0x41a   : > { %9422 = vmatprep.subr.bf16.mxu1 %v12695_v31 }
 0x41d   : > { %9424 = vmatpush3.bf16.msra.mxu1 %v12703_v59 }
 0x41e   : > { %9426 = vmatprep.subr.bf16.mxu1 %v12715_v49 }
 0x421   : > { %9428 = vmatpush3.bf16.msra.mxu1 %v13998_v35 }
 0x422   : > { %9430 = vmatprep.subr.bf16.mxu1 %v14000_v26 }
 0x424   : > { %4791 = vmatmul.mubr.f32.vlgmr.msra.gmra.mrb[8].mxu1 %v12970_v50  ;;  %v10280_v50 = vunpack.i.h.bf16 %v12986_v60  ;;  %v14014_v60 = vld [vmem:[#allocation22_spill] sm:$0xff] }
 0x425   : > { %9432 = vmatpush3.bf16.msra.mxu1 %v14002_v10  ;;  %4860 = vmatprep.mubr.f32.mxu1 %v12979_v28 }
 0x426   : > { %9434 = vmatprep.subr.bf16.mxu1 %v14003_v40  ;;  %v5412_v23 = vsel %vm3192_vm1, %v14013_v51, %v10280_v50  ;;  %v14016_v50 = vld [vmem:[#allocation31_spill] sm:$0xff] }
 0x427   : > { %v5413_v57 = vsel %vm3849_vm9, %v5412_v23, %v10285_v45  ;;  %v5877_v45 = vld [vmem:[#allocation2 + $0x78] sm:$0x1] }
 0x428   : > { %v13157_v0 = vsel %vm3851_vm10, %v5413_v57, %v10290_v39  ;;  %v5878_v39 = vld [vmem:[#allocation2 + $0xb8] sm:$0x1]  ;;  %v6014_v23 = vrot.slane %v5877_v45, 7 }
 0x429   : > { %9436 = vmatpush3.bf16.msra.mxu1 %v14004_v14  ;;  %v5879_v51 = vld [vmem:[#allocation2 + $0xf8] sm:$0x1] }
 0x42a   : > { %9438 = vmatprep.subr.bf16.mxu1 %v14005_v19  ;;  %v5881_v57 = vld [vmem:[#allocation2 + $0x178] sm:$0x1] }
 0x42d   : > { %9440 = vmatpush3.bf16.msra.mxu1 %v14006_v16 }
 0x42e   : > { %9442 = vmatprep.subr.bf16.mxu1 %v14007_v1 }
 0x431   : > { %9444 = vmatpush3.bf16.msra.mxu1 %v14008_v3 }
 0x432   : > { %9446 = vmatprep.subr.bf16.mxu1 %v14009_v29 }
 0x435   : > { %9448 = vmatpush3.bf16.msra.mxu1 %v14010_v12 }
 0x436   : > { %9450 = vmatprep.subr.bf16.mxu1 %v14011_v63 }
 0x439   : > { %9452 = vmatpush3.bf16.msra.mxu1 %v12913_v54 }
 0x43a   : > { %9454 = vmatprep.subr.bf16.mxu1 %v12919_v58 }
 0x43d   : > { %9456 = vmatpush3.bf16.msra.mxu1 %v12949_v27 }
 0x43e   : > { %9458 = vmatprep.subr.bf16.mxu1 %v12952_v13 }
 0x441   : > { %9460 = vmatpush3.bf16.msra.mxu1 %v12984_v21 }
 0x442   : > { %9462 = vmatprep.subr.bf16.mxu1 %v12515_v41 }
 0x444   : > { %4861 = vmatmul.mubr.f32.vlgmr.msra.gmra.mrb[10].mxu1 %v13006_v17 }
 0x445   : > { %9464 = vmatpush3.bf16.msra.mxu1 %v12517_v53  ;;  %5196 = vmatprep.mubr.f32.mxu1 %v14014_v60  ;;  %v6016_v60 = vrot.slane %v5878_v39, 6 }
 0x446   : > { %9466 = vmatprep.subr.bf16.mxu1 %v12558_v36 }
 0x449   : > { %9468 = vmatpush3.bf16.msra.mxu1 %v12560_v4 }
 0x44a   : > { %9470 = vmatprep.subr.bf16.mxu1 %v12603_v30 }
 0x44d   : > { %9472 = vmatpush3.bf16.msra.mxu1 %v12612_v34 }
 0x44e   : > { %9474 = vmatprep.subr.bf16.mxu1 %v12614_v43 }
 0x451   : > { %9476 = vmatpush3.bf16.msra.mxu1 %v12630_v15 }
 0x452   : > { %9478 = vmatprep.subr.bf16.mxu1 %v12634_v55 }
 0x455   : > { %9480 = vmatpush3.bf16.msra.mxu1 %v12655_v32 }
 0x456   : > { %9482 = vmatprep.subr.bf16.mxu1 %v12670_v11 }
 0x459   : > { %9484 = vmatpush3.bf16.msra.mxu1 %v12692_v44 }
 0x45a   : > { %9486 = vmatprep.subr.bf16.mxu1 %v12695_v31 }
 0x45d   : > { %9488 = vmatpush3.bf16.msra.mxu1 %v12703_v59 }
 0x45e   : > { %9490 = vmatprep.subr.bf16.mxu1 %v12715_v49 }
 0x461   : > { %9492 = vmatpush3.bf16.msra.mxu1 %v13998_v35 }
 0x462   : > { %9494 = vmatprep.subr.bf16.mxu1 %v14000_v26 }
 0x464   : > { %5197 = vmatmul.mubr.f32.vlgmr.msra.gmra.mrb[12].mxu1 %v13009_v37 }
 0x465   : > { %9496 = vmatpush3.bf16.msra.mxu1 %v14002_v10  ;;  %5266 = vmatprep.mubr.f32.mxu1 %v13078_v5 }
 0x466   : > { %9498 = vmatprep.subr.bf16.mxu1 %v14003_v40 }
 0x469   : > { %9500 = vmatpush3.bf16.msra.mxu1 %v14004_v14 }
 0x46a   : > { %9502 = vmatprep.subr.bf16.mxu1 %v14005_v19 }
 0x46d   : > { %9504 = vmatpush3.bf16.msra.mxu1 %v14006_v16 }
 0x46e   : > { %9506 = vmatprep.subr.bf16.mxu1 %v14007_v1 }
 0x471   : > { %9508 = vmatpush3.bf16.msra.mxu1 %v14008_v3 }
 0x472   : > { %9510 = vmatprep.subr.bf16.mxu1 %v14009_v29 }
 0x475   : > { %9512 = vmatpush3.bf16.msra.mxu1 %v14010_v12 }
 0x476   : > { %9514 = vmatprep.subr.bf16.mxu1 %v14011_v63 }
 0x477   : > { %v8065_v47 = vpop.f32.mrb[0].mxu1 }
 0x478   : > { %v8066_v37 = vpop.f32.mrb[1].mxu1 }
 0x479   : > { %v8067_v42 = vadd.f32 %v8066_v37, %v8065_v47  ;;  %9516 = vmatpush3.bf16.msra.mxu1 %v12913_v54  ;;  %v13288_v47 = vpop.permute.xlu1 %10307 }
 0x47a   : > { %9518 = vmatprep.subr.bf16.mxu1 %v12919_v58 }
 0x47d   : > { %9520 = vmatpush3.bf16.msra.mxu1 %v12949_v27  ;;  %v13302_v39 = vpop.permute.xlu1 %10317 }
 0x47e   : > { %9522 = vmatprep.subr.bf16.mxu1 %v12952_v13 }
 0x481   : > { %9524 = vmatpush3.bf16.msra.mxu1 %v12984_v21 }
 0x482   : > { %9526 = vmatprep.subr.bf16.mxu1 %v12515_v41 }
 0x484   : > { %5267 = vmatmul.mubr.f32.vlgmr.msra.gmra.mrb[14].mxu1 %v13107_v18 }
 0x485   : > { %9528 = vmatpush3.bf16.msra.mxu1 %v12517_v53  ;;  %5482 = vmatprep.mubr.f32.mxu1 %v13068_v56 }
 0x486   : > { %9530 = vmatprep.subr.bf16.mxu1 %v12558_v36 }
 0x489   : > { %9532 = vmatpush3.bf16.msra.mxu1 %v12560_v4 }
 0x48a   : > { %9534 = vmatprep.subr.bf16.mxu1 %v12603_v30 }
 0x48d   : > { %9536 = vmatpush3.bf16.msra.mxu1 %v12612_v34 }
 0x48e   : > { %9538 = vmatprep.subr.bf16.mxu1 %v12614_v43 }
 0x491   : > { %9540 = vmatpush3.bf16.msra.mxu1 %v12630_v15 }
 0x492   : > { %9542 = vmatprep.subr.bf16.mxu1 %v12634_v55 }
 0x495   : > { %9544 = vmatpush3.bf16.msra.mxu1 %v12655_v32 }
 0x496   : > { %9546 = vmatprep.subr.bf16.mxu1 %v12670_v11 }
 0x497   : > { %v8100_v33 = vpop.f32.mrb[2].mxu1 }
 0x498   : > { %v8101_v56 = vpop.f32.mrb[3].mxu1 }
 0x499   : > { %v8102_v62 = vadd.f32 %v8101_v56, %v8100_v33  ;;  %9548 = vmatpush3.bf16.msra.mxu1 %v12692_v44  ;;  %v6018_v33 = vrot.slane %v5879_v51, 5 }
 0x49a   : > { %9550 = vmatprep.subr.bf16.mxu1 %v12695_v31 }
 0x49b   : > { %v13213_v9 = vadd.f32 %v8102_v62, %v8067_v42  ;;  %v5882_v42 = vld [vmem:[#allocation2 + $0x1b8] sm:$0x1] }
 0x49c   : > { %v5876_v62 = vld [vmem:[#allocation2 + $0x38] sm:$0x1] }
 0x49d   : > { %9552 = vmatpush3.bf16.msra.mxu1 %v12703_v59 }
 0x49e   : > { %9554 = vmatprep.subr.bf16.mxu1 %v12715_v49 }
 0x4a1   : > { %9556 = vmatpush3.bf16.msra.mxu1 %v13998_v35 }
 0x4a2   : > { %9558 = vmatprep.subr.bf16.mxu1 %v14000_v26  ;;  %v8625_v46 = vpop.f32.mrb[64].mxu0 }
 0x4a3   : > { %v8626_v52 = vpop.f32.mrb[65].mxu0 }
 0x4a4   : > { %5483 = vmatmul.mubr.f32.vlgmr.msra.gmra.mrb[16].mxu1 %v12944_v24  ;;  %v13223_v8 = vadd.f32 %v8626_v52, %v8625_v46  ;;  %v5883_v46 = vld [vmem:[#allocation2 + $0x1f8] sm:$0x1] }
 0x4a5   : > { %9560 = vmatpush3.bf16.msra.mxu1 %v14002_v10  ;;  %5552 = vmatprep.mubr.f32.mxu1 %v13138_v38 }
 0x4a6   : > { %9562 = vmatprep.subr.bf16.mxu1 %v14003_v40 }
 0x4a9   : > { %9564 = vmatpush3.bf16.msra.mxu1 %v14004_v14 }
 0x4aa   : > { %9566 = vmatprep.subr.bf16.mxu1 %v14005_v19 }
 0x4ad   : > { %9568 = vmatpush3.bf16.msra.mxu1 %v14006_v16 }
 0x4ae   : > { %9570 = vmatprep.subr.bf16.mxu1 %v14007_v1 }
 0x4b1   : > { %9572 = vmatpush3.bf16.msra.mxu1 %v14008_v3 }
 0x4b2   : > { %9574 = vmatprep.subr.bf16.mxu1 %v14009_v29 }
 0x4b5   : > { %9576 = vmatpush3.bf16.msra.mxu1 %v14010_v12 }
 0x4b6   : > { %9578 = vmatprep.subr.bf16.mxu1 %v14011_v63 }
 0x4b7   : > { %v8135_v24 = vpop.f32.mrb[4].mxu1 }
 0x4b8   : > { %v8136_v25 = vpop.f32.mrb[5].mxu1 }
 0x4b9   : > { %v8137_v6 = vadd.f32 %v8136_v25, %v8135_v24  ;;  %9580 = vmatpush3.bf16.msra.mxu1 %v12913_v54  ;;  %v6015_v25 = vsel %vm3458_vm2, %v6014_v23, %v5876_v62  ;;  %v10319_v23 = vunpack.i.l.bf16 %v13302_v39  ;;  %v5846_v62 = vld [vmem:[#allocation2 + $0xb0] sm:$0x1] }
 0x4ba   : > { %9582 = vmatprep.subr.bf16.mxu1 %v12919_v58 }
 0x4bd   : > { %9584 = vmatpush3.bf16.msra.mxu1 %v12949_v27 }
 0x4be   : > { %9586 = vmatprep.subr.bf16.mxu1 %v12952_v13 }
 0x4c1   : > { %9588 = vmatpush3.bf16.msra.mxu1 %v12984_v21 }
 0x4c2   : > { %9590 = vmatprep.subr.bf16.mxu1 %v12515_v41 }
 0x4c4   : > { %5553 = vmatmul.mubr.f32.vlgmr.msra.gmra.mrb[18].mxu1 %v13157_v0 }
 0x4c5   : > { %9592 = vmatpush3.bf16.msra.mxu1 %v12517_v53  ;;  %5768 = vmatprep.mubr.f32.mxu1 %v12979_v28 }
 0x4c6   : > { %9594 = vmatprep.subr.bf16.mxu1 %v12558_v36 }
 0x4c9   : > { %9596 = vmatpush3.bf16.msra.mxu1 %v12560_v4 }
 0x4ca   : > { %9598 = vmatprep.subr.bf16.mxu1 %v12603_v30 }
 0x4cd   : > { %9600 = vmatpush3.bf16.msra.mxu1 %v12612_v34 }
 0x4ce   : > { %9602 = vmatprep.subr.bf16.mxu1 %v12614_v43 }
 0x4d1   : > { %9604 = vmatpush3.bf16.msra.mxu1 %v12630_v15 }
 0x4d2   : > { %9606 = vmatprep.subr.bf16.mxu1 %v12634_v55 }
 0x4d5   : > { %9608 = vmatpush3.bf16.msra.mxu1 %v12655_v32 }
 0x4d6   : > { %9610 = vmatprep.subr.bf16.mxu1 %v12670_v11 }
 0x4d7   : > { %v8170_v48 = vpop.f32.mrb[6].mxu1 }
 0x4d8   : > { %v8171_v28 = vpop.f32.mrb[7].mxu1 }
 0x4d9   : > { %v8172_v61 = vadd.f32 %v8171_v28, %v8170_v48  ;;  %9612 = vmatpush3.bf16.msra.mxu1 %v12692_v44  ;;  %v13292_v48 = vpop.permute.xlu0 %10312  ;;  %v6017_v28 = vsel %vm3461_vm3, %v6016_v60, %v6015_v25  ;;  %v5849_v25 = vld [vmem:[#allocation2 + $0x170] sm:$0x1] }
 0x4da   : > { %9614 = vmatprep.subr.bf16.mxu1 %v12695_v31  ;;  %v10314_v45 = vunpack.i.l.bf16 %v13292_v48 }
 0x4db   : > { %v4431_v22 = vadd.f32 %v8172_v61, %v8137_v6  ;;  %v6022_v6 = vrot.slane %v5881_v57, 3  ;;  %v6024_v61 = vrot.slane %v5882_v42, 2  ;;  %v6895_v42 = vld [vmem:[%s13758_s5 + $0x80] sm:$0xff] }
 0x4dd   : > { %9616 = vmatpush3.bf16.msra.mxu1 %v12703_v59  ;;  %6823 = vrot.lane.b32.xlu1 %v4431_v22, %s10418_s22 }
 0x4de   : > { %9618 = vmatprep.subr.bf16.mxu1 %v12715_v49 }
 0x4e1   : > { %9620 = vmatpush3.bf16.msra.mxu1 %v13998_v35 }
 0x4e2   : > { %9622 = vmatprep.subr.bf16.mxu1 %v14000_v26 }
 0x4e4   : > { %5769 = vmatmul.mubr.f32.vlgmr.msra.gmra.mrb[20].mxu1 %v13006_v17 }
 0x4e5   : > { %9624 = vmatpush3.bf16.msra.mxu1 %v14002_v10  ;;  %5838 = vmatprep.mubr.f32.mxu1 %v14015_v20  ;;  %v6019_v20 = vsel %vm3464_vm4, %v6018_v33, %v6017_v28  ;;  %v6896_v33 = vld [vmem:[%s13758_s5 + $0x88] sm:$0xff]  ;;  %v5844_v28 = vld [vmem:[#allocation2 + $0x30] sm:$0x1] }
 0x4e6   : > { %9626 = vmatprep.subr.bf16.mxu1 %v14003_v40 }
 0x4e9   : > { %9628 = vmatpush3.bf16.msra.mxu1 %v14004_v14 }
 0x4ea   : > { %9630 = vmatprep.subr.bf16.mxu1 %v14005_v19 }
 0x4ed   : > { %9632 = vmatpush3.bf16.msra.mxu1 %v14006_v16 }
 0x4ee   : > { %9634 = vmatprep.subr.bf16.mxu1 %v14007_v1 }
 0x4f1   : > { %9636 = vmatpush3.bf16.msra.mxu1 %v14008_v3 }
 0x4f2   : > { %9638 = vmatprep.subr.bf16.mxu1 %v14009_v29 }
 0x4f5   : > { %9640 = vmatpush3.bf16.msra.mxu1 %v14010_v12 }
 0x4f6   : > { %9642 = vmatprep.subr.bf16.mxu1 %v14011_v63 }
 0x4f7   : > { %v8205_v17 = vpop.f32.mrb[8].mxu1 }
 0x4f8   : > { %v8206_v7 = vpop.f32.mrb[9].mxu1 }
 0x4f9   : > { %v8207_v2 = vadd.f32 %v8206_v7, %v8205_v17  ;;  %9644 = vmatpush3.bf16.msra.mxu1 %v12913_v54  ;;  %v6026_v17 = vrot.slane %v5883_v46, 1  ;;  %v10309_v7 = vunpack.i.l.bf16 %v13288_v47  ;;  %v5847_v46 = vld [vmem:[#allocation2 + $0xf0] sm:$0x1] }
 0x4fa   : > { %9646 = vmatprep.subr.bf16.mxu1 %v12919_v58 }
 0x4fd   : > { %9648 = vmatpush3.bf16.msra.mxu1 %v12949_v27 }
 0x4fe   : > { %9650 = vmatprep.subr.bf16.mxu1 %v12952_v13 }
 0x501   : > { %9652 = vmatpush3.bf16.msra.mxu1 %v12984_v21 }
 0x502   : > { %9654 = vmatprep.subr.bf16.mxu1 %v12515_v41 }
 0x504   : > { %5839 = vmatmul.mubr.f32.vlgmr.msra.gmra.mrb[22].mxu1 %v14016_v50 }
 0x505   : > { %9656 = vmatpush3.bf16.msra.mxu1 %v12517_v53  ;;  %6174 = vmatprep.mubr.f32.mxu1 %v13078_v5  ;;  %v5880_v5 = vld [vmem:[#allocation2 + $0x138] sm:$0x1] }
 0x506   : > { %9658 = vmatprep.subr.bf16.mxu1 %v12558_v36  ;;  %v6020_v52 = vrot.slane %v5880_v5, 4 }
 0x508   : > { %v6021_v50 = vsel %vm3467_vm5, %v6020_v52, %v6019_v20  ;;  %v5848_v52 = vld [vmem:[#allocation2 + $0x130] sm:$0x1]  ;;  %v5920_v20 = vrot.slane %v5847_v46, 5 }
 0x509   : > { %9660 = vmatpush3.bf16.msra.mxu1 %v12560_v4  ;;  %v6023_v51 = vsel %vm3470_vm6, %v6022_v6, %v6021_v50  ;;  %v5918_v6 = vrot.slane %v5846_v62, 6 }
 0x50a   : > { %9662 = vmatprep.subr.bf16.mxu1 %v12603_v30 }
 0x50d   : > { %9664 = vmatpush3.bf16.msra.mxu1 %v12612_v34 }
 0x50e   : > { %9666 = vmatprep.subr.bf16.mxu1 %v12614_v43 }
 0x511   : > { %9668 = vmatpush3.bf16.msra.mxu1 %v12630_v15 }
 0x512   : > { %9670 = vmatprep.subr.bf16.mxu1 %v12634_v55 }
 0x515   : > { %9672 = vmatpush3.bf16.msra.mxu1 %v12655_v32 }
 0x516   : > { %9674 = vmatprep.subr.bf16.mxu1 %v12670_v11 }
 0x517   : > { %v8240_v37 = vpop.f32.mrb[10].mxu1 }
 0x518   : > { %v8241_v56 = vpop.f32.mrb[11].mxu1 }
 0x519   : > { %v8242_v24 = vadd.f32 %v8241_v56, %v8240_v37  ;;  %9676 = vmatpush3.bf16.msra.mxu1 %v12692_v44  ;;  %v9845_v56 = vpack.c.bf16 %v6896_v33, %v6895_v42  ;;  %v6897_v33 = vld [vmem:[%s13758_s5 + $0x90] sm:$0xff] }
 0x51a   : > { %9678 = vmatprep.subr.bf16.mxu1 %v12695_v31 }
 0x51b   : > { %v13296_v22 = vadd.f32 %v8242_v24, %v8207_v2  ;;  %v6025_v2 = vsel %vm3473_vm7, %v6024_v61, %v6023_v51  ;;  %9846 = vmatprep.subr.bf16.mxu0 %v9845_v56  ;;  %v5850_v61 = vld [vmem:[#allocation2 + $0x1b0] sm:$0x1]  ;;  %v6880_v51 = vld [vmem:[%s13758_s5 + $0x8] sm:$0xff]  ;;  %v6898_v56 = vld [vmem:[%s13758_s5 + $0x98] sm:$0xff] }
 0x51c   : > { %v6027_v5 = vsel %vm3476_vm8, %v6026_v17, %v6025_v2  ;;  %v5922_v17 = vrot.slane %v5848_v52, 4  ;;  %v9849_v52 = vpack.c.bf16 %v6898_v56, %v6897_v33  ;;  %v6885_v56 = vld [vmem:[%s13758_s5 + $0x30] sm:$0xff] }
 0x51d   : > { %9680 = vmatpush3.bf16.msra.mxu1 %v12703_v59  ;;  %v6107_v57 = vsel %vm3192_vm1, %v6027_v5, %v10309_v7  ;;  %v5851_v7 = vld [vmem:[#allocation2 + $0x1f0] sm:$0x1]  ;;  %v5924_v5 = vrot.slane %v5849_v25, 3  ;;  %v6899_v25 = vld [vmem:[%s13758_s5 + $0xa0] sm:$0xff] }
 0x51e   : > { %9682 = vmatprep.subr.bf16.mxu1 %v12715_v49  ;;  %v6108_v60 = vsel %vm3849_vm9, %v6107_v57, %v10314_v45  ;;  %v6879_v45 = vld [vmem:[%s13758_s5] sm:$0xff]  ;;  %v5928_v46 = vrot.slane %v5851_v7, 1 }
 0x51f   : > { %v6109_v37 = vsel %vm3851_vm10, %v6108_v60, %v10319_v23  ;;  %v9847_v57 = vpack.c.bf16 %v6880_v51, %v6879_v45  ;;  %v6884_v45 = vld [vmem:[%s13758_s5 + $0x28] sm:$0xff] }
 0x521   : > { %9684 = vmatpush3.bf16.msra.mxu1 %v13998_v35  ;;  %9848 = vmatpush3.bf16.msra.mxu0 %v9847_v57 }
 0x522   : > { %9686 = vmatprep.subr.bf16.mxu1 %v14000_v26  ;;  %9850 = vmatprep.subr.bf16.mxu0 %v9849_v52 }
 0x524   : > { %6175 = vmatmul.mubr.f32.vlgmr.msra.gmra.mrb[24].mxu1 %v13107_v18  ;;  %v5845_v18 = vld [vmem:[#allocation2 + $0x70] sm:$0x1] }
 0x525   : > { %9688 = vmatpush3.bf16.msra.mxu1 %v14002_v10  ;;  %6244 = vmatprep.mubr.f32.mxu1 %v6109_v37  ;;  %v5916_v24 = vrot.slane %v5845_v18, 7  ;;  %v5926_v37 = vrot.slane %v5850_v61, 2  ;;  %v6881_v18 = vld [vmem:[%s13758_s5 + $0x10] sm:$0xff]  ;;  %v10310_v61 = vunpack.i.h.bf16 %v13288_v47  ;;  %v6902_v47 = vld [vmem:[%s13758_s5 + $0xb8] sm:$0xff] }
 0x526   : > { %9690 = vmatprep.subr.bf16.mxu1 %v14003_v40 }
 0x527   : > { %v5917_v2 = vsel %vm3458_vm2, %v5916_v24, %v5844_v28  ;;  %v6882_v24 = vld [vmem:[%s13758_s5 + $0x18] sm:$0xff] }
 0x528   : > { %v5919_v60 = vsel %vm3461_vm3, %v5918_v6, %v5917_v2  ;;  %v6900_v6 = vld [vmem:[%s13758_s5 + $0xa8] sm:$0xff]  ;;  %v10315_v2 = vunpack.i.h.bf16 %v13292_v48 }
 0x529   : > { %9692 = vmatpush3.bf16.msra.mxu1 %v14004_v14  ;;  %v5921_v62 = vsel %vm3464_vm4, %v5920_v20, %v5919_v60  ;;  %v9851_v20 = vpack.c.bf16 %v6882_v24, %v6881_v18  ;;  %v9853_v7 = vpack.c.bf16 %v6900_v6, %v6899_v25  ;;  %v10320_v60 = vunpack.i.h.bf16 %v13302_v39  ;;  %v6904_v39 = vld [vmem:[%s13758_s5 + $0xc8] sm:$0xff]  ;;  %v6887_v25 = vld [vmem:[%s13758_s5 + $0x40] sm:$0xff] }
 0x52a   : > { %9694 = vmatprep.subr.bf16.mxu1 %v14005_v19  ;;  %v5923_v28 = vsel %vm3467_vm5, %v5922_v17, %v5921_v62  ;;  %v6901_v17 = vld [vmem:[%s13758_s5 + $0xb0] sm:$0xff]  ;;  %v6903_v62 = vld [vmem:[%s13758_s5 + $0xc0] sm:$0xff]  ;;  %v6888_v6 = vld [vmem:[%s13758_s5 + $0x48] sm:$0xff] }
 0x52b   : > { %v5925_v51 = vsel %vm3470_vm6, %v5924_v5, %v5923_v28  ;;  %9852 = vmatpush3.bf16.msra.mxu0 %v9851_v20  ;;  %v9857_v33 = vpack.c.bf16 %v6902_v47, %v6901_v17  ;;  %v9861_v24 = vpack.c.bf16 %v6904_v39, %v6903_v62  ;;  %v6905_v28 = vld [vmem:[%s13758_s5 + $0xd0] sm:$0xff]  ;;  %v6910_v17 = vld [vmem:[%s13758_s5 + $0xf8] sm:$0xff]  ;;  %v10323_v47 = vpop.permute.xlu0 %10322 }
 0x52c   : > { %9854 = vmatprep.subr.bf16.mxu0 %v9853_v7  ;;  %v6889_v7 = vld [vmem:[%s13758_s5 + $0x50] sm:$0xff]  ;;  %v10325_v62 = vunpack.i.h.bf16 %v10323_v47 }
 0x52d   : > { %9696 = vmatpush3.bf16.msra.mxu1 %v14006_v16 }
 0x52e   : > { %9698 = vmatprep.subr.bf16.mxu1 %v14007_v1 }
 0x531   : > { %9700 = vmatpush3.bf16.msra.mxu1 %v14008_v3 }
 0x532   : > { %9702 = vmatprep.subr.bf16.mxu1 %v14009_v29 }
 0x535   : > { %9704 = vmatpush3.bf16.msra.mxu1 %v14010_v12 }
 0x536   : > { %9706 = vmatprep.subr.bf16.mxu1 %v14011_v63 }
 0x537   : > { %v8275_v50 = vpop.f32.mrb[12].mxu1 }
 0x538   : > { %v8276_v23 = vpop.f32.mrb[13].mxu1 }
 0x539   : > { %v13340_v42 = vadd.f32 %v8276_v23, %v8275_v50  ;;  %9708 = vmatpush3.bf16.msra.mxu1 %v12913_v54  ;;  %v6883_v50 = vld [vmem:[%s13758_s5 + $0x20] sm:$0xff]  ;;  %v5927_v23 = vsel %vm3473_vm7, %v5926_v37, %v5925_v51  ;;  %v6886_v37 = vld [vmem:[%s13758_s5 + $0x38] sm:$0xff] }
 0x53a   : > { %9710 = vmatprep.subr.bf16.mxu1 %v12919_v58  ;;  %v5929_v57 = vsel %vm3476_vm8, %v5928_v46, %v5927_v23  ;;  %v9855_v5 = vpack.c.bf16 %v6884_v45, %v6883_v50  ;;  %v9859_v46 = vpack.c.bf16 %v6886_v37, %v6885_v56  ;;  %v6890_v50 = vld [vmem:[%s13758_s5 + $0x58] sm:$0xff]  ;;  %v6891_v51 = vld [vmem:[%s13758_s5 + $0x60] sm:$0xff]  ;;  %v10333_v56 = vpop.permute.xlu0 %10332 }
 0x53b   : > { %v6104_v48 = vsel %vm3192_vm1, %v5929_v57, %v10310_v61  ;;  %v9863_v61 = vpack.c.bf16 %v6888_v6, %v6887_v25  ;;  %v14017_v37 = vld [vmem:[#allocation11_spill] sm:$0xff]  ;;  %v14018_v25 = vld [vmem:[#allocation10_spill] sm:$0xff] }
 0x53c   : > { %v6105_v18 = vsel %vm3849_vm9, %v6104_v48, %v10315_v2  ;;  %9856 = vmatpush3.bf16.msra.mxu0 %v9855_v5  ;;  %v6892_v2 = vld [vmem:[%s13758_s5 + $0x68] sm:$0xff]  ;;  %v6390_v6 = vsel %vm3192_vm1, %v14018_v25, %v10325_v62  ;;  %v10421_v62 = vmov 0.0  }
 0x53d   : > { %9712 = vmatpush3.bf16.msra.mxu1 %v12949_v27  ;;  %v6106_v52 = vsel %vm3851_vm10, %v6105_v18, %v10320_v60  ;;  %9858 = vmatprep.subr.bf16.mxu0 %v9857_v33  ;;  %v10324_v60 = vunpack.i.l.bf16 %v10323_v47  ;;  %v10328_v33 = vpop.permute.xlu1 %10327 }
 0x53e   : > { %9714 = vmatprep.subr.bf16.mxu1 %v12952_v13 }
 0x53f   : > { %v6393_v18 = vsel %vm3192_vm1, %v14017_v37, %v10324_v60 }
 0x540   : > { %9860 = vmatpush3.bf16.msra.mxu0 %v9859_v46 }
 0x541   : > { %9716 = vmatpush3.bf16.msra.mxu1 %v12984_v21  ;;  %9862 = vmatprep.subr.bf16.mxu0 %v9861_v24  ;;  %v10330_v24 = vunpack.i.h.bf16 %v10328_v33 }
 0x542   : > { %9718 = vmatprep.subr.bf16.mxu1 %v12515_v41  ;;  %v6906_v41 = vld [vmem:[%s13758_s5 + $0xd8] sm:$0xff] }
 0x543   : > { %v9865_v20 = vpack.c.bf16 %v6906_v41, %v6905_v28  ;;  %v10335_v28 = vunpack.i.h.bf16 %v10333_v56 }
 0x544   : > { %6245 = vmatmul.mubr.f32.vlgmr.msra.gmra.mrb[26].mxu1 %v6106_v52  ;;  %9864 = vmatpush3.bf16.msra.mxu0 %v9863_v61  ;;  %v14019_v61 = vld [vmem:[#allocation13_spill] sm:$0xff] }
 0x545   : > { %9720 = vmatpush3.bf16.msra.mxu1 %v12517_v53  ;;  %6460 = vmatprep.mubr.f32.mxu1 %v13138_v38  ;;  %v6907_v53 = vld [vmem:[%s13758_s5 + $0xe0] sm:$0xff]  ;;  %v9867_v38 = vpack.c.bf16 %v6890_v50, %v6889_v7  ;;  %v6391_v50 = vsel %vm3849_vm9, %v6390_v6, %v10330_v24 }
 0x546   : > { %9722 = vmatprep.subr.bf16.mxu1 %v12558_v36  ;;  %v6908_v36 = vld [vmem:[%s13758_s5 + $0xe8] sm:$0xff]  ;;  %9866 = vmatprep.subr.bf16.mxu0 %v9865_v20  ;;  %v6927_v6 = vld [vmem:[%s13758_s5 + $0x180] sm:$0xff] }
 0x547   : > { %v9869_v45 = vpack.c.bf16 %v6908_v36, %v6907_v53  ;;  %v6392_v53 = vsel %vm3851_vm10, %v6391_v50, %v10335_v28  ;;  %v6928_v28 = vld [vmem:[%s13758_s5 + $0x188] sm:$0xff]  ;;  %v6930_v50 = vld [vmem:[%s13758_s5 + $0x198] sm:$0xff] }
 0x548   : > { %9868 = vmatpush3.bf16.msra.mxu0 %v9867_v38 }
 0x549   : > { %9724 = vmatpush3.bf16.msra.mxu1 %v12560_v4  ;;  %v9871_v4 = vpack.c.bf16 %v6892_v2, %v6891_v51  ;;  %9870 = vmatprep.subr.bf16.mxu0 %v9869_v45  ;;  %v6844_v45 = vlaneseq }
 0x54a   : > { %9726 = vmatprep.subr.bf16.mxu1 %v12603_v30  ;;  %v6909_v30 = vld [vmem:[%s13758_s5 + $0xf0] sm:$0xff] }
 0x54b   : > { %v13512_v51 = vshrl.u32 %v6844_v45, 7  ;;  %v6918_v45 = vld [vmem:[%s13758_s5 + $0x138] sm:$0xff] }
 0x54c   : > { %9872 = vmatpush3.bf16.msra.mxu0 %v9871_v4 }
 0x54d   : > { %9728 = vmatpush3.bf16.msra.mxu1 %v12612_v34  ;;  %v6893_v34 = vld [vmem:[%s13758_s5 + $0x70] sm:$0xff]  ;;  %v6850_v2 = vsub.s32 1, %v13512_v51 }
 0x54e   : > { %9730 = vmatprep.subr.bf16.mxu1 %v12614_v43  ;;  %v9873_v43 = vpack.c.bf16 %v6910_v17, %v6909_v30 }
 0x550   : > { %9874 = vmatprep.subr.bf16.mxu0 %v9873_v43 }
 0x551   : > { %9732 = vmatpush3.bf16.msra.mxu1 %v12630_v15  ;;  %v6894_v15 = vld [vmem:[%s13758_s5 + $0x78] sm:$0xff] }
 0x552   : > { %9734 = vmatprep.subr.bf16.mxu1 %v12634_v55  ;;  %v9875_v55 = vpack.c.bf16 %v6894_v15, %v6893_v34 }
 0x554   : > { %9876 = vmatpush3.bf16.msra.mxu0 %v9875_v55 }
 0x555   : > { %9736 = vmatpush3.bf16.msra.mxu1 %v12655_v32  ;;  %v10329_v32 = vunpack.i.l.bf16 %v10328_v33  ;;  %v6944_v33 = vld [vmem:[%s13758_s5 + $0x208] sm:$0xff] }
 0x556   : > { %9738 = vmatprep.subr.bf16.mxu1 %v12670_v11  ;;  %v10334_v11 = vunpack.i.l.bf16 %v10333_v56  ;;  %v10419_v56 = vmov 0.0|0.0  }
 0x557   : > { %v8310_v23 = vpop.f32.mrb[14].mxu1  ;;  %9909 = vmatprep.subr.bf16.mxu0 %v10419_v56 }
 0x558   : > { %v8311_v57 = vpop.f32.mrb[15].mxu1 }
 0x559   : > { %v8312_v5 = vadd.f32 %v8311_v57, %v8310_v23  ;;  %9740 = vmatpush3.bf16.msra.mxu1 %v12692_v44  ;;  %v6394_v44 = vsel %vm3849_vm9, %v6393_v18, %v10329_v32 }
 0x55a   : > { %9742 = vmatprep.subr.bf16.mxu1 %v12695_v31  ;;  %v6395_v31 = vsel %vm3851_vm10, %v6394_v44, %v10334_v11  ;;  %v6946_v11 = vld [vmem:[%s13758_s5 + $0x218] sm:$0xff] }
 0x55b   : > { %v5269_v48 = vadd.f32 %v8312_v5, %v13340_v42  ;;  %v10343_v42 = vpop.permute.xlu0 %10342 }
 0x55c   : > { %v10344_v46 = vunpack.i.l.bf16 %v10343_v42 }
 0x55d   : > { %6827 = vrot.lane.b32.xlu0 %v5269_v48, %s10418_s22  ;;  %9744 = vmatpush3.bf16.msra.mxu1 %v12703_v59  ;;  %v10338_v59 = vpop.permute.xlu1 %10337 }
 0x55e   : > { %9746 = vmatprep.subr.bf16.mxu1 %v12715_v49  ;;  %v10339_v39 = vunpack.i.l.bf16 %v10338_v59 }
 0x560   : > { %v6679_v20 = vsel %vm3192_vm1, %v14019_v61, %v10339_v39  ;;  %v9877_v61 = vpack.c.bf16 %v6928_v28, %v6927_v6 }
 0x561   : > { %9748 = vmatpush3.bf16.msra.mxu1 %v13998_v35  ;;  %v10348_v52 = vpop.permute.xlu1 %10347  ;;  %v6680_v7 = vsel %vm3849_vm9, %v6679_v20, %v10344_v46  ;;  %v6912_v20 = vld [vmem:[%s13758_s5 + $0x108] sm:$0xff] }
 0x562   : > { %9750 = vmatprep.subr.bf16.mxu1 %v14000_v26  ;;  %v10349_v41 = vunpack.i.l.bf16 %v10348_v52 }
 0x564   : > { %6461 = vmatmul.mubr.f32.vlgmr.msra.gmra.mrb[28].mxu1 %v13157_v0  ;;  %v6681_v36 = vsel %vm3851_vm10, %v6680_v7, %v10349_v41  ;;  %v6911_v41 = vld [vmem:[%s13758_s5 + $0x100] sm:$0xff]  ;;  %v6929_v7 = vld [vmem:[%s13758_s5 + $0x190] sm:$0xff] }
 0x565   : > { %9752 = vmatpush3.bf16.msra.mxu1 %v14002_v10  ;;  %6530 = vmatprep.mubr.f32.mxu1 %v6395_v31  ;;  %v6824_v4 = vpop.permute.xlu1 %6823 }
 0x566   : > { %9754 = vmatprep.subr.bf16.mxu1 %v14003_v40  ;;  %v6838_v30 = vsel %vm3849_vm9, %v13213_v9, %v6824_v4  ;;  %v6943_v9 = vld [vmem:[%s13758_s5 + $0x200] sm:$0xff]  ;;  %v6936_v4 = vld [vmem:[%s13758_s5 + $0x1c8] sm:$0xff] }
 0x567   : > { %v9910_v32 = vpack.c.bf16 %v6944_v33, %v6943_v9  ;;  %v6940_v9 = vld [vmem:[%s13758_s5 + $0x1e8] sm:$0xff] }
 0x569   : > { %9756 = vmatpush3.bf16.msra.mxu1 %v14004_v14 }
 0x56a   : > { %9758 = vmatprep.subr.bf16.mxu1 %v14005_v19 }
 0x56d   : > { %9760 = vmatpush3.bf16.msra.mxu1 %v14006_v16 }
 0x56e   : > { %9762 = vmatprep.subr.bf16.mxu1 %v14007_v1 }
 0x571   : > { %9764 = vmatpush3.bf16.msra.mxu1 %v14008_v3 }
 0x572   : > { %9766 = vmatprep.subr.bf16.mxu1 %v14009_v29 }
 0x575   : > { %9768 = vmatpush3.bf16.msra.mxu1 %v14010_v12 }
 0x576   : > { %9770 = vmatprep.subr.bf16.mxu1 %v14011_v63 }
 0x577   : > { %v8345_v49 = vpop.f32.mrb[16].mxu1 }
 0x578   : > { %v8346_v35 = vpop.f32.mrb[17].mxu1 }
 0x579   : > { %v8347_v0 = vadd.f32 %v8346_v35, %v8345_v49  ;;  %9772 = vmatpush3.bf16.msra.mxu1 %v12913_v54  ;;  %v6948_v49 = vld [vmem:[%s13758_s5 + $0x228] sm:$0xff]  ;;  %v6949_v35 = vld [vmem:[%s13758_s5 + $0x230] sm:$0xff] }
 0x57a   : > { %9774 = vmatprep.subr.bf16.mxu1 %v12919_v58 }
 0x57d   : > { %9776 = vmatpush3.bf16.msra.mxu1 %v12949_v27 }
 0x57e   : > { %9778 = vmatprep.subr.bf16.mxu1 %v12952_v13 }
 0x581   : > { %9780 = vmatpush3.bf16.msra.mxu1 %v12984_v21 }
 0x582   : > { %9814 = vmatprep.subr.bf16.mxu1 %v14000_v26 }
 0x584   : > { %6531 = vmatmul.mubr.f32.vlgmr.msra.gmra.mrb[30].mxu1 %v6392_v53  ;;  %v9879_v53 = vpack.c.bf16 %v6912_v20, %v6911_v41 }
 0x585   : > { %9816 = vmatpush3.bf16.msra.mxu1 %v14002_v10  ;;  %6816 = vmatprep.mubr.f32.mxu1 %v6681_v36  ;;  %v9881_v36 = vpack.c.bf16 %v6930_v50, %v6929_v7 }
 0x586   : > { %9818 = vmatprep.subr.bf16.mxu1 %v14003_v40  ;;  %v10340_v40 = vunpack.i.h.bf16 %v10338_v59  ;;  %v6947_v59 = vld [vmem:[%s13758_s5 + $0x220] sm:$0xff] }
 0x589   : > { %9820 = vmatpush3.bf16.msra.mxu1 %v14004_v14 }
 0x58a   : > { %9822 = vmatprep.subr.bf16.mxu1 %v14005_v19  ;;  %v10345_v19 = vunpack.i.h.bf16 %v10343_v42  ;;  %v6950_v42 = vld [vmem:[%s13758_s5 + $0x238] sm:$0xff] }
 0x58b   : > { %v9919_v39 = vpack.c.bf16 %v6950_v42, %v6949_v35 }
 0x58d   : > { %9824 = vmatpush3.bf16.msra.mxu1 %v14006_v16  ;;  %v14020_v16 = vld [vmem:[#allocation12_spill] sm:$0xff] }
 0x58e   : > { %9826 = vmatprep.subr.bf16.mxu1 %v14007_v1  ;;  %v6676_v1 = vsel %vm3192_vm1, %v14020_v16, %v10340_v40  ;;  %v6932_v40 = vld [vmem:[%s13758_s5 + $0x1a8] sm:$0xff] }
 0x591   : > { %9828 = vmatpush3.bf16.msra.mxu1 %v14008_v3  ;;  %v10350_v3 = vunpack.i.h.bf16 %v10348_v52 }
 0x592   : > { %9830 = vmatprep.subr.bf16.mxu1 %v14009_v29  ;;  %v6677_v29 = vsel %vm3849_vm9, %v6676_v1, %v10345_v19  ;;  %v6915_v1 = vld [vmem:[%s13758_s5 + $0x120] sm:$0xff] }
 0x595   : > { %9832 = vmatpush3.bf16.msra.mxu1 %v14010_v12 }
 0x596   : > { %9834 = vmatprep.subr.bf16.mxu1 %v14011_v63 }
 0x597   : > { %v8380_v26 = vpop.f32.mrb[18].mxu1 }
 0x598   : > { %v8381_v10 = vpop.f32.mrb[19].mxu1 }
 0x599   : > { %v8382_v38 = vadd.f32 %v8381_v10, %v8380_v26  ;;  %9836 = vmatpush3.bf16.msra.mxu1 %v12913_v54  ;;  %v6678_v54 = vsel %vm3851_vm10, %v6677_v29, %v10350_v3  ;;  %v6913_v26 = vld [vmem:[%s13758_s5 + $0x110] sm:$0xff]  ;;  %v6914_v10 = vld [vmem:[%s13758_s5 + $0x118] sm:$0xff]  ;;  %v6916_v3 = vld [vmem:[%s13758_s5 + $0x128] sm:$0xff] }
 0x59a   : > { %9838 = vmatprep.subr.bf16.mxu1 %v12919_v58  ;;  %v9883_v19 = vpack.c.bf16 %v6914_v10, %v6913_v26  ;;  %v6933_v29 = vld [vmem:[%s13758_s5 + $0x1b0] sm:$0xff]  ;;  %v6854_v26 = vsub.s32 2, %v13512_v51  ;;  %v6858_v10 = vsub.s32 3, %v13512_v51 }
 0x59b   : > { %v13503_v14 = vadd.f32 %v8382_v38, %v8347_v0  ;;  %v9916_v0 = vpack.c.bf16 %v6948_v49, %v6947_v59  ;;  %v6931_v38 = vld [vmem:[%s13758_s5 + $0x1a0] sm:$0xff]  ;;  %v6926_v49 = vld [vmem:[%s13758_s5 + $0x178] sm:$0xff] }
 0x59c   : > { %v9885_v16 = vpack.c.bf16 %v6932_v40, %v6931_v38 }
 0x59d   : > { %9840 = vmatpush3.bf16.msra.mxu1 %v12949_v27  ;;  %v6846_v27 = vsub.s32 0, %v13512_v51 }
 0x59e   : > { %9842 = vmatprep.subr.bf16.mxu1 %v12952_v13  ;;  %v13518_v13 = vld [vmem:[%s13757_s4] sm:$0x1f] }
 0x59f   : > { %v6851_v17 = vrot.slane %v13518_v13, %v6850_v2  ;;  %v6935_v2 = vld [vmem:[%s13758_s5 + $0x1c0] sm:$0xff]  ;;  %v6855_v40 = vrot.slane %v13518_v13, %v6854_v26 }
 0x5a1   : > { %9844 = vmatpush3.bf16.msra.mxu1 %v12984_v21  ;;  %v6847_v21 = vrot.slane %v13518_v13, %v6846_v27 }
 0x5a2   : > { %9878 = vmatprep.subr.bf16.mxu1 %v9877_v61 }
 0x5a3   : > { %v6869_v43 = vadd.f32 %v6847_v21, %v6838_v30 }
 0x5a4   : > { %6817 = vmatmul.mubr.f32.vlgmr.msra.gmra.mrb[32].mxu1 %v6678_v54  ;;  %v6934_v54 = vld [vmem:[%s13758_s5 + $0x1b8] sm:$0xff] }
 0x5a5   : > { %v6874_v23 = vmax.f32 %v6869_v43, 0.0  ;;  %9880 = vmatpush3.bf16.msra.mxu1 %v9879_v53  ;;  %v6919_v43 = vld [vmem:[%s13758_s5 + $0x140] sm:$0xff] }
 0x5a6   : > { %9882 = vmatprep.subr.bf16.mxu1 %v9881_v36 }
 0x5a9   : > { %9884 = vmatpush3.bf16.msra.mxu1 %v9883_v19  ;;  %v6859_v19 = vrot.slane %v13518_v13, %v6858_v10 }
 0x5aa   : > { %9886 = vmatprep.subr.bf16.mxu1 %v9885_v16 }
 0x5b7   : > { %v8415_v58 = vpop.f32.mrb[20].mxu1 }
 0x5b8   : > { %v8416_v12 = vpop.f32.mrb[21].mxu1 }
 0x5b9   : > { %v8417_v63 = vadd.f32 %v8416_v12, %v8415_v58  ;;  %v9887_v58 = vpack.c.bf16 %v6916_v3, %v6915_v1  ;;  %v9889_v12 = vpack.c.bf16 %v6934_v54, %v6933_v29 }
 0x5bb   : > { %9888 = vmatpush3.bf16.msra.mxu1 %v9887_v58  ;;  %v7173_v58 = vld [vmem:[%s13760_s7 + $0x8] sm:$0xff] }
 0x5bc   : > { %9890 = vmatprep.subr.bf16.mxu1 %v9889_v12 }
 0x5cf   : > { %v6828_v34 = vpop.permute.xlu0 %6827 }
 0x5d0   : > { %v6839_v15 = vsel %vm3849_vm9, %v13296_v22, %v6828_v34  ;;  %v6945_v22 = vld [vmem:[%s13758_s5 + $0x210] sm:$0xff]  ;;  %v9893_v34 = vpack.c.bf16 %v6936_v4, %v6935_v2  ;;  %v7179_v4 = vld [vmem:[%s13760_s7 + $0x38] sm:$0xff] }
 0x5d1   : > { %v6870_v55 = vadd.f32 %v6851_v17, %v6839_v15  ;;  %v9913_v37 = vpack.c.bf16 %v6946_v11, %v6945_v22  ;;  %v6920_v15 = vld [vmem:[%s13758_s5 + $0x148] sm:$0xff] }
 0x5d2   : > { %v6924_v11 = vld [vmem:[%s13758_s5 + $0x168] sm:$0xff] }
 0x5d3   : > { %v6875_v47 = vmax.f32 %v6870_v55, 0.0  ;;  %v6937_v55 = vld [vmem:[%s13758_s5 + $0x1d0] sm:$0xff] }
 0x5d5   : > { %7025 = vmatprep.mubr.f32.mxu0 %v6875_v47  ;;  %v6938_v47 = vld [vmem:[%s13758_s5 + $0x1d8] sm:$0xff] }
 0x5d6   : > { %7026 = vmatmul.mubr.f32.vlgmr.msra.gmra.mrb[66].mxu0 %v6874_v23  ;;  %v9895_v23 = vpack.c.bf16 %v6920_v15, %v6919_v43 }
 0x5d7   : > { %v8450_v57 = vpop.f32.mrb[22].mxu1  ;;  %9911 = vmatpush3.bf16.msra.mxu0 %v9910_v32  ;;  %9199 = vmatprep.mubr.msk.f32.mxu0 %vm10420_vm11, %v10421_v62  ;;  %v6923_v32 = vld [vmem:[%s13758_s5 + $0x160] sm:$0xff] }
 0x5d8   : > { %v8451_v5 = vpop.f32.mrb[23].mxu1  ;;  %9912 = vmatprep.subr.bf16.mxu0 %v10419_v56 }
 0x5d9   : > { %v8452_v48 = vadd.f32 %v8451_v5, %v8450_v57  ;;  %v9897_v57 = vpack.c.bf16 %v6938_v47, %v6937_v55  ;;  %v6921_v5 = vld [vmem:[%s13758_s5 + $0x150] sm:$0xff] }
 0x5db   : > { %v5841_v60 = vadd.f32 %v8452_v48, %v8417_v63  ;;  %9914 = vmatpush3.bf16.msra.mxu0 %v9913_v37  ;;  %v6917_v63 = vld [vmem:[%s13758_s5 + $0x130] sm:$0xff]  ;;  %v6922_v48 = vld [vmem:[%s13758_s5 + $0x158] sm:$0xff]  ;;  %v9903_v37 = vpack.c.bf16 %v6924_v11, %v6923_v32 }
 0x5dc   : > { %9915 = vmatprep.subr.bf16.mxu0 %v10419_v56  ;;  %v9891_v17 = vpack.c.bf16 %v6918_v45, %v6917_v63  ;;  %v9899_v33 = vpack.c.bf16 %v6922_v48, %v6921_v5  ;;  %v7176_v63 = vld [vmem:[%s13760_s7 + $0x20] sm:$0xff]  ;;  %v7177_v45 = vld [vmem:[%s13760_s7 + $0x28] sm:$0xff] }
 0x5dd   : > { %6831 = vrot.lane.b32.xlu1 %v5841_v60, %s10418_s22  ;;  %v6939_v60 = vld [vmem:[%s13758_s5 + $0x1e0] sm:$0xff]  ;;  %v9928_v2 = vpack.c.bf16 %v7177_v45, %v7176_v63 }
 0x5de   : > { %9892 = vmatpush3.bf16.msra.mxu1 %v9891_v17  ;;  %v9901_v22 = vpack.c.bf16 %v6940_v9, %v6939_v60 }
 0x5df   : > { %9917 = vmatpush3.bf16.msra.mxu0 %v9916_v0  ;;  %9894 = vmatprep.subr.bf16.mxu1 %v9893_v34  ;;  %v7745_v34 = vld [vmem:[%s13759_s6] ss:$0 sm:$0xff] }
 0x5e0   : > { %9918 = vmatprep.subr.bf16.mxu0 %v10419_v56 }
 0x5e2   : > { %9896 = vmatpush3.bf16.msra.mxu1 %v9895_v23 }
 0x5e3   : > { %9920 = vmatpush3.bf16.msra.mxu0 %v9919_v39  ;;  %9898 = vmatprep.subr.bf16.mxu1 %v9897_v57 }
 0x5e4   : > { %9921 = vmatprep.subr.bf16.mxu0 %v10419_v56 }
 0x5e6   : > { %9900 = vmatpush3.bf16.msra.mxu1 %v9899_v33 }
 0x5e7   : > { %9902 = vmatprep.subr.bf16.mxu1 %v9901_v22 }
 0x5ea   : > { %9904 = vmatpush3.bf16.msra.mxu1 %v9903_v37 }
 0x5f7   : > { %v8485_v18 = vpop.f32.mrb[24].mxu1 }
 0x5f8   : > { %v8486_v44 = vpop.f32.mrb[25].mxu1 }
 0x5f9   : > { %v8487_v31 = vadd.f32 %v8486_v44, %v8485_v18  ;;  %v6941_v18 = vld [vmem:[%s13758_s5 + $0x1f0] sm:$0xff]  ;;  %v6942_v44 = vld [vmem:[%s13758_s5 + $0x1f8] sm:$0xff] }
 0x5fa   : > { %v9905_v59 = vpack.c.bf16 %v6942_v44, %v6941_v18 }
 0x5fc   : > { %9906 = vmatprep.subr.bf16.mxu1 %v9905_v59 }
 0x617   : > { %v8520_v46 = vpop.f32.mrb[26].mxu1 }
 0x618   : > { %v8521_v52 = vpop.f32.mrb[27].mxu1 }
 0x619   : > { %v8522_v24 = vadd.f32 %v8521_v52, %v8520_v46  ;;  %v6862_v52 = vsub.s32 4, %v13512_v51  ;;  %v7172_v51 = vld [vmem:[%s13760_s7] sm:$0xff] }
 0x61b   : > { %v13559_v25 = vadd.f32 %v8522_v24, %v8487_v31  ;;  %v6925_v31 = vld [vmem:[%s13758_s5 + $0x170] sm:$0xff]  ;;  %v6863_v41 = vrot.slane %v13518_v13, %v6862_v52  ;;  %v9922_v13 = vpack.c.bf16 %v7173_v58, %v7172_v51 }
 0x61c   : > { %v9907_v35 = vpack.c.bf16 %v6926_v49, %v6925_v31 }
 0x61e   : > { %9908 = vmatpush3.bf16.msra.mxu1 %v9907_v35 }
 0x637   : > { %v8555_v27 = vpop.f32.mrb[28].mxu1 }
 0x638   : > { %v8556_v21 = vpop.f32.mrb[29].mxu1 }
 0x639   : > { %v8557_v30 = vadd.f32 %v8556_v21, %v8555_v27  ;;  %v7178_v27 = vld [vmem:[%s13760_s7 + $0x30] sm:$0xff] }
 0x63a   : > { %v9931_v21 = vpack.c.bf16 %v7179_v4, %v7178_v27 }
 0x64f   : > { %v6832_v38 = vpop.permute.xlu1 %6831 }
 0x657   : > { %v8590_v0 = vpop.f32.mrb[30].mxu1 }
 0x658   : > { %v8591_v42 = vpop.f32.mrb[31].mxu1 }
 0x659   : > { %v8592_v39 = vadd.f32 %v8591_v42, %v8590_v0 }
 0x65b   : > { %v6533_v46 = vadd.f32 %v8592_v39, %v8557_v30 }
 0x65d   : > { %6835 = vrot.lane.b32.xlu0 %v6533_v46, %s10418_s22  ;;  %s7276_s22 = sshll.u32 %s328_s28, 4  ;;  %s13713_s22 = int_to_ptr.vmem [resolvable:$true] %s7276_s22 }
 0x65e   : > { %s10352_s14 = scalar_lea.vmem %s13713_s22, 128  ;;  %p10359_p0 = scmp.lt.s32.totalorder %s13713_s22, %s10357_s23 }
 0x65f   : > { %p10353_p11 = scmp.ne.s32.totalorder %s13713_s22, %s10352_s14  ;;  %p10360_p1 = scmp.lt.s32.totalorder %s10358_s24, %s10352_s14 }
 0x661   : > { %p10354_p12 = pnand %p10353_p11, %p10511_p5  ;;  %p10361_p2 = por %p10360_p1, %p10359_p0 }
 0x663   : > { %p10355_p13 = pneg %p10354_p12 }
 0x665   : > { %p10362_p3 = pnand %p10361_p2, %p10355_p13 }
 0x677   : > { %v8660_v24 = vpop.f32.mrb[32].mxu1 }
 0x678   : > { %v8661_v6 = vpop.f32.mrb[33].mxu1 }
 0x679   : > { %v8662_v28 = vadd.f32 %v8661_v6, %v8660_v24 }
 0x67b   : > { %v6819_v61 = vadd.f32 %v8662_v28, %v13223_v8  ;;  %v6840_v8 = vsel %vm3849_vm9, %v13503_v14, %v6832_v38  ;;  %v7174_v14 = vld [vmem:[%s13760_s7 + $0x10] sm:$0xff] }
 0x67c   : > { %v6871_v1 = vadd.f32 %v6855_v40, %v6840_v8 }
 0x67d   : > { %v6873_v20 = vadd.f32 %v6863_v41, %v6819_v61 }
 0x67e   : > { %v6876_v54 = vmax.f32 %v6871_v1, 0.0 }
 0x67f   : > { %v6878_v7 = vmax.f32 %v6873_v20, 0.0 }
 0x681   : > { %9200 = vmatmul.mubr.msk.f32.vlgmr.msra.gmra.mrb[68].mxu0 %vm3849_vm9, %v6878_v7 }
 0x682   : > { %9218 = vmatprep.mubr.msk.f32.mxu0 %vm10420_vm11, %v10421_v62  ;;  %9923 = vmatpush3.bf16.msra.mxu0 %v9922_v13 }
 0x683   : > { %9924 = vmatprep.subr.bf16.mxu0 %v10419_v56 }
 0x6a9   : > { %v8695_v50 = vpop.f32.mrb[66].mxu0 }
 0x6aa   : > { %v8696_v53 = vpop.f32.mrb[67].mxu0 }
 0x6ab   : > { %v8697_v36 = vadd.f32 %v8696_v53, %v8695_v50 }
 0x6ad   : > { %v7028_v55 = vadd.f32 %v8697_v36, %v7745_v34 }
 0x6cf   : > { %v6836_v16 = vpop.permute.xlu0 %6835 }
 0x6d0   : > { %v6841_v62 = vsel %vm3849_vm9, %v13559_v25, %v6836_v16  ;;  %v7175_v25 = vld [vmem:[%s13760_s7 + $0x18] sm:$0xff] }
 0x6d1   : > { %v6872_v3 = vadd.f32 %v6859_v19, %v6841_v62  ;;  %v9925_v12 = vpack.c.bf16 %v7175_v25, %v7174_v14 }
 0x6d3   : > { %v6877_v29 = vmax.f32 %v6872_v3, 0.0  ;;  %9926 = vmatpush3.bf16.msra.mxu0 %v9925_v12 }
 0x6d4   : > { %9927 = vmatprep.subr.bf16.mxu0 %v10419_v56 }
 0x6d5   : > { %7095 = vmatprep.mubr.f32.mxu1 %v6877_v29 }
 0x6d6   : > { %7096 = vmatmul.mubr.f32.vlgmr.msra.gmra.mrb[34].mxu1 %v6876_v54 }
 0x6d7   : > { %9929 = vmatpush3.bf16.msra.mxu0 %v9928_v2 }
 0x6d8   : > { %9930 = vmatprep.subr.bf16.mxu0 %v10419_v56  ;;  %v7747_v56 = vld [vmem:[%s13761_s8] ss:$0 sm:$0xff] }
 0x6db   : > { %9932 = vmatpush3.bf16.msra.mxu0 %v9931_v21 }
 0x754   : > { %v7167_v30 = vpop.f32.mrb[68].mxu0 }
 0x755   : > { %v9201_v17 = vpop.f32.mrb[69].mxu0 }
 0x7a9   : > { %v8730_v43 = vpop.f32.mrb[34].mxu1 }
 0x7aa   : > { %v8731_v15 = vpop.f32.mrb[35].mxu1 }
 0x7ab   : > { %v8732_v47 = vadd.f32 %v8731_v15, %v8730_v43 }
 0x7ad   : > { %v7098_v23 = vadd.f32 %v8732_v47, %v7028_v55 }
 0x7af   : > { %v7168_v57 = vadd.f32 %v7167_v30, %v7098_v23 }
 0x7b1   : > { %v7171_v5 = vmax.f32 %v7168_v57, 0.0 }
 0x7b3   : > { %9219 = vmatmul.mubr.msk.f32.vlgmr.msra.gmra.mrb[70].mxu0 %vm3849_vm9, %v7171_v5 }
 0x886   : > { %v7256_v48 = vpop.f32.mrb[70].mxu0 }
 0x887   : > { %v7257_v60 = vadd.f32 %v7747_v56, %v7256_v48  ;;  %v9220_v9 = vpop.f32.mrb[71].mxu0 }
 0x889   : > { %v7260_v33 = vmax.f32 %v7257_v60, 0.0 }
 0x88b   : > { %7261 = vst [vmem:[%s328_s28] sm:$0xff] %v7260_v33 }
 0x88c   : > { %10365 = shalt.err (!%p10362_p3)
}
 0x88d   : > { %s10366_s16 = scalar_lea.hbm %s13711_s17, 128  ;;  %s10370_s28 = scalar_lea.hbm %s13762_s9, 256 }
 0x88e   : > { %p10367_p4 = scmp.ne.s32.totalorder %s13711_s17, %s10366_s16  ;;  %p10371_p9 = scmp.lt.u32.totalorder %s13711_s17, %s13762_s9 }
 0x88f   : > { %p10372_p10 = scmp.lt.u32.totalorder %s10370_s28, %s10366_s16  ;;  %p10374_p12 = scmp.lt.u32.totalorder %s10366_s16, %s13711_s17 }
 0x890   : > { %p10368_p7 = pnand %p10367_p4, %p10511_p5 }
 0x891   : > { %p10373_p11 = por %p10372_p10, %p10371_p9 }
 0x892   : > { %p10369_p8 = pneg %p10368_p7 }
 0x893   : > { %p10375_p13 = por %p10374_p12, %p10373_p11 }
 0x895   : > { %p10376_p0 = pnand %p10375_p13, %p10369_p8 }
 0x897   : > { %10379 = shalt.err (!%p10376_p0)
}
 0x898   : > { %10126 = dma.vmem_to_hbm [thread:$0]  (%p10511_p5), %s13713_s22, 128, %s13711_s17, %s7263_s21  }
 0x899 PF: > { %p10132_p1 = scmp.ge.s32.totalorder %s10414_s12, 2  ;;  %s7288_s14 = sand.u32 1, %s10402_s30  }
 0x89a   : > { %s7289_s13 = scalar_lea.sflag [#allocation4], %s7288_s14 }
 0x89b   : > { %p10129_p2 = pnand %p10132_p1, %p10515_p6 }
 0x89d   : > { %10397 = dma.done.wait (!%p10129_p2), %s7289_s13, 128  }
 0x89e   : > { %10399 = vsyncadd (!%p10129_p2), %s7289_s13, 4294967168  ;;  %p19_p3 = scmp.ge.s32.totalorder %s10498_s15, 4   ;;  %s14021_s30 = smov %s10406_s10 }
 0x89f   : > { %s14022_s10 = smov %s10410_s11  ;;  %s14023_s11 = smov %s10509_s18 }
 0x8a0   : > { %s14024_s12 = smov %s10498_s15  ;;  %21 = sbr.rel (!%p19_p3) target bundleno = 3 (0x3), region = 95 }
 0x8a7   :  { %7294 = vsyncpa [#allocation4], 1 }
 0x8a8   :  { %7296 = vsyncpa [#allocation4 + $0x1], 1 }

</bundles_post_ra>
